<compile_context>
chip_gen: v5e
topology: v5e:2x2
jax: 0.10.0
libtpu: 0.0.40
codegen_flags: <defaults>
</compile_context>

<pallas_src>
import functools

import jax
import jax.numpy as jnp
from jax.experimental import pallas as pl
from jax.experimental.pallas import tpu as pltpu


def _round_up(x, m):
    return ((x + m - 1) // m) * m


# ----------------------- conv 4x4 / stride 2 / pad 1 kernel ------------------

def _conv4x4_s2_kernel(xs_ref, w_ref, o_ref, *, wh, m_valid, relu):
    """One batch sample of Conv2d(k=4, s=2, p=1, bias=False) (+ReLU), taps fused.

    xs_ref: (1, 2, 2, Cin, m_pad)   parity-split, flattened, zero-padded input (bf16)
    w_ref:  (16, Cout, Cin)         per-tap weight matrices, t = ky*4 + kx (bf16)
    o_ref:  (1, Cout, m_valid)      out[co, hh*wh + ww] (bf16), junk row/col trimmed
                                    by the wrapper.
    """
    acc = None
    for ky in range(4):
        for kx in range(4):
            # parity class of this tap (which stride-2 phase of the padded input)
            x_par = xs_ref[0, ky % 2, kx % 2, :, :]            # (Cin, m_pad)
            # static element offset of this tap inside the flat (Hh, Wh) grid
            off = (ky // 2) * wh + (kx // 2)                    # 0, 1, wh, wh+1
            x_win = x_par[:, off:off + m_valid]                 # (Cin, m_valid)
            w_tap = w_ref[ky * 4 + kx, :, :]                    # (Cout, Cin)
            part = jnp.dot(w_tap, x_win,
                           preferred_element_type=jnp.float32)  # (Cout, m_valid) f32
            acc = part if acc is None else acc + part
    if relu:
        acc = jnp.maximum(acc, 0.0)
    o_ref[0, :, :] = acc.astype(o_ref.dtype)


def conv4x4_s2_p1(x_nchw, w_oihw, relu=True):
    """Conv2d(4, stride=2, pad=1, bias=False) + ReLU via a fused-im2col Pallas kernel."""
    B, Cin, H, W = x_nchw.shape
    Cout = w_oihw.shape[0]
    assert H % 2 == 0 and W % 2 == 0
    Ho, Wo = H // 2, W // 2
    Hh, Wh = Ho + 1, Wo + 1                     # half-sizes of the padded input
    m_spatial = Hh * Wh                         # flat (expanded) spatial grid per sample
    m_valid = _round_up(m_spatial, 128)         # lane-dense output width
    m_pad = m_valid + 128                       # guard so every tap window is in bounds

    # ---- 1x-data layout prep (replaces the 16x im2col expansion) ----
    # zero-pad spatially, then split into the 2x2 stride phases (space-to-depth)
    xp = jnp.pad(x_nchw, ((0, 0), (0, 0), (1, 1), (1, 1)))        # (B, Cin, 2Hh, 2Wh)
    xs = xp.reshape(B, Cin, Hh, 2, Wh, 2)
    xs = jnp.transpose(xs, (0, 3, 5, 1, 2, 4))                    # (B, 2, 2, Cin, Hh, Wh)
    xs = xs.reshape(B, 2, 2, Cin, m_spatial)
    xs = jnp.pad(xs, ((0, 0), (0, 0), (0, 0), (0, 0), (0, m_pad - m_spatial)))
    xs = xs.astype(jnp.bfloat16)

    # per-tap weight matrices: (Cout, Cin, 4, 4) -> (ky, kx, co, ci) -> (16, Cout, Cin)
    wt = jnp.transpose(w_oihw, (2, 3, 0, 1)).reshape(16, Cout, Cin).astype(jnp.bfloat16)

    # NOTE: weights are tiny here (<=64 KB); if nf/batch are scaled up, cap
    # vmem_limit_bytes / pin the resident weight block before growing further.
    out = pl.pallas_call(
        functools.partial(_conv4x4_s2_kernel, wh=Wh, m_valid=m_valid, relu=relu),
        out_shape=jax.ShapeDtypeStruct((B, Cout, m_valid), jnp.bfloat16),
        grid=(B,),
        in_specs=[
            pl.BlockSpec((1, 2, 2, Cin, m_pad), lambda b: (b, 0, 0, 0, 0)),
            pl.BlockSpec((16, Cout, Cin), lambda b: (0, 0, 0)),
        ],
        out_specs=pl.BlockSpec((1, Cout, m_valid), lambda b: (b, 0, 0)),
        compiler_params=pltpu.CompilerParams(dimension_semantics=("parallel",)),
    )(xs, wt)

    # drop the junk row/column coming from computing over the (Ho+1, Wo+1) grid
    out = out[:, :, :m_spatial].reshape(B, Cout, Hh, Wh)[:, :, :Ho, :Wo]
    return out                                                    # (B, Cout, Ho, Wo) bf16


# ------------------------------- classifier ----------------------------------

def _linear_rowsum_kernel(f_ref, w_ref, b_ref, o_ref):
    """out[b, o] = sum_k f[b, k] * w[o, k] + bias[o]   (VPU multiply + lane reduce)."""
    f = f_ref[...].astype(jnp.float32)                  # (B, K)
    w = w_ref[...].astype(jnp.float32)                  # (O, K)
    num_out = w_ref.shape[0]
    for o in range(num_out):                            # static, tiny (num_outputs)
        col = jnp.sum(f * w[o:o + 1, :], axis=-1, keepdims=True)   # (B, 1)
        o_ref[:, o:o + 1] = col + b_ref[:, o:o + 1]


def linear(feats, w, bias):
    """feats (B, K) @ w.T (K, O) + bias, as a single tiny Pallas row-reduction."""
    B, K = feats.shape
    O = w.shape[0]
    return pl.pallas_call(
        _linear_rowsum_kernel,
        out_shape=jax.ShapeDtypeStruct((B, O), jnp.float32),
        grid=(1,),
        in_specs=[
            pl.BlockSpec((B, K), lambda i: (0, 0)),
            pl.BlockSpec((O, K), lambda i: (0, 0)),
            pl.BlockSpec((1, O), lambda i: (0, 0)),
        ],
        out_specs=pl.BlockSpec((B, O), lambda i: (0, 0)),
    )(feats.astype(jnp.bfloat16), w.astype(jnp.bfloat16),
      bias.reshape(1, O).astype(jnp.float32))


# ------------------------------- model ----------------------------------------

def init_params(key, input_dim=64, nf=8, num_outputs=1):
    channels = 3
    layer_depth = [channels, nf, nf * 2, nf * 4, nf * 8]
    keys = jax.random.split(key, len(layer_depth))
    conv_ws = []
    for i in range(len(layer_depth) - 1):
        cin, cout = layer_depth[i], layer_depth[i + 1]
        bound = 1.0 / (cin * 16) ** 0.5                  # PyTorch-style fan_in bound
        conv_ws.append(jax.random.uniform(keys[i], (cout, cin, 4, 4),
                                          jnp.float32, -bound, bound))
    fc_in = layer_depth[-1] * 4 ** 2
    bound = 1.0 / fc_in ** 0.5
    fc_w = jax.random.uniform(keys[-1], (num_outputs, fc_in), jnp.float32, -bound, bound)
    fc_b = jax.random.uniform(jax.random.fold_in(keys[-1], 1), (num_outputs,),
                              jnp.float32, -bound, bound)
    return {"conv_ws": conv_ws, "fc_w": fc_w, "fc_b": fc_b}


def dc_discriminator_forward(params, img, *, input_dim, num_outputs):
    """Matches DCDiscriminator.forward with normalize='none' (conv(bias=False)+ReLU x4, Linear)."""
    b = img.shape[0]
    x = img.reshape(b, 3, input_dim, input_dim)          # NCHW, like PyTorch
    for w in params["conv_ws"]:
        x = conv4x4_s2_p1(x, w, relu=True)               # stays NCHW
    feats = x.reshape(b, -1)                             # channel-major flatten == PyTorch
    out = linear(feats, params["fc_w"], params["fc_b"])
    if num_outputs == 1:
        return out.reshape(b)                            # output.view(len(img))
    return out.reshape(b, num_outputs)


def reference_forward(params, img, input_dim, num_outputs):
    """Pure-JAX reference (lax.conv) mirroring the kernel's bf16-input / f32-accum precision."""
    b = img.shape[0]
    x = img.reshape(b, 3, input_dim, input_dim).astype(jnp.float32)
    for w in params["conv_ws"]:
        x = x.astype(jnp.bfloat16).astype(jnp.float32)
        wq = w.astype(jnp.bfloat16).astype(jnp.float32)
        x = jax.lax.conv_general_dilated(
            x, wq, window_strides=(2, 2), padding=((1, 1), (1, 1)),
            dimension_numbers=("NCHW", "OIHW", "NCHW"))
        x = jnp.maximum(x, 0.0)
    feats = x.astype(jnp.bfloat16).astype(jnp.float32).reshape(b, -1)
    wq = params["fc_w"].astype(jnp.bfloat16).astype(jnp.float32)
    out = feats @ wq.T + params["fc_b"]
    return out.reshape(b) if num_outputs == 1 else out


# ------------------------------- main ------------------------------------------

if __name__ == "__main__":
    key = jax.random.PRNGKey(0)
    pkey, xkey = jax.random.split(key)

    # classifier hard-codes a 4x4 final feature map -> input_dim must be 64;
    # keep things small via nf=8 and batch=2.
    input_dim, nf, num_outputs, batch = 64, 8, 1, 2

    params = init_params(pkey, input_dim=input_dim, nf=nf, num_outputs=num_outputs)
    img = jax.random.normal(xkey, (batch, 3, input_dim, input_dim), jnp.float32)

    fwd = jax.jit(functools.partial(dc_discriminator_forward,
                                    input_dim=input_dim, num_outputs=num_outputs))
    out = jax.block_until_ready(fwd(params, img))
    assert out.shape == (batch,), out.shape

    ref = jax.block_until_ready(reference_forward(params, img, input_dim, num_outputs))
    max_err = float(jnp.max(jnp.abs(out - ref)))
    if max_err > 1e-2:
        raise AssertionError(f"Pallas output mismatch vs reference: max abs err {max_err}")

    print("KERNEL_OK")
</pallas_src>

<mosaic_0001>
module attributes {stable_mosaic.version = 11 : i64} {
  func.func @_conv4x4_s2_kernel(%arg0: i32, %arg1: memref<1x2x2x3x1280xbf16, #tpu.memory_space<vmem>>, %arg2: memref<16x8x3xbf16, #tpu.memory_space<vmem>>, %arg3: memref<1x8x1152xbf16, #tpu.memory_space<vmem>>) attributes {dimension_semantics = [#tpu.dimension_semantics<parallel>], iteration_bounds = array<i64: 2>, scalar_prefetch = 0 : i64, scratch_operands = 0 : i64, tpu.core_type = #tpu.core_type<tc>, window_params = [{transform_indices = @transform_0, window_bounds = array<i64: 1, 2, 2, 3, 1280>}, {pipeline_mode = #tpu.pipeline_mode<synchronous>, transform_indices = @transform_1, window_bounds = array<i64: 16, 8, 3>}, {transform_indices = @transform_2, window_bounds = array<i64: 1, 8, 1152>}]} {
    %c0 = arith.constant 0 : index
    %c0_0 = arith.constant 0 : index
    %c0_1 = arith.constant 0 : index
    %c0_2 = arith.constant 0 : index
    %c0_3 = arith.constant 0 : index
    %0 = vector.load %arg1[%c0, %c0_0, %c0_1, %c0_2, %c0_3] : memref<1x2x2x3x1280xbf16, #tpu.memory_space<vmem>>, vector<1x1x1x3x1280xbf16>
    %1 = vector.shape_cast %0 : vector<1x1x1x3x1280xbf16> to vector<3x1280xbf16>
    %2 = vector.extract_strided_slice %1 {offsets = [0, 0], sizes = [3, 1152], strides = [1, 1]} : vector<3x1280xbf16> to vector<3x1152xbf16>
    %c0_4 = arith.constant 0 : index
    %c0_5 = arith.constant 0 : index
    %c0_6 = arith.constant 0 : index
    %3 = vector.load %arg2[%c0_4, %c0_5, %c0_6] : memref<16x8x3xbf16, #tpu.memory_space<vmem>>, vector<1x8x3xbf16>
    %4 = vector.shape_cast %3 : vector<1x8x3xbf16> to vector<8x3xbf16>
    %cst = arith.constant dense<0.000000e+00> : vector<8x1152xf32>
    %5 = tpu.matmul %4, %2, %cst {dimension_numbers = #tpu.dot_dimension_numbers<[1], [0], [0], [1], [0, 0, 1, 1], [], []>} : vector<8x3xbf16>, vector<3x1152xbf16>, vector<8x1152xf32> -> vector<8x1152xf32>
    %c0_7 = arith.constant 0 : index
    %c0_8 = arith.constant 0 : index
    %c1 = arith.constant 1 : index
    %c0_9 = arith.constant 0 : index
    %c0_10 = arith.constant 0 : index
    %6 = vector.load %arg1[%c0_7, %c0_8, %c1, %c0_9, %c0_10] : memref<1x2x2x3x1280xbf16, #tpu.memory_space<vmem>>, vector<1x1x1x3x1280xbf16>
    %7 = vector.shape_cast %6 : vector<1x1x1x3x1280xbf16> to vector<3x1280xbf16>
    %8 = vector.extract_strided_slice %7 {offsets = [0, 0], sizes = [3, 1152], strides = [1, 1]} : vector<3x1280xbf16> to vector<3x1152xbf16>
    %c1_11 = arith.constant 1 : index
    %c0_12 = arith.constant 0 : index
    %c0_13 = arith.constant 0 : index
    %9 = vector.load %arg2[%c1_11, %c0_12, %c0_13] : memref<16x8x3xbf16, #tpu.memory_space<vmem>>, vector<1x8x3xbf16>
    %10 = vector.shape_cast %9 : vector<1x8x3xbf16> to vector<8x3xbf16>
    %cst_14 = arith.constant dense<0.000000e+00> : vector<8x1152xf32>
    %11 = tpu.matmul %10, %8, %cst_14 {dimension_numbers = #tpu.dot_dimension_numbers<[1], [0], [0], [1], [0, 0, 1, 1], [], []>} : vector<8x3xbf16>, vector<3x1152xbf16>, vector<8x1152xf32> -> vector<8x1152xf32>
    %12 = arith.addf %5, %11 : vector<8x1152xf32>
    %c0_15 = arith.constant 0 : index
    %c0_16 = arith.constant 0 : index
    %c0_17 = arith.constant 0 : index
    %c0_18 = arith.constant 0 : index
    %c0_19 = arith.constant 0 : index
    %13 = vector.load %arg1[%c0_15, %c0_16, %c0_17, %c0_18, %c0_19] : memref<1x2x2x3x1280xbf16, #tpu.memory_space<vmem>>, vector<1x1x1x3x1280xbf16>
    %14 = vector.shape_cast %13 : vector<1x1x1x3x1280xbf16> to vector<3x1280xbf16>
    %15 = vector.extract_strided_slice %14 {offsets = [0, 1], sizes = [3, 1152], strides = [1, 1]} : vector<3x1280xbf16> to vector<3x1152xbf16>
    %c2 = arith.constant 2 : index
    %c0_20 = arith.constant 0 : index
    %c0_21 = arith.constant 0 : index
    %16 = vector.load %arg2[%c2, %c0_20, %c0_21] : memref<16x8x3xbf16, #tpu.memory_space<vmem>>, vector<1x8x3xbf16>
    %17 = vector.shape_cast %16 : vector<1x8x3xbf16> to vector<8x3xbf16>
    %cst_22 = arith.constant dense<0.000000e+00> : vector<8x1152xf32>
    %18 = tpu.matmul %17, %15, %cst_22 {dimension_numbers = #tpu.dot_dimension_numbers<[1], [0], [0], [1], [0, 0, 1, 1], [], []>} : vector<8x3xbf16>, vector<3x1152xbf16>, vector<8x1152xf32> -> vector<8x1152xf32>
    %19 = arith.addf %12, %18 : vector<8x1152xf32>
    %c0_23 = arith.constant 0 : index
    %c0_24 = arith.constant 0 : index
    %c1_25 = arith.constant 1 : index
    %c0_26 = arith.constant 0 : index
    %c0_27 = arith.constant 0 : index
    %20 = vector.load %arg1[%c0_23, %c0_24, %c1_25, %c0_26, %c0_27] : memref<1x2x2x3x1280xbf16, #tpu.memory_space<vmem>>, vector<1x1x1x3x1280xbf16>
    %21 = vector.shape_cast %20 : vector<1x1x1x3x1280xbf16> to vector<3x1280xbf16>
    %22 = vector.extract_strided_slice %21 {offsets = [0, 1], sizes = [3, 1152], strides = [1, 1]} : vector<3x1280xbf16> to vector<3x1152xbf16>
    %c3 = arith.constant 3 : index
    %c0_28 = arith.constant 0 : index
    %c0_29 = arith.constant 0 : index
    %23 = vector.load %arg2[%c3, %c0_28, %c0_29] : memref<16x8x3xbf16, #tpu.memory_space<vmem>>, vector<1x8x3xbf16>
    %24 = vector.shape_cast %23 : vector<1x8x3xbf16> to vector<8x3xbf16>
    %cst_30 = arith.constant dense<0.000000e+00> : vector<8x1152xf32>
    %25 = tpu.matmul %24, %22, %cst_30 {dimension_numbers = #tpu.dot_dimension_numbers<[1], [0], [0], [1], [0, 0, 1, 1], [], []>} : vector<8x3xbf16>, vector<3x1152xbf16>, vector<8x1152xf32> -> vector<8x1152xf32>
    %26 = arith.addf %19, %25 : vector<8x1152xf32>
    %c0_31 = arith.constant 0 : index
    %c1_32 = arith.constant 1 : index
    %c0_33 = arith.constant 0 : index
    %c0_34 = arith.constant 0 : index
    %c0_35 = arith.constant 0 : index
    %27 = vector.load %arg1[%c0_31, %c1_32, %c0_33, %c0_34, %c0_35] : memref<1x2x2x3x1280xbf16, #tpu.memory_space<vmem>>, vector<1x1x1x3x1280xbf16>
    %28 = vector.shape_cast %27 : vector<1x1x1x3x1280xbf16> to vector<3x1280xbf16>
    %29 = vector.extract_strided_slice %28 {offsets = [0, 0], sizes = [3, 1152], strides = [1, 1]} : vector<3x1280xbf16> to vector<3x1152xbf16>
    %c4 = arith.constant 4 : index
    %c0_36 = arith.constant 0 : index
    %c0_37 = arith.constant 0 : index
    %30 = vector.load %arg2[%c4, %c0_36, %c0_37] : memref<16x8x3xbf16, #tpu.memory_space<vmem>>, vector<1x8x3xbf16>
    %31 = vector.shape_cast %30 : vector<1x8x3xbf16> to vector<8x3xbf16>
    %cst_38 = arith.constant dense<0.000000e+00> : vector<8x1152xf32>
    %32 = tpu.matmul %31, %29, %cst_38 {dimension_numbers = #tpu.dot_dimension_numbers<[1], [0], [0], [1], [0, 0, 1, 1], [], []>} : vector<8x3xbf16>, vector<3x1152xbf16>, vector<8x1152xf32> -> vector<8x1152xf32>
    %33 = arith.addf %26, %32 : vector<8x1152xf32>
    %c0_39 = arith.constant 0 : index
    %c1_40 = arith.constant 1 : index
    %c1_41 = arith.constant 1 : index
    %c0_42 = arith.constant 0 : index
    %c0_43 = arith.constant 0 : index
    %34 = vector.load %arg1[%c0_39, %c1_40, %c1_41, %c0_42, %c0_43] : memref<1x2x2x3x1280xbf16, #tpu.memory_space<vmem>>, vector<1x1x1x3x1280xbf16>
    %35 = vector.shape_cast %34 : vector<1x1x1x3x1280xbf16> to vector<3x1280xbf16>
    %36 = vector.extract_strided_slice %35 {offsets = [0, 0], sizes = [3, 1152], strides = [1, 1]} : vector<3x1280xbf16> to vector<3x1152xbf16>
    %c5 = arith.constant 5 : index
    %c0_44 = arith.constant 0 : index
    %c0_45 = arith.constant 0 : index
    %37 = vector.load %arg2[%c5, %c0_44, %c0_45] : memref<16x8x3xbf16, #tpu.memory_space<vmem>>, vector<1x8x3xbf16>
    %38 = vector.shape_cast %37 : vector<1x8x3xbf16> to vector<8x3xbf16>
    %cst_46 = arith.constant dense<0.000000e+00> : vector<8x1152xf32>
    %39 = tpu.matmul %38, %36, %cst_46 {dimension_numbers = #tpu.dot_dimension_numbers<[1], [0], [0], [1], [0, 0, 1, 1], [], []>} : vector<8x3xbf16>, vector<3x1152xbf16>, vector<8x1152xf32> -> vector<8x1152xf32>
    %40 = arith.addf %33, %39 : vector<8x1152xf32>
    %c0_47 = arith.constant 0 : index
    %c1_48 = arith.constant 1 : index
    %c0_49 = arith.constant 0 : index
    %c0_50 = arith.constant 0 : index
    %c0_51 = arith.constant 0 : index
    %41 = vector.load %arg1[%c0_47, %c1_48, %c0_49, %c0_50, %c0_51] : memref<1x2x2x3x1280xbf16, #tpu.memory_space<vmem>>, vector<1x1x1x3x1280xbf16>
    %42 = vector.shape_cast %41 : vector<1x1x1x3x1280xbf16> to vector<3x1280xbf16>
    %43 = vector.extract_strided_slice %42 {offsets = [0, 1], sizes = [3, 1152], strides = [1, 1]} : vector<3x1280xbf16> to vector<3x1152xbf16>
    %c6 = arith.constant 6 : index
    %c0_52 = arith.constant 0 : index
    %c0_53 = arith.constant 0 : index
    %44 = vector.load %arg2[%c6, %c0_52, %c0_53] : memref<16x8x3xbf16, #tpu.memory_space<vmem>>, vector<1x8x3xbf16>
    %45 = vector.shape_cast %44 : vector<1x8x3xbf16> to vector<8x3xbf16>
    %cst_54 = arith.constant dense<0.000000e+00> : vector<8x1152xf32>
    %46 = tpu.matmul %45, %43, %cst_54 {dimension_numbers = #tpu.dot_dimension_numbers<[1], [0], [0], [1], [0, 0, 1, 1], [], []>} : vector<8x3xbf16>, vector<3x1152xbf16>, vector<8x1152xf32> -> vector<8x1152xf32>
    %47 = arith.addf %40, %46 : vector<8x1152xf32>
    %c0_55 = arith.constant 0 : index
    %c1_56 = arith.constant 1 : index
    %c1_57 = arith.constant 1 : index
    %c0_58 = arith.constant 0 : index
    %c0_59 = arith.constant 0 : index
    %48 = vector.load %arg1[%c0_55, %c1_56, %c1_57, %c0_58, %c0_59] : memref<1x2x2x3x1280xbf16, #tpu.memory_space<vmem>>, vector<1x1x1x3x1280xbf16>
    %49 = vector.shape_cast %48 : vector<1x1x1x3x1280xbf16> to vector<3x1280xbf16>
    %50 = vector.extract_strided_slice %49 {offsets = [0, 1], sizes = [3, 1152], strides = [1, 1]} : vector<3x1280xbf16> to vector<3x1152xbf16>
    %c7 = arith.constant 7 : index
    %c0_60 = arith.constant 0 : index
    %c0_61 = arith.constant 0 : index
    %51 = vector.load %arg2[%c7, %c0_60, %c0_61] : memref<16x8x3xbf16, #tpu.memory_space<vmem>>, vector<1x8x3xbf16>
    %52 = vector.shape_cast %51 : vector<1x8x3xbf16> to vector<8x3xbf16>
    %cst_62 = arith.constant dense<0.000000e+00> : vector<8x1152xf32>
    %53 = tpu.matmul %52, %50, %cst_62 {dimension_numbers = #tpu.dot_dimension_numbers<[1], [0], [0], [1], [0, 0, 1, 1], [], []>} : vector<8x3xbf16>, vector<3x1152xbf16>, vector<8x1152xf32> -> vector<8x1152xf32>
    %54 = arith.addf %47, %53 : vector<8x1152xf32>
    %c0_63 = arith.constant 0 : index
    %c0_64 = arith.constant 0 : index
    %c0_65 = arith.constant 0 : index
    %c0_66 = arith.constant 0 : index
    %c0_67 = arith.constant 0 : index
    %55 = vector.load %arg1[%c0_63, %c0_64, %c0_65, %c0_66, %c0_67] : memref<1x2x2x3x1280xbf16, #tpu.memory_space<vmem>>, vector<1x1x1x3x1280xbf16>
    %56 = vector.shape_cast %55 : vector<1x1x1x3x1280xbf16> to vector<3x1280xbf16>
    %57 = vector.extract_strided_slice %56 {offsets = [0, 33], sizes = [3, 1152], strides = [1, 1]} : vector<3x1280xbf16> to vector<3x1152xbf16>
    %c8 = arith.constant 8 : index
    %c0_68 = arith.constant 0 : index
    %c0_69 = arith.constant 0 : index
    %58 = vector.load %arg2[%c8, %c0_68, %c0_69] : memref<16x8x3xbf16, #tpu.memory_space<vmem>>, vector<1x8x3xbf16>
    %59 = vector.shape_cast %58 : vector<1x8x3xbf16> to vector<8x3xbf16>
    %cst_70 = arith.constant dense<0.000000e+00> : vector<8x1152xf32>
    %60 = tpu.matmul %59, %57, %cst_70 {dimension_numbers = #tpu.dot_dimension_numbers<[1], [0], [0], [1], [0, 0, 1, 1], [], []>} : vector<8x3xbf16>, vector<3x1152xbf16>, vector<8x1152xf32> -> vector<8x1152xf32>
    %61 = arith.addf %54, %60 : vector<8x1152xf32>
    %c0_71 = arith.constant 0 : index
    %c0_72 = arith.constant 0 : index
    %c1_73 = arith.constant 1 : index
    %c0_74 = arith.constant 0 : index
    %c0_75 = arith.constant 0 : index
    %62 = vector.load %arg1[%c0_71, %c0_72, %c1_73, %c0_74, %c0_75] : memref<1x2x2x3x1280xbf16, #tpu.memory_space<vmem>>, vector<1x1x1x3x1280xbf16>
    %63 = vector.shape_cast %62 : vector<1x1x1x3x1280xbf16> to vector<3x1280xbf16>
    %64 = vector.extract_strided_slice %63 {offsets = [0, 33], sizes = [3, 1152], strides = [1, 1]} : vector<3x1280xbf16> to vector<3x1152xbf16>
    %c9 = arith.constant 9 : index
    %c0_76 = arith.constant 0 : index
    %c0_77 = arith.constant 0 : index
    %65 = vector.load %arg2[%c9, %c0_76, %c0_77] : memref<16x8x3xbf16, #tpu.memory_space<vmem>>, vector<1x8x3xbf16>
    %66 = vector.shape_cast %65 : vector<1x8x3xbf16> to vector<8x3xbf16>
    %cst_78 = arith.constant dense<0.000000e+00> : vector<8x1152xf32>
    %67 = tpu.matmul %66, %64, %cst_78 {dimension_numbers = #tpu.dot_dimension_numbers<[1], [0], [0], [1], [0, 0, 1, 1], [], []>} : vector<8x3xbf16>, vector<3x1152xbf16>, vector<8x1152xf32> -> vector<8x1152xf32>
    %68 = arith.addf %61, %67 : vector<8x1152xf32>
    %c0_79 = arith.constant 0 : index
    %c0_80 = arith.constant 0 : index
    %c0_81 = arith.constant 0 : index
    %c0_82 = arith.constant 0 : index
    %c0_83 = arith.constant 0 : index
    %69 = vector.load %arg1[%c0_79, %c0_80, %c0_81, %c0_82, %c0_83] : memref<1x2x2x3x1280xbf16, #tpu.memory_space<vmem>>, vector<1x1x1x3x1280xbf16>
    %70 = vector.shape_cast %69 : vector<1x1x1x3x1280xbf16> to vector<3x1280xbf16>
    %71 = vector.extract_strided_slice %70 {offsets = [0, 34], sizes = [3, 1152], strides = [1, 1]} : vector<3x1280xbf16> to vector<3x1152xbf16>
    %c10 = arith.constant 10 : index
    %c0_84 = arith.constant 0 : index
    %c0_85 = arith.constant 0 : index
    %72 = vector.load %arg2[%c10, %c0_84, %c0_85] : memref<16x8x3xbf16, #tpu.memory_space<vmem>>, vector<1x8x3xbf16>
    %73 = vector.shape_cast %72 : vector<1x8x3xbf16> to vector<8x3xbf16>
    %cst_86 = arith.constant dense<0.000000e+00> : vector<8x1152xf32>
    %74 = tpu.matmul %73, %71, %cst_86 {dimension_numbers = #tpu.dot_dimension_numbers<[1], [0], [0], [1], [0, 0, 1, 1], [], []>} : vector<8x3xbf16>, vector<3x1152xbf16>, vector<8x1152xf32> -> vector<8x1152xf32>
    %75 = arith.addf %68, %74 : vector<8x1152xf32>
    %c0_87 = arith.constant 0 : index
    %c0_88 = arith.constant 0 : index
    %c1_89 = arith.constant 1 : index
    %c0_90 = arith.constant 0 : index
    %c0_91 = arith.constant 0 : index
    %76 = vector.load %arg1[%c0_87, %c0_88, %c1_89, %c0_90, %c0_91] : memref<1x2x2x3x1280xbf16, #tpu.memory_space<vmem>>, vector<1x1x1x3x1280xbf16>
    %77 = vector.shape_cast %76 : vector<1x1x1x3x1280xbf16> to vector<3x1280xbf16>
    %78 = vector.extract_strided_slice %77 {offsets = [0, 34], sizes = [3, 1152], strides = [1, 1]} : vector<3x1280xbf16> to vector<3x1152xbf16>
    %c11 = arith.constant 11 : index
    %c0_92 = arith.constant 0 : index
    %c0_93 = arith.constant 0 : index
    %79 = vector.load %arg2[%c11, %c0_92, %c0_93] : memref<16x8x3xbf16, #tpu.memory_space<vmem>>, vector<1x8x3xbf16>
    %80 = vector.shape_cast %79 : vector<1x8x3xbf16> to vector<8x3xbf16>
    %cst_94 = arith.constant dense<0.000000e+00> : vector<8x1152xf32>
    %81 = tpu.matmul %80, %78, %cst_94 {dimension_numbers = #tpu.dot_dimension_numbers<[1], [0], [0], [1], [0, 0, 1, 1], [], []>} : vector<8x3xbf16>, vector<3x1152xbf16>, vector<8x1152xf32> -> vector<8x1152xf32>
    %82 = arith.addf %75, %81 : vector<8x1152xf32>
    %c0_95 = arith.constant 0 : index
    %c1_96 = arith.constant 1 : index
    %c0_97 = arith.constant 0 : index
    %c0_98 = arith.constant 0 : index
    %c0_99 = arith.constant 0 : index
    %83 = vector.load %arg1[%c0_95, %c1_96, %c0_97, %c0_98, %c0_99] : memref<1x2x2x3x1280xbf16, #tpu.memory_space<vmem>>, vector<1x1x1x3x1280xbf16>
    %84 = vector.shape_cast %83 : vector<1x1x1x3x1280xbf16> to vector<3x1280xbf16>
    %85 = vector.extract_strided_slice %84 {offsets = [0, 33], sizes = [3, 1152], strides = [1, 1]} : vector<3x1280xbf16> to vector<3x1152xbf16>
    %c12 = arith.constant 12 : index
    %c0_100 = arith.constant 0 : index
    %c0_101 = arith.constant 0 : index
    %86 = vector.load %arg2[%c12, %c0_100, %c0_101] : memref<16x8x3xbf16, #tpu.memory_space<vmem>>, vector<1x8x3xbf16>
    %87 = vector.shape_cast %86 : vector<1x8x3xbf16> to vector<8x3xbf16>
    %cst_102 = arith.constant dense<0.000000e+00> : vector<8x1152xf32>
    %88 = tpu.matmul %87, %85, %cst_102 {dimension_numbers = #tpu.dot_dimension_numbers<[1], [0], [0], [1], [0, 0, 1, 1], [], []>} : vector<8x3xbf16>, vector<3x1152xbf16>, vector<8x1152xf32> -> vector<8x1152xf32>
    %89 = arith.addf %82, %88 : vector<8x1152xf32>
    %c0_103 = arith.constant 0 : index
    %c1_104 = arith.constant 1 : index
    %c1_105 = arith.constant 1 : index
    %c0_106 = arith.constant 0 : index
    %c0_107 = arith.constant 0 : index
    %90 = vector.load %arg1[%c0_103, %c1_104, %c1_105, %c0_106, %c0_107] : memref<1x2x2x3x1280xbf16, #tpu.memory_space<vmem>>, vector<1x1x1x3x1280xbf16>
    %91 = vector.shape_cast %90 : vector<1x1x1x3x1280xbf16> to vector<3x1280xbf16>
    %92 = vector.extract_strided_slice %91 {offsets = [0, 33], sizes = [3, 1152], strides = [1, 1]} : vector<3x1280xbf16> to vector<3x1152xbf16>
    %c13 = arith.constant 13 : index
    %c0_108 = arith.constant 0 : index
    %c0_109 = arith.constant 0 : index
    %93 = vector.load %arg2[%c13, %c0_108, %c0_109] : memref<16x8x3xbf16, #tpu.memory_space<vmem>>, vector<1x8x3xbf16>
    %94 = vector.shape_cast %93 : vector<1x8x3xbf16> to vector<8x3xbf16>
    %cst_110 = arith.constant dense<0.000000e+00> : vector<8x1152xf32>
    %95 = tpu.matmul %94, %92, %cst_110 {dimension_numbers = #tpu.dot_dimension_numbers<[1], [0], [0], [1], [0, 0, 1, 1], [], []>} : vector<8x3xbf16>, vector<3x1152xbf16>, vector<8x1152xf32> -> vector<8x1152xf32>
    %96 = arith.addf %89, %95 : vector<8x1152xf32>
    %c0_111 = arith.constant 0 : index
    %c1_112 = arith.constant 1 : index
    %c0_113 = arith.constant 0 : index
    %c0_114 = arith.constant 0 : index
    %c0_115 = arith.constant 0 : index
    %97 = vector.load %arg1[%c0_111, %c1_112, %c0_113, %c0_114, %c0_115] : memref<1x2x2x3x1280xbf16, #tpu.memory_space<vmem>>, vector<1x1x1x3x1280xbf16>
    %98 = vector.shape_cast %97 : vector<1x1x1x3x1280xbf16> to vector<3x1280xbf16>
    %99 = vector.extract_strided_slice %98 {offsets = [0, 34], sizes = [3, 1152], strides = [1, 1]} : vector<3x1280xbf16> to vector<3x1152xbf16>
    %c14 = arith.constant 14 : index
    %c0_116 = arith.constant 0 : index
    %c0_117 = arith.constant 0 : index
    %100 = vector.load %arg2[%c14, %c0_116, %c0_117] : memref<16x8x3xbf16, #tpu.memory_space<vmem>>, vector<1x8x3xbf16>
    %101 = vector.shape_cast %100 : vector<1x8x3xbf16> to vector<8x3xbf16>
    %cst_118 = arith.constant dense<0.000000e+00> : vector<8x1152xf32>
    %102 = tpu.matmul %101, %99, %cst_118 {dimension_numbers = #tpu.dot_dimension_numbers<[1], [0], [0], [1], [0, 0, 1, 1], [], []>} : vector<8x3xbf16>, vector<3x1152xbf16>, vector<8x1152xf32> -> vector<8x1152xf32>
    %103 = arith.addf %96, %102 : vector<8x1152xf32>
    %c0_119 = arith.constant 0 : index
    %c1_120 = arith.constant 1 : index
    %c1_121 = arith.constant 1 : index
    %c0_122 = arith.constant 0 : index
    %c0_123 = arith.constant 0 : index
    %104 = vector.load %arg1[%c0_119, %c1_120, %c1_121, %c0_122, %c0_123] : memref<1x2x2x3x1280xbf16, #tpu.memory_space<vmem>>, vector<1x1x1x3x1280xbf16>
    %105 = vector.shape_cast %104 : vector<1x1x1x3x1280xbf16> to vector<3x1280xbf16>
    %106 = vector.extract_strided_slice %105 {offsets = [0, 34], sizes = [3, 1152], strides = [1, 1]} : vector<3x1280xbf16> to vector<3x1152xbf16>
    %c15 = arith.constant 15 : index
    %c0_124 = arith.constant 0 : index
    %c0_125 = arith.constant 0 : index
    %107 = vector.load %arg2[%c15, %c0_124, %c0_125] : memref<16x8x3xbf16, #tpu.memory_space<vmem>>, vector<1x8x3xbf16>
    %108 = vector.shape_cast %107 : vector<1x8x3xbf16> to vector<8x3xbf16>
    %cst_126 = arith.constant dense<0.000000e+00> : vector<8x1152xf32>
    %109 = tpu.matmul %108, %106, %cst_126 {dimension_numbers = #tpu.dot_dimension_numbers<[1], [0], [0], [1], [0, 0, 1, 1], [], []>} : vector<8x3xbf16>, vector<3x1152xbf16>, vector<8x1152xf32> -> vector<8x1152xf32>
    %110 = arith.addf %103, %109 : vector<8x1152xf32>
    %cst_127 = arith.constant 0.000000e+00 : f32
    %111 = vector.broadcast %cst_127 : f32 to vector<8x1152xf32>
    %112 = arith.maximumf %110, %111 : vector<8x1152xf32>
    %113 = arith.truncf %112 : vector<8x1152xf32> to vector<8x1152xbf16>
    %c0_128 = arith.constant 0 : index
    %c0_129 = arith.constant 0 : index
    %c0_130 = arith.constant 0 : index
    %114 = vector.load %arg3[%c0_128, %c0_129, %c0_130] : memref<1x8x1152xbf16, #tpu.memory_space<vmem>>, vector<1x8x1152xbf16>
    %115 = vector.shape_cast %114 : vector<1x8x1152xbf16> to vector<8x1152xbf16>
    %116 = vector.shape_cast %113 : vector<8x1152xbf16> to vector<1x8x1152xbf16>
    tpu.vector_store %arg3[%c0_128, %c0_129, %c0_130], %116 {strides = array<i32>} : memref<1x8x1152xbf16, #tpu.memory_space<vmem>>, vector<1x8x1152xbf16>,
    return
  }
  func.func @transform_0(%arg0: i32) -> (i32, i32, i32, i32, i32) {
    %c0_i32 = arith.constant 0 : i32
    %c0_i32_0 = arith.constant 0 : i32
    %c0_i32_1 = arith.constant 0 : i32
    %c0_i32_2 = arith.constant 0 : i32
    %c0_i32_3 = arith.constant 0 : i32
    return %arg0, %c0_i32, %c0_i32_0, %c0_i32_1, %c0_i32_2 : i32, i32, i32, i32, i32
  }
  func.func @transform_1(%arg0: i32) -> (i32, i32, i32) {
    %c0_i32 = arith.constant 0 : i32
    %c0_i32_0 = arith.constant 0 : i32
    %c0_i32_1 = arith.constant 0 : i32
    %c0_i32_2 = arith.constant 0 : i32
    return %c0_i32, %c0_i32_0, %c0_i32_1 : i32, i32, i32
  }
  func.func @transform_2(%arg0: i32) -> (i32, i32, i32) {
    %c0_i32 = arith.constant 0 : i32
    %c0_i32_0 = arith.constant 0 : i32
    %c0_i32_1 = arith.constant 0 : i32
    return %arg0, %c0_i32, %c0_i32_0 : i32, i32, i32
  }
}

module attributes {stable_mosaic.version = 11 : i64} {
  func.func @_conv4x4_s2_kernel(%arg0: i32, %arg1: memref<1x2x2x8x512xbf16, #tpu.memory_space<vmem>>, %arg2: memref<16x16x8xbf16, #tpu.memory_space<vmem>>, %arg3: memref<1x16x384xbf16, #tpu.memory_space<vmem>>) attributes {dimension_semantics = [#tpu.dimension_semantics<parallel>], iteration_bounds = array<i64: 2>, scalar_prefetch = 0 : i64, scratch_operands = 0 : i64, tpu.core_type = #tpu.core_type<tc>, window_params = [{transform_indices = @transform_0, window_bounds = array<i64: 1, 2, 2, 8, 512>}, {pipeline_mode = #tpu.pipeline_mode<synchronous>, transform_indices = @transform_1, window_bounds = array<i64: 16, 16, 8>}, {transform_indices = @transform_2, window_bounds = array<i64: 1, 16, 384>}]} {
    %c0 = arith.constant 0 : index
    %c0_0 = arith.constant 0 : index
    %c0_1 = arith.constant 0 : index
    %c0_2 = arith.constant 0 : index
    %c0_3 = arith.constant 0 : index
    %0 = vector.load %arg1[%c0, %c0_0, %c0_1, %c0_2, %c0_3] : memref<1x2x2x8x512xbf16, #tpu.memory_space<vmem>>, vector<1x1x1x8x512xbf16>
    %1 = vector.shape_cast %0 : vector<1x1x1x8x512xbf16> to vector<8x512xbf16>
    %2 = vector.extract_strided_slice %1 {offsets = [0, 0], sizes = [8, 384], strides = [1, 1]} : vector<8x512xbf16> to vector<8x384xbf16>
    %c0_4 = arith.constant 0 : index
    %c0_5 = arith.constant 0 : index
    %c0_6 = arith.constant 0 : index
    %3 = vector.load %arg2[%c0_4, %c0_5, %c0_6] : memref<16x16x8xbf16, #tpu.memory_space<vmem>>, vector<1x16x8xbf16>
    %4 = vector.shape_cast %3 : vector<1x16x8xbf16> to vector<16x8xbf16>
    %cst = arith.constant dense<0.000000e+00> : vector<16x384xf32>
    %5 = tpu.matmul %4, %2, %cst {dimension_numbers = #tpu.dot_dimension_numbers<[1], [0], [0], [1], [0, 0, 1, 1], [], []>} : vector<16x8xbf16>, vector<8x384xbf16>, vector<16x384xf32> -> vector<16x384xf32>
    %c0_7 = arith.constant 0 : index
    %c0_8 = arith.constant 0 : index
    %c1 = arith.constant 1 : index
    %c0_9 = arith.constant 0 : index
    %c0_10 = arith.constant 0 : index
    %6 = vector.load %arg1[%c0_7, %c0_8, %c1, %c0_9, %c0_10] : memref<1x2x2x8x512xbf16, #tpu.memory_space<vmem>>, vector<1x1x1x8x512xbf16>
    %7 = vector.shape_cast %6 : vector<1x1x1x8x512xbf16> to vector<8x512xbf16>
    %8 = vector.extract_strided_slice %7 {offsets = [0, 0], sizes = [8, 384], strides = [1, 1]} : vector<8x512xbf16> to vector<8x384xbf16>
    %c1_11 = arith.constant 1 : index
    %c0_12 = arith.constant 0 : index
    %c0_13 = arith.constant 0 : index
    %9 = vector.load %arg2[%c1_11, %c0_12, %c0_13] : memref<16x16x8xbf16, #tpu.memory_space<vmem>>, vector<1x16x8xbf16>
    %10 = vector.shape_cast %9 : vector<1x16x8xbf16> to vector<16x8xbf16>
    %cst_14 = arith.constant dense<0.000000e+00> : vector<16x384xf32>
    %11 = tpu.matmul %10, %8, %cst_14 {dimension_numbers = #tpu.dot_dimension_numbers<[1], [0], [0], [1], [0, 0, 1, 1], [], []>} : vector<16x8xbf16>, vector<8x384xbf16>, vector<16x384xf32> -> vector<16x384xf32>
    %12 = arith.addf %5, %11 : vector<16x384xf32>
    %c0_15 = arith.constant 0 : index
    %c0_16 = arith.constant 0 : index
    %c0_17 = arith.constant 0 : index
    %c0_18 = arith.constant 0 : index
    %c0_19 = arith.constant 0 : index
    %13 = vector.load %arg1[%c0_15, %c0_16, %c0_17, %c0_18, %c0_19] : memref<1x2x2x8x512xbf16, #tpu.memory_space<vmem>>, vector<1x1x1x8x512xbf16>
    %14 = vector.shape_cast %13 : vector<1x1x1x8x512xbf16> to vector<8x512xbf16>
    %15 = vector.extract_strided_slice %14 {offsets = [0, 1], sizes = [8, 384], strides = [1, 1]} : vector<8x512xbf16> to vector<8x384xbf16>
    %c2 = arith.constant 2 : index
    %c0_20 = arith.constant 0 : index
    %c0_21 = arith.constant 0 : index
    %16 = vector.load %arg2[%c2, %c0_20, %c0_21] : memref<16x16x8xbf16, #tpu.memory_space<vmem>>, vector<1x16x8xbf16>
    %17 = vector.shape_cast %16 : vector<1x16x8xbf16> to vector<16x8xbf16>
    %cst_22 = arith.constant dense<0.000000e+00> : vector<16x384xf32>
    %18 = tpu.matmul %17, %15, %cst_22 {dimension_numbers = #tpu.dot_dimension_numbers<[1], [0], [0], [1], [0, 0, 1, 1], [], []>} : vector<16x8xbf16>, vector<8x384xbf16>, vector<16x384xf32> -> vector<16x384xf32>
    %19 = arith.addf %12, %18 : vector<16x384xf32>
    %c0_23 = arith.constant 0 : index
    %c0_24 = arith.constant 0 : index
    %c1_25 = arith.constant 1 : index
    %c0_26 = arith.constant 0 : index
    %c0_27 = arith.constant 0 : index
    %20 = vector.load %arg1[%c0_23, %c0_24, %c1_25, %c0_26, %c0_27] : memref<1x2x2x8x512xbf16, #tpu.memory_space<vmem>>, vector<1x1x1x8x512xbf16>
    %21 = vector.shape_cast %20 : vector<1x1x1x8x512xbf16> to vector<8x512xbf16>
    %22 = vector.extract_strided_slice %21 {offsets = [0, 1], sizes = [8, 384], strides = [1, 1]} : vector<8x512xbf16> to vector<8x384xbf16>
    %c3 = arith.constant 3 : index
    %c0_28 = arith.constant 0 : index
    %c0_29 = arith.constant 0 : index
    %23 = vector.load %arg2[%c3, %c0_28, %c0_29] : memref<16x16x8xbf16, #tpu.memory_space<vmem>>, vector<1x16x8xbf16>
    %24 = vector.shape_cast %23 : vector<1x16x8xbf16> to vector<16x8xbf16>
    %cst_30 = arith.constant dense<0.000000e+00> : vector<16x384xf32>
    %25 = tpu.matmul %24, %22, %cst_30 {dimension_numbers = #tpu.dot_dimension_numbers<[1], [0], [0], [1], [0, 0, 1, 1], [], []>} : vector<16x8xbf16>, vector<8x384xbf16>, vector<16x384xf32> -> vector<16x384xf32>
    %26 = arith.addf %19, %25 : vector<16x384xf32>
    %c0_31 = arith.constant 0 : index
    %c1_32 = arith.constant 1 : index
    %c0_33 = arith.constant 0 : index
    %c0_34 = arith.constant 0 : index
    %c0_35 = arith.constant 0 : index
    %27 = vector.load %arg1[%c0_31, %c1_32, %c0_33, %c0_34, %c0_35] : memref<1x2x2x8x512xbf16, #tpu.memory_space<vmem>>, vector<1x1x1x8x512xbf16>
    %28 = vector.shape_cast %27 : vector<1x1x1x8x512xbf16> to vector<8x512xbf16>
    %29 = vector.extract_strided_slice %28 {offsets = [0, 0], sizes = [8, 384], strides = [1, 1]} : vector<8x512xbf16> to vector<8x384xbf16>
    %c4 = arith.constant 4 : index
    %c0_36 = arith.constant 0 : index
    %c0_37 = arith.constant 0 : index
    %30 = vector.load %arg2[%c4, %c0_36, %c0_37] : memref<16x16x8xbf16, #tpu.memory_space<vmem>>, vector<1x16x8xbf16>
    %31 = vector.shape_cast %30 : vector<1x16x8xbf16> to vector<16x8xbf16>
    %cst_38 = arith.constant dense<0.000000e+00> : vector<16x384xf32>
    %32 = tpu.matmul %31, %29, %cst_38 {dimension_numbers = #tpu.dot_dimension_numbers<[1], [0], [0], [1], [0, 0, 1, 1], [], []>} : vector<16x8xbf16>, vector<8x384xbf16>, vector<16x384xf32> -> vector<16x384xf32>
    %33 = arith.addf %26, %32 : vector<16x384xf32>
    %c0_39 = arith.constant 0 : index
    %c1_40 = arith.constant 1 : index
    %c1_41 = arith.constant 1 : index
    %c0_42 = arith.constant 0 : index
    %c0_43 = arith.constant 0 : index
    %34 = vector.load %arg1[%c0_39, %c1_40, %c1_41, %c0_42, %c0_43] : memref<1x2x2x8x512xbf16, #tpu.memory_space<vmem>>, vector<1x1x1x8x512xbf16>
    %35 = vector.shape_cast %34 : vector<1x1x1x8x512xbf16> to vector<8x512xbf16>
    %36 = vector.extract_strided_slice %35 {offsets = [0, 0], sizes = [8, 384], strides = [1, 1]} : vector<8x512xbf16> to vector<8x384xbf16>
    %c5 = arith.constant 5 : index
    %c0_44 = arith.constant 0 : index
    %c0_45 = arith.constant 0 : index
    %37 = vector.load %arg2[%c5, %c0_44, %c0_45] : memref<16x16x8xbf16, #tpu.memory_space<vmem>>, vector<1x16x8xbf16>
    %38 = vector.shape_cast %37 : vector<1x16x8xbf16> to vector<16x8xbf16>
    %cst_46 = arith.constant dense<0.000000e+00> : vector<16x384xf32>
    %39 = tpu.matmul %38, %36, %cst_46 {dimension_numbers = #tpu.dot_dimension_numbers<[1], [0], [0], [1], [0, 0, 1, 1], [], []>} : vector<16x8xbf16>, vector<8x384xbf16>, vector<16x384xf32> -> vector<16x384xf32>
    %40 = arith.addf %33, %39 : vector<16x384xf32>
    %c0_47 = arith.constant 0 : index
    %c1_48 = arith.constant 1 : index
    %c0_49 = arith.constant 0 : index
    %c0_50 = arith.constant 0 : index
    %c0_51 = arith.constant 0 : index
    %41 = vector.load %arg1[%c0_47, %c1_48, %c0_49, %c0_50, %c0_51] : memref<1x2x2x8x512xbf16, #tpu.memory_space<vmem>>, vector<1x1x1x8x512xbf16>
    %42 = vector.shape_cast %41 : vector<1x1x1x8x512xbf16> to vector<8x512xbf16>
    %43 = vector.extract_strided_slice %42 {offsets = [0, 1], sizes = [8, 384], strides = [1, 1]} : vector<8x512xbf16> to vector<8x384xbf16>
    %c6 = arith.constant 6 : index
    %c0_52 = arith.constant 0 : index
    %c0_53 = arith.constant 0 : index
    %44 = vector.load %arg2[%c6, %c0_52, %c0_53] : memref<16x16x8xbf16, #tpu.memory_space<vmem>>, vector<1x16x8xbf16>
    %45 = vector.shape_cast %44 : vector<1x16x8xbf16> to vector<16x8xbf16>
    %cst_54 = arith.constant dense<0.000000e+00> : vector<16x384xf32>
    %46 = tpu.matmul %45, %43, %cst_54 {dimension_numbers = #tpu.dot_dimension_numbers<[1], [0], [0], [1], [0, 0, 1, 1], [], []>} : vector<16x8xbf16>, vector<8x384xbf16>, vector<16x384xf32> -> vector<16x384xf32>
    %47 = arith.addf %40, %46 : vector<16x384xf32>
    %c0_55 = arith.constant 0 : index
    %c1_56 = arith.constant 1 : index
    %c1_57 = arith.constant 1 : index
    %c0_58 = arith.constant 0 : index
    %c0_59 = arith.constant 0 : index
    %48 = vector.load %arg1[%c0_55, %c1_56, %c1_57, %c0_58, %c0_59] : memref<1x2x2x8x512xbf16, #tpu.memory_space<vmem>>, vector<1x1x1x8x512xbf16>
    %49 = vector.shape_cast %48 : vector<1x1x1x8x512xbf16> to vector<8x512xbf16>
    %50 = vector.extract_strided_slice %49 {offsets = [0, 1], sizes = [8, 384], strides = [1, 1]} : vector<8x512xbf16> to vector<8x384xbf16>
    %c7 = arith.constant 7 : index
    %c0_60 = arith.constant 0 : index
    %c0_61 = arith.constant 0 : index
    %51 = vector.load %arg2[%c7, %c0_60, %c0_61] : memref<16x16x8xbf16, #tpu.memory_space<vmem>>, vector<1x16x8xbf16>
    %52 = vector.shape_cast %51 : vector<1x16x8xbf16> to vector<16x8xbf16>
    %cst_62 = arith.constant dense<0.000000e+00> : vector<16x384xf32>
    %53 = tpu.matmul %52, %50, %cst_62 {dimension_numbers = #tpu.dot_dimension_numbers<[1], [0], [0], [1], [0, 0, 1, 1], [], []>} : vector<16x8xbf16>, vector<8x384xbf16>, vector<16x384xf32> -> vector<16x384xf32>
    %54 = arith.addf %47, %53 : vector<16x384xf32>
    %c0_63 = arith.constant 0 : index
    %c0_64 = arith.constant 0 : index
    %c0_65 = arith.constant 0 : index
    %c0_66 = arith.constant 0 : index
    %c0_67 = arith.constant 0 : index
    %55 = vector.load %arg1[%c0_63, %c0_64, %c0_65, %c0_66, %c0_67] : memref<1x2x2x8x512xbf16, #tpu.memory_space<vmem>>, vector<1x1x1x8x512xbf16>
    %56 = vector.shape_cast %55 : vector<1x1x1x8x512xbf16> to vector<8x512xbf16>
    %57 = vector.extract_strided_slice %56 {offsets = [0, 17], sizes = [8, 384], strides = [1, 1]} : vector<8x512xbf16> to vector<8x384xbf16>
    %c8 = arith.constant 8 : index
    %c0_68 = arith.constant 0 : index
    %c0_69 = arith.constant 0 : index
    %58 = vector.load %arg2[%c8, %c0_68, %c0_69] : memref<16x16x8xbf16, #tpu.memory_space<vmem>>, vector<1x16x8xbf16>
    %59 = vector.shape_cast %58 : vector<1x16x8xbf16> to vector<16x8xbf16>
    %cst_70 = arith.constant dense<0.000000e+00> : vector<16x384xf32>
    %60 = tpu.matmul %59, %57, %cst_70 {dimension_numbers = #tpu.dot_dimension_numbers<[1], [0], [0], [1], [0, 0, 1, 1], [], []>} : vector<16x8xbf16>, vector<8x384xbf16>, vector<16x384xf32> -> vector<16x384xf32>
    %61 = arith.addf %54, %60 : vector<16x384xf32>
    %c0_71 = arith.constant 0 : index
    %c0_72 = arith.constant 0 : index
    %c1_73 = arith.constant 1 : index
    %c0_74 = arith.constant 0 : index
    %c0_75 = arith.constant 0 : index
    %62 = vector.load %arg1[%c0_71, %c0_72, %c1_73, %c0_74, %c0_75] : memref<1x2x2x8x512xbf16, #tpu.memory_space<vmem>>, vector<1x1x1x8x512xbf16>
    %63 = vector.shape_cast %62 : vector<1x1x1x8x512xbf16> to vector<8x512xbf16>
    %64 = vector.extract_strided_slice %63 {offsets = [0, 17], sizes = [8, 384], strides = [1, 1]} : vector<8x512xbf16> to vector<8x384xbf16>
    %c9 = arith.constant 9 : index
    %c0_76 = arith.constant 0 : index
    %c0_77 = arith.constant 0 : index
    %65 = vector.load %arg2[%c9, %c0_76, %c0_77] : memref<16x16x8xbf16, #tpu.memory_space<vmem>>, vector<1x16x8xbf16>
    %66 = vector.shape_cast %65 : vector<1x16x8xbf16> to vector<16x8xbf16>
    %cst_78 = arith.constant dense<0.000000e+00> : vector<16x384xf32>
    %67 = tpu.matmul %66, %64, %cst_78 {dimension_numbers = #tpu.dot_dimension_numbers<[1], [0], [0], [1], [0, 0, 1, 1], [], []>} : vector<16x8xbf16>, vector<8x384xbf16>, vector<16x384xf32> -> vector<16x384xf32>
    %68 = arith.addf %61, %67 : vector<16x384xf32>
    %c0_79 = arith.constant 0 : index
    %c0_80 = arith.constant 0 : index
    %c0_81 = arith.constant 0 : index
    %c0_82 = arith.constant 0 : index
    %c0_83 = arith.constant 0 : index
    %69 = vector.load %arg1[%c0_79, %c0_80, %c0_81, %c0_82, %c0_83] : memref<1x2x2x8x512xbf16, #tpu.memory_space<vmem>>, vector<1x1x1x8x512xbf16>
    %70 = vector.shape_cast %69 : vector<1x1x1x8x512xbf16> to vector<8x512xbf16>
    %71 = vector.extract_strided_slice %70 {offsets = [0, 18], sizes = [8, 384], strides = [1, 1]} : vector<8x512xbf16> to vector<8x384xbf16>
    %c10 = arith.constant 10 : index
    %c0_84 = arith.constant 0 : index
    %c0_85 = arith.constant 0 : index
    %72 = vector.load %arg2[%c10, %c0_84, %c0_85] : memref<16x16x8xbf16, #tpu.memory_space<vmem>>, vector<1x16x8xbf16>
    %73 = vector.shape_cast %72 : vector<1x16x8xbf16> to vector<16x8xbf16>
    %cst_86 = arith.constant dense<0.000000e+00> : vector<16x384xf32>
    %74 = tpu.matmul %73, %71, %cst_86 {dimension_numbers = #tpu.dot_dimension_numbers<[1], [0], [0], [1], [0, 0, 1, 1], [], []>} : vector<16x8xbf16>, vector<8x384xbf16>, vector<16x384xf32> -> vector<16x384xf32>
    %75 = arith.addf %68, %74 : vector<16x384xf32>
    %c0_87 = arith.constant 0 : index
    %c0_88 = arith.constant 0 : index
    %c1_89 = arith.constant 1 : index
    %c0_90 = arith.constant 0 : index
    %c0_91 = arith.constant 0 : index
    %76 = vector.load %arg1[%c0_87, %c0_88, %c1_89, %c0_90, %c0_91] : memref<1x2x2x8x512xbf16, #tpu.memory_space<vmem>>, vector<1x1x1x8x512xbf16>
    %77 = vector.shape_cast %76 : vector<1x1x1x8x512xbf16> to vector<8x512xbf16>
    %78 = vector.extract_strided_slice %77 {offsets = [0, 18], sizes = [8, 384], strides = [1, 1]} : vector<8x512xbf16> to vector<8x384xbf16>
    %c11 = arith.constant 11 : index
    %c0_92 = arith.constant 0 : index
    %c0_93 = arith.constant 0 : index
    %79 = vector.load %arg2[%c11, %c0_92, %c0_93] : memref<16x16x8xbf16, #tpu.memory_space<vmem>>, vector<1x16x8xbf16>
    %80 = vector.shape_cast %79 : vector<1x16x8xbf16> to vector<16x8xbf16>
    %cst_94 = arith.constant dense<0.000000e+00> : vector<16x384xf32>
    %81 = tpu.matmul %80, %78, %cst_94 {dimension_numbers = #tpu.dot_dimension_numbers<[1], [0], [0], [1], [0, 0, 1, 1], [], []>} : vector<16x8xbf16>, vector<8x384xbf16>, vector<16x384xf32> -> vector<16x384xf32>
    %82 = arith.addf %75, %81 : vector<16x384xf32>
    %c0_95 = arith.constant 0 : index
    %c1_96 = arith.constant 1 : index
    %c0_97 = arith.constant 0 : index
    %c0_98 = arith.constant 0 : index
    %c0_99 = arith.constant 0 : index
    %83 = vector.load %arg1[%c0_95, %c1_96, %c0_97, %c0_98, %c0_99] : memref<1x2x2x8x512xbf16, #tpu.memory_space<vmem>>, vector<1x1x1x8x512xbf16>
    %84 = vector.shape_cast %83 : vector<1x1x1x8x512xbf16> to vector<8x512xbf16>
    %85 = vector.extract_strided_slice %84 {offsets = [0, 17], sizes = [8, 384], strides = [1, 1]} : vector<8x512xbf16> to vector<8x384xbf16>
    %c12 = arith.constant 12 : index
    %c0_100 = arith.constant 0 : index
    %c0_101 = arith.constant 0 : index
    %86 = vector.load %arg2[%c12, %c0_100, %c0_101] : memref<16x16x8xbf16, #tpu.memory_space<vmem>>, vector<1x16x8xbf16>
    %87 = vector.shape_cast %86 : vector<1x16x8xbf16> to vector<16x8xbf16>
    %cst_102 = arith.constant dense<0.000000e+00> : vector<16x384xf32>
    %88 = tpu.matmul %87, %85, %cst_102 {dimension_numbers = #tpu.dot_dimension_numbers<[1], [0], [0], [1], [0, 0, 1, 1], [], []>} : vector<16x8xbf16>, vector<8x384xbf16>, vector<16x384xf32> -> vector<16x384xf32>
    %89 = arith.addf %82, %88 : vector<16x384xf32>
    %c0_103 = arith.constant 0 : index
    %c1_104 = arith.constant 1 : index
    %c1_105 = arith.constant 1 : index
    %c0_106 = arith.constant 0 : index
    %c0_107 = arith.constant 0 : index
    %90 = vector.load %arg1[%c0_103, %c1_104, %c1_105, %c0_106, %c0_107] : memref<1x2x2x8x512xbf16, #tpu.memory_space<vmem>>, vector<1x1x1x8x512xbf16>
    %91 = vector.shape_cast %90 : vector<1x1x1x8x512xbf16> to vector<8x512xbf16>
    %92 = vector.extract_strided_slice %91 {offsets = [0, 17], sizes = [8, 384], strides = [1, 1]} : vector<8x512xbf16> to vector<8x384xbf16>
    %c13 = arith.constant 13 : index
    %c0_108 = arith.constant 0 : index
    %c0_109 = arith.constant 0 : index
    %93 = vector.load %arg2[%c13, %c0_108, %c0_109] : memref<16x16x8xbf16, #tpu.memory_space<vmem>>, vector<1x16x8xbf16>
    %94 = vector.shape_cast %93 : vector<1x16x8xbf16> to vector<16x8xbf16>
    %cst_110 = arith.constant dense<0.000000e+00> : vector<16x384xf32>
    %95 = tpu.matmul %94, %92, %cst_110 {dimension_numbers = #tpu.dot_dimension_numbers<[1], [0], [0], [1], [0, 0, 1, 1], [], []>} : vector<16x8xbf16>, vector<8x384xbf16>, vector<16x384xf32> -> vector<16x384xf32>
    %96 = arith.addf %89, %95 : vector<16x384xf32>
    %c0_111 = arith.constant 0 : index
    %c1_112 = arith.constant 1 : index
    %c0_113 = arith.constant 0 : index
    %c0_114 = arith.constant 0 : index
    %c0_115 = arith.constant 0 : index
    %97 = vector.load %arg1[%c0_111, %c1_112, %c0_113, %c0_114, %c0_115] : memref<1x2x2x8x512xbf16, #tpu.memory_space<vmem>>, vector<1x1x1x8x512xbf16>
    %98 = vector.shape_cast %97 : vector<1x1x1x8x512xbf16> to vector<8x512xbf16>
    %99 = vector.extract_strided_slice %98 {offsets = [0, 18], sizes = [8, 384], strides = [1, 1]} : vector<8x512xbf16> to vector<8x384xbf16>
    %c14 = arith.constant 14 : index
    %c0_116 = arith.constant 0 : index
    %c0_117 = arith.constant 0 : index
    %100 = vector.load %arg2[%c14, %c0_116, %c0_117] : memref<16x16x8xbf16, #tpu.memory_space<vmem>>, vector<1x16x8xbf16>
    %101 = vector.shape_cast %100 : vector<1x16x8xbf16> to vector<16x8xbf16>
    %cst_118 = arith.constant dense<0.000000e+00> : vector<16x384xf32>
    %102 = tpu.matmul %101, %99, %cst_118 {dimension_numbers = #tpu.dot_dimension_numbers<[1], [0], [0], [1], [0, 0, 1, 1], [], []>} : vector<16x8xbf16>, vector<8x384xbf16>, vector<16x384xf32> -> vector<16x384xf32>
    %103 = arith.addf %96, %102 : vector<16x384xf32>
    %c0_119 = arith.constant 0 : index
    %c1_120 = arith.constant 1 : index
    %c1_121 = arith.constant 1 : index
    %c0_122 = arith.constant 0 : index
    %c0_123 = arith.constant 0 : index
    %104 = vector.load %arg1[%c0_119, %c1_120, %c1_121, %c0_122, %c0_123] : memref<1x2x2x8x512xbf16, #tpu.memory_space<vmem>>, vector<1x1x1x8x512xbf16>
    %105 = vector.shape_cast %104 : vector<1x1x1x8x512xbf16> to vector<8x512xbf16>
    %106 = vector.extract_strided_slice %105 {offsets = [0, 18], sizes = [8, 384], strides = [1, 1]} : vector<8x512xbf16> to vector<8x384xbf16>
    %c15 = arith.constant 15 : index
    %c0_124 = arith.constant 0 : index
    %c0_125 = arith.constant 0 : index
    %107 = vector.load %arg2[%c15, %c0_124, %c0_125] : memref<16x16x8xbf16, #tpu.memory_space<vmem>>, vector<1x16x8xbf16>
    %108 = vector.shape_cast %107 : vector<1x16x8xbf16> to vector<16x8xbf16>
    %cst_126 = arith.constant dense<0.000000e+00> : vector<16x384xf32>
    %109 = tpu.matmul %108, %106, %cst_126 {dimension_numbers = #tpu.dot_dimension_numbers<[1], [0], [0], [1], [0, 0, 1, 1], [], []>} : vector<16x8xbf16>, vector<8x384xbf16>, vector<16x384xf32> -> vector<16x384xf32>
    %110 = arith.addf %103, %109 : vector<16x384xf32>
    %cst_127 = arith.constant 0.000000e+00 : f32
    %111 = vector.broadcast %cst_127 : f32 to vector<16x384xf32>
    %112 = arith.maximumf %110, %111 : vector<16x384xf32>
    %113 = arith.truncf %112 : vector<16x384xf32> to vector<16x384xbf16>
    %c0_128 = arith.constant 0 : index
    %c0_129 = arith.constant 0 : index
    %c0_130 = arith.constant 0 : index
    %114 = vector.load %arg3[%c0_128, %c0_129, %c0_130] : memref<1x16x384xbf16, #tpu.memory_space<vmem>>, vector<1x16x384xbf16>
    %115 = vector.shape_cast %114 : vector<1x16x384xbf16> to vector<16x384xbf16>
    %116 = vector.shape_cast %113 : vector<16x384xbf16> to vector<1x16x384xbf16>
    tpu.vector_store %arg3[%c0_128, %c0_129, %c0_130], %116 {strides = array<i32>} : memref<1x16x384xbf16, #tpu.memory_space<vmem>>, vector<1x16x384xbf16>,
    return
  }
  func.func @transform_0(%arg0: i32) -> (i32, i32, i32, i32, i32) {
    %c0_i32 = arith.constant 0 : i32
    %c0_i32_0 = arith.constant 0 : i32
    %c0_i32_1 = arith.constant 0 : i32
    %c0_i32_2 = arith.constant 0 : i32
    %c0_i32_3 = arith.constant 0 : i32
    return %arg0, %c0_i32, %c0_i32_0, %c0_i32_1, %c0_i32_2 : i32, i32, i32, i32, i32
  }
  func.func @transform_1(%arg0: i32) -> (i32, i32, i32) {
    %c0_i32 = arith.constant 0 : i32
    %c0_i32_0 = arith.constant 0 : i32
    %c0_i32_1 = arith.constant 0 : i32
    %c0_i32_2 = arith.constant 0 : i32
    return %c0_i32, %c0_i32_0, %c0_i32_1 : i32, i32, i32
  }
  func.func @transform_2(%arg0: i32) -> (i32, i32, i32) {
    %c0_i32 = arith.constant 0 : i32
    %c0_i32_0 = arith.constant 0 : i32
    %c0_i32_1 = arith.constant 0 : i32
    return %arg0, %c0_i32, %c0_i32_0 : i32, i32, i32
  }
}

module attributes {stable_mosaic.version = 11 : i64} {
  func.func @_conv4x4_s2_kernel(%arg0: i32, %arg1: memref<1x2x2x16x256xbf16, #tpu.memory_space<vmem>>, %arg2: memref<16x32x16xbf16, #tpu.memory_space<vmem>>, %arg3: memref<1x32x128xbf16, #tpu.memory_space<vmem>>) attributes {dimension_semantics = [#tpu.dimension_semantics<parallel>], iteration_bounds = array<i64: 2>, scalar_prefetch = 0 : i64, scratch_operands = 0 : i64, tpu.core_type = #tpu.core_type<tc>, window_params = [{transform_indices = @transform_0, window_bounds = array<i64: 1, 2, 2, 16, 256>}, {pipeline_mode = #tpu.pipeline_mode<synchronous>, transform_indices = @transform_1, window_bounds = array<i64: 16, 32, 16>}, {transform_indices = @transform_2, window_bounds = array<i64: 1, 32, 128>}]} {
    %c0 = arith.constant 0 : index
    %c0_0 = arith.constant 0 : index
    %c0_1 = arith.constant 0 : index
    %c0_2 = arith.constant 0 : index
    %c0_3 = arith.constant 0 : index
    %0 = vector.load %arg1[%c0, %c0_0, %c0_1, %c0_2, %c0_3] : memref<1x2x2x16x256xbf16, #tpu.memory_space<vmem>>, vector<1x1x1x16x256xbf16>
    %1 = vector.shape_cast %0 : vector<1x1x1x16x256xbf16> to vector<16x256xbf16>
    %2 = vector.extract_strided_slice %1 {offsets = [0, 0], sizes = [16, 128], strides = [1, 1]} : vector<16x256xbf16> to vector<16x128xbf16>
    %c0_4 = arith.constant 0 : index
    %c0_5 = arith.constant 0 : index
    %c0_6 = arith.constant 0 : index
    %3 = vector.load %arg2[%c0_4, %c0_5, %c0_6] : memref<16x32x16xbf16, #tpu.memory_space<vmem>>, vector<1x32x16xbf16>
    %4 = vector.shape_cast %3 : vector<1x32x16xbf16> to vector<32x16xbf16>
    %cst = arith.constant dense<0.000000e+00> : vector<32x128xf32>
    %5 = tpu.matmul %4, %2, %cst {dimension_numbers = #tpu.dot_dimension_numbers<[1], [0], [0], [1], [0, 0, 1, 1], [], []>} : vector<32x16xbf16>, vector<16x128xbf16>, vector<32x128xf32> -> vector<32x128xf32>
    %c0_7 = arith.constant 0 : index
    %c0_8 = arith.constant 0 : index
    %c1 = arith.constant 1 : index
    %c0_9 = arith.constant 0 : index
    %c0_10 = arith.constant 0 : index
    %6 = vector.load %arg1[%c0_7, %c0_8, %c1, %c0_9, %c0_10] : memref<1x2x2x16x256xbf16, #tpu.memory_space<vmem>>, vector<1x1x1x16x256xbf16>
    %7 = vector.shape_cast %6 : vector<1x1x1x16x256xbf16> to vector<16x256xbf16>
    %8 = vector.extract_strided_slice %7 {offsets = [0, 0], sizes = [16, 128], strides = [1, 1]} : vector<16x256xbf16> to vector<16x128xbf16>
    %c1_11 = arith.constant 1 : index
    %c0_12 = arith.constant 0 : index
    %c0_13 = arith.constant 0 : index
    %9 = vector.load %arg2[%c1_11, %c0_12, %c0_13] : memref<16x32x16xbf16, #tpu.memory_space<vmem>>, vector<1x32x16xbf16>
    %10 = vector.shape_cast %9 : vector<1x32x16xbf16> to vector<32x16xbf16>
    %cst_14 = arith.constant dense<0.000000e+00> : vector<32x128xf32>
    %11 = tpu.matmul %10, %8, %cst_14 {dimension_numbers = #tpu.dot_dimension_numbers<[1], [0], [0], [1], [0, 0, 1, 1], [], []>} : vector<32x16xbf16>, vector<16x128xbf16>, vector<32x128xf32> -> vector<32x128xf32>
    %12 = arith.addf %5, %11 : vector<32x128xf32>
    %c0_15 = arith.constant 0 : index
    %c0_16 = arith.constant 0 : index
    %c0_17 = arith.constant 0 : index
    %c0_18 = arith.constant 0 : index
    %c0_19 = arith.constant 0 : index
    %13 = vector.load %arg1[%c0_15, %c0_16, %c0_17, %c0_18, %c0_19] : memref<1x2x2x16x256xbf16, #tpu.memory_space<vmem>>, vector<1x1x1x16x256xbf16>
    %14 = vector.shape_cast %13 : vector<1x1x1x16x256xbf16> to vector<16x256xbf16>
    %15 = vector.extract_strided_slice %14 {offsets = [0, 1], sizes = [16, 128], strides = [1, 1]} : vector<16x256xbf16> to vector<16x128xbf16>
    %c2 = arith.constant 2 : index
    %c0_20 = arith.constant 0 : index
    %c0_21 = arith.constant 0 : index
    %16 = vector.load %arg2[%c2, %c0_20, %c0_21] : memref<16x32x16xbf16, #tpu.memory_space<vmem>>, vector<1x32x16xbf16>
    %17 = vector.shape_cast %16 : vector<1x32x16xbf16> to vector<32x16xbf16>
    %cst_22 = arith.constant dense<0.000000e+00> : vector<32x128xf32>
    %18 = tpu.matmul %17, %15, %cst_22 {dimension_numbers = #tpu.dot_dimension_numbers<[1], [0], [0], [1], [0, 0, 1, 1], [], []>} : vector<32x16xbf16>, vector<16x128xbf16>, vector<32x128xf32> -> vector<32x128xf32>
    %19 = arith.addf %12, %18 : vector<32x128xf32>
    %c0_23 = arith.constant 0 : index
    %c0_24 = arith.constant 0 : index
    %c1_25 = arith.constant 1 : index
    %c0_26 = arith.constant 0 : index
    %c0_27 = arith.constant 0 : index
    %20 = vector.load %arg1[%c0_23, %c0_24, %c1_25, %c0_26, %c0_27] : memref<1x2x2x16x256xbf16, #tpu.memory_space<vmem>>, vector<1x1x1x16x256xbf16>
    %21 = vector.shape_cast %20 : vector<1x1x1x16x256xbf16> to vector<16x256xbf16>
    %22 = vector.extract_strided_slice %21 {offsets = [0, 1], sizes = [16, 128], strides = [1, 1]} : vector<16x256xbf16> to vector<16x128xbf16>
    %c3 = arith.constant 3 : index
    %c0_28 = arith.constant 0 : index
    %c0_29 = arith.constant 0 : index
    %23 = vector.load %arg2[%c3, %c0_28, %c0_29] : memref<16x32x16xbf16, #tpu.memory_space<vmem>>, vector<1x32x16xbf16>
    %24 = vector.shape_cast %23 : vector<1x32x16xbf16> to vector<32x16xbf16>
    %cst_30 = arith.constant dense<0.000000e+00> : vector<32x128xf32>
    %25 = tpu.matmul %24, %22, %cst_30 {dimension_numbers = #tpu.dot_dimension_numbers<[1], [0], [0], [1], [0, 0, 1, 1], [], []>} : vector<32x16xbf16>, vector<16x128xbf16>, vector<32x128xf32> -> vector<32x128xf32>
    %26 = arith.addf %19, %25 : vector<32x128xf32>
    %c0_31 = arith.constant 0 : index
    %c1_32 = arith.constant 1 : index
    %c0_33 = arith.constant 0 : index
    %c0_34 = arith.constant 0 : index
    %c0_35 = arith.constant 0 : index
    %27 = vector.load %arg1[%c0_31, %c1_32, %c0_33, %c0_34, %c0_35] : memref<1x2x2x16x256xbf16, #tpu.memory_space<vmem>>, vector<1x1x1x16x256xbf16>
    %28 = vector.shape_cast %27 : vector<1x1x1x16x256xbf16> to vector<16x256xbf16>
    %29 = vector.extract_strided_slice %28 {offsets = [0, 0], sizes = [16, 128], strides = [1, 1]} : vector<16x256xbf16> to vector<16x128xbf16>
    %c4 = arith.constant 4 : index
    %c0_36 = arith.constant 0 : index
    %c0_37 = arith.constant 0 : index
    %30 = vector.load %arg2[%c4, %c0_36, %c0_37] : memref<16x32x16xbf16, #tpu.memory_space<vmem>>, vector<1x32x16xbf16>
    %31 = vector.shape_cast %30 : vector<1x32x16xbf16> to vector<32x16xbf16>
    %cst_38 = arith.constant dense<0.000000e+00> : vector<32x128xf32>
    %32 = tpu.matmul %31, %29, %cst_38 {dimension_numbers = #tpu.dot_dimension_numbers<[1], [0], [0], [1], [0, 0, 1, 1], [], []>} : vector<32x16xbf16>, vector<16x128xbf16>, vector<32x128xf32> -> vector<32x128xf32>
    %33 = arith.addf %26, %32 : vector<32x128xf32>
    %c0_39 = arith.constant 0 : index
    %c1_40 = arith.constant 1 : index
    %c1_41 = arith.constant 1 : index
    %c0_42 = arith.constant 0 : index
    %c0_43 = arith.constant 0 : index
    %34 = vector.load %arg1[%c0_39, %c1_40, %c1_41, %c0_42, %c0_43] : memref<1x2x2x16x256xbf16, #tpu.memory_space<vmem>>, vector<1x1x1x16x256xbf16>
    %35 = vector.shape_cast %34 : vector<1x1x1x16x256xbf16> to vector<16x256xbf16>
    %36 = vector.extract_strided_slice %35 {offsets = [0, 0], sizes = [16, 128], strides = [1, 1]} : vector<16x256xbf16> to vector<16x128xbf16>
    %c5 = arith.constant 5 : index
    %c0_44 = arith.constant 0 : index
    %c0_45 = arith.constant 0 : index
    %37 = vector.load %arg2[%c5, %c0_44, %c0_45] : memref<16x32x16xbf16, #tpu.memory_space<vmem>>, vector<1x32x16xbf16>
    %38 = vector.shape_cast %37 : vector<1x32x16xbf16> to vector<32x16xbf16>
    %cst_46 = arith.constant dense<0.000000e+00> : vector<32x128xf32>
    %39 = tpu.matmul %38, %36, %cst_46 {dimension_numbers = #tpu.dot_dimension_numbers<[1], [0], [0], [1], [0, 0, 1, 1], [], []>} : vector<32x16xbf16>, vector<16x128xbf16>, vector<32x128xf32> -> vector<32x128xf32>
    %40 = arith.addf %33, %39 : vector<32x128xf32>
    %c0_47 = arith.constant 0 : index
    %c1_48 = arith.constant 1 : index
    %c0_49 = arith.constant 0 : index
    %c0_50 = arith.constant 0 : index
    %c0_51 = arith.constant 0 : index
    %41 = vector.load %arg1[%c0_47, %c1_48, %c0_49, %c0_50, %c0_51] : memref<1x2x2x16x256xbf16, #tpu.memory_space<vmem>>, vector<1x1x1x16x256xbf16>
    %42 = vector.shape_cast %41 : vector<1x1x1x16x256xbf16> to vector<16x256xbf16>
    %43 = vector.extract_strided_slice %42 {offsets = [0, 1], sizes = [16, 128], strides = [1, 1]} : vector<16x256xbf16> to vector<16x128xbf16>
    %c6 = arith.constant 6 : index
    %c0_52 = arith.constant 0 : index
    %c0_53 = arith.constant 0 : index
    %44 = vector.load %arg2[%c6, %c0_52, %c0_53] : memref<16x32x16xbf16, #tpu.memory_space<vmem>>, vector<1x32x16xbf16>
    %45 = vector.shape_cast %44 : vector<1x32x16xbf16> to vector<32x16xbf16>
    %cst_54 = arith.constant dense<0.000000e+00> : vector<32x128xf32>
    %46 = tpu.matmul %45, %43, %cst_54 {dimension_numbers = #tpu.dot_dimension_numbers<[1], [0], [0], [1], [0, 0, 1, 1], [], []>} : vector<32x16xbf16>, vector<16x128xbf16>, vector<32x128xf32> -> vector<32x128xf32>
    %47 = arith.addf %40, %46 : vector<32x128xf32>
    %c0_55 = arith.constant 0 : index
    %c1_56 = arith.constant 1 : index
    %c1_57 = arith.constant 1 : index
    %c0_58 = arith.constant 0 : index
    %c0_59 = arith.constant 0 : index
    %48 = vector.load %arg1[%c0_55, %c1_56, %c1_57, %c0_58, %c0_59] : memref<1x2x2x16x256xbf16, #tpu.memory_space<vmem>>, vector<1x1x1x16x256xbf16>
    %49 = vector.shape_cast %48 : vector<1x1x1x16x256xbf16> to vector<16x256xbf16>
    %50 = vector.extract_strided_slice %49 {offsets = [0, 1], sizes = [16, 128], strides = [1, 1]} : vector<16x256xbf16> to vector<16x128xbf16>
    %c7 = arith.constant 7 : index
    %c0_60 = arith.constant 0 : index
    %c0_61 = arith.constant 0 : index
    %51 = vector.load %arg2[%c7, %c0_60, %c0_61] : memref<16x32x16xbf16, #tpu.memory_space<vmem>>, vector<1x32x16xbf16>
    %52 = vector.shape_cast %51 : vector<1x32x16xbf16> to vector<32x16xbf16>
    %cst_62 = arith.constant dense<0.000000e+00> : vector<32x128xf32>
    %53 = tpu.matmul %52, %50, %cst_62 {dimension_numbers = #tpu.dot_dimension_numbers<[1], [0], [0], [1], [0, 0, 1, 1], [], []>} : vector<32x16xbf16>, vector<16x128xbf16>, vector<32x128xf32> -> vector<32x128xf32>
    %54 = arith.addf %47, %53 : vector<32x128xf32>
    %c0_63 = arith.constant 0 : index
    %c0_64 = arith.constant 0 : index
    %c0_65 = arith.constant 0 : index
    %c0_66 = arith.constant 0 : index
    %c0_67 = arith.constant 0 : index
    %55 = vector.load %arg1[%c0_63, %c0_64, %c0_65, %c0_66, %c0_67] : memref<1x2x2x16x256xbf16, #tpu.memory_space<vmem>>, vector<1x1x1x16x256xbf16>
    %56 = vector.shape_cast %55 : vector<1x1x1x16x256xbf16> to vector<16x256xbf16>
    %57 = vector.extract_strided_slice %56 {offsets = [0, 9], sizes = [16, 128], strides = [1, 1]} : vector<16x256xbf16> to vector<16x128xbf16>
    %c8 = arith.constant 8 : index
    %c0_68 = arith.constant 0 : index
    %c0_69 = arith.constant 0 : index
    %58 = vector.load %arg2[%c8, %c0_68, %c0_69] : memref<16x32x16xbf16, #tpu.memory_space<vmem>>, vector<1x32x16xbf16>
    %59 = vector.shape_cast %58 : vector<1x32x16xbf16> to vector<32x16xbf16>
    %cst_70 = arith.constant dense<0.000000e+00> : vector<32x128xf32>
    %60 = tpu.matmul %59, %57, %cst_70 {dimension_numbers = #tpu.dot_dimension_numbers<[1], [0], [0], [1], [0, 0, 1, 1], [], []>} : vector<32x16xbf16>, vector<16x128xbf16>, vector<32x128xf32> -> vector<32x128xf32>
    %61 = arith.addf %54, %60 : vector<32x128xf32>
    %c0_71 = arith.constant 0 : index
    %c0_72 = arith.constant 0 : index
    %c1_73 = arith.constant 1 : index
    %c0_74 = arith.constant 0 : index
    %c0_75 = arith.constant 0 : index
    %62 = vector.load %arg1[%c0_71, %c0_72, %c1_73, %c0_74, %c0_75] : memref<1x2x2x16x256xbf16, #tpu.memory_space<vmem>>, vector<1x1x1x16x256xbf16>
    %63 = vector.shape_cast %62 : vector<1x1x1x16x256xbf16> to vector<16x256xbf16>
    %64 = vector.extract_strided_slice %63 {offsets = [0, 9], sizes = [16, 128], strides = [1, 1]} : vector<16x256xbf16> to vector<16x128xbf16>
    %c9 = arith.constant 9 : index
    %c0_76 = arith.constant 0 : index
    %c0_77 = arith.constant 0 : index
    %65 = vector.load %arg2[%c9, %c0_76, %c0_77] : memref<16x32x16xbf16, #tpu.memory_space<vmem>>, vector<1x32x16xbf16>
    %66 = vector.shape_cast %65 : vector<1x32x16xbf16> to vector<32x16xbf16>
    %cst_78 = arith.constant dense<0.000000e+00> : vector<32x128xf32>
    %67 = tpu.matmul %66, %64, %cst_78 {dimension_numbers = #tpu.dot_dimension_numbers<[1], [0], [0], [1], [0, 0, 1, 1], [], []>} : vector<32x16xbf16>, vector<16x128xbf16>, vector<32x128xf32> -> vector<32x128xf32>
    %68 = arith.addf %61, %67 : vector<32x128xf32>
    %c0_79 = arith.constant 0 : index
    %c0_80 = arith.constant 0 : index
    %c0_81 = arith.constant 0 : index
    %c0_82 = arith.constant 0 : index
    %c0_83 = arith.constant 0 : index
    %69 = vector.load %arg1[%c0_79, %c0_80, %c0_81, %c0_82, %c0_83] : memref<1x2x2x16x256xbf16, #tpu.memory_space<vmem>>, vector<1x1x1x16x256xbf16>
    %70 = vector.shape_cast %69 : vector<1x1x1x16x256xbf16> to vector<16x256xbf16>
    %71 = vector.extract_strided_slice %70 {offsets = [0, 10], sizes = [16, 128], strides = [1, 1]} : vector<16x256xbf16> to vector<16x128xbf16>
    %c10 = arith.constant 10 : index
    %c0_84 = arith.constant 0 : index
    %c0_85 = arith.constant 0 : index
    %72 = vector.load %arg2[%c10, %c0_84, %c0_85] : memref<16x32x16xbf16, #tpu.memory_space<vmem>>, vector<1x32x16xbf16>
    %73 = vector.shape_cast %72 : vector<1x32x16xbf16> to vector<32x16xbf16>
    %cst_86 = arith.constant dense<0.000000e+00> : vector<32x128xf32>
    %74 = tpu.matmul %73, %71, %cst_86 {dimension_numbers = #tpu.dot_dimension_numbers<[1], [0], [0], [1], [0, 0, 1, 1], [], []>} : vector<32x16xbf16>, vector<16x128xbf16>, vector<32x128xf32> -> vector<32x128xf32>
    %75 = arith.addf %68, %74 : vector<32x128xf32>
    %c0_87 = arith.constant 0 : index
    %c0_88 = arith.constant 0 : index
    %c1_89 = arith.constant 1 : index
    %c0_90 = arith.constant 0 : index
    %c0_91 = arith.constant 0 : index
    %76 = vector.load %arg1[%c0_87, %c0_88, %c1_89, %c0_90, %c0_91] : memref<1x2x2x16x256xbf16, #tpu.memory_space<vmem>>, vector<1x1x1x16x256xbf16>
    %77 = vector.shape_cast %76 : vector<1x1x1x16x256xbf16> to vector<16x256xbf16>
    %78 = vector.extract_strided_slice %77 {offsets = [0, 10], sizes = [16, 128], strides = [1, 1]} : vector<16x256xbf16> to vector<16x128xbf16>
    %c11 = arith.constant 11 : index
    %c0_92 = arith.constant 0 : index
    %c0_93 = arith.constant 0 : index
    %79 = vector.load %arg2[%c11, %c0_92, %c0_93] : memref<16x32x16xbf16, #tpu.memory_space<vmem>>, vector<1x32x16xbf16>
    %80 = vector.shape_cast %79 : vector<1x32x16xbf16> to vector<32x16xbf16>
    %cst_94 = arith.constant dense<0.000000e+00> : vector<32x128xf32>
    %81 = tpu.matmul %80, %78, %cst_94 {dimension_numbers = #tpu.dot_dimension_numbers<[1], [0], [0], [1], [0, 0, 1, 1], [], []>} : vector<32x16xbf16>, vector<16x128xbf16>, vector<32x128xf32> -> vector<32x128xf32>
    %82 = arith.addf %75, %81 : vector<32x128xf32>
    %c0_95 = arith.constant 0 : index
    %c1_96 = arith.constant 1 : index
    %c0_97 = arith.constant 0 : index
    %c0_98 = arith.constant 0 : index
    %c0_99 = arith.constant 0 : index
    %83 = vector.load %arg1[%c0_95, %c1_96, %c0_97, %c0_98, %c0_99] : memref<1x2x2x16x256xbf16, #tpu.memory_space<vmem>>, vector<1x1x1x16x256xbf16>
    %84 = vector.shape_cast %83 : vector<1x1x1x16x256xbf16> to vector<16x256xbf16>
    %85 = vector.extract_strided_slice %84 {offsets = [0, 9], sizes = [16, 128], strides = [1, 1]} : vector<16x256xbf16> to vector<16x128xbf16>
    %c12 = arith.constant 12 : index
    %c0_100 = arith.constant 0 : index
    %c0_101 = arith.constant 0 : index
    %86 = vector.load %arg2[%c12, %c0_100, %c0_101] : memref<16x32x16xbf16, #tpu.memory_space<vmem>>, vector<1x32x16xbf16>
    %87 = vector.shape_cast %86 : vector<1x32x16xbf16> to vector<32x16xbf16>
    %cst_102 = arith.constant dense<0.000000e+00> : vector<32x128xf32>
    %88 = tpu.matmul %87, %85, %cst_102 {dimension_numbers = #tpu.dot_dimension_numbers<[1], [0], [0], [1], [0, 0, 1, 1], [], []>} : vector<32x16xbf16>, vector<16x128xbf16>, vector<32x128xf32> -> vector<32x128xf32>
    %89 = arith.addf %82, %88 : vector<32x128xf32>
    %c0_103 = arith.constant 0 : index
    %c1_104 = arith.constant 1 : index
    %c1_105 = arith.constant 1 : index
    %c0_106 = arith.constant 0 : index
    %c0_107 = arith.constant 0 : index
    %90 = vector.load %arg1[%c0_103, %c1_104, %c1_105, %c0_106, %c0_107] : memref<1x2x2x16x256xbf16, #tpu.memory_space<vmem>>, vector<1x1x1x16x256xbf16>
    %91 = vector.shape_cast %90 : vector<1x1x1x16x256xbf16> to vector<16x256xbf16>
    %92 = vector.extract_strided_slice %91 {offsets = [0, 9], sizes = [16, 128], strides = [1, 1]} : vector<16x256xbf16> to vector<16x128xbf16>
    %c13 = arith.constant 13 : index
    %c0_108 = arith.constant 0 : index
    %c0_109 = arith.constant 0 : index
    %93 = vector.load %arg2[%c13, %c0_108, %c0_109] : memref<16x32x16xbf16, #tpu.memory_space<vmem>>, vector<1x32x16xbf16>
    %94 = vector.shape_cast %93 : vector<1x32x16xbf16> to vector<32x16xbf16>
    %cst_110 = arith.constant dense<0.000000e+00> : vector<32x128xf32>
    %95 = tpu.matmul %94, %92, %cst_110 {dimension_numbers = #tpu.dot_dimension_numbers<[1], [0], [0], [1], [0, 0, 1, 1], [], []>} : vector<32x16xbf16>, vector<16x128xbf16>, vector<32x128xf32> -> vector<32x128xf32>
    %96 = arith.addf %89, %95 : vector<32x128xf32>
    %c0_111 = arith.constant 0 : index
    %c1_112 = arith.constant 1 : index
    %c0_113 = arith.constant 0 : index
    %c0_114 = arith.constant 0 : index
    %c0_115 = arith.constant 0 : index
    %97 = vector.load %arg1[%c0_111, %c1_112, %c0_113, %c0_114, %c0_115] : memref<1x2x2x16x256xbf16, #tpu.memory_space<vmem>>, vector<1x1x1x16x256xbf16>
    %98 = vector.shape_cast %97 : vector<1x1x1x16x256xbf16> to vector<16x256xbf16>
    %99 = vector.extract_strided_slice %98 {offsets = [0, 10], sizes = [16, 128], strides = [1, 1]} : vector<16x256xbf16> to vector<16x128xbf16>
    %c14 = arith.constant 14 : index
    %c0_116 = arith.constant 0 : index
    %c0_117 = arith.constant 0 : index
    %100 = vector.load %arg2[%c14, %c0_116, %c0_117] : memref<16x32x16xbf16, #tpu.memory_space<vmem>>, vector<1x32x16xbf16>
    %101 = vector.shape_cast %100 : vector<1x32x16xbf16> to vector<32x16xbf16>
    %cst_118 = arith.constant dense<0.000000e+00> : vector<32x128xf32>
    %102 = tpu.matmul %101, %99, %cst_118 {dimension_numbers = #tpu.dot_dimension_numbers<[1], [0], [0], [1], [0, 0, 1, 1], [], []>} : vector<32x16xbf16>, vector<16x128xbf16>, vector<32x128xf32> -> vector<32x128xf32>
    %103 = arith.addf %96, %102 : vector<32x128xf32>
    %c0_119 = arith.constant 0 : index
    %c1_120 = arith.constant 1 : index
    %c1_121 = arith.constant 1 : index
    %c0_122 = arith.constant 0 : index
    %c0_123 = arith.constant 0 : index
    %104 = vector.load %arg1[%c0_119, %c1_120, %c1_121, %c0_122, %c0_123] : memref<1x2x2x16x256xbf16, #tpu.memory_space<vmem>>, vector<1x1x1x16x256xbf16>
    %105 = vector.shape_cast %104 : vector<1x1x1x16x256xbf16> to vector<16x256xbf16>
    %106 = vector.extract_strided_slice %105 {offsets = [0, 10], sizes = [16, 128], strides = [1, 1]} : vector<16x256xbf16> to vector<16x128xbf16>
    %c15 = arith.constant 15 : index
    %c0_124 = arith.constant 0 : index
    %c0_125 = arith.constant 0 : index
    %107 = vector.load %arg2[%c15, %c0_124, %c0_125] : memref<16x32x16xbf16, #tpu.memory_space<vmem>>, vector<1x32x16xbf16>
    %108 = vector.shape_cast %107 : vector<1x32x16xbf16> to vector<32x16xbf16>
    %cst_126 = arith.constant dense<0.000000e+00> : vector<32x128xf32>
    %109 = tpu.matmul %108, %106, %cst_126 {dimension_numbers = #tpu.dot_dimension_numbers<[1], [0], [0], [1], [0, 0, 1, 1], [], []>} : vector<32x16xbf16>, vector<16x128xbf16>, vector<32x128xf32> -> vector<32x128xf32>
    %110 = arith.addf %103, %109 : vector<32x128xf32>
    %cst_127 = arith.constant 0.000000e+00 : f32
    %111 = vector.broadcast %cst_127 : f32 to vector<32x128xf32>
    %112 = arith.maximumf %110, %111 : vector<32x128xf32>
    %113 = arith.truncf %112 : vector<32x128xf32> to vector<32x128xbf16>
    %c0_128 = arith.constant 0 : index
    %c0_129 = arith.constant 0 : index
    %c0_130 = arith.constant 0 : index
    %114 = vector.load %arg3[%c0_128, %c0_129, %c0_130] : memref<1x32x128xbf16, #tpu.memory_space<vmem>>, vector<1x32x128xbf16>
    %115 = vector.shape_cast %114 : vector<1x32x128xbf16> to vector<32x128xbf16>
    %116 = vector.shape_cast %113 : vector<32x128xbf16> to vector<1x32x128xbf16>
    tpu.vector_store %arg3[%c0_128, %c0_129, %c0_130], %116 {strides = array<i32>} : memref<1x32x128xbf16, #tpu.memory_space<vmem>>, vector<1x32x128xbf16>,
    return
  }
  func.func @transform_0(%arg0: i32) -> (i32, i32, i32, i32, i32) {
    %c0_i32 = arith.constant 0 : i32
    %c0_i32_0 = arith.constant 0 : i32
    %c0_i32_1 = arith.constant 0 : i32
    %c0_i32_2 = arith.constant 0 : i32
    %c0_i32_3 = arith.constant 0 : i32
    return %arg0, %c0_i32, %c0_i32_0, %c0_i32_1, %c0_i32_2 : i32, i32, i32, i32, i32
  }
  func.func @transform_1(%arg0: i32) -> (i32, i32, i32) {
    %c0_i32 = arith.constant 0 : i32
    %c0_i32_0 = arith.constant 0 : i32
    %c0_i32_1 = arith.constant 0 : i32
    %c0_i32_2 = arith.constant 0 : i32
    return %c0_i32, %c0_i32_0, %c0_i32_1 : i32, i32, i32
  }
  func.func @transform_2(%arg0: i32) -> (i32, i32, i32) {
    %c0_i32 = arith.constant 0 : i32
    %c0_i32_0 = arith.constant 0 : i32
    %c0_i32_1 = arith.constant 0 : i32
    return %arg0, %c0_i32, %c0_i32_0 : i32, i32, i32
  }
}

module attributes {stable_mosaic.version = 11 : i64} {
  func.func @_conv4x4_s2_kernel(%arg0: i32, %arg1: memref<1x2x2x32x256xbf16, #tpu.memory_space<vmem>>, %arg2: memref<16x64x32xbf16, #tpu.memory_space<vmem>>, %arg3: memref<1x64x128xbf16, #tpu.memory_space<vmem>>) attributes {dimension_semantics = [#tpu.dimension_semantics<parallel>], iteration_bounds = array<i64: 2>, scalar_prefetch = 0 : i64, scratch_operands = 0 : i64, tpu.core_type = #tpu.core_type<tc>, window_params = [{transform_indices = @transform_0, window_bounds = array<i64: 1, 2, 2, 32, 256>}, {pipeline_mode = #tpu.pipeline_mode<synchronous>, transform_indices = @transform_1, window_bounds = array<i64: 16, 64, 32>}, {transform_indices = @transform_2, window_bounds = array<i64: 1, 64, 128>}]} {
    %c0 = arith.constant 0 : index
    %c0_0 = arith.constant 0 : index
    %c0_1 = arith.constant 0 : index
    %c0_2 = arith.constant 0 : index
    %c0_3 = arith.constant 0 : index
    %0 = vector.load %arg1[%c0, %c0_0, %c0_1, %c0_2, %c0_3] : memref<1x2x2x32x256xbf16, #tpu.memory_space<vmem>>, vector<1x1x1x32x256xbf16>
    %1 = vector.shape_cast %0 : vector<1x1x1x32x256xbf16> to vector<32x256xbf16>
    %2 = vector.extract_strided_slice %1 {offsets = [0, 0], sizes = [32, 128], strides = [1, 1]} : vector<32x256xbf16> to vector<32x128xbf16>
    %c0_4 = arith.constant 0 : index
    %c0_5 = arith.constant 0 : index
    %c0_6 = arith.constant 0 : index
    %3 = vector.load %arg2[%c0_4, %c0_5, %c0_6] : memref<16x64x32xbf16, #tpu.memory_space<vmem>>, vector<1x64x32xbf16>
    %4 = vector.shape_cast %3 : vector<1x64x32xbf16> to vector<64x32xbf16>
    %cst = arith.constant dense<0.000000e+00> : vector<64x128xf32>
    %5 = tpu.matmul %4, %2, %cst {dimension_numbers = #tpu.dot_dimension_numbers<[1], [0], [0], [1], [0, 0, 1, 1], [], []>} : vector<64x32xbf16>, vector<32x128xbf16>, vector<64x128xf32> -> vector<64x128xf32>
    %c0_7 = arith.constant 0 : index
    %c0_8 = arith.constant 0 : index
    %c1 = arith.constant 1 : index
    %c0_9 = arith.constant 0 : index
    %c0_10 = arith.constant 0 : index
    %6 = vector.load %arg1[%c0_7, %c0_8, %c1, %c0_9, %c0_10] : memref<1x2x2x32x256xbf16, #tpu.memory_space<vmem>>, vector<1x1x1x32x256xbf16>
    %7 = vector.shape_cast %6 : vector<1x1x1x32x256xbf16> to vector<32x256xbf16>
    %8 = vector.extract_strided_slice %7 {offsets = [0, 0], sizes = [32, 128], strides = [1, 1]} : vector<32x256xbf16> to vector<32x128xbf16>
    %c1_11 = arith.constant 1 : index
    %c0_12 = arith.constant 0 : index
    %c0_13 = arith.constant 0 : index
    %9 = vector.load %arg2[%c1_11, %c0_12, %c0_13] : memref<16x64x32xbf16, #tpu.memory_space<vmem>>, vector<1x64x32xbf16>
    %10 = vector.shape_cast %9 : vector<1x64x32xbf16> to vector<64x32xbf16>
    %cst_14 = arith.constant dense<0.000000e+00> : vector<64x128xf32>
    %11 = tpu.matmul %10, %8, %cst_14 {dimension_numbers = #tpu.dot_dimension_numbers<[1], [0], [0], [1], [0, 0, 1, 1], [], []>} : vector<64x32xbf16>, vector<32x128xbf16>, vector<64x128xf32> -> vector<64x128xf32>
    %12 = arith.addf %5, %11 : vector<64x128xf32>
    %c0_15 = arith.constant 0 : index
    %c0_16 = arith.constant 0 : index
    %c0_17 = arith.constant 0 : index
    %c0_18 = arith.constant 0 : index
    %c0_19 = arith.constant 0 : index
    %13 = vector.load %arg1[%c0_15, %c0_16, %c0_17, %c0_18, %c0_19] : memref<1x2x2x32x256xbf16, #tpu.memory_space<vmem>>, vector<1x1x1x32x256xbf16>
    %14 = vector.shape_cast %13 : vector<1x1x1x32x256xbf16> to vector<32x256xbf16>
    %15 = vector.extract_strided_slice %14 {offsets = [0, 1], sizes = [32, 128], strides = [1, 1]} : vector<32x256xbf16> to vector<32x128xbf16>
    %c2 = arith.constant 2 : index
    %c0_20 = arith.constant 0 : index
    %c0_21 = arith.constant 0 : index
    %16 = vector.load %arg2[%c2, %c0_20, %c0_21] : memref<16x64x32xbf16, #tpu.memory_space<vmem>>, vector<1x64x32xbf16>
    %17 = vector.shape_cast %16 : vector<1x64x32xbf16> to vector<64x32xbf16>
    %cst_22 = arith.constant dense<0.000000e+00> : vector<64x128xf32>
    %18 = tpu.matmul %17, %15, %cst_22 {dimension_numbers = #tpu.dot_dimension_numbers<[1], [0], [0], [1], [0, 0, 1, 1], [], []>} : vector<64x32xbf16>, vector<32x128xbf16>, vector<64x128xf32> -> vector<64x128xf32>
    %19 = arith.addf %12, %18 : vector<64x128xf32>
    %c0_23 = arith.constant 0 : index
    %c0_24 = arith.constant 0 : index
    %c1_25 = arith.constant 1 : index
    %c0_26 = arith.constant 0 : index
    %c0_27 = arith.constant 0 : index
    %20 = vector.load %arg1[%c0_23, %c0_24, %c1_25, %c0_26, %c0_27] : memref<1x2x2x32x256xbf16, #tpu.memory_space<vmem>>, vector<1x1x1x32x256xbf16>
    %21 = vector.shape_cast %20 : vector<1x1x1x32x256xbf16> to vector<32x256xbf16>
    %22 = vector.extract_strided_slice %21 {offsets = [0, 1], sizes = [32, 128], strides = [1, 1]} : vector<32x256xbf16> to vector<32x128xbf16>
    %c3 = arith.constant 3 : index
    %c0_28 = arith.constant 0 : index
    %c0_29 = arith.constant 0 : index
    %23 = vector.load %arg2[%c3, %c0_28, %c0_29] : memref<16x64x32xbf16, #tpu.memory_space<vmem>>, vector<1x64x32xbf16>
    %24 = vector.shape_cast %23 : vector<1x64x32xbf16> to vector<64x32xbf16>
    %cst_30 = arith.constant dense<0.000000e+00> : vector<64x128xf32>
    %25 = tpu.matmul %24, %22, %cst_30 {dimension_numbers = #tpu.dot_dimension_numbers<[1], [0], [0], [1], [0, 0, 1, 1], [], []>} : vector<64x32xbf16>, vector<32x128xbf16>, vector<64x128xf32> -> vector<64x128xf32>
    %26 = arith.addf %19, %25 : vector<64x128xf32>
    %c0_31 = arith.constant 0 : index
    %c1_32 = arith.constant 1 : index
    %c0_33 = arith.constant 0 : index
    %c0_34 = arith.constant 0 : index
    %c0_35 = arith.constant 0 : index
    %27 = vector.load %arg1[%c0_31, %c1_32, %c0_33, %c0_34, %c0_35] : memref<1x2x2x32x256xbf16, #tpu.memory_space<vmem>>, vector<1x1x1x32x256xbf16>
    %28 = vector.shape_cast %27 : vector<1x1x1x32x256xbf16> to vector<32x256xbf16>
    %29 = vector.extract_strided_slice %28 {offsets = [0, 0], sizes = [32, 128], strides = [1, 1]} : vector<32x256xbf16> to vector<32x128xbf16>
    %c4 = arith.constant 4 : index
    %c0_36 = arith.constant 0 : index
    %c0_37 = arith.constant 0 : index
    %30 = vector.load %arg2[%c4, %c0_36, %c0_37] : memref<16x64x32xbf16, #tpu.memory_space<vmem>>, vector<1x64x32xbf16>
    %31 = vector.shape_cast %30 : vector<1x64x32xbf16> to vector<64x32xbf16>
    %cst_38 = arith.constant dense<0.000000e+00> : vector<64x128xf32>
    %32 = tpu.matmul %31, %29, %cst_38 {dimension_numbers = #tpu.dot_dimension_numbers<[1], [0], [0], [1], [0, 0, 1, 1], [], []>} : vector<64x32xbf16>, vector<32x128xbf16>, vector<64x128xf32> -> vector<64x128xf32>
    %33 = arith.addf %26, %32 : vector<64x128xf32>
    %c0_39 = arith.constant 0 : index
    %c1_40 = arith.constant 1 : index
    %c1_41 = arith.constant 1 : index
    %c0_42 = arith.constant 0 : index
    %c0_43 = arith.constant 0 : index
    %34 = vector.load %arg1[%c0_39, %c1_40, %c1_41, %c0_42, %c0_43] : memref<1x2x2x32x256xbf16, #tpu.memory_space<vmem>>, vector<1x1x1x32x256xbf16>
    %35 = vector.shape_cast %34 : vector<1x1x1x32x256xbf16> to vector<32x256xbf16>
    %36 = vector.extract_strided_slice %35 {offsets = [0, 0], sizes = [32, 128], strides = [1, 1]} : vector<32x256xbf16> to vector<32x128xbf16>
    %c5 = arith.constant 5 : index
    %c0_44 = arith.constant 0 : index
    %c0_45 = arith.constant 0 : index
    %37 = vector.load %arg2[%c5, %c0_44, %c0_45] : memref<16x64x32xbf16, #tpu.memory_space<vmem>>, vector<1x64x32xbf16>
    %38 = vector.shape_cast %37 : vector<1x64x32xbf16> to vector<64x32xbf16>
    %cst_46 = arith.constant dense<0.000000e+00> : vector<64x128xf32>
    %39 = tpu.matmul %38, %36, %cst_46 {dimension_numbers = #tpu.dot_dimension_numbers<[1], [0], [0], [1], [0, 0, 1, 1], [], []>} : vector<64x32xbf16>, vector<32x128xbf16>, vector<64x128xf32> -> vector<64x128xf32>
    %40 = arith.addf %33, %39 : vector<64x128xf32>
    %c0_47 = arith.constant 0 : index
    %c1_48 = arith.constant 1 : index
    %c0_49 = arith.constant 0 : index
    %c0_50 = arith.constant 0 : index
    %c0_51 = arith.constant 0 : index
    %41 = vector.load %arg1[%c0_47, %c1_48, %c0_49, %c0_50, %c0_51] : memref<1x2x2x32x256xbf16, #tpu.memory_space<vmem>>, vector<1x1x1x32x256xbf16>
    %42 = vector.shape_cast %41 : vector<1x1x1x32x256xbf16> to vector<32x256xbf16>
    %43 = vector.extract_strided_slice %42 {offsets = [0, 1], sizes = [32, 128], strides = [1, 1]} : vector<32x256xbf16> to vector<32x128xbf16>
    %c6 = arith.constant 6 : index
    %c0_52 = arith.constant 0 : index
    %c0_53 = arith.constant 0 : index
    %44 = vector.load %arg2[%c6, %c0_52, %c0_53] : memref<16x64x32xbf16, #tpu.memory_space<vmem>>, vector<1x64x32xbf16>
    %45 = vector.shape_cast %44 : vector<1x64x32xbf16> to vector<64x32xbf16>
    %cst_54 = arith.constant dense<0.000000e+00> : vector<64x128xf32>
    %46 = tpu.matmul %45, %43, %cst_54 {dimension_numbers = #tpu.dot_dimension_numbers<[1], [0], [0], [1], [0, 0, 1, 1], [], []>} : vector<64x32xbf16>, vector<32x128xbf16>, vector<64x128xf32> -> vector<64x128xf32>
    %47 = arith.addf %40, %46 : vector<64x128xf32>
    %c0_55 = arith.constant 0 : index
    %c1_56 = arith.constant 1 : index
    %c1_57 = arith.constant 1 : index
    %c0_58 = arith.constant 0 : index
    %c0_59 = arith.constant 0 : index
    %48 = vector.load %arg1[%c0_55, %c1_56, %c1_57, %c0_58, %c0_59] : memref<1x2x2x32x256xbf16, #tpu.memory_space<vmem>>, vector<1x1x1x32x256xbf16>
    %49 = vector.shape_cast %48 : vector<1x1x1x32x256xbf16> to vector<32x256xbf16>
    %50 = vector.extract_strided_slice %49 {offsets = [0, 1], sizes = [32, 128], strides = [1, 1]} : vector<32x256xbf16> to vector<32x128xbf16>
    %c7 = arith.constant 7 : index
    %c0_60 = arith.constant 0 : index
    %c0_61 = arith.constant 0 : index
    %51 = vector.load %arg2[%c7, %c0_60, %c0_61] : memref<16x64x32xbf16, #tpu.memory_space<vmem>>, vector<1x64x32xbf16>
    %52 = vector.shape_cast %51 : vector<1x64x32xbf16> to vector<64x32xbf16>
    %cst_62 = arith.constant dense<0.000000e+00> : vector<64x128xf32>
    %53 = tpu.matmul %52, %50, %cst_62 {dimension_numbers = #tpu.dot_dimension_numbers<[1], [0], [0], [1], [0, 0, 1, 1], [], []>} : vector<64x32xbf16>, vector<32x128xbf16>, vector<64x128xf32> -> vector<64x128xf32>
    %54 = arith.addf %47, %53 : vector<64x128xf32>
    %c0_63 = arith.constant 0 : index
    %c0_64 = arith.constant 0 : index
    %c0_65 = arith.constant 0 : index
    %c0_66 = arith.constant 0 : index
    %c0_67 = arith.constant 0 : index
    %55 = vector.load %arg1[%c0_63, %c0_64, %c0_65, %c0_66, %c0_67] : memref<1x2x2x32x256xbf16, #tpu.memory_space<vmem>>, vector<1x1x1x32x256xbf16>
    %56 = vector.shape_cast %55 : vector<1x1x1x32x256xbf16> to vector<32x256xbf16>
    %57 = vector.extract_strided_slice %56 {offsets = [0, 5], sizes = [32, 128], strides = [1, 1]} : vector<32x256xbf16> to vector<32x128xbf16>
    %c8 = arith.constant 8 : index
    %c0_68 = arith.constant 0 : index
    %c0_69 = arith.constant 0 : index
    %58 = vector.load %arg2[%c8, %c0_68, %c0_69] : memref<16x64x32xbf16, #tpu.memory_space<vmem>>, vector<1x64x32xbf16>
    %59 = vector.shape_cast %58 : vector<1x64x32xbf16> to vector<64x32xbf16>
    %cst_70 = arith.constant dense<0.000000e+00> : vector<64x128xf32>
    %60 = tpu.matmul %59, %57, %cst_70 {dimension_numbers = #tpu.dot_dimension_numbers<[1], [0], [0], [1], [0, 0, 1, 1], [], []>} : vector<64x32xbf16>, vector<32x128xbf16>, vector<64x128xf32> -> vector<64x128xf32>
    %61 = arith.addf %54, %60 : vector<64x128xf32>
    %c0_71 = arith.constant 0 : index
    %c0_72 = arith.constant 0 : index
    %c1_73 = arith.constant 1 : index
    %c0_74 = arith.constant 0 : index
    %c0_75 = arith.constant 0 : index
    %62 = vector.load %arg1[%c0_71, %c0_72, %c1_73, %c0_74, %c0_75] : memref<1x2x2x32x256xbf16, #tpu.memory_space<vmem>>, vector<1x1x1x32x256xbf16>
    %63 = vector.shape_cast %62 : vector<1x1x1x32x256xbf16> to vector<32x256xbf16>
    %64 = vector.extract_strided_slice %63 {offsets = [0, 5], sizes = [32, 128], strides = [1, 1]} : vector<32x256xbf16> to vector<32x128xbf16>
    %c9 = arith.constant 9 : index
    %c0_76 = arith.constant 0 : index
    %c0_77 = arith.constant 0 : index
    %65 = vector.load %arg2[%c9, %c0_76, %c0_77] : memref<16x64x32xbf16, #tpu.memory_space<vmem>>, vector<1x64x32xbf16>
    %66 = vector.shape_cast %65 : vector<1x64x32xbf16> to vector<64x32xbf16>
    %cst_78 = arith.constant dense<0.000000e+00> : vector<64x128xf32>
    %67 = tpu.matmul %66, %64, %cst_78 {dimension_numbers = #tpu.dot_dimension_numbers<[1], [0], [0], [1], [0, 0, 1, 1], [], []>} : vector<64x32xbf16>, vector<32x128xbf16>, vector<64x128xf32> -> vector<64x128xf32>
    %68 = arith.addf %61, %67 : vector<64x128xf32>
    %c0_79 = arith.constant 0 : index
    %c0_80 = arith.constant 0 : index
    %c0_81 = arith.constant 0 : index
    %c0_82 = arith.constant 0 : index
    %c0_83 = arith.constant 0 : index
    %69 = vector.load %arg1[%c0_79, %c0_80, %c0_81, %c0_82, %c0_83] : memref<1x2x2x32x256xbf16, #tpu.memory_space<vmem>>, vector<1x1x1x32x256xbf16>
    %70 = vector.shape_cast %69 : vector<1x1x1x32x256xbf16> to vector<32x256xbf16>
    %71 = vector.extract_strided_slice %70 {offsets = [0, 6], sizes = [32, 128], strides = [1, 1]} : vector<32x256xbf16> to vector<32x128xbf16>
    %c10 = arith.constant 10 : index
    %c0_84 = arith.constant 0 : index
    %c0_85 = arith.constant 0 : index
    %72 = vector.load %arg2[%c10, %c0_84, %c0_85] : memref<16x64x32xbf16, #tpu.memory_space<vmem>>, vector<1x64x32xbf16>
    %73 = vector.shape_cast %72 : vector<1x64x32xbf16> to vector<64x32xbf16>
    %cst_86 = arith.constant dense<0.000000e+00> : vector<64x128xf32>
    %74 = tpu.matmul %73, %71, %cst_86 {dimension_numbers = #tpu.dot_dimension_numbers<[1], [0], [0], [1], [0, 0, 1, 1], [], []>} : vector<64x32xbf16>, vector<32x128xbf16>, vector<64x128xf32> -> vector<64x128xf32>
    %75 = arith.addf %68, %74 : vector<64x128xf32>
    %c0_87 = arith.constant 0 : index
    %c0_88 = arith.constant 0 : index
    %c1_89 = arith.constant 1 : index
    %c0_90 = arith.constant 0 : index
    %c0_91 = arith.constant 0 : index
    %76 = vector.load %arg1[%c0_87, %c0_88, %c1_89, %c0_90, %c0_91] : memref<1x2x2x32x256xbf16, #tpu.memory_space<vmem>>, vector<1x1x1x32x256xbf16>
    %77 = vector.shape_cast %76 : vector<1x1x1x32x256xbf16> to vector<32x256xbf16>
    %78 = vector.extract_strided_slice %77 {offsets = [0, 6], sizes = [32, 128], strides = [1, 1]} : vector<32x256xbf16> to vector<32x128xbf16>
    %c11 = arith.constant 11 : index
    %c0_92 = arith.constant 0 : index
    %c0_93 = arith.constant 0 : index
    %79 = vector.load %arg2[%c11, %c0_92, %c0_93] : memref<16x64x32xbf16, #tpu.memory_space<vmem>>, vector<1x64x32xbf16>
    %80 = vector.shape_cast %79 : vector<1x64x32xbf16> to vector<64x32xbf16>
    %cst_94 = arith.constant dense<0.000000e+00> : vector<64x128xf32>
    %81 = tpu.matmul %80, %78, %cst_94 {dimension_numbers = #tpu.dot_dimension_numbers<[1], [0], [0], [1], [0, 0, 1, 1], [], []>} : vector<64x32xbf16>, vector<32x128xbf16>, vector<64x128xf32> -> vector<64x128xf32>
    %82 = arith.addf %75, %81 : vector<64x128xf32>
    %c0_95 = arith.constant 0 : index
    %c1_96 = arith.constant 1 : index
    %c0_97 = arith.constant 0 : index
    %c0_98 = arith.constant 0 : index
    %c0_99 = arith.constant 0 : index
    %83 = vector.load %arg1[%c0_95, %c1_96, %c0_97, %c0_98, %c0_99] : memref<1x2x2x32x256xbf16, #tpu.memory_space<vmem>>, vector<1x1x1x32x256xbf16>
    %84 = vector.shape_cast %83 : vector<1x1x1x32x256xbf16> to vector<32x256xbf16>
    %85 = vector.extract_strided_slice %84 {offsets = [0, 5], sizes = [32, 128], strides = [1, 1]} : vector<32x256xbf16> to vector<32x128xbf16>
    %c12 = arith.constant 12 : index
    %c0_100 = arith.constant 0 : index
    %c0_101 = arith.constant 0 : index
    %86 = vector.load %arg2[%c12, %c0_100, %c0_101] : memref<16x64x32xbf16, #tpu.memory_space<vmem>>, vector<1x64x32xbf16>
    %87 = vector.shape_cast %86 : vector<1x64x32xbf16> to vector<64x32xbf16>
    %cst_102 = arith.constant dense<0.000000e+00> : vector<64x128xf32>
    %88 = tpu.matmul %87, %85, %cst_102 {dimension_numbers = #tpu.dot_dimension_numbers<[1], [0], [0], [1], [0, 0, 1, 1], [], []>} : vector<64x32xbf16>, vector<32x128xbf16>, vector<64x128xf32> -> vector<64x128xf32>
    %89 = arith.addf %82, %88 : vector<64x128xf32>
    %c0_103 = arith.constant 0 : index
    %c1_104 = arith.constant 1 : index
    %c1_105 = arith.constant 1 : index
    %c0_106 = arith.constant 0 : index
    %c0_107 = arith.constant 0 : index
    %90 = vector.load %arg1[%c0_103, %c1_104, %c1_105, %c0_106, %c0_107] : memref<1x2x2x32x256xbf16, #tpu.memory_space<vmem>>, vector<1x1x1x32x256xbf16>
    %91 = vector.shape_cast %90 : vector<1x1x1x32x256xbf16> to vector<32x256xbf16>
    %92 = vector.extract_strided_slice %91 {offsets = [0, 5], sizes = [32, 128], strides = [1, 1]} : vector<32x256xbf16> to vector<32x128xbf16>
    %c13 = arith.constant 13 : index
    %c0_108 = arith.constant 0 : index
    %c0_109 = arith.constant 0 : index
    %93 = vector.load %arg2[%c13, %c0_108, %c0_109] : memref<16x64x32xbf16, #tpu.memory_space<vmem>>, vector<1x64x32xbf16>
    %94 = vector.shape_cast %93 : vector<1x64x32xbf16> to vector<64x32xbf16>
    %cst_110 = arith.constant dense<0.000000e+00> : vector<64x128xf32>
    %95 = tpu.matmul %94, %92, %cst_110 {dimension_numbers = #tpu.dot_dimension_numbers<[1], [0], [0], [1], [0, 0, 1, 1], [], []>} : vector<64x32xbf16>, vector<32x128xbf16>, vector<64x128xf32> -> vector<64x128xf32>
    %96 = arith.addf %89, %95 : vector<64x128xf32>
    %c0_111 = arith.constant 0 : index
    %c1_112 = arith.constant 1 : index
    %c0_113 = arith.constant 0 : index
    %c0_114 = arith.constant 0 : index
    %c0_115 = arith.constant 0 : index
    %97 = vector.load %arg1[%c0_111, %c1_112, %c0_113, %c0_114, %c0_115] : memref<1x2x2x32x256xbf16, #tpu.memory_space<vmem>>, vector<1x1x1x32x256xbf16>
    %98 = vector.shape_cast %97 : vector<1x1x1x32x256xbf16> to vector<32x256xbf16>
    %99 = vector.extract_strided_slice %98 {offsets = [0, 6], sizes = [32, 128], strides = [1, 1]} : vector<32x256xbf16> to vector<32x128xbf16>
    %c14 = arith.constant 14 : index
    %c0_116 = arith.constant 0 : index
    %c0_117 = arith.constant 0 : index
    %100 = vector.load %arg2[%c14, %c0_116, %c0_117] : memref<16x64x32xbf16, #tpu.memory_space<vmem>>, vector<1x64x32xbf16>
    %101 = vector.shape_cast %100 : vector<1x64x32xbf16> to vector<64x32xbf16>
    %cst_118 = arith.constant dense<0.000000e+00> : vector<64x128xf32>
    %102 = tpu.matmul %101, %99, %cst_118 {dimension_numbers = #tpu.dot_dimension_numbers<[1], [0], [0], [1], [0, 0, 1, 1], [], []>} : vector<64x32xbf16>, vector<32x128xbf16>, vector<64x128xf32> -> vector<64x128xf32>
    %103 = arith.addf %96, %102 : vector<64x128xf32>
    %c0_119 = arith.constant 0 : index
    %c1_120 = arith.constant 1 : index
    %c1_121 = arith.constant 1 : index
    %c0_122 = arith.constant 0 : index
    %c0_123 = arith.constant 0 : index
    %104 = vector.load %arg1[%c0_119, %c1_120, %c1_121, %c0_122, %c0_123] : memref<1x2x2x32x256xbf16, #tpu.memory_space<vmem>>, vector<1x1x1x32x256xbf16>
    %105 = vector.shape_cast %104 : vector<1x1x1x32x256xbf16> to vector<32x256xbf16>
    %106 = vector.extract_strided_slice %105 {offsets = [0, 6], sizes = [32, 128], strides = [1, 1]} : vector<32x256xbf16> to vector<32x128xbf16>
    %c15 = arith.constant 15 : index
    %c0_124 = arith.constant 0 : index
    %c0_125 = arith.constant 0 : index
    %107 = vector.load %arg2[%c15, %c0_124, %c0_125] : memref<16x64x32xbf16, #tpu.memory_space<vmem>>, vector<1x64x32xbf16>
    %108 = vector.shape_cast %107 : vector<1x64x32xbf16> to vector<64x32xbf16>
    %cst_126 = arith.constant dense<0.000000e+00> : vector<64x128xf32>
    %109 = tpu.matmul %108, %106, %cst_126 {dimension_numbers = #tpu.dot_dimension_numbers<[1], [0], [0], [1], [0, 0, 1, 1], [], []>} : vector<64x32xbf16>, vector<32x128xbf16>, vector<64x128xf32> -> vector<64x128xf32>
    %110 = arith.addf %103, %109 : vector<64x128xf32>
    %cst_127 = arith.constant 0.000000e+00 : f32
    %111 = vector.broadcast %cst_127 : f32 to vector<64x128xf32>
    %112 = arith.maximumf %110, %111 : vector<64x128xf32>
    %113 = arith.truncf %112 : vector<64x128xf32> to vector<64x128xbf16>
    %c0_128 = arith.constant 0 : index
    %c0_129 = arith.constant 0 : index
    %c0_130 = arith.constant 0 : index
    %114 = vector.load %arg3[%c0_128, %c0_129, %c0_130] : memref<1x64x128xbf16, #tpu.memory_space<vmem>>, vector<1x64x128xbf16>
    %115 = vector.shape_cast %114 : vector<1x64x128xbf16> to vector<64x128xbf16>
    %116 = vector.shape_cast %113 : vector<64x128xbf16> to vector<1x64x128xbf16>
    tpu.vector_store %arg3[%c0_128, %c0_129, %c0_130], %116 {strides = array<i32>} : memref<1x64x128xbf16, #tpu.memory_space<vmem>>, vector<1x64x128xbf16>,
    return
  }
  func.func @transform_0(%arg0: i32) -> (i32, i32, i32, i32, i32) {
    %c0_i32 = arith.constant 0 : i32
    %c0_i32_0 = arith.constant 0 : i32
    %c0_i32_1 = arith.constant 0 : i32
    %c0_i32_2 = arith.constant 0 : i32
    %c0_i32_3 = arith.constant 0 : i32
    return %arg0, %c0_i32, %c0_i32_0, %c0_i32_1, %c0_i32_2 : i32, i32, i32, i32, i32
  }
  func.func @transform_1(%arg0: i32) -> (i32, i32, i32) {
    %c0_i32 = arith.constant 0 : i32
    %c0_i32_0 = arith.constant 0 : i32
    %c0_i32_1 = arith.constant 0 : i32
    %c0_i32_2 = arith.constant 0 : i32
    return %c0_i32, %c0_i32_0, %c0_i32_1 : i32, i32, i32
  }
  func.func @transform_2(%arg0: i32) -> (i32, i32, i32) {
    %c0_i32 = arith.constant 0 : i32
    %c0_i32_0 = arith.constant 0 : i32
    %c0_i32_1 = arith.constant 0 : i32
    return %arg0, %c0_i32, %c0_i32_0 : i32, i32, i32
  }
}

module attributes {stable_mosaic.version = 11 : i64} {
  func.func @_linear_rowsum_kernel(%arg0: i32, %arg1: memref<2x1024xbf16, #tpu.memory_space<vmem>>, %arg2: memref<1x1024xbf16, #tpu.memory_space<vmem>>, %arg3: memref<1x1xf32, #tpu.memory_space<vmem>>, %arg4: memref<2x1xf32, #tpu.memory_space<vmem>>) attributes {dimension_semantics = [#tpu.dimension_semantics<arbitrary>], iteration_bounds = array<i64: 1>, scalar_prefetch = 0 : i64, scratch_operands = 0 : i64, tpu.core_type = #tpu.core_type<tc>, window_params = [{pipeline_mode = #tpu.pipeline_mode<synchronous>, transform_indices = @transform_0, window_bounds = array<i64: 2, 1024>}, {pipeline_mode = #tpu.pipeline_mode<synchronous>, transform_indices = @transform_1, window_bounds = array<i64: 1, 1024>}, {pipeline_mode = #tpu.pipeline_mode<synchronous>, transform_indices = @transform_2, window_bounds = array<i64: 1, 1>}, {pipeline_mode = #tpu.pipeline_mode<synchronous>, transform_indices = @transform_3, window_bounds = array<i64: 2, 1>}]} {
    %c0 = arith.constant 0 : index
    %c0_0 = arith.constant 0 : index
    %0 = vector.load %arg1[%c0, %c0_0] : memref<2x1024xbf16, #tpu.memory_space<vmem>>, vector<2x1024xbf16>
    %1 = arith.extf %0 : vector<2x1024xbf16> to vector<2x1024xf32>
    %c0_1 = arith.constant 0 : index
    %c0_2 = arith.constant 0 : index
    %2 = vector.load %arg2[%c0_1, %c0_2] : memref<1x1024xbf16, #tpu.memory_space<vmem>>, vector<1x1024xbf16>
    %3 = arith.extf %2 : vector<1x1024xbf16> to vector<1x1024xf32>
    %4 = vector.broadcast %3 : vector<1x1024xf32> to vector<2x1024xf32>
    %5 = arith.mulf %1, %4 : vector<2x1024xf32>
    %cst = arith.constant dense<0.000000e+00> : vector<2xf32>
    %6 = vector.multi_reduction <add>, %5, %cst [1] : vector<2x1024xf32> to vector<2xf32>
    %7 = vector.shape_cast %6 : vector<2xf32> to vector<2x1xf32>
    %c0_3 = arith.constant 0 : index
    %c0_4 = arith.constant 0 : index
    %8 = vector.load %arg3[%c0_3, %c0_4] : memref<1x1xf32, #tpu.memory_space<vmem>>, vector<1x1xf32>
    %9 = vector.broadcast %8 : vector<1x1xf32> to vector<2x1xf32>
    %10 = arith.addf %7, %9 : vector<2x1xf32>
    %c0_5 = arith.constant 0 : index
    %c0_6 = arith.constant 0 : index
    %11 = vector.load %arg4[%c0_5, %c0_6] : memref<2x1xf32, #tpu.memory_space<vmem>>, vector<2x1xf32>
    tpu.vector_store %arg4[%c0_5, %c0_6], %10 {strides = array<i32>} : memref<2x1xf32, #tpu.memory_space<vmem>>, vector<2x1xf32>,
    return
  }
  func.func @transform_0(%arg0: i32) -> (i32, i32) {
    %c0_i32 = arith.constant 0 : i32
    %c0_i32_0 = arith.constant 0 : i32
    %c0_i32_1 = arith.constant 0 : i32
    return %c0_i32, %c0_i32_0 : i32, i32
  }
  func.func @transform_1(%arg0: i32) -> (i32, i32) {
    %c0_i32 = arith.constant 0 : i32
    %c0_i32_0 = arith.constant 0 : i32
    %c0_i32_1 = arith.constant 0 : i32
    return %c0_i32, %c0_i32_0 : i32, i32
  }
  func.func @transform_2(%arg0: i32) -> (i32, i32) {
    %c0_i32 = arith.constant 0 : i32
    %c0_i32_0 = arith.constant 0 : i32
    %c0_i32_1 = arith.constant 0 : i32
    return %c0_i32, %c0_i32_0 : i32, i32
  }
  func.func @transform_3(%arg0: i32) -> (i32, i32) {
    %c0_i32 = arith.constant 0 : i32
    %c0_i32_0 = arith.constant 0 : i32
    %c0_i32_1 = arith.constant 0 : i32
    return %c0_i32, %c0_i32_0 : i32, i32
  }
}

</mosaic_0001>

<bundles_post_ra>
// kernel: dc_discriminator_forward.5
= control target key start
LH: loop header
LB: loop body
LE: loop exit
PB: predicated region body
PF: predicated region fallthrough
CT: control target
= control target key end

     0   :  { %s3633_s9 = smov 0   ;;  %s4878_s0 = inlined_call_operand.vmem [shape: bf16[2,2,2,3,1280], index: 0, kind: input, shape index: {}]   ;;  %s4879_s1 = inlined_call_operand.vmem [shape: bf16[16,8,3], index: 1, kind: input, shape index: {}]   ;;  %s4880_s2 = inlined_call_operand.vmem [shape: bf16[2,8,1152], index: 2, kind: output, shape index: {}]  }
   0x1 LB: > { %s3415_s10 = sadd.s32 4294967295, %s3612_s9   ;;  %p3419_p0 = scmp.ge.s32.totalorder %s3612_s9, 1  ;;  %s3612_s9 = sphi %s3633_s9, %s12_s9  }
   0x2   : > { %p112_p1 = scmp.lt.s32.totalorder %s3612_s9, 3 }
   0x4   : > { %p113_p2 = pnand %p3419_p0, %p112_p1 }
   0x5   : > { %p134_p3 = scmp.lt.s32.totalorder (!%p113_p2), %s3415_s10, 1  ;;  %s3615_s15 = smov (!%p113_p2), 127  }
   0x6   : > { %116 = sbr.rel (%p113_p2) target bundleno = 823 (0x337), region = 28  ;;  %s3616_s24 = smov (!%p113_p2), 95  }
   0x7   : > { %s3617_s29 = smov (!%p113_p2), 94  }
   0xb   : > { %s4882_s10 = smov (!%p134_p3, %s3415_s10), 1  ;;  %vm175_vm0 = vcmask 1040384   ;;  %vm176_vm1 = vcmask 1041408   ;;  %v3614_v23 = vmov 65535   ;;  %v3705_v29 = vld [vmem:[%s4879_s1 + $0x4] sm:$0xf] }
   0xc   : > { %s3592_s11 = smul.u32 80, %s4882_s10  ;;  %v177_v24 = vsel %vm175_vm0, 4294967295, %v3614_v23  ;;  %vm171_vm2 = vcmask 23552   ;;  %vm514_vm3 = vcmask 1039360   ;;  %vm1697_vm4 = vcmask 777216  }
   0xd   : > { %v3698_v25 = vsel %vm176_vm1, %v177_v24, 0  ;;  %vm2120_vm5 = vcmask 769024  }
   0xe   : > { %s3647_s14 = scalar_lea.vmem %s4878_s0, %s3592_s11 }
   0xf   : > { %v3650_v0 = vld [vmem:[%s3647_s14 + $0x14] sm:$0xff]  ;;  %v3654_v1 = vld [vmem:[%s3647_s14 + $0x1c] sm:$0xff]  ;;  %v3658_v2 = vld [vmem:[%s3647_s14 + $0x24] sm:$0xf] }
  0x10   : > { %156 = vst [vmem:[#allocation1] ss:$4 sm:$0xff] %v3650_v0  ;;  %v3662_v7 = vld [vmem:[%s3647_s14 + $0x8] sm:$0xff]  ;;  %v3672_v12 = vld [vmem:[%s3647_s14] sm:$0xff]  ;;  %v3687_v18 = vld [vmem:[%s3647_s14 + $0x10] sm:$0xf] }
  0x11   : > { %159 = vst [vmem:[#allocation1 + $0x20] ss:$4 sm:$0xff] %v3654_v1  ;;  %v3758_v57 = vld [vmem:[%s3647_s14 + $0x30] sm:$0xff] }
  0x17   : > { %v160_v3 = vld.sshfl [vmem:[#allocation1] sm:$0xff pattern:$0x73625140]  ;;  %v161_v4 = vld.sshfl [vmem:[#allocation1 + $0x8] sm:$0xff pattern:$0x73625140] }
  0x18   : > { %v162_v5 = vld.sshfl [vmem:[#allocation1 + $0x10] sm:$0xff pattern:$0x73625140]  ;;  %v163_v6 = vld.sshfl [vmem:[#allocation1 + $0x18] sm:$0xff pattern:$0x73625140]  ;;  %v179_v26 = vand.u32 %v3698_v25, %v160_v3  ;;  %v181_v39 = vand.u32 %v3698_v25, %v161_v4 }
  0x19   : > { %169 = vst [vmem:[#allocation1] ss:$4 sm:$0xff] %v3658_v2  ;;  %v164_v8 = vld.sshfl [vmem:[#allocation1 + $0x20] sm:$0xff pattern:$0x73625140]  ;;  %v183_v33 = vand.u32 %v3698_v25, %v162_v5  ;;  %v185_v34 = vand.u32 %v3698_v25, %v163_v6  ;;  %v3770_v3 = vld [vmem:[%s3647_s14 + $0x28] sm:$0xff] }
  0x1a   : > { %v3664_v9 = vld.sshfl [vmem:[#allocation1 + $0x28] sm:$0xff pattern:$0x73625140]  ;;  %v3666_v10 = vld.sshfl [vmem:[#allocation1 + $0x30] sm:$0xff pattern:$0x73625140]  ;;  %204 = vmatpush.bf16.msra.mxu0 %v179_v26  ;;  %v187_v40 = vand.u32 %v3698_v25, %v164_v8  ;;  %217 = vmatpush.bf16.msra.mxu1 %v181_v39 }
  0x1b   : > { %v3668_v11 = vld.sshfl [vmem:[#allocation1 + $0x38] sm:$0xff pattern:$0x73625140]  ;;  %230 = vmatpush.bf16.msra.mxu2 %v183_v33  ;;  %243 = vmatpush.bf16.msra.mxu3 %v185_v34  ;;  %v191_v43 = vand.u32 %v3698_v25, %v3666_v10  ;;  %v189_v47 = vand.u32 %v3698_v25, %v3664_v9  ;;  %v3780_v6 = vld [vmem:[%s3647_s14 + $0x44] sm:$0xff] }
  0x1c   : > { %318 = vst [vmem:[#allocation1 + $0x20] ss:$4 sm:$0xff] %v3662_v7  ;;  %v193_v44 = vand.u32 %v3698_v25, %v3668_v11  ;;  %v3825_v26 = vld [vmem:[%s3647_s14 + $0x3c] sm:$0xff] }
  0x1d   : > { %3426 = vmatmul.msk.bf16.vlgmr.msra.gmra.mxu0 %vm171_vm2, %v3705_v29  ;;  %3427 = vmatmul.msk.bf16.vlgmr.msra.gmra.mxu1 %vm171_vm2, %v3705_v29 }
  0x1e   : > { %3428 = vmatmul.msk.bf16.vlgmr.msra.gmra.mxu2 %vm171_vm2, %v3705_v29  ;;  %3429 = vmatmul.msk.bf16.vlgmr.msra.gmra.mxu3 %vm171_vm2, %v3705_v29 }
  0x1f   : > { %256 = vmatpush.bf16.msrb.mxu0 %v187_v40  ;;  %282 = vmatpush.bf16.msrb.mxu2 %v191_v43 }
  0x20   : > { %v3674_v13 = vld.sshfl [vmem:[#allocation1] sm:$0xff pattern:$0x73625140]  ;;  %295 = vmatpush.bf16.msrb.mxu3 %v193_v44  ;;  %269 = vmatpush.bf16.msrb.mxu1 %v189_v47 }
  0x21   : > { %315 = vst [vmem:[#allocation1] ss:$4 sm:$0xff] %v3672_v12  ;;  %v195_v48 = vand.u32 %v3698_v25, %v3674_v13  ;;  %v148_v13 = vld [vmem:[%s4879_s1] sm:$0xf] }
  0x23   : > { %v3677_v14 = vld.sshfl [vmem:[#allocation1 + $0x20] sm:$0xff pattern:$0x73625140]  ;;  %v3679_v15 = vld.sshfl [vmem:[#allocation1 + $0x28] sm:$0xff pattern:$0x73625140]  ;;  %308 = vmatpush.bf16.msra.mxu0 %v195_v48 }
  0x24   : > { %v3681_v16 = vld.sshfl [vmem:[#allocation1 + $0x30] sm:$0xff pattern:$0x73625140]  ;;  %v3683_v17 = vld.sshfl [vmem:[#allocation1 + $0x38] sm:$0xff pattern:$0x73625140]  ;;  %v343_v58 = vand.u32 %v3679_v15, %v3698_v25  ;;  %v341_v62 = vand.u32 %v3677_v14, %v3698_v25 }
  0x25   : > { %472 = vst [vmem:[#allocation1 + $0x20] ss:$4 sm:$0xff] %v3662_v7  ;;  %v345_v59 = vand.u32 %v3681_v16, %v3698_v25  ;;  %v347_v63 = vand.u32 %v3683_v17, %v3698_v25  ;;  %v3796_v14 = vld [vmem:[%s3647_s14 + $0x38] sm:$0xf] }
  0x28   : > { %v3689_v19 = vld.sshfl [vmem:[#allocation1] sm:$0xff pattern:$0x73625140]  ;;  %v3691_v20 = vld.sshfl [vmem:[#allocation1 + $0x8] sm:$0xff pattern:$0x73625140] }
  0x29   : > { %v3693_v21 = vld.sshfl [vmem:[#allocation1 + $0x10] sm:$0xff pattern:$0x73625140]  ;;  %v3695_v22 = vld.sshfl [vmem:[#allocation1 + $0x18] sm:$0xff pattern:$0x73625140]  ;;  %v335_v49 = vand.u32 %v3691_v20, %v3698_v25  ;;  %v333_v54 = vand.u32 %v3689_v19, %v3698_v25 }
  0x2a   : > { %328 = vst [vmem:[#allocation1] ss:$4 sm:$0xff] %v3687_v18  ;;  %v337_v53 = vand.u32 %v3693_v21, %v3698_v25  ;;  %v339_v55 = vand.u32 %v3695_v22, %v3698_v25 }
  0x2b   : > { %371 = vmatpush.bf16.msra.mxu2 %v335_v49  ;;  %358 = vmatpush.bf16.msra.mxu1 %v333_v54 }
  0x2c   : > { %v483_v27 = vld.sshfl [vmem:[#allocation1 + $0x28] sm:$0xff pattern:$0x73625140]  ;;  %v487_v28 = vld.sshfl [vmem:[#allocation1 + $0x38] sm:$0xff pattern:$0x73625140]  ;;  %384 = vmatpush.bf16.msra.mxu3 %v337_v53 }
  0x2d   : > { %504 = vrot.lane.b32.xlu2 %v483_v27, %s3615_s15  ;;  %v481_v31 = vld.sshfl [vmem:[#allocation1 + $0x20] sm:$0xff pattern:$0x73625140]  ;;  %v485_v32 = vld.sshfl [vmem:[#allocation1 + $0x30] sm:$0xff pattern:$0x73625140]  ;;  %3430 = vmatmul.msk.bf16.vlgmr.msrb.gmra.mxu0 %vm171_vm2, %v3705_v29 }
  0x2e   : > { %684 = vst [vmem:[#allocation1 + $0x20] ss:$4 sm:$0xff] %v3654_v1  ;;  %3432 = vmatmul.msk.bf16.vlgmr.msrb.gmra.mxu2 %vm171_vm2, %v3705_v29  ;;  %3433 = vmatmul.msk.bf16.vlgmr.msrb.gmra.mxu3 %vm171_vm2, %v3705_v29 }
  0x2f   : > { %397 = vmatpush.bf16.msrb.mxu0 %v339_v55  ;;  %423 = vmatpush.bf16.msrb.mxu2 %v343_v58  ;;  %v3875_v58 = vld [vmem:[%s4879_s1 + $0x8] sm:$0xf] }
  0x30   : > { %436 = vmatpush.bf16.msrb.mxu3 %v345_v59  ;;  %3431 = vmatmul.msk.bf16.vlgmr.msrb.gmra.mxu1 %vm171_vm2, %v3705_v29 }
  0x31   : > { %v3707_v30 = vld.sshfl [vmem:[#allocation1] sm:$0xff pattern:$0x73625140]  ;;  %410 = vmatpush.bf16.msrb.mxu1 %v341_v62 }
  0x32   : > { %470 = vst [vmem:[#allocation1] ss:$4 sm:$0xff] %v3672_v12  ;;  %v349_v24 = vand.u32 %v3707_v30, %v3698_v25 }
  0x35   : > { %506 = vrot.lane.b32.xlu2 %v485_v32, %s3615_s15  ;;  %v693_v51 = vld.sshfl [vmem:[#allocation1 + $0x20] sm:$0xff pattern:$0x73625140]  ;;  %v699_v56 = vld.sshfl [vmem:[#allocation1 + $0x38] sm:$0xff pattern:$0x73625140] }
  0x36   : > { %v697_v60 = vld.sshfl [vmem:[#allocation1 + $0x30] sm:$0xff pattern:$0x73625140]  ;;  %v695_v61 = vld.sshfl [vmem:[#allocation1 + $0x28] sm:$0xff pattern:$0x73625140] }
  0x37   : > { %901 = vst [vmem:[#allocation1 + $0x20] ss:$4 sm:$0xff] %v3758_v57 }
  0x39   : > { %v473_v35 = vld.sshfl [vmem:[#allocation1] sm:$0xff pattern:$0x73625140]  ;;  %v477_v36 = vld.sshfl [vmem:[#allocation1 + $0x10] sm:$0xff pattern:$0x73625140] }
  0x3a   : > { %494 = vrot.lane.b32.xlu0 %v473_v35, %s3615_s15  ;;  %498 = vrot.lane.b32.xlu1 %v477_v36, %s3615_s15  ;;  %v475_v37 = vld.sshfl [vmem:[#allocation1 + $0x8] sm:$0xff pattern:$0x73625140]  ;;  %v479_v38 = vld.sshfl [vmem:[#allocation1 + $0x18] sm:$0xff pattern:$0x73625140] }
  0x3b   : > { %489 = vst [vmem:[#allocation1] ss:$4 sm:$0xff] %v3687_v18 }
  0x3d   : > { %3434 = vmatmul.msk.bf16.vlgmr.msra.gmra.mxu0 %vm171_vm2, %v3705_v29 }
  0x3e   : > { %449 = vmatpush.bf16.msra.mxu0 %v347_v63  ;;  %v3783_v8 = vld.sshfl [vmem:[#allocation1 + $0x20] sm:$0xff pattern:$0x73625140]  ;;  %v3785_v9 = vld.sshfl [vmem:[#allocation1 + $0x28] sm:$0xff pattern:$0x73625140]  ;;  %3436 = vmatmul.msk.bf16.vlgmr.msra.gmra.mxu2 %vm171_vm2, %v148_v13 }
  0x3f   : > { %v3787_v10 = vld.sshfl [vmem:[#allocation1 + $0x30] sm:$0xff pattern:$0x73625140]  ;;  %v3789_v11 = vld.sshfl [vmem:[#allocation1 + $0x38] sm:$0xff pattern:$0x73625140]  ;;  %3437 = vmatmul.msk.bf16.vlgmr.msra.gmra.mxu3 %vm171_vm2, %v148_v13 }
  0x40   : > { %1070 = vst [vmem:[#allocation1 + $0x20] ss:$4 sm:$0xff] %v3780_v6  ;;  %3435 = vmatmul.msk.bf16.vlgmr.msra.gmra.mxu1 %vm171_vm2, %v148_v13 }
  0x41   : > { %462 = vmatpush.bf16.msra.mxu1 %v349_v24 }
  0x42   : > { %496 = vrot.lane.b32.xlu0 %v475_v37, %s3615_s15  ;;  %502 = vrot.lane.b32.xlu1 %v481_v31, %s3615_s15  ;;  %v490_v41 = vld.sshfl [vmem:[#allocation1] sm:$0xff pattern:$0x73625140]  ;;  %v492_v42 = vld.sshfl [vmem:[#allocation1 + $0x8] sm:$0xff pattern:$0x73625140] }
  0x43   : > { %682 = vst [vmem:[#allocation1] ss:$4 sm:$0xff] %v3650_v0  ;;  %512 = vrot.lane.b32.xlu2 %v492_v42, %s3615_s15 }
  0x47   : > { %v3812_v20 = vld.sshfl [vmem:[#allocation1 + $0x20] sm:$0xff pattern:$0x73625140]  ;;  %v3814_v21 = vld.sshfl [vmem:[#allocation1 + $0x28] sm:$0xff pattern:$0x73625140] }
  0x48   : > { %v3816_v22 = vld.sshfl [vmem:[#allocation1 + $0x30] sm:$0xff pattern:$0x73625140]  ;;  %v3818_v23 = vld.sshfl [vmem:[#allocation1 + $0x38] sm:$0xff pattern:$0x73625140] }
  0x49   : > { %1233 = vst [vmem:[#allocation1 + $0x20] ss:$4 sm:$0xff] %v3758_v57 }
  0x4a   : > { %500 = vrot.lane.b32.xlu0 %v479_v38, %s3615_s15  ;;  %510 = vrot.lane.b32.xlu1 %v490_v41, %s3615_s15  ;;  %v685_v45 = vld.sshfl [vmem:[#allocation1] sm:$0xff pattern:$0x73625140]  ;;  %v687_v46 = vld.sshfl [vmem:[#allocation1 + $0x8] sm:$0xff pattern:$0x73625140] }
  0x4b   : > { %v691_v50 = vld.sshfl [vmem:[#allocation1 + $0x18] sm:$0xff pattern:$0x73625140]  ;;  %v689_v52 = vld.sshfl [vmem:[#allocation1 + $0x10] sm:$0xff pattern:$0x73625140]  ;;  %508 = vrot.lane.b32.xlu2 %v487_v28, %s3615_s15 }
  0x4c   : > { %701 = vst [vmem:[#allocation1] ss:$4 sm:$0xff] %v3658_v2  ;;  %v3836_v28 = vld [vmem:[%s3647_s14 + $0x4c] sm:$0xf] }
  0x4d   : > { %3438 = vmatmul.msk.bf16.vlgmr.msrb.gmra.mxu0 %vm171_vm2, %v148_v13 }
  0x4e   : > { %3440 = vmatmul.msk.bf16.vlgmr.msrb.gmra.mxu2 %vm171_vm2, %v148_v13 }
  0x4f   : > { %3441 = vmatmul.msk.bf16.vlgmr.msrb.gmra.mxu3 %vm171_vm2, %v148_v13 }
  0x50   : > { %3439 = vmatmul.msk.bf16.vlgmr.msrb.gmra.mxu1 %vm171_vm2, %v148_v13  ;;  %v1246_v42 = vld.sshfl [vmem:[#allocation1 + $0x30] sm:$0xff pattern:$0x73625140]  ;;  %v1244_v59 = vld.sshfl [vmem:[#allocation1 + $0x28] sm:$0xff pattern:$0x73625140] }
  0x51   : > { %v1242_v62 = vld.sshfl [vmem:[#allocation1 + $0x20] sm:$0xff pattern:$0x73625140]  ;;  %v1248_v63 = vld.sshfl [vmem:[#allocation1 + $0x38] sm:$0xff pattern:$0x73625140] }
  0x52   : > { %706 = vrot.lane.b32.xlu0 %v685_v45, %s3615_s15  ;;  %708 = vrot.lane.b32.xlu1 %v687_v46, %s3615_s15  ;;  %1444 = vst [vmem:[#allocation1 + $0x20] ss:$4 sm:$0xff] %v3780_v6 }
  0x53   : > { %v704_v4 = vld.sshfl [vmem:[#allocation1 + $0x8] sm:$0xff pattern:$0x73625140]  ;;  %716 = vrot.lane.b32.xlu2 %v695_v61, %s3615_s15  ;;  %v702_v5 = vld.sshfl [vmem:[#allocation1] sm:$0xff pattern:$0x73625140] }
  0x54   : > { %898 = vst [vmem:[#allocation1] ss:$4 sm:$0xff] %v3770_v3 }
  0x5a   : > { %712 = vrot.lane.b32.xlu0 %v691_v50, %s3615_s15  ;;  %714 = vrot.lane.b32.xlu1 %v693_v51, %s3615_s15 }
  0x5b   : > { %722 = vrot.lane.b32.xlu2 %v702_v5, %s3615_s15  ;;  %v3802_v15 = vld.sshfl [vmem:[#allocation1] sm:$0xff pattern:$0x73625140]  ;;  %v3804_v16 = vld.sshfl [vmem:[#allocation1 + $0x8] sm:$0xff pattern:$0x73625140] }
  0x5c   : > { %v3807_v17 = vld.sshfl [vmem:[#allocation1 + $0x10] sm:$0xff pattern:$0x73625140]  ;;  %v3809_v19 = vld.sshfl [vmem:[#allocation1 + $0x18] sm:$0xff pattern:$0x73625140] }
  0x5d   : > { %911 = vst [vmem:[#allocation1] ss:$4 sm:$0xff] %v3796_v14  ;;  %3442 = vmatmul.msk.bf16.vlgmr.msra.gmra.mxu0 %vm171_vm2, %v148_v13 }
  0x60   : > { %3443 = vmatmul.msk.bf16.vlgmr.msra.gmra.mxu1 %vm171_vm2, %v148_v13 }
  0x62   : > { %710 = vrot.lane.b32.xlu0 %v689_v52, %s3615_s15  ;;  %720 = vrot.lane.b32.xlu1 %v699_v56, %s3615_s15 }
  0x64   : > { %v3830_v27 = vld.sshfl [vmem:[#allocation1] sm:$0xff pattern:$0x73625140] }
  0x65   : > { %1067 = vst [vmem:[#allocation1] ss:$4 sm:$0xff] %v3825_v26 }
  0x6a   : > { %718 = vrot.lane.b32.xlu1 %v697_v60, %s3615_s15  ;;  %724 = vrot.lane.b32.xlu0 %v704_v4, %s3615_s15 }
  0x6c   : > { %v3840_v29 = vld.sshfl [vmem:[#allocation1] sm:$0xff pattern:$0x73625140]  ;;  %v3842_v30 = vld.sshfl [vmem:[#allocation1 + $0x8] sm:$0xff pattern:$0x73625140] }
  0x6d   : > { %v3844_v31 = vld.sshfl [vmem:[#allocation1 + $0x10] sm:$0xff pattern:$0x73625140]  ;;  %v3846_v32 = vld.sshfl [vmem:[#allocation1 + $0x18] sm:$0xff pattern:$0x73625140] }
  0x6e   : > { %1080 = vst [vmem:[#allocation1] ss:$4 sm:$0xff] %v3836_v28 }
  0x75   : > { %v3852_v35 = vld.sshfl [vmem:[#allocation1] sm:$0xff pattern:$0x73625140] }
  0x76   : > { %1231 = vst [vmem:[#allocation1] ss:$4 sm:$0xff] %v3770_v3 }
  0x7d   : > { %v1238_v36 = vld.sshfl [vmem:[#allocation1 + $0x10] sm:$0xff pattern:$0x73625140]  ;;  %v1236_v40 = vld.sshfl [vmem:[#allocation1 + $0x8] sm:$0xff pattern:$0x73625140] }
  0x7e   : > { %1259 = vrot.lane.b32.xlu1 %v1238_v36, %s3615_s15  ;;  %1257 = vrot.lane.b32.xlu0 %v1236_v40, %s3615_s15  ;;  %v3857_v41 = vld.sshfl [vmem:[#allocation1 + $0x18] sm:$0xff pattern:$0x73625140]  ;;  %v1234_v44 = vld.sshfl [vmem:[#allocation1] sm:$0xff pattern:$0x73625140] }
  0x7f   : > { %1255 = vrot.lane.b32.xlu2 %v1234_v44, %s3615_s15  ;;  %1250 = vst [vmem:[#allocation1] ss:$4 sm:$0xff] %v3796_v14 }
  0x86   : > { %1267 = vrot.lane.b32.xlu1 %v1246_v42, %s3615_s15  ;;  %v1253_v61 = vld.sshfl [vmem:[#allocation1 + $0x8] sm:$0xff pattern:$0x73625140]  ;;  %1265 = vrot.lane.b32.xlu0 %v1244_v59, %s3615_s15  ;;  %v1251_v24 = vld.sshfl [vmem:[#allocation1] sm:$0xff pattern:$0x73625140] }
  0x87   : > { %v505_v33 = vpop.permute.xlu2 %504  ;;  %1263 = vrot.lane.b32.xlu2 %v1242_v62, %s3615_s15  ;;  %1442 = vst [vmem:[#allocation1] ss:$4 sm:$0xff] %v3825_v26 }
  0x8e   : > { %1273 = vrot.lane.b32.xlu1 %v1253_v61, %s3615_s15  ;;  %1271 = vrot.lane.b32.xlu0 %v1251_v24, %s3615_s15 }
  0x8f   : > { %v507_v34 = vpop.permute.xlu2 %506  ;;  %1261 = vrot.lane.b32.xlu2 %v3857_v41, %s3615_s15 }
  0x90   : > { %v520_v45 = vsel %vm514_vm3, %v505_v33, %v507_v34 }
  0x91   : > { %v543_v48 = vand.u32 %v520_v45, %v3698_v25 }
  0x96   : > { %1269 = vrot.lane.b32.xlu1 %v1248_v63, %s3615_s15 }
  0x9a   : > { %v3859_v43 = vpop.f32.mrf.mxu0 }
  0x9d   : > { %v513_v37 = vpop.permute.xlu2 %512 }
  0xa2   : > { %v208_v56 = vpop.f32.mrf.mxu0 }
  0xa3   : > { %v1447_v56 = vld.sshfl [vmem:[#allocation1 + $0x8] sm:$0xff pattern:$0x73625140] }
  0xa4   : > { %1468 = vrot.lane.b32.xlu0 %v1447_v56, %s3615_s15 }
  0xa5   : > { %v509_v55 = vpop.permute.xlu2 %508 }
  0xa6   : > { %v521_v60 = vsel %vm514_vm3, %v507_v34, %v509_v55 }
  0xa7   : > { %v546_v5 = vand.u32 %v521_v60, %v3698_v25 }
  0xac   : > { %v495_v38 = vpop.permute.xlu0 %494  ;;  %v499_v39 = vpop.permute.xlu1 %498 }
  0xad   : > { %v717_v59 = vpop.permute.xlu2 %716 }
  0xb4   : > { %v497_v46 = vpop.permute.xlu0 %496  ;;  %v503_v47 = vpop.permute.xlu1 %502 }
  0xb5   : > { %v515_v49 = vsel %vm514_vm3, %v495_v38, %v497_v46  ;;  %v516_v50 = vsel %vm514_vm3, %v497_v46, %v499_v39  ;;  %v519_v51 = vsel %vm514_vm3, %v503_v47, %v505_v33  ;;  %v3896_v46 = vpop.f32.mrf.mxu1 }
  0xb6   : > { %v528_v52 = vand.u32 %v515_v49, %v3698_v25  ;;  %v531_v53 = vand.u32 %v516_v50, %v3698_v25  ;;  %v540_v54 = vand.u32 %v519_v51, %v3698_v25 }
  0xb8   : > { %561 = vmatpush.bf16.msra.mxu2 %v528_v52  ;;  %574 = vmatpush.bf16.msra.mxu3 %v531_v53 }
  0xbb   : > { %3445 = vmatmul.msk.bf16.vlgmr.msra.gmra.mxu2 %vm171_vm2, %v3875_v58  ;;  %3446 = vmatmul.msk.bf16.vlgmr.msra.gmra.mxu3 %vm171_vm2, %v3875_v58 }
  0xbc   : > { %613 = vmatpush.bf16.msrb.mxu2 %v540_v54  ;;  %626 = vmatpush.bf16.msrb.mxu3 %v543_v48  ;;  %v501_v4 = vpop.permute.xlu0 %500  ;;  %v511_v13 = vpop.permute.xlu1 %510 }
  0xbd   : > { %v517_v33 = vsel %vm514_vm3, %v499_v39, %v501_v4  ;;  %v518_v34 = vsel %vm514_vm3, %v501_v4, %v503_v47  ;;  %v522_v36 = vsel %vm514_vm3, %v509_v55, %v511_v13  ;;  %v523_v38 = vsel %vm514_vm3, %v511_v13, %v513_v37  ;;  %v3898_v48 = vpop.f32.mrf.mxu2  ;;  %v3900_v39 = vpop.f32.mrf.mxu3 }
  0xbe   : > { %v534_v40 = vand.u32 %v517_v33, %v3698_v25  ;;  %v537_v42 = vand.u32 %v518_v34, %v3698_v25  ;;  %v549_v44 = vand.u32 %v522_v36, %v3698_v25  ;;  %v552_v45 = vand.u32 %v523_v38, %v3698_v25  ;;  %v3902_v47 = vpop.f32.mrf.mxu0  ;;  %v221_v52 = vpop.f32.mrf.mxu1  ;;  %v1453_v34 = vld.sshfl [vmem:[#allocation1 + $0x20] sm:$0xff pattern:$0x73625140] }
  0xbf   : > { %v723_v36 = vpop.permute.xlu2 %722  ;;  %v1445_v38 = vld.sshfl [vmem:[#allocation1] sm:$0xff pattern:$0x73625140]  ;;  %1474 = vrot.lane.b32.xlu0 %v1453_v34, %s3615_s15 }
  0xc0   : > { %587 = vmatpush.bf16.msrb.mxu0 %v534_v40  ;;  %600 = vmatpush.bf16.msrb.mxu1 %v537_v42 }
  0xc1   : > { %665 = vmatpush.bf16.msra.mxu2 %v552_v45  ;;  %1466 = vrot.lane.b32.xlu2 %v1445_v38, %s3615_s15 }
  0xc3   : > { %3447 = vmatmul.msk.bf16.vlgmr.msrb.gmra.mxu0 %vm171_vm2, %v3875_v58  ;;  %3448 = vmatmul.msk.bf16.vlgmr.msrb.gmra.mxu1 %vm171_vm2, %v3875_v58 }
  0xc4   : > { %639 = vmatpush.bf16.msra.mxu0 %v546_v5  ;;  %652 = vmatpush.bf16.msra.mxu1 %v549_v44  ;;  %v707_v37 = vpop.permute.xlu0 %706  ;;  %v709_v49 = vpop.permute.xlu1 %708 }
  0xc5   : > { %v726_v50 = vsel %vm514_vm3, %v707_v37, %v709_v49  ;;  %v234_v53 = vpop.f32.mrf.mxu2  ;;  %v247_v54 = vpop.f32.mrf.mxu3 }
  0xc6   : > { %v739_v51 = vand.u32 %v726_v50, %v3698_v25  ;;  %v260_v55 = vpop.f32.mrf.mxu0  ;;  %v3923_v5 = vpop.f32.mrf.mxu1 }
  0xc7   : > { %v3945_v55 = vld [vmem:[%s4879_s1 + $0xc] sm:$0xf] }
  0xc8   : > { %772 = vmatpush.bf16.msra.mxu3 %v739_v51 }
  0xcb   : > { %3449 = vmatmul.msk.bf16.vlgmr.msrb.gmra.mxu2 %vm171_vm2, %v3875_v58  ;;  %3450 = vmatmul.msk.bf16.vlgmr.msrb.gmra.mxu3 %vm171_vm2, %v3875_v58 }
  0xcc   : > { %v713_v60 = vpop.permute.xlu0 %712  ;;  %v715_v61 = vpop.permute.xlu1 %714 }
  0xcd   : > { %v729_v41 = vsel %vm514_vm3, %v713_v60, %v715_v61  ;;  %v730_v62 = vsel %vm514_vm3, %v715_v61, %v717_v59  ;;  %v3925_v13 = vpop.f32.mrf.mxu2  ;;  %v3927_v24 = vpop.f32.mrf.mxu3  ;;  %v1455_v61 = vld.sshfl [vmem:[#allocation1 + $0x28] sm:$0xff pattern:$0x73625140] }
  0xce   : > { %v748_v63 = vand.u32 %v729_v41, %v3698_v25  ;;  %v751_v4 = vand.u32 %v730_v62, %v3698_v25  ;;  %v3929_v33 = vpop.f32.mrf.mxu0  ;;  %v273_v52 = vpop.f32.mrf.mxu1  ;;  %v1457_v41 = vld.sshfl [vmem:[#allocation1 + $0x30] sm:$0xff pattern:$0x73625140]  ;;  %1476 = vrot.lane.b32.xlu1 %v1455_v61, %s3615_s15 }
  0xcf   : > { %v918_v52 = vand.u32 %v3804_v16, %v3698_v25 }
  0xd0   : > { %811 = vmatpush.bf16.msrb.mxu2 %v748_v63  ;;  %824 = vmatpush.bf16.msrb.mxu3 %v751_v4  ;;  %v1451_v4 = vld.sshfl [vmem:[#allocation1 + $0x18] sm:$0xff pattern:$0x73625140] }
  0xd1   : > { %1472 = vrot.lane.b32.xlu2 %v1451_v4, %s3615_s15 }
  0xd3   : > { %3451 = vmatmul.msk.bf16.vlgmr.msra.gmra.mxu0 %vm171_vm2, %v3875_v58  ;;  %3452 = vmatmul.msk.bf16.vlgmr.msra.gmra.mxu1 %vm171_vm2, %v3875_v58 }
  0xd4   : > { %v711_v40 = vpop.permute.xlu0 %710  ;;  %v721_v42 = vpop.permute.xlu1 %720 }
  0xd5   : > { %v727_v44 = vsel %vm514_vm3, %v709_v49, %v711_v40  ;;  %v728_v45 = vsel %vm514_vm3, %v711_v40, %v713_v60  ;;  %v733_v37 = vsel %vm514_vm3, %v721_v42, %v723_v36  ;;  %v286_v53 = vpop.f32.mrf.mxu2  ;;  %v299_v54 = vpop.f32.mrf.mxu3  ;;  %v1459_v60 = vld.sshfl [vmem:[#allocation1 + $0x38] sm:$0xff pattern:$0x73625140] }
  0xd6   : > { %v742_v50 = vand.u32 %v727_v44, %v3698_v25  ;;  %v745_v51 = vand.u32 %v728_v45, %v3698_v25  ;;  %v760_v49 = vand.u32 %v733_v37, %v3698_v25  ;;  %v312_v56 = vpop.f32.mrf.mxu0  ;;  %1480 = vrot.lane.b32.xlu0 %v1459_v60, %s3615_s15  ;;  %1655 = vst [vmem:[#allocation1 + $0x20] ss:$4 sm:$0xff] %v3662_v7  ;;  %v360_v37 = vpop.f32.mrf.mxu1 }
  0xd8   : > { %785 = vmatpush.bf16.msrb.mxu0 %v742_v50  ;;  %798 = vmatpush.bf16.msrb.mxu1 %v745_v51  ;;  %v3963_v51 = vadd.f32 %v360_v37, %v3859_v43 }
  0xdb   : > { %3453 = vmatmul.msk.bf16.vlgmr.msra.gmra.mxu2 %vm171_vm2, %v3875_v58  ;;  %3455 = vmatmul.msk.bf16.vlgmr.msra.gmra.mxu3 %vm171_vm2, %v3945_v55 }
  0xdc   : > { %v719_v62 = vpop.permute.xlu1 %718  ;;  %v725_v63 = vpop.permute.xlu0 %724  ;;  %863 = vmatpush.bf16.msra.mxu2 %v760_v49  ;;  %v1449_v49 = vld.sshfl [vmem:[#allocation1 + $0x10] sm:$0xff pattern:$0x73625140] }
  0xdd   : > { %v731_v34 = vsel %vm514_vm3, %v717_v59, %v719_v62  ;;  %v732_v38 = vsel %vm514_vm3, %v719_v62, %v721_v42  ;;  %v734_v40 = vsel %vm514_vm3, %v723_v36, %v725_v63  ;;  %v373_v50 = vpop.f32.mrf.mxu2  ;;  %v386_v42 = vpop.f32.mrf.mxu3  ;;  %v916_v36 = vand.u32 %v3802_v15, %v3698_v25  ;;  %1461 = vst [vmem:[#allocation1] ss:$4 sm:$0xff] %v3836_v28 }
  0xde   : > { %v754_v58 = vand.u32 %v731_v34, %v3698_v25  ;;  %v757_v44 = vand.u32 %v732_v38, %v3698_v25  ;;  %v763_v45 = vand.u32 %v734_v40, %v3698_v25  ;;  %v3966_v59 = vadd.f32 %v373_v50, %v3896_v46  ;;  %v399_v54 = vpop.f32.mrf.mxu0  ;;  %1478 = vrot.lane.b32.xlu0 %v1457_v41, %s3615_s15  ;;  %v362_v15 = vpop.f32.mrf.mxu1  ;;  %v1664_v41 = vld.sshfl [vmem:[#allocation1 + $0x20] sm:$0xff pattern:$0x73625140] }
  0xdf   : > { %v3973_v53 = vadd.f32 %v386_v42, %v3898_v48  ;;  %v3976_v43 = vadd.f32 %v399_v54, %v3900_v39  ;;  %1470 = vrot.lane.b32.xlu2 %v1449_v49, %s3615_s15  ;;  %v920_v48 = vand.u32 %v3807_v17, %v3698_v25  ;;  %v922_v39 = vand.u32 %v3809_v19, %v3698_v25  ;;  %v1670_v54 = vld.sshfl [vmem:[#allocation1 + $0x38] sm:$0xff pattern:$0x73625140]  ;;  %v3467_v49 = vld [vmem:[%s4879_s1 + $0x10] sm:$0xf] }
  0xe0   : > { %837 = vmatpush.bf16.msra.mxu0 %v754_v58  ;;  %850 = vmatpush.bf16.msra.mxu1 %v757_v44  ;;  %v924_v34 = vand.u32 %v3783_v8, %v3698_v25  ;;  %v926_v38 = vand.u32 %v3785_v9, %v3698_v25  ;;  %v1668_v8 = vld.sshfl [vmem:[#allocation1 + $0x30] sm:$0xff pattern:$0x73625140]  ;;  %v930_v50 = vand.u32 %v3789_v11, %v3698_v25 }
  0xe1   : > { %876 = vmatpush.bf16.msra.mxu3 %v763_v45  ;;  %v932_v15 = vand.u32 %v3830_v27, %v3698_v25  ;;  %v1087_v27 = vand.u32 %v3842_v30, %v3698_v25  ;;  %v1091_v30 = vand.u32 %v3846_v32, %v3698_v25  ;;  %v1097_v32 = vand.u32 %v3816_v22, %v3698_v25 }
  0xe2   : > { %v1099_v22 = vand.u32 %v3818_v23, %v3698_v25 }
  0xe3   : > { %3456 = vmatmul.msk.bf16.vlgmr.msrb.gmra.mxu0 %vm171_vm2, %v3945_v55  ;;  %3457 = vmatmul.msk.bf16.vlgmr.msrb.gmra.mxu1 %vm171_vm2, %v3945_v55 }
  0xe4   : > { %941 = vmatpush.bf16.msrb.mxu0 %v916_v36  ;;  %954 = vmatpush.bf16.msrb.mxu1 %v918_v52  ;;  %v1462_v60 = vld.sshfl [vmem:[#allocation1] sm:$0xff pattern:$0x73625140]  ;;  %v1464_v61 = vld.sshfl [vmem:[#allocation1 + $0x8] sm:$0xff pattern:$0x73625140] }
  0xe5   : > { %v375_v16 = vpop.f32.mrf.mxu2  ;;  %v388_v46 = vpop.f32.mrf.mxu3  ;;  %1482 = vrot.lane.b32.xlu1 %v1462_v60, %s3615_s15  ;;  %1653 = vst [vmem:[#allocation1] ss:$4 sm:$0xff] %v3672_v12  ;;  %v1666_v52 = vld.sshfl [vmem:[#allocation1 + $0x28] sm:$0xff pattern:$0x73625140] }
  0xe6   : > { %v401_v56 = vpop.f32.mrf.mxu0  ;;  %1685 = vrot.lane.b32.xlu0 %v1664_v41, %s3616_s24  ;;  %v412_v17 = vpop.f32.mrf.mxu1  ;;  %1867 = vst [vmem:[#allocation1 + $0x20] ss:$4 sm:$0xff] %v3654_v1  ;;  %v1095_v41 = vand.u32 %v3814_v21, %v3698_v25  ;;  %v4075_v21 = vld [vmem:[%s4879_s1 + $0x14] sm:$0xf] }
  0xe7   : > { %1484 = vrot.lane.b32.xlu2 %v1464_v61, %s3615_s15  ;;  %v3998_v62 = vadd.f32 %v412_v17, %v3902_v47  ;;  %v1256_v60 = vpop.permute.xlu2 %1255 }
  0xeb   : > { %3458 = vmatmul.msk.bf16.vlgmr.msrb.gmra.mxu2 %vm171_vm2, %v3945_v55  ;;  %3459 = vmatmul.msk.bf16.vlgmr.msrb.gmra.mxu3 %vm171_vm2, %v3945_v55 }
  0xec   : > { %967 = vmatpush.bf16.msrb.mxu2 %v920_v48  ;;  %980 = vmatpush.bf16.msrb.mxu3 %v922_v39  ;;  %v1660_v44 = vld.sshfl [vmem:[#allocation1 + $0x10] sm:$0xff pattern:$0x73625140]  ;;  %v1662_v36 = vld.sshfl [vmem:[#allocation1 + $0x18] sm:$0xff pattern:$0x73625140] }
  0xed   : > { %v425_v19 = vpop.f32.mrf.mxu2  ;;  %v438_v4 = vpop.f32.mrf.mxu3  ;;  %1681 = vrot.lane.b32.xlu1 %v1660_v44, %s3616_s24  ;;  %v1878_v56 = vld.sshfl [vmem:[#allocation1 + $0x28] sm:$0xff pattern:$0x73625140] }
  0xee   : > { %v4001_v63 = vadd.f32 %v425_v19, %v3923_v5  ;;  %v4008_v40 = vadd.f32 %v438_v4, %v3925_v13  ;;  %v451_v58 = vpop.f32.mrf.mxu0  ;;  %1689 = vrot.lane.b32.xlu0 %v1668_v8, %s3616_s24  ;;  %v414_v9 = vpop.f32.mrf.mxu1  ;;  %v1658_v5 = vld.sshfl [vmem:[#allocation1 + $0x8] sm:$0xff pattern:$0x73625140]  ;;  %v1656_v13 = vld.sshfl [vmem:[#allocation1] sm:$0xff pattern:$0x73625140] }
  0xef   : > { %v4011_v45 = vadd.f32 %v451_v58, %v3927_v24  ;;  %v928_v24 = vand.u32 %v3787_v10, %v3698_v25  ;;  %1683 = vrot.lane.b32.xlu2 %v1662_v36, %s3616_s24  ;;  %1672 = vst [vmem:[#allocation1] ss:$4 sm:$0xff] %v3687_v18  ;;  %v1882_v19 = vld.sshfl [vmem:[#allocation1 + $0x38] sm:$0xff pattern:$0x73625140]  ;;  %v1264_v4 = vpop.permute.xlu2 %1263 }
  0xf0   : > { %v1260_v17 = vpop.permute.xlu1 %1259  ;;  %v1880_v58 = vld.sshfl [vmem:[#allocation1 + $0x30] sm:$0xff pattern:$0x73625140]  ;;  %v1258_v8 = vpop.permute.xlu0 %1257 }
  0xf1   : > { %v1275_v23 = vsel %vm514_vm3, %v1256_v60, %v1258_v8 }
  0xf3   : > { %3460 = vmatmul.msk.bf16.vlgmr.msra.gmra.mxu0 %vm171_vm2, %v3945_v55  ;;  %3461 = vmatmul.msk.bf16.vlgmr.msra.gmra.mxu1 %vm171_vm2, %v3945_v55 }
  0xf4   : > { %993 = vmatpush.bf16.msra.mxu0 %v924_v34  ;;  %1006 = vmatpush.bf16.msra.mxu1 %v926_v38  ;;  %v1101_v34 = vand.u32 %v3852_v35, %v3698_v25  ;;  %v1876_v38 = vld.sshfl [vmem:[#allocation1 + $0x20] sm:$0xff pattern:$0x73625140]  ;;  %v1276_v35 = vsel %vm514_vm3, %v1258_v8, %v1260_v17 }
  0xf5   : > { %v427_v47 = vpop.f32.mrf.mxu2  ;;  %v440_v37 = vpop.f32.mrf.mxu3  ;;  %1677 = vrot.lane.b32.xlu1 %v1656_v13, %s3616_s24  ;;  %2078 = vst [vmem:[#allocation1 + $0x20] ss:$4 sm:$0xff] %v3662_v7 }
  0xf6   : > { %v453_v42 = vpop.f32.mrf.mxu0  ;;  %1687 = vrot.lane.b32.xlu0 %v1666_v52, %s3616_s24  ;;  %v464_v10 = vpop.f32.mrf.mxu1  ;;  %v1673_v16 = vld.sshfl [vmem:[#allocation1] sm:$0xff pattern:$0x73625140]  ;;  %v1675_v46 = vld.sshfl [vmem:[#allocation1 + $0x8] sm:$0xff pattern:$0x73625140]  ;;  %v1288_v47 = vand.u32 %v1275_v23, %v3698_v25 }
  0xf7   : > { %v4033_v11 = vadd.f32 %v464_v10, %v3929_v33  ;;  %1865 = vst [vmem:[#allocation1] ss:$4 sm:$0xff] %v3650_v0  ;;  %1679 = vrot.lane.b32.xlu2 %v1658_v5, %s3616_s24  ;;  %v1291_v5 = vand.u32 %v1276_v35, %v3698_v25  ;;  %v1262_v13 = vpop.permute.xlu2 %1261 }
  0xf8   : > { %v1268_v7 = vpop.permute.xlu1 %1267 }
  0xfb   : > { %3462 = vmatmul.msk.bf16.vlgmr.msra.gmra.mxu2 %vm171_vm2, %v3945_v55  ;;  %3463 = vmatmul.msk.bf16.vlgmr.msra.gmra.mxu3 %vm171_vm2, %v3945_v55  ;;  %v1085_v55 = vand.u32 %v3840_v29, %v3698_v25  ;;  %v1089_v29 = vand.u32 %v3844_v31, %v3698_v25  ;;  %v1093_v31 = vand.u32 %v3812_v20, %v3698_v25 }
  0xfc   : > { %1019 = vmatpush.bf16.msra.mxu2 %v928_v24  ;;  %1032 = vmatpush.bf16.msra.mxu3 %v930_v50  ;;  %v1277_v24 = vsel %vm514_vm3, %v1260_v17, %v1262_v13  ;;  %v1278_v50 = vsel %vm514_vm3, %v1262_v13, %v1264_v4  ;;  %v2089_v23 = vld.sshfl [vmem:[#allocation1 + $0x28] sm:$0xff pattern:$0x73625140] }
  0xfd   : > { %1691 = vrot.lane.b32.xlu1 %v1670_v54, %s3616_s24  ;;  %v1294_v42 = vand.u32 %v1277_v24, %v3698_v25  ;;  %v1297_v36 = vand.u32 %v1278_v50, %v3698_v25 }
  0xfe   : > { %v466_v33 = vpop.f32.mrf.mxu1  ;;  %v1870_v48 = vld.sshfl [vmem:[#allocation1 + $0x8] sm:$0xff pattern:$0x73625140]  ;;  %v1874_v39 = vld.sshfl [vmem:[#allocation1 + $0x18] sm:$0xff pattern:$0x73625140] }
  0xff   : > { %1693 = vrot.lane.b32.xlu2 %v1673_v16, %s3616_s24  ;;  %1895 = vrot.lane.b32.xlu0 %v1874_v39, %s3616_s24  ;;  %v1868_v61 = vld.sshfl [vmem:[#allocation1] sm:$0xff pattern:$0x73625140]  ;;  %v1872_v20 = vld.sshfl [vmem:[#allocation1 + $0x10] sm:$0xff pattern:$0x73625140] }
 0x100   : > { %1884 = vst [vmem:[#allocation1] ss:$4 sm:$0xff] %v3658_v2  ;;  %v1274_v52 = vpop.permute.xlu1 %1273  ;;  %v2087_v33 = vld.sshfl [vmem:[#allocation1 + $0x20] sm:$0xff pattern:$0x73625140] }
 0x103   : > { %3468 = vmatmul.msk.bf16.vlgmr.msrb.gmra.mxu0 %vm171_vm2, %v3467_v49  ;;  %3469 = vmatmul.msk.bf16.vlgmr.msrb.gmra.mxu1 %vm171_vm2, %v3467_v49 }
 0x104   : > { %1045 = vmatpush.bf16.msrb.mxu0 %v932_v15  ;;  %1110 = vmatpush.bf16.msrb.mxu1 %v1085_v55 }
 0x105   : > { %1891 = vrot.lane.b32.xlu1 %v1870_v48, %s3616_s24 }
 0x107   : > { %1899 = vrot.lane.b32.xlu0 %v1878_v56, %s3616_s24  ;;  %1893 = vrot.lane.b32.xlu2 %v1872_v20, %s3616_s24  ;;  %v1885_v44 = vld.sshfl [vmem:[#allocation1] sm:$0xff pattern:$0x73625140]  ;;  %v4087_v9 = vld.sshfl [vmem:[#allocation1 + $0x8] sm:$0xff pattern:$0x73625140] }
 0x108   : > { %2076 = vst [vmem:[#allocation1] ss:$4 sm:$0xff] %v3672_v12  ;;  %v1266_v12 = vpop.permute.xlu0 %1265 }
 0x109   : > { %v1279_v10 = vsel %vm514_vm3, %v1264_v4, %v1266_v12 }
 0x10a   : > { %v1300_v16 = vand.u32 %v1279_v10, %v3698_v25 }
 0x10b   : > { %3470 = vmatmul.msk.bf16.vlgmr.msrb.gmra.mxu2 %vm171_vm2, %v3467_v49  ;;  %3471 = vmatmul.msk.bf16.vlgmr.msrb.gmra.mxu3 %vm171_vm2, %v3467_v49 }
 0x10c   : > { %1123 = vmatpush.bf16.msrb.mxu2 %v1087_v27  ;;  %1136 = vmatpush.bf16.msrb.mxu3 %v1089_v29  ;;  %v1270_v27 = vpop.permute.xlu1 %1269 }
 0x10d   : > { %1695 = vrot.lane.b32.xlu1 %v1675_v46, %s3616_s24  ;;  %v1281_v29 = vsel %vm514_vm3, %v1268_v7, %v1270_v27 }
 0x10e   : > { %v1306_v20 = vand.u32 %v1281_v29, %v3698_v25  ;;  %v2091_v29 = vld.sshfl [vmem:[#allocation1 + $0x30] sm:$0xff pattern:$0x73625140] }
 0x10f   : > { %1897 = vrot.lane.b32.xlu0 %v1876_v38, %s3616_s24  ;;  %1889 = vrot.lane.b32.xlu2 %v1868_v61, %s3616_s24  ;;  %v2079_v37 = vld.sshfl [vmem:[#allocation1] sm:$0xff pattern:$0x73625140]  ;;  %v2083_v54 = vld.sshfl [vmem:[#allocation1 + $0x10] sm:$0xff pattern:$0x73625140] }
 0x110   : > { %v1272_v55 = vpop.permute.xlu0 %1271 }
 0x111   : > { %v1282_v48 = vsel %vm514_vm3, %v1270_v27, %v1272_v55 }
 0x112   : > { %v1309_v17 = vand.u32 %v1282_v48, %v3698_v25 }
 0x113   : > { %3472 = vmatmul.msk.bf16.vlgmr.msra.gmra.mxu0 %vm171_vm2, %v3467_v49  ;;  %3473 = vmatmul.msk.bf16.vlgmr.msra.gmra.mxu1 %vm171_vm2, %v3467_v49 }
 0x114   : > { %1149 = vmatpush.bf16.msra.mxu0 %v1091_v30  ;;  %1162 = vmatpush.bf16.msra.mxu1 %v1093_v31 }
 0x115   : > { %1901 = vrot.lane.b32.xlu1 %v1880_v58, %s3616_s24 }
 0x117   : > { %1903 = vrot.lane.b32.xlu2 %v1882_v19, %s3616_s24  ;;  %2104 = vrot.lane.b32.xlu0 %v2083_v54, %s3617_s29 }
 0x118   : > { %v1469_v60 = vpop.permute.xlu0 %1468 }
 0x11b   : > { %3474 = vmatmul.msk.bf16.vlgmr.msra.gmra.mxu2 %vm171_vm2, %v3467_v49  ;;  %3475 = vmatmul.msk.bf16.vlgmr.msra.gmra.mxu3 %vm171_vm2, %v3467_v49  ;;  %v1467_v15 = vpop.permute.xlu2 %1466 }
 0x11c   : > { %1175 = vmatpush.bf16.msra.mxu2 %v1095_v41  ;;  %1188 = vmatpush.bf16.msra.mxu3 %v1097_v32 }
 0x11d   : > { %2100 = vrot.lane.b32.xlu1 %v2079_v37, %s3617_s29 }
 0x11f   : > { %2108 = vrot.lane.b32.xlu0 %v2087_v33, %s3617_s29 }
 0x123   : > { %3476 = vmatmul.msk.bf16.vlgmr.msrb.gmra.mxu0 %vm171_vm2, %v3467_v49  ;;  %3481 = vmatmul.msk.bf16.vlgmr.msrb.gmra.mxu1 %vm171_vm2, %v4075_v21  ;;  %v1280_v49 = vsel %vm514_vm3, %v1266_v12, %v1268_v7 }
 0x124   : > { %1201 = vmatpush.bf16.msrb.mxu0 %v1099_v22  ;;  %1214 = vmatpush.bf16.msrb.mxu1 %v1101_v34  ;;  %v1303_v46 = vand.u32 %v1280_v49, %v3698_v25  ;;  %v2085_v22 = vld.sshfl [vmem:[#allocation1 + $0x18] sm:$0xff pattern:$0x73625140] }
 0x125   : > { %1905 = vrot.lane.b32.xlu1 %v1885_v44, %s3616_s24 }
 0x127   : > { %2106 = vrot.lane.b32.xlu0 %v2085_v22, %s3617_s29 }
 0x12b   : > { %3482 = vmatmul.msk.bf16.vlgmr.msrb.gmra.mxu2 %vm171_vm2, %v4075_v21  ;;  %3483 = vmatmul.msk.bf16.vlgmr.msrb.gmra.mxu3 %vm171_vm2, %v4075_v21  ;;  %v1473_v61 = vpop.permute.xlu2 %1472 }
 0x12c   : > { %1321 = vmatpush.bf16.msrb.mxu2 %v1288_v47  ;;  %1334 = vmatpush.bf16.msrb.mxu3 %v1291_v5 }
 0x12d   : > { %2110 = vrot.lane.b32.xlu1 %v2089_v23, %s3617_s29 }
 0x131   : > { %v1475_v38 = vpop.permute.xlu0 %1474 }
 0x133   : > { %3484 = vmatmul.msk.bf16.vlgmr.msra.gmra.mxu0 %vm171_vm2, %v4075_v21  ;;  %3485 = vmatmul.msk.bf16.vlgmr.msra.gmra.mxu1 %vm171_vm2, %v4075_v21 }
 0x134   : > { %1347 = vmatpush.bf16.msra.mxu0 %v1294_v42  ;;  %1360 = vmatpush.bf16.msra.mxu1 %v1297_v36 }
 0x139   : > { %v1471_v47 = vpop.permute.xlu2 %1470 }
 0x13a   : > { %v1487_v5 = vsel %vm514_vm3, %v1469_v60, %v1471_v47  ;;  %v1488_v13 = vsel %vm514_vm3, %v1471_v47, %v1473_v61  ;;  %v4226_v47 = vld [vmem:[%s4879_s1 + $0x1c] sm:$0xf] }
 0x13b   : > { %3486 = vmatmul.msk.bf16.vlgmr.msra.gmra.mxu2 %vm171_vm2, %v4075_v21  ;;  %3487 = vmatmul.msk.bf16.vlgmr.msra.gmra.mxu3 %vm171_vm2, %v4075_v21  ;;  %v1502_v36 = vand.u32 %v1487_v5, %v3698_v25 }
 0x13c   : > { %1373 = vmatpush.bf16.msra.mxu2 %v1300_v16  ;;  %1386 = vmatpush.bf16.msra.mxu3 %v1303_v46 }
 0x13e   : > { %v563_v39 = vpop.f32.mrf.mxu2  ;;  %v576_v30 = vpop.f32.mrf.mxu3 }
 0x13f   : > { %v4123_v31 = vadd.f32 %v563_v39, %v3963_v51  ;;  %v4126_v56 = vadd.f32 %v576_v30, %v3966_v59  ;;  %v2081_v51 = vld.sshfl [vmem:[#allocation1 + $0x8] sm:$0xff pattern:$0x73625140]  ;;  %v1283_v59 = vsel %vm514_vm3, %v1272_v55, %v1274_v52  ;;  %v1505_v52 = vand.u32 %v1488_v13, %v3698_v25  ;;  %v2093_v55 = vld.sshfl [vmem:[#allocation1 + $0x38] sm:$0xff pattern:$0x73625140] }
 0x140   : > { %v589_v41 = vpop.f32.mrf.mxu0  ;;  %v602_v32 = vpop.f32.mrf.mxu1  ;;  %2102 = vrot.lane.b32.xlu2 %v2081_v51, %s3617_s29  ;;  %2095 = vst [vmem:[#allocation1] ss:$4 sm:$0xff] %v3687_v18  ;;  %v4148_v18 = vld [vmem:[%s4879_s1 + $0x18] sm:$0xf]  ;;  %v1312_v8 = vand.u32 %v1283_v59, %v3698_v25 }
 0x141   : > { %v4131_v19 = vadd.f32 %v589_v41, %v3973_v53  ;;  %v4134_v4 = vadd.f32 %v602_v32, %v3976_v43  ;;  %v1486_v53 = vsel %vm514_vm3, %v1467_v15, %v1469_v60  ;;  %2290 = vst [vmem:[#allocation1 + $0x20] ss:$4 sm:$0xff] %v3654_v1  ;;  %v1485_v60 = vpop.permute.xlu2 %1484 }
 0x143   : > { %3488 = vmatmul.msk.bf16.vlgmr.msrb.gmra.mxu0 %vm171_vm2, %v4075_v21  ;;  %3489 = vmatmul.msk.bf16.vlgmr.msrb.gmra.mxu1 %vm171_vm2, %v4075_v21  ;;  %v1499_v21 = vand.u32 %v1486_v53, %v3698_v25 }
 0x144   : > { %1399 = vmatpush.bf16.msrb.mxu0 %v1306_v20  ;;  %1412 = vmatpush.bf16.msrb.mxu1 %v1309_v17 }
 0x146   : > { %v565_v43 = vpop.f32.mrf.mxu2  ;;  %v578_v34 = vpop.f32.mrf.mxu3 }
 0x147   : > { %v2096_v35 = vld.sshfl [vmem:[#allocation1] sm:$0xff pattern:$0x73625140]  ;;  %v4153_v7 = vld.sshfl [vmem:[#allocation1 + $0x8] sm:$0xff pattern:$0x73625140] }
 0x148   : > { %v591_v58 = vpop.f32.mrf.mxu0  ;;  %v604_v44 = vpop.f32.mrf.mxu1  ;;  %1907 = vrot.lane.b32.xlu2 %v4087_v9, %s3616_s24  ;;  %2288 = vst [vmem:[#allocation1] ss:$4 sm:$0xff] %v3650_v0  ;;  %2116 = vrot.lane.b32.xlu1 %v2096_v35, %s3617_s29  ;;  %v2305_v13 = vld.sshfl [vmem:[#allocation1 + $0x38] sm:$0xff pattern:$0x73625140] }
 0x149   : > { %v1481_v0 = vpop.permute.xlu0 %1480 }
 0x14b   : > { %3491 = vmatmul.msk.bf16.vlgmr.msrb.gmra.mxu2 %vm171_vm2, %v4148_v18  ;;  %3492 = vmatmul.msk.bf16.vlgmr.msrb.gmra.mxu3 %vm171_vm2, %v4148_v18 }
 0x14c   : > { %1425 = vmatpush.bf16.msrb.mxu2 %v1312_v8  ;;  %1532 = vmatpush.bf16.msrb.mxu3 %v1499_v21 }
 0x14e   : > { %v615_v37 = vpop.f32.mrf.mxu2  ;;  %v628_v12 = vpop.f32.mrf.mxu3 }
 0x14f   : > { %v4165_v24 = vadd.f32 %v615_v37, %v3998_v62  ;;  %v4168_v9 = vadd.f32 %v628_v12, %v4001_v63  ;;  %v2291_v62 = vld.sshfl [vmem:[#allocation1] sm:$0xff pattern:$0x73625140]  ;;  %v1477_v63 = vpop.permute.xlu1 %1476  ;;  %v2293_v48 = vld.sshfl [vmem:[#allocation1 + $0x8] sm:$0xff pattern:$0x73625140] }
 0x150   : > { %v641_v50 = vpop.f32.mrf.mxu0  ;;  %v654_v42 = vpop.f32.mrf.mxu1  ;;  %2312 = vrot.lane.b32.xlu0 %v2291_v62, %s3617_s29  ;;  %v1490_v49 = vsel %vm514_vm3, %v1475_v38, %v1477_v63  ;;  %2112 = vrot.lane.b32.xlu2 %v2091_v29, %s3617_s29  ;;  %v2297_v39 = vld.sshfl [vmem:[#allocation1 + $0x18] sm:$0xff pattern:$0x73625140] }
 0x151   : > { %v4173_v54 = vadd.f32 %v641_v50, %v4008_v40  ;;  %v4176_v10 = vadd.f32 %v654_v42, %v4011_v45  ;;  %v1489_v40 = vsel %vm514_vm3, %v1473_v61, %v1475_v38  ;;  %v1511_v27 = vand.u32 %v1490_v49, %v3698_v25  ;;  %2314 = vrot.lane.b32.xlu1 %v2293_v48, %s3617_s29  ;;  %v1479_v30 = vpop.permute.xlu0 %1478 }
 0x152   : > { %v1508_v33 = vand.u32 %v1489_v40, %v3698_v25  ;;  %v1491_v41 = vsel %vm514_vm3, %v1477_v63, %v1479_v30  ;;  %v1492_v1 = vsel %vm514_vm3, %v1479_v30, %v1481_v0 }
 0x153   : > { %3493 = vmatmul.msk.bf16.vlgmr.msra.gmra.mxu0 %vm171_vm2, %v4148_v18  ;;  %3494 = vmatmul.msk.bf16.vlgmr.msra.gmra.mxu1 %vm171_vm2, %v4148_v18  ;;  %v1514_v53 = vand.u32 %v1491_v41, %v3698_v25  ;;  %v1517_v43 = vand.u32 %v1492_v1, %v3698_v25 }
 0x154   : > { %1545 = vmatpush.bf16.msra.mxu0 %v1502_v36  ;;  %1558 = vmatpush.bf16.msra.mxu1 %v1505_v52 }
 0x156   : > { %v617_v45 = vpop.f32.mrf.mxu2  ;;  %v630_v15 = vpop.f32.mrf.mxu3 }
 0x157   : > { %v1483_v61 = vpop.permute.xlu1 %1482 }
 0x158   : > { %v643_v16 = vpop.f32.mrf.mxu0  ;;  %v656_v46 = vpop.f32.mrf.mxu1  ;;  %2318 = vrot.lane.b32.xlu0 %v2297_v39, %s3617_s29  ;;  %2118 = vrot.lane.b32.xlu2 %v4153_v7, %s3617_s29  ;;  %v1493_v58 = vsel %vm514_vm3, %v1481_v0, %v1483_v61  ;;  %v1494_v44 = vsel %vm514_vm3, %v1483_v61, %v1485_v60 }
 0x159   : > { %v1686_v8 = vpop.permute.xlu0 %1685  ;;  %v1523_v5 = vand.u32 %v1494_v44, %v3698_v25  ;;  %v2303_v46 = vld.sshfl [vmem:[#allocation1 + $0x30] sm:$0xff pattern:$0x73625140] }
 0x15b   : > { %3495 = vmatmul.msk.bf16.vlgmr.msra.gmra.mxu2 %vm171_vm2, %v4148_v18  ;;  %3496 = vmatmul.msk.bf16.vlgmr.msra.gmra.mxu3 %vm171_vm2, %v4148_v18 }
 0x15c   : > { %1571 = vmatpush.bf16.msra.mxu2 %v1508_v33  ;;  %1584 = vmatpush.bf16.msra.mxu3 %v1511_v27 }
 0x15e   : > { %v667_v32 = vpop.f32.mrf.mxu2  ;;  %v774_v20 = vpop.f32.mrf.mxu3 }
 0x15f   : > { %v4199_v17 = vadd.f32 %v667_v32, %v4033_v11  ;;  %v4202_v22 = vadd.f32 %v774_v20, %v4123_v31  ;;  %v2299_v11 = vld.sshfl [vmem:[#allocation1 + $0x20] sm:$0xff pattern:$0x73625140]  ;;  %v2295_v31 = vld.sshfl [vmem:[#allocation1 + $0x10] sm:$0xff pattern:$0x73625140] }
 0x160   : > { %v787_v51 = vpop.f32.mrf.mxu0  ;;  %v800_v59 = vpop.f32.mrf.mxu1  ;;  %2320 = vrot.lane.b32.xlu1 %v2299_v11, %s3617_s29  ;;  %2307 = vst [vmem:[#allocation1] ss:$4 sm:$0xff] %v3658_v2  ;;  %2316 = vrot.lane.b32.xlu0 %v2295_v31, %s3617_s29  ;;  %v1520_v2 = vand.u32 %v1493_v58, %v3698_v25 }
 0x161   : > { %v4207_v34 = vadd.f32 %v787_v51, %v4126_v56  ;;  %v4210_v38 = vadd.f32 %v800_v59, %v4131_v19  ;;  %v1684_v56 = vpop.permute.xlu2 %1683  ;;  %v1682_v19 = vpop.permute.xlu1 %1681  ;;  %2114 = vrot.lane.b32.xlu2 %v2093_v55, %s3617_s29 }
 0x162   : > { %v1690_v63 = vpop.permute.xlu0 %1689 }
 0x163   : > { %3497 = vmatmul.msk.bf16.vlgmr.msrb.gmra.mxu0 %vm171_vm2, %v4148_v18  ;;  %3498 = vmatmul.msk.bf16.vlgmr.msrb.gmra.mxu1 %vm171_vm2, %v4148_v18 }
 0x164   : > { %1597 = vmatpush.bf16.msrb.mxu0 %v1514_v53  ;;  %1610 = vmatpush.bf16.msrb.mxu1 %v1517_v43 }
 0x166   : > { %v669_v21 = vpop.f32.mrf.mxu2  ;;  %v776_v23 = vpop.f32.mrf.mxu3 }
 0x167   : > { %v2310_v30 = vld.sshfl [vmem:[#allocation1 + $0x8] sm:$0xff pattern:$0x73625140]  ;;  %v2308_v60 = vld.sshfl [vmem:[#allocation1] sm:$0xff pattern:$0x73625140] }
 0x168   : > { %v789_v35 = vpop.f32.mrf.mxu0  ;;  %v802_v7 = vpop.f32.mrf.mxu1  ;;  %2326 = vrot.lane.b32.xlu1 %v2305_v13, %s3617_s29  ;;  %2330 = vrot.lane.b32.xlu0 %v2310_v30, %s3617_s29  ;;  %2499 = vst [vmem:[#allocation1] ss:$4 sm:$0xff] %v3770_v3 }
 0x169   : > { %v1680_v37 = vpop.permute.xlu2 %1679  ;;  %v1678_v12 = vpop.permute.xlu1 %1677 }
 0x16a   : > { %v1699_v0 = vsel %vm1697_vm4, %v1680_v37, %v1682_v19  ;;  %v1698_v50 = vsel %vm1697_vm4, %v1678_v12, %v1680_v37  ;;  %v1688_v61 = vpop.permute.xlu0 %1687 }
 0x16b   : > { %3499 = vmatmul.msk.bf16.vlgmr.msrb.gmra.mxu2 %vm171_vm2, %v4148_v18  ;;  %3501 = vmatmul.msk.bf16.vlgmr.msrb.gmra.mxu3 %vm171_vm2, %v4226_v47  ;;  %v2301_v18 = vld.sshfl [vmem:[#allocation1 + $0x28] sm:$0xff pattern:$0x73625140]  ;;  %v1714_v45 = vand.u32 %v1699_v0, %v3698_v25  ;;  %v1711_v15 = vand.u32 %v1698_v50, %v3698_v25  ;;  %v1702_v1 = vsel %vm1697_vm4, %v1686_v8, %v1688_v61 }
 0x16c   : > { %1623 = vmatpush.bf16.msrb.mxu2 %v1520_v2  ;;  %1636 = vmatpush.bf16.msrb.mxu3 %v1523_v5  ;;  %2501 = vst [vmem:[#allocation1 + $0x20] ss:$4 sm:$0xff] %v3758_v57  ;;  %v1703_v32 = vsel %vm1697_vm4, %v1688_v61, %v1690_v63 }
 0x16d   : > { %2322 = vrot.lane.b32.xlu2 %v2301_v18, %s3617_s29 }
 0x16e   : > { %v813_v42 = vpop.f32.mrf.mxu2  ;;  %v826_v36 = vpop.f32.mrf.mxu3 }
 0x16f   : > { %v4239_v52 = vadd.f32 %v813_v42, %v4134_v4  ;;  %v4242_v62 = vadd.f32 %v826_v36, %v4165_v24  ;;  %v1701_v4 = vsel %vm1697_vm4, %v1684_v56, %v1686_v8  ;;  %v1700_v24 = vsel %vm1697_vm4, %v1682_v19, %v1684_v56  ;;  %v2508_v21 = vld.sshfl [vmem:[#allocation1 + $0x18] sm:$0xff pattern:$0x73625140]  ;;  %v2504_v12 = vld.sshfl [vmem:[#allocation1 + $0x8] sm:$0xff pattern:$0x73625140] }
 0x170   : > { %v839_v40 = vpop.f32.mrf.mxu0  ;;  %v852_v49 = vpop.f32.mrf.mxu1  ;;  %2324 = vrot.lane.b32.xlu1 %v2303_v46, %s3617_s29  ;;  %v1720_v48 = vand.u32 %v1701_v4, %v3698_v25  ;;  %v1717_v39 = vand.u32 %v1700_v24, %v3698_v25  ;;  %v1723_v56 = vand.u32 %v1702_v1, %v3698_v25  ;;  %v1726_v19 = vand.u32 %v1703_v32, %v3698_v25 }
 0x171   : > { %v4247_v55 = vadd.f32 %v839_v40, %v4168_v9  ;;  %v4250_v16 = vadd.f32 %v852_v49, %v4173_v54  ;;  %v1692_v9 = vpop.permute.xlu1 %1691  ;;  %v1694_v41 = vpop.permute.xlu2 %1693  ;;  %2529 = vrot.lane.b32.xlu0 %v2508_v21, %s3616_s24 }
 0x173   : > { %3502 = vmatmul.msk.bf16.vlgmr.msra.gmra.mxu0 %vm171_vm2, %v4226_v47  ;;  %3503 = vmatmul.msk.bf16.vlgmr.msra.gmra.mxu1 %vm171_vm2, %v4226_v47  ;;  %v2510_v8 = vld.sshfl [vmem:[#allocation1 + $0x20] sm:$0xff pattern:$0x73625140]  ;;  %v2514_v37 = vld.sshfl [vmem:[#allocation1 + $0x30] sm:$0xff pattern:$0x73625140] }
 0x174   : > { %1744 = vmatpush.bf16.msra.mxu0 %v1711_v15  ;;  %1757 = vmatpush.bf16.msra.mxu1 %v1714_v45  ;;  %v2502_v45 = vld.sshfl [vmem:[#allocation1] sm:$0xff pattern:$0x73625140] }
 0x175   : > { %2328 = vrot.lane.b32.xlu2 %v2308_v60, %s3617_s29 }
 0x176   : > { %v815_v54 = vpop.f32.mrf.mxu2  ;;  %v828_v33 = vpop.f32.mrf.mxu3 }
 0x177   : > { %v2506_v33 = vld.sshfl [vmem:[#allocation1 + $0x10] sm:$0xff pattern:$0x73625140] }
 0x178   : > { %v841_v27 = vpop.f32.mrf.mxu0  ;;  %v854_v29 = vpop.f32.mrf.mxu1  ;;  %2531 = vrot.lane.b32.xlu1 %v2510_v8, %s3616_s24  ;;  %2518 = vst [vmem:[#allocation1] ss:$4 sm:$0xff] %v3796_v14 }
 0x179   : > { %v1892_v43 = vpop.permute.xlu1 %1891  ;;  %2525 = vrot.lane.b32.xlu0 %v2504_v12, %s3616_s24 }
 0x17b   : > { %3504 = vmatmul.msk.bf16.vlgmr.msra.gmra.mxu2 %vm171_vm2, %v4226_v47  ;;  %3505 = vmatmul.msk.bf16.vlgmr.msra.gmra.mxu3 %vm171_vm2, %v4226_v47 }
 0x17c   : > { %1770 = vmatpush.bf16.msra.mxu2 %v1717_v39  ;;  %1783 = vmatpush.bf16.msra.mxu3 %v1720_v48 }
 0x17d   : > { %2527 = vrot.lane.b32.xlu2 %v2506_v33, %s3616_s24 }
 0x17e   : > { %v865_v20 = vpop.f32.mrf.mxu2  ;;  %v878_v51 = vpop.f32.mrf.mxu3 }
 0x17f   : > { %v4273_v59 = vadd.f32 %v865_v20, %v4176_v10  ;;  %v4276_v53 = vadd.f32 %v878_v51, %v4199_v17  ;;  %v1894_v10 = vpop.permute.xlu2 %1893  ;;  %v1704_v17 = vsel %vm1697_vm4, %v1690_v63, %v1692_v9  ;;  %v4334_v1 = vld.sshfl [vmem:[#allocation1 + $0x8] sm:$0xff pattern:$0x73625140] }
 0x180   : > { %v943_v11 = vpop.f32.mrf.mxu0  ;;  %v956_v31 = vpop.f32.mrf.mxu1  ;;  %v1729_v5 = vand.u32 %v1704_v17, %v3698_v25  ;;  %2535 = vrot.lane.b32.xlu1 %v2514_v37, %s3616_s24 }
 0x181   : > { %v4281_v58 = vadd.f32 %v943_v11, %v4202_v22  ;;  %v4284_v44 = vadd.f32 %v956_v31, %v4207_v34  ;;  %v1705_v22 = vsel %vm1697_vm4, %v1692_v9, %v1694_v41  ;;  %v1896_v34 = vpop.permute.xlu0 %1895  ;;  %v1696_v0 = vpop.permute.xlu1 %1695 }
 0x182   : > { %v1732_v13 = vand.u32 %v1705_v22, %v3698_v25  ;;  %v1706_v42 = vsel %vm1697_vm4, %v1694_v41, %v1696_v0  ;;  %v2519_v41 = vld.sshfl [vmem:[#allocation1] sm:$0xff pattern:$0x73625140] }
 0x183   : > { %3506 = vmatmul.msk.bf16.vlgmr.msrb.gmra.mxu0 %vm171_vm2, %v4226_v47  ;;  %3507 = vmatmul.msk.bf16.vlgmr.msrb.gmra.mxu1 %vm171_vm2, %v4226_v47  ;;  %v1735_v24 = vand.u32 %v1706_v42, %v3698_v25  ;;  %2710 = vst [vmem:[#allocation1] ss:$4 sm:$0xff] %v3825_v26 }
 0x184   : > { %1796 = vmatpush.bf16.msrb.mxu0 %v1723_v56  ;;  %1809 = vmatpush.bf16.msrb.mxu1 %v1726_v19 }
 0x185   : > { %2539 = vrot.lane.b32.xlu0 %v2519_v41, %s3616_s24  ;;  %2523 = vrot.lane.b32.xlu2 %v2502_v45, %s3616_s24 }
 0x186   : > { %v867_v23 = vpop.f32.mrf.mxu2  ;;  %v880_v35 = vpop.f32.mrf.mxu3 }
 0x187   : > { %v1890_v50 = vpop.permute.xlu2 %1889 }
 0x188   : > { %v945_v7 = vpop.f32.mrf.mxu0  ;;  %v958_v2 = vpop.f32.mrf.mxu1  ;;  %v1909_v36 = vsel %vm1697_vm4, %v1890_v50, %v1892_v43 }
 0x189   : > { %v1900_v15 = vpop.permute.xlu0 %1899  ;;  %v1922_v9 = vand.u32 %v1909_v36, %v3698_v25  ;;  %v1902_v27 = vpop.permute.xlu1 %1901 }
 0x18a   : > { %v2719_v35 = vld.sshfl [vmem:[#allocation1 + $0x18] sm:$0xff pattern:$0x73625140]  ;;  %v2717_v7 = vld.sshfl [vmem:[#allocation1 + $0x10] sm:$0xff pattern:$0x73625140] }
 0x18b   : > { %3508 = vmatmul.msk.bf16.vlgmr.msrb.gmra.mxu2 %vm171_vm2, %v4226_v47  ;;  %3509 = vmatmul.msk.bf16.vlgmr.msrb.gmra.mxu3 %vm171_vm2, %v4226_v47  ;;  %v4313_v47 = vld [vmem:[%s4879_s1 + $0x20] sm:$0xf] }
 0x18c   : > { %1822 = vmatpush.bf16.msrb.mxu2 %v1729_v5  ;;  %1835 = vmatpush.bf16.msrb.mxu3 %v1732_v13  ;;  %v2713_v42 = vld.sshfl [vmem:[#allocation1] sm:$0xff pattern:$0x73625140] }
 0x18d   : > { %2738 = vrot.lane.b32.xlu0 %v2717_v7, %s3616_s24 }
 0x18e   : > { %v969_v18 = vpop.f32.mrf.mxu2  ;;  %v982_v63 = vpop.f32.mrf.mxu3 }
 0x18f   : > { %v4305_v40 = vadd.f32 %v969_v18, %v4210_v38  ;;  %v4308_v49 = vadd.f32 %v982_v63, %v4239_v52  ;;  %v2512_v52 = vld.sshfl [vmem:[#allocation1 + $0x28] sm:$0xff pattern:$0x73625140]  ;;  %v1904_v20 = vpop.permute.xlu2 %1903 }
 0x190   : > { %v995_v46 = vpop.f32.mrf.mxu0  ;;  %v1008_v4 = vpop.f32.mrf.mxu1  ;;  %2533 = vrot.lane.b32.xlu1 %v2512_v52, %s3616_s24 }
 0x191   : > { %v4318_v54 = vadd.f32 %v995_v46, %v4242_v62  ;;  %v4321_v38 = vadd.f32 %v1008_v4, %v4247_v55  ;;  %v1910_v62 = vsel %vm1697_vm4, %v1892_v43, %v1894_v10  ;;  %v1911_v55 = vsel %vm1697_vm4, %v1894_v10, %v1896_v34  ;;  %v1898_v32 = vpop.permute.xlu0 %1897  ;;  %v2101_v8 = vpop.permute.xlu1 %2100 }
 0x192   : > { %v1925_v60 = vand.u32 %v1910_v62, %v3698_v25  ;;  %v1928_v61 = vand.u32 %v1911_v55, %v3698_v25  ;;  %v1912_v51 = vsel %vm1697_vm4, %v1896_v34, %v1898_v32  ;;  %v1913_v43 = vsel %vm1697_vm4, %v1898_v32, %v1900_v15  ;;  %v4392_v55 = vld [vmem:[%s4879_s1 + $0x24] sm:$0xf] }
 0x193   : > { %3511 = vmatmul.msk.bf16.vlgmr.msra.gmra.mxu0 %vm171_vm2, %v4313_v47  ;;  %3512 = vmatmul.msk.bf16.vlgmr.msra.gmra.mxu1 %vm171_vm2, %v4313_v47  ;;  %v1931_v17 = vand.u32 %v1912_v51, %v3698_v25  ;;  %v1934_v22 = vand.u32 %v1913_v43, %v3698_v25 }
 0x194   : > { %1848 = vmatpush.bf16.msra.mxu0 %v1735_v24  ;;  %1955 = vmatpush.bf16.msra.mxu1 %v1922_v9 }
 0x195   : > { %2734 = vrot.lane.b32.xlu0 %v2713_v42, %s3616_s24 }
 0x196   : > { %v971_v29 = vpop.f32.mrf.mxu2  ;;  %v984_v48 = vpop.f32.mrf.mxu3 }
 0x198   : > { %v997_v39 = vpop.f32.mrf.mxu0  ;;  %v1010_v30 = vpop.f32.mrf.mxu1  ;;  %2740 = vrot.lane.b32.xlu1 %v2719_v35, %s3616_s24 }
 0x199   : > { %v4368_v2 = vpop.permute.xlu0 %2104  ;;  %v1906_v36 = vpop.permute.xlu1 %1905 }
 0x19a   : > { %v1916_v45 = vsel %vm1697_vm4, %v1904_v20, %v1906_v36 }
 0x19b   : > { %3513 = vmatmul.msk.bf16.vlgmr.msra.gmra.mxu2 %vm171_vm2, %v4313_v47  ;;  %3514 = vmatmul.msk.bf16.vlgmr.msra.gmra.mxu3 %vm171_vm2, %v4313_v47 }
 0x19c   : > { %1968 = vmatpush.bf16.msra.mxu2 %v1925_v60  ;;  %1981 = vmatpush.bf16.msra.mxu3 %v1928_v61 }
 0x19e   : > { %v1021_v11 = vpop.f32.mrf.mxu2  ;;  %v1034_v31 = vpop.f32.mrf.mxu3 }
 0x19f   : > { %v4346_v56 = vadd.f32 %v1021_v11, %v4250_v16  ;;  %v4349_v19 = vadd.f32 %v1034_v31, %v4273_v59  ;;  %v2516_v16 = vld.sshfl [vmem:[#allocation1 + $0x38] sm:$0xff pattern:$0x73625140]  ;;  %v2103_v59 = vpop.permute.xlu2 %2102 }
 0x1a0   : > { %v1047_v21 = vpop.f32.mrf.mxu0  ;;  %v1112_v10 = vpop.f32.mrf.mxu1  ;;  %2712 = vst [vmem:[#allocation1 + $0x20] ss:$4 sm:$0xff] %v3780_v6  ;;  %2537 = vrot.lane.b32.xlu2 %v2516_v16, %s3616_s24 }
 0x1a1   : > { %v4354_v23 = vadd.f32 %v1047_v21, %v4276_v53  ;;  %v4357_v34 = vadd.f32 %v1112_v10, %v4281_v58  ;;  %v1914_v53 = vsel %vm1697_vm4, %v1900_v15, %v1902_v27  ;;  %v1915_v58 = vsel %vm1697_vm4, %v1902_v27, %v1904_v20  ;;  %v4387_v52 = vpop.permute.xlu0 %2108 }
 0x1a2   : > { %v1937_v0 = vand.u32 %v1914_v53, %v3698_v25  ;;  %v1940_v50 = vand.u32 %v1915_v58, %v3698_v25  ;;  %v1943_v27 = vand.u32 %v1916_v45, %v3698_v25 }
 0x1a3   : > { %3515 = vmatmul.msk.bf16.vlgmr.msrb.gmra.mxu0 %vm171_vm2, %v4313_v47  ;;  %3516 = vmatmul.msk.bf16.vlgmr.msrb.gmra.mxu1 %vm171_vm2, %v4313_v47 }
 0x1a4   : > { %1994 = vmatpush.bf16.msrb.mxu0 %v1931_v17  ;;  %2007 = vmatpush.bf16.msrb.mxu1 %v1934_v22 }
 0x1a6   : > { %v1023_v5 = vpop.f32.mrf.mxu2  ;;  %v1036_v13 = vpop.f32.mrf.mxu3 }
 0x1a7   : > { %v2723_v18 = vld.sshfl [vmem:[#allocation1 + $0x28] sm:$0xff pattern:$0x73625140]  ;;  %v1908_v63 = vpop.permute.xlu2 %1907  ;;  %v2721_v39 = vld.sshfl [vmem:[#allocation1 + $0x20] sm:$0xff pattern:$0x73625140] }
 0x1a8   : > { %v1049_v37 = vpop.f32.mrf.mxu0  ;;  %v1114_v12 = vpop.f32.mrf.mxu1  ;;  %2744 = vrot.lane.b32.xlu1 %v2723_v18, %s3616_s24  ;;  %v1917_v15 = vsel %vm1697_vm4, %v1906_v36, %v1908_v63  ;;  %v2727_v51 = vld.sshfl [vmem:[#allocation1 + $0x38] sm:$0xff pattern:$0x73625140] }
 0x1a9   : > { %v1946_v29 = vand.u32 %v1917_v15, %v3698_v25  ;;  %2748 = vrot.lane.b32.xlu0 %v2727_v51, %s3616_s24  ;;  %v2107_v31 = vpop.permute.xlu0 %2106 }
 0x1aa   : > { %v2123_v21 = vsel %vm2120_vm5, %v4368_v2, %v2107_v31  ;;  %v2124_v10 = vsel %vm2120_vm5, %v2107_v31, %v4387_v52 }
 0x1ab   : > { %3517 = vmatmul.msk.bf16.vlgmr.msrb.gmra.mxu2 %vm171_vm2, %v4313_v47  ;;  %3518 = vmatmul.msk.bf16.vlgmr.msrb.gmra.mxu3 %vm171_vm2, %v4313_v47  ;;  %v2143_v53 = vand.u32 %v2124_v10, %v3698_v25 }
 0x1ac   : > { %2020 = vmatpush.bf16.msrb.mxu2 %v1937_v0  ;;  %2033 = vmatpush.bf16.msrb.mxu3 %v1940_v50 }
 0x1ae   : > { %v1125_v46 = vpop.f32.mrf.mxu2  ;;  %v1138_v4 = vpop.f32.mrf.mxu3 }
 0x1af   : > { %v4382_v24 = vadd.f32 %v1125_v46, %v4284_v44  ;;  %v4385_v9 = vadd.f32 %v1138_v4, %v4305_v40  ;;  %v2715_v40 = vld.sshfl [vmem:[#allocation1 + $0x8] sm:$0xff pattern:$0x73625140]  ;;  %v2113_v30 = vpop.permute.xlu2 %2112 }
 0x1b0   : > { %v1151_v33 = vpop.f32.mrf.mxu0  ;;  %v1164_v62 = vpop.f32.mrf.mxu1  ;;  %2736 = vrot.lane.b32.xlu2 %v2715_v40, %s3616_s24  ;;  %2729 = vst [vmem:[#allocation1] ss:$4 sm:$0xff] %v3836_v28  ;;  %2742 = vrot.lane.b32.xlu1 %v2721_v39, %s3616_s24 }
 0x1b1   : > { %v4397_v48 = vadd.f32 %v1151_v33, %v4308_v49  ;;  %v4400_v44 = vadd.f32 %v1164_v62, %v4318_v54  ;;  %v2121_v49 = vsel %vm2120_vm5, %v2101_v8, %v2103_v59  ;;  %v2122_v54 = vsel %vm2120_vm5, %v2103_v59, %v4368_v2  ;;  %v2111_v8 = vpop.permute.xlu1 %2110 }
 0x1b2   : > { %v2134_v20 = vand.u32 %v2121_v49, %v3698_v25  ;;  %v2140_v59 = vand.u32 %v2123_v21, %v3698_v25 }
 0x1b3   : > { %3519 = vmatmul.msk.bf16.vlgmr.msra.gmra.mxu0 %vm171_vm2, %v4313_v47  ;;  %3521 = vmatmul.msk.bf16.vlgmr.msra.gmra.mxu1 %vm171_vm2, %v4392_v55  ;;  %v2137_v47 = vand.u32 %v2122_v54, %v3698_v25 }
 0x1b4   : > { %2046 = vmatpush.bf16.msra.mxu0 %v1943_v27  ;;  %2059 = vmatpush.bf16.msra.mxu1 %v1946_v29 }
 0x1b6   : > { %v1127_v60 = vpop.f32.mrf.mxu2  ;;  %v1140_v61 = vpop.f32.mrf.mxu3 }
 0x1b7   : > { %v4414_v43 = vld.sshfl [vmem:[#allocation1] sm:$0xff pattern:$0x73625140]  ;;  %v2732_v11 = vld.sshfl [vmem:[#allocation1 + $0x8] sm:$0xff pattern:$0x73625140]  ;;  %v2119_v35 = vpop.permute.xlu2 %2118 }
 0x1b8   : > { %v1153_v41 = vpop.f32.mrf.mxu0  ;;  %v1166_v32 = vpop.f32.mrf.mxu1  ;;  %2921 = vst [vmem:[#allocation1] ss:$4 sm:$0xff] %v3770_v3  ;;  %2541 = vrot.lane.b32.xlu2 %v4334_v1, %s3616_s24 }
 0x1bb   : > { %3522 = vmatmul.msk.bf16.vlgmr.msra.gmra.mxu2 %vm171_vm2, %v4392_v55  ;;  %3523 = vmatmul.msk.bf16.vlgmr.msra.gmra.mxu3 %vm171_vm2, %v4392_v55 }
 0x1bc   : > { %2167 = vmatpush.bf16.msra.mxu2 %v2134_v20  ;;  %2180 = vmatpush.bf16.msra.mxu3 %v2137_v47 }
 0x1be   : > { %v1177_v3 = vpop.f32.mrf.mxu2  ;;  %v1190_v17 = vpop.f32.mrf.mxu3 }
 0x1bf   : > { %v4429_v22 = vadd.f32 %v1177_v3, %v4321_v38  ;;  %v4432_v1 = vadd.f32 %v1190_v17, %v4346_v56  ;;  %v2928_v5 = vld.sshfl [vmem:[#allocation1 + $0x10] sm:$0xff pattern:$0x73625140]  ;;  %v2926_v13 = vld.sshfl [vmem:[#allocation1 + $0x8] sm:$0xff pattern:$0x73625140]  ;;  %v2117_v56 = vpop.permute.xlu1 %2116  ;;  %v2115_v63 = vpop.permute.xlu2 %2114 }
 0x1c0   : > { %v1203_v7 = vpop.f32.mrf.mxu0  ;;  %v1216_v16 = vpop.f32.mrf.mxu1  ;;  %2949 = vrot.lane.b32.xlu1 %v2928_v5, %s3617_s29  ;;  %2947 = vrot.lane.b32.xlu0 %v2926_v13, %s3617_s29  ;;  %v2725_v38 = vld.sshfl [vmem:[#allocation1 + $0x30] sm:$0xff pattern:$0x73625140]  ;;  %v2127_v15 = vsel %vm2120_vm5, %v2113_v30, %v2115_v63  ;;  %v2128_v46 = vsel %vm2120_vm5, %v2115_v63, %v2117_v56  ;;  %v2930_v60 = vld.sshfl [vmem:[#allocation1 + $0x18] sm:$0xff pattern:$0x73625140] }
 0x1c1   : > { %v4437_v58 = vadd.f32 %v1203_v7, %v4349_v19  ;;  %v4440_v2 = vadd.f32 %v1216_v16, %v4354_v23  ;;  %2923 = vst [vmem:[#allocation1 + $0x20] ss:$4 sm:$0xff] %v3758_v57  ;;  %v2125_v19 = vsel %vm2120_vm5, %v4387_v52, %v2111_v8  ;;  %v2126_v23 = vsel %vm2120_vm5, %v2111_v8, %v2113_v30 }
 0x1c2   : > { %v2313_v37 = vpop.permute.xlu0 %2312  ;;  %2746 = vrot.lane.b32.xlu2 %v2725_v38, %s3616_s24  ;;  %v2146_v36 = vand.u32 %v2125_v19, %v3698_v25  ;;  %v2149_v18 = vand.u32 %v2126_v23, %v3698_v25  ;;  %v2152_v39 = vand.u32 %v2127_v15, %v3698_v25  ;;  %v2155_v49 = vand.u32 %v2128_v46, %v3698_v25 }
 0x1c3   : > { %3524 = vmatmul.msk.bf16.vlgmr.msrb.gmra.mxu0 %vm171_vm2, %v4392_v55  ;;  %3525 = vmatmul.msk.bf16.vlgmr.msrb.gmra.mxu1 %vm171_vm2, %v4392_v55 }
 0x1c4   : > { %2193 = vmatpush.bf16.msrb.mxu0 %v2140_v59  ;;  %2206 = vmatpush.bf16.msrb.mxu1 %v2143_v53 }
 0x1c6   : > { %v1179_v12 = vpop.f32.mrf.mxu2  ;;  %v1192_v0 = vpop.f32.mrf.mxu3 }
 0x1c7   : > { %v2315_v45 = vpop.permute.xlu1 %2314 }
 0x1c8   : > { %v1205_v50 = vpop.f32.mrf.mxu0  ;;  %v1218_v42 = vpop.f32.mrf.mxu1  ;;  %v2932_v57 = vld.sshfl [vmem:[#allocation1 + $0x20] sm:$0xff pattern:$0x73625140]  ;;  %2752 = vrot.lane.b32.xlu0 %v2732_v11, %s3616_s24  ;;  %v2936_v61 = vld.sshfl [vmem:[#allocation1 + $0x30] sm:$0xff pattern:$0x73625140] }
 0x1c9   : > { %2953 = vrot.lane.b32.xlu1 %v2932_v57, %s3617_s29  ;;  %v2938_v38 = vld.sshfl [vmem:[#allocation1 + $0x38] sm:$0xff pattern:$0x73625140] }
 0x1ca   : > { %v2319_v27 = vpop.permute.xlu0 %2318 }
 0x1cb   : > { %3526 = vmatmul.msk.bf16.vlgmr.msrb.gmra.mxu2 %vm171_vm2, %v4392_v55  ;;  %3527 = vmatmul.msk.bf16.vlgmr.msrb.gmra.mxu3 %vm171_vm2, %v4392_v55 }
 0x1cc   : > { %2219 = vmatpush.bf16.msrb.mxu2 %v2146_v36  ;;  %2232 = vmatpush.bf16.msrb.mxu3 %v2149_v18 }
 0x1ce   : > { %v1323_v4 = vpop.f32.mrf.mxu2  ;;  %v1336_v52 = vpop.f32.mrf.mxu3 }
 0x1cf   : > { %v4464_v33 = vadd.f32 %v1323_v4, %v4357_v34  ;;  %v4467_v62 = vadd.f32 %v1336_v52, %v4382_v24  ;;  %v2924_v34 = vld.sshfl [vmem:[#allocation1] sm:$0xff pattern:$0x73625140]  ;;  %v2129_v24 = vsel %vm2120_vm5, %v2117_v56, %v2119_v35 }
 0x1d0   : > { %v1349_v29 = vpop.f32.mrf.mxu0  ;;  %v1362_v40 = vpop.f32.mrf.mxu1  ;;  %2957 = vrot.lane.b32.xlu0 %v2936_v61, %s3617_s29  ;;  %2940 = vst [vmem:[#allocation1] ss:$4 sm:$0xff] %v3796_v14  ;;  %2945 = vrot.lane.b32.xlu2 %v2924_v34, %s3617_s29  ;;  %v2158_v14 = vand.u32 %v2129_v24, %v3698_v25 }
 0x1d1   : > { %v4472_v54 = vadd.f32 %v1349_v29, %v4385_v9  ;;  %v4475_v30 = vadd.f32 %v1362_v40, %v4397_v48  ;;  %v2332_v9 = vsel %vm2120_vm5, %v2313_v37, %v2315_v45  ;;  %2951 = vrot.lane.b32.xlu1 %v2930_v60, %s3617_s29  ;;  %v2934_v60 = vld.sshfl [vmem:[#allocation1 + $0x28] sm:$0xff pattern:$0x73625140] }
 0x1d2   : > { %v2321_v48 = vpop.permute.xlu1 %2320  ;;  %v2345_v51 = vand.u32 %v2332_v9, %v3698_v25  ;;  %v2317_v31 = vpop.permute.xlu0 %2316  ;;  %3134 = vst [vmem:[#allocation1 + $0x20] ss:$4 sm:$0xff] %v3780_v6 }
 0x1d3   : > { %3528 = vmatmul.msk.bf16.vlgmr.msra.gmra.mxu0 %vm171_vm2, %v4392_v55  ;;  %3529 = vmatmul.msk.bf16.vlgmr.msra.gmra.mxu1 %vm171_vm2, %v4392_v55  ;;  %v4490_v55 = vld [vmem:[%s4879_s1 + $0x28] sm:$0xf]  ;;  %v2333_v21 = vsel %vm2120_vm5, %v2315_v45, %v2317_v31  ;;  %v2334_v10 = vsel %vm2120_vm5, %v2317_v31, %v2319_v27 }
 0x1d4   : > { %2245 = vmatpush.bf16.msra.mxu0 %v2152_v39  ;;  %2258 = vmatpush.bf16.msra.mxu1 %v2155_v49  ;;  %v2348_v53 = vand.u32 %v2333_v21, %v3698_v25  ;;  %v2351_v5 = vand.u32 %v2334_v10, %v3698_v25 }
 0x1d6   : > { %v1325_v41 = vpop.f32.mrf.mxu2  ;;  %v1338_v32 = vpop.f32.mrf.mxu3 }
 0x1d7   : > { %v4494_v11 = vld.sshfl [vmem:[#allocation1] sm:$0xff pattern:$0x73625140]  ;;  %v2943_v8 = vld.sshfl [vmem:[#allocation1 + $0x8] sm:$0xff pattern:$0x73625140] }
 0x1d8   : > { %v1351_v20 = vpop.f32.mrf.mxu0  ;;  %v1364_v47 = vpop.f32.mrf.mxu1  ;;  %3132 = vst [vmem:[#allocation1] ss:$4 sm:$0xff] %v3825_v26  ;;  %2750 = vrot.lane.b32.xlu2 %v4414_v43, %s3616_s24  ;;  %2963 = vrot.lane.b32.xlu0 %v2943_v8, %s3617_s29  ;;  %v4563_v41 = vld [vmem:[%s4879_s1 + $0x2c] sm:$0xf]  ;;  %s3593_s24 = smul.u32 36, %s4882_s10 }
 0x1da   : > { %v2327_v26 = vpop.permute.xlu1 %2326  ;;  %v2331_v36 = vpop.permute.xlu0 %2330  ;;  %s4864_s27 = scalar_lea.vmem %s4880_s2, %s3593_s24 }
 0x1db   : > { %3531 = vmatmul.msk.bf16.vlgmr.msra.gmra.mxu2 %vm171_vm2, %v4490_v55  ;;  %3532 = vmatmul.msk.bf16.vlgmr.msra.gmra.mxu3 %vm171_vm2, %v4490_v55 }
 0x1dc   : > { %2271 = vmatpush.bf16.msra.mxu2 %v2158_v14  ;;  %2378 = vmatpush.bf16.msra.mxu3 %v2345_v51 }
 0x1de   : > { %v1375_v3 = vpop.f32.mrf.mxu2  ;;  %v1388_v17 = vpop.f32.mrf.mxu3 }
 0x1df   : > { %v4507_v35 = vadd.f32 %v1375_v3, %v4400_v44  ;;  %v4510_v7 = vadd.f32 %v1388_v17, %v4429_v22  ;;  %v3135_v56 = vld.sshfl [vmem:[#allocation1] sm:$0xff pattern:$0x73625140]  ;;  %v2323_v44 = vpop.permute.xlu2 %2322  ;;  %v2335_v22 = vsel %vm2120_vm5, %v2319_v27, %v2321_v48  ;;  %v3141_v42 = vld.sshfl [vmem:[#allocation1 + $0x18] sm:$0xff pattern:$0x73625140] }
 0x1e0   : > { %v1401_v16 = vpop.f32.mrf.mxu0  ;;  %v1414_v59 = vpop.f32.mrf.mxu1  ;;  %2959 = vrot.lane.b32.xlu0 %v2938_v38, %s3617_s29  ;;  %3156 = vrot.lane.b32.xlu1 %v3135_v56, %s3617_s29  ;;  %v2354_v12 = vand.u32 %v2335_v22, %v3698_v25  ;;  %v3137_v38 = vld.sshfl [vmem:[#allocation1 + $0x8] sm:$0xff pattern:$0x73625140] }
 0x1e1   : > { %v4515_v13 = vadd.f32 %v1401_v16, %v4432_v1  ;;  %v4518_v43 = vadd.f32 %v1414_v59, %v4437_v58  ;;  %v2336_v1 = vsel %vm2120_vm5, %v2321_v48, %v2323_v44  ;;  %2955 = vrot.lane.b32.xlu2 %v2934_v60, %s3617_s29 }
 0x1e2   : > { %v2357_v0 = vand.u32 %v2336_v1, %v3698_v25  ;;  %v2325_v50 = vpop.permute.xlu1 %2324 }
 0x1e3   : > { %3533 = vmatmul.msk.bf16.vlgmr.msrb.gmra.mxu0 %vm171_vm2, %v4490_v55  ;;  %3534 = vmatmul.msk.bf16.vlgmr.msrb.gmra.mxu1 %vm171_vm2, %v4490_v55  ;;  %v2337_v63 = vsel %vm2120_vm5, %v2323_v44, %v2325_v50  ;;  %v2338_v57 = vsel %vm2120_vm5, %v2325_v50, %v2327_v26 }
 0x1e4   : > { %2391 = vmatpush.bf16.msrb.mxu0 %v2348_v53  ;;  %2404 = vmatpush.bf16.msrb.mxu1 %v2351_v5  ;;  %v2360_v29 = vand.u32 %v2337_v63, %v3698_v25  ;;  %v2363_v40 = vand.u32 %v2338_v57, %v3698_v25  ;;  %v3145_v5 = vld.sshfl [vmem:[#allocation1 + $0x28] sm:$0xff pattern:$0x73625140] }
 0x1e6   : > { %v1377_v58 = vpop.f32.mrf.mxu2  ;;  %v1390_v19 = vpop.f32.mrf.mxu3 }
 0x1e7   : > { %v2329_v18 = vpop.permute.xlu2 %2328  ;;  %v3143_v58 = vld.sshfl [vmem:[#allocation1 + $0x20] sm:$0xff pattern:$0x73625140] }
 0x1e8   : > { %v1403_v23 = vpop.f32.mrf.mxu0  ;;  %v1416_v37 = vpop.f32.mrf.mxu1  ;;  %3162 = vrot.lane.b32.xlu1 %v3141_v42, %s3617_s29  ;;  %v2339_v61 = vsel %vm2120_vm5, %v2327_v26, %v2329_v18  ;;  %3166 = vrot.lane.b32.xlu0 %v3145_v5, %s3617_s29 }
 0x1e9   : > { %v2366_v32 = vand.u32 %v2339_v61, %v3698_v25  ;;  %2961 = vrot.lane.b32.xlu2 %v4494_v11, %s3617_s29 }
 0x1ea   : > { %v2532_v34 = vpop.permute.xlu1 %2531 }
 0x1eb   : > { %3535 = vmatmul.msk.bf16.vlgmr.msrb.gmra.mxu2 %vm171_vm2, %v4490_v55  ;;  %3536 = vmatmul.msk.bf16.vlgmr.msrb.gmra.mxu3 %vm171_vm2, %v4490_v55 }
 0x1ec   : > { %2417 = vmatpush.bf16.msrb.mxu2 %v2354_v12  ;;  %2430 = vmatpush.bf16.msrb.mxu3 %v2357_v0 }
 0x1ee   : > { %v1427_v45 = vpop.f32.mrf.mxu2  ;;  %v1534_v15 = vpop.f32.mrf.mxu3 }
 0x1ef   : > { %v4538_v46 = vadd.f32 %v1427_v45, %v4440_v2  ;;  %v4541_v4 = vadd.f32 %v1534_v15, %v4464_v33  ;;  %v3139_v2 = vld.sshfl [vmem:[#allocation1 + $0x10] sm:$0xff pattern:$0x73625140]  ;;  %v2528_v33 = vpop.permute.xlu2 %2527 }
 0x1f0   : > { %v1547_v52 = vpop.f32.mrf.mxu0  ;;  %v1560_v27 = vpop.f32.mrf.mxu1  ;;  %3160 = vrot.lane.b32.xlu1 %v3139_v2, %s3617_s29  ;;  %3151 = vst [vmem:[#allocation1] ss:$4 sm:$0xff] %v3836_v28 }
 0x1f1   : > { %v4546_v39 = vadd.f32 %v1547_v52, %v4467_v62  ;;  %v4549_v49 = vadd.f32 %v1560_v27, %v4472_v54  ;;  %v2530_v62 = vpop.permute.xlu0 %2529  ;;  %v2340_v54 = vsel %vm2120_vm5, %v2329_v18, %v2331_v36  ;;  %3158 = vrot.lane.b32.xlu2 %v3137_v38, %s3617_s29 }
 0x1f2   : > { %v2369_v20 = vand.u32 %v2340_v54, %v3698_v25 }
 0x1f3   : > { %3537 = vmatmul.msk.bf16.vlgmr.msra.gmra.mxu0 %vm171_vm2, %v4490_v55  ;;  %3538 = vmatmul.msk.bf16.vlgmr.msra.gmra.mxu1 %vm171_vm2, %v4490_v55 }
 0x1f4   : > { %2443 = vmatpush.bf16.msra.mxu0 %v2360_v29  ;;  %2456 = vmatpush.bf16.msra.mxu1 %v2363_v40 }
 0x1f6   : > { %v1429_v24 = vpop.f32.mrf.mxu2  ;;  %v1536_v6 = vpop.f32.mrf.mxu3 }
 0x1f7   : > { %v2524_v47 = vpop.permute.xlu2 %2523  ;;  %v3152_v63 = vld.sshfl [vmem:[#allocation1] sm:$0xff pattern:$0x73625140]  ;;  %v3154_v40 = vld.sshfl [vmem:[#allocation1 + $0x8] sm:$0xff pattern:$0x73625140] }
 0x1f8   : > { %v1549_v9 = vpop.f32.mrf.mxu0  ;;  %v1562_v48 = vpop.f32.mrf.mxu1  ;;  %3172 = vrot.lane.b32.xlu0 %v3152_v63, %s3617_s29  ;;  %3174 = vrot.lane.b32.xlu1 %v3154_v40, %s3617_s29  ;;  %v3147_v24 = vld.sshfl [vmem:[#allocation1 + $0x30] sm:$0xff pattern:$0x73625140] }
 0x1f9   : > { %v2526_v14 = vpop.permute.xlu0 %2525  ;;  %3164 = vrot.lane.b32.xlu2 %v3143_v58, %s3617_s29 }
 0x1fa   : > { %v2544_v51 = vsel %vm1697_vm4, %v2526_v14, %v2528_v33  ;;  %v2543_v31 = vsel %vm1697_vm4, %v2524_v47, %v2526_v14 }
 0x1fb   : > { %3539 = vmatmul.msk.bf16.vlgmr.msra.gmra.mxu2 %vm171_vm2, %v4490_v55  ;;  %3541 = vmatmul.msk.bf16.vlgmr.msra.gmra.mxu3 %vm171_vm2, %v4563_v41  ;;  %v2536_v55 = vpop.permute.xlu1 %2535  ;;  %v2559_v26 = vand.u32 %v2544_v51, %v3698_v25  ;;  %v2556_v16 = vand.u32 %v2543_v31, %v3698_v25 }
 0x1fc   : > { %2469 = vmatpush.bf16.msra.mxu2 %v2366_v32  ;;  %2482 = vmatpush.bf16.msra.mxu3 %v2369_v20 }
 0x1fe   : > { %v1573_v8 = vpop.f32.mrf.mxu2  ;;  %v1586_v21 = vpop.f32.mrf.mxu3 }
 0x1ff   : > { %v4576_v10 = vadd.f32 %v1573_v8, %v4475_v30  ;;  %v4579_v11 = vadd.f32 %v1586_v21, %v4507_v35  ;;  %v2546_v30 = vsel %vm1697_vm4, %v2530_v62, %v2532_v34  ;;  %v2545_v35 = vsel %vm1697_vm4, %v2528_v33, %v2530_v62 }
 0x200   : > { %v1599_v3 = vpop.f32.mrf.mxu0  ;;  %v1612_v17 = vpop.f32.mrf.mxu1  ;;  %v2565_v1 = vand.u32 %v2546_v30, %v3698_v25  ;;  %v2562_v28 = vand.u32 %v2545_v35, %v3698_v25 }
 0x201   : > { %v4584_v59 = vadd.f32 %v1599_v3, %v4510_v7  ;;  %v4587_v53 = vadd.f32 %v1612_v17, %v4515_v13  ;;  %v2538_v7 = vpop.permute.xlu2 %2537  ;;  %v2540_v23 = vpop.permute.xlu0 %2539 }
 0x203   : > { %3542 = vmatmul.msk.bf16.vlgmr.msrb.gmra.mxu0 %vm171_vm2, %v4563_v41  ;;  %3543 = vmatmul.msk.bf16.vlgmr.msrb.gmra.mxu1 %vm171_vm2, %v4563_v41  ;;  %v2534_v19 = vpop.permute.xlu1 %2533 }
 0x204   : > { %2589 = vmatpush.bf16.msrb.mxu0 %v2556_v16  ;;  %2602 = vmatpush.bf16.msrb.mxu1 %v2559_v26  ;;  %v2547_v37 = vsel %vm1697_vm4, %v2532_v34, %v2534_v19  ;;  %v2548_v12 = vsel %vm1697_vm4, %v2534_v19, %v2536_v55 }
 0x205   : > { %v2568_v15 = vand.u32 %v2547_v37, %v3698_v25  ;;  %v2571_v52 = vand.u32 %v2548_v12, %v3698_v25 }
 0x206   : > { %v1575_v13 = vpop.f32.mrf.mxu2  ;;  %v1588_v56 = vpop.f32.mrf.mxu3 }
 0x208   : > { %v1601_v44 = vpop.f32.mrf.mxu0  ;;  %v1614_v22 = vpop.f32.mrf.mxu1 }
 0x20a   : > { %v2737_v18 = vpop.permute.xlu2 %2736 }
 0x20b   : > { %3544 = vmatmul.msk.bf16.vlgmr.msrb.gmra.mxu2 %vm171_vm2, %v4563_v41  ;;  %3545 = vmatmul.msk.bf16.vlgmr.msrb.gmra.mxu3 %vm171_vm2, %v4563_v41  ;;  %v2741_v60 = vpop.permute.xlu1 %2740 }
 0x20c   : > { %2615 = vmatpush.bf16.msrb.mxu2 %v2562_v28  ;;  %2628 = vmatpush.bf16.msrb.mxu3 %v2565_v1 }
 0x20e   : > { %v1625_v0 = vpop.f32.mrf.mxu2  ;;  %v1638_v50 = vpop.f32.mrf.mxu3 }
 0x20f   : > { %v4608_v42 = vadd.f32 %v1625_v0, %v4518_v43  ;;  %v4611_v36 = vadd.f32 %v1638_v50, %v4538_v46  ;;  %v3149_v43 = vld.sshfl [vmem:[#allocation1 + $0x38] sm:$0xff pattern:$0x73625140]  ;;  %v2739_v46 = vpop.permute.xlu0 %2738 }
 0x210   : > { %v1746_v57 = vpop.f32.mrf.mxu0  ;;  %v1759_v45 = vpop.f32.mrf.mxu1  ;;  %3170 = vrot.lane.b32.xlu2 %v3149_v43, %s3617_s29  ;;  %v2756_v26 = vsel %vm1697_vm4, %v2739_v46, %v2741_v60 }
 0x211   : > { %v4617_v27 = vadd.f32 %v1746_v57, %v4541_v4  ;;  %v4620_v29 = vadd.f32 %v1759_v45, %v4546_v39  ;;  %v2549_v4 = vsel %vm1697_vm4, %v2536_v55, %v2538_v7  ;;  %v2550_v39 = vsel %vm1697_vm4, %v2538_v7, %v2540_v23 }
 0x212   : > { %v2574_v54 = vand.u32 %v2549_v4, %v3698_v25  ;;  %v2577_v34 = vand.u32 %v2550_v39, %v3698_v25  ;;  %v2542_v6 = vpop.permute.xlu2 %2541  ;;  %v2773_v35 = vand.u32 %v2756_v26, %v3698_v25 }
 0x213   : > { %3546 = vmatmul.msk.bf16.vlgmr.msra.gmra.mxu0 %vm171_vm2, %v4563_v41  ;;  %3547 = vmatmul.msk.bf16.vlgmr.msra.gmra.mxu1 %vm171_vm2, %v4563_v41  ;;  %v2551_v48 = vsel %vm1697_vm4, %v2540_v23, %v2542_v6 }
 0x214   : > { %2641 = vmatpush.bf16.msra.mxu0 %v2568_v15  ;;  %2654 = vmatpush.bf16.msra.mxu1 %v2571_v52  ;;  %v2580_v55 = vand.u32 %v2551_v48, %v3698_v25 }
 0x216   : > { %v1627_v2 = vpop.f32.mrf.mxu2  ;;  %v1640_v33 = vpop.f32.mrf.mxu3 }
 0x217   : > { %v2735_v9 = vpop.permute.xlu0 %2734 }
 0x218   : > { %v1748_v62 = vpop.f32.mrf.mxu0  ;;  %v1761_v61 = vpop.f32.mrf.mxu1  ;;  %3168 = vrot.lane.b32.xlu2 %v3147_v24, %s3617_s29  ;;  %v2754_v32 = vsel %vm1697_vm4, %v2735_v9, %v2737_v18  ;;  %v4709_v24 = vld [vmem:[%s4879_s1 + $0x34] sm:$0xf] }
 0x219   : > { %v2767_v3 = vand.u32 %v2754_v32, %v3698_v25 }
 0x21a   : > { %v2745_v31 = vpop.permute.xlu1 %2744 }
 0x21b   : > { %3548 = vmatmul.msk.bf16.vlgmr.msra.gmra.mxu2 %vm171_vm2, %v4563_v41  ;;  %3549 = vmatmul.msk.bf16.vlgmr.msra.gmra.mxu3 %vm171_vm2, %v4563_v41  ;;  %v4648_v41 = vld [vmem:[%s4879_s1 + $0x30] sm:$0xf] }
 0x21c   : > { %2667 = vmatpush.bf16.msra.mxu2 %v2574_v54  ;;  %2680 = vmatpush.bf16.msra.mxu3 %v2577_v34  ;;  %v2747_v16 = vpop.permute.xlu2 %2746 }
 0x21e   : > { %v1772_v20 = vpop.f32.mrf.mxu2  ;;  %v1785_v47 = vpop.f32.mrf.mxu3 }
 0x21f   : > { %v4640_v14 = vadd.f32 %v1772_v20, %v4549_v49  ;;  %v4643_v51 = vadd.f32 %v1785_v47, %v4576_v10  ;;  %v2755_v10 = vsel %vm1697_vm4, %v2737_v18, %v2739_v46  ;;  %v2749_v13 = vpop.permute.xlu0 %2748 }
 0x220   : > { %v1798_v8 = vpop.f32.mrf.mxu0  ;;  %v1811_v21 = vpop.f32.mrf.mxu1  ;;  %v2760_v63 = vsel %vm1697_vm4, %v2747_v16, %v2749_v13 }
 0x221   : > { %v4653_v17 = vadd.f32 %v1798_v8, %v4579_v11  ;;  %v4656_v49 = vadd.f32 %v1811_v21, %v4584_v59  ;;  %v2770_v59 = vand.u32 %v2755_v10, %v3698_v25  ;;  %v2785_v43 = vand.u32 %v2760_v63, %v3698_v25 }
 0x222   : > { %v2743_v7 = vpop.permute.xlu1 %2742 }
 0x223   : > { %3551 = vmatmul.msk.bf16.vlgmr.msrb.gmra.mxu0 %vm171_vm2, %v4648_v41  ;;  %3552 = vmatmul.msk.bf16.vlgmr.msrb.gmra.mxu1 %vm171_vm2, %v4648_v41  ;;  %v2757_v56 = vsel %vm1697_vm4, %v2741_v60, %v2743_v7  ;;  %v2758_v44 = vsel %vm1697_vm4, %v2743_v7, %v2745_v31 }
 0x224   : > { %2693 = vmatpush.bf16.msrb.mxu0 %v2580_v55  ;;  %2800 = vmatpush.bf16.msrb.mxu1 %v2767_v3  ;;  %v2776_v12 = vand.u32 %v2757_v56, %v3698_v25  ;;  %v2779_v0 = vand.u32 %v2758_v44, %v3698_v25 }
 0x226   : > { %v1774_v5 = vpop.f32.mrf.mxu2  ;;  %v1787_v38 = vpop.f32.mrf.mxu3 }
 0x228   : > { %v1800_v11 = vpop.f32.mrf.mxu0  ;;  %v1813_v30 = vpop.f32.mrf.mxu1 }
 0x22a   : > { %v2946_v19 = vpop.permute.xlu2 %2945 }
 0x22b   : > { %3553 = vmatmul.msk.bf16.vlgmr.msrb.gmra.mxu2 %vm171_vm2, %v4648_v41  ;;  %3554 = vmatmul.msk.bf16.vlgmr.msrb.gmra.mxu3 %vm171_vm2, %v4648_v41 }
 0x22c   : > { %2813 = vmatpush.bf16.msrb.mxu2 %v2770_v59  ;;  %2826 = vmatpush.bf16.msrb.mxu3 %v2773_v35 }
 0x22e   : > { %v1824_v22 = vpop.f32.mrf.mxu2  ;;  %v1837_v1 = vpop.f32.mrf.mxu3 }
 0x22f   : > { %v4673_v28 = vadd.f32 %v1824_v22, %v4587_v53  ;;  %v4676_v58 = vadd.f32 %v1837_v1, %v4608_v42  ;;  %v2759_v42 = vsel %vm1697_vm4, %v2745_v31, %v2747_v16 }
 0x230   : > { %v1850_v23 = vpop.f32.mrf.mxu0  ;;  %v1957_v37 = vpop.f32.mrf.mxu1 }
 0x231   : > { %v4681_v50 = vadd.f32 %v1850_v23, %v4611_v36  ;;  %v4684_v18 = vadd.f32 %v1957_v37, %v4617_v27  ;;  %v2782_v27 = vand.u32 %v2759_v42, %v3698_v25 }
 0x232   : > { %v2948_v53 = vpop.permute.xlu0 %2947  ;;  %v2950_v57 = vpop.permute.xlu1 %2949 }
 0x233   : > { %3555 = vmatmul.msk.bf16.vlgmr.msra.gmra.mxu0 %vm171_vm2, %v4648_v41  ;;  %3556 = vmatmul.msk.bf16.vlgmr.msra.gmra.mxu1 %vm171_vm2, %v4648_v41  ;;  %v2751_v40 = vpop.permute.xlu2 %2750  ;;  %v2965_v32 = vsel %vm2120_vm5, %v2946_v19, %v2948_v53  ;;  %v2966_v20 = vsel %vm2120_vm5, %v2948_v53, %v2950_v57 }
 0x234   : > { %2839 = vmatpush.bf16.msra.mxu0 %v2776_v12  ;;  %2852 = vmatpush.bf16.msra.mxu1 %v2779_v0  ;;  %v2761_v4 = vsel %vm1697_vm4, %v2749_v13, %v2751_v40  ;;  %v2978_v21 = vand.u32 %v2965_v32, %v3698_v25  ;;  %v2981_v55 = vand.u32 %v2966_v20, %v3698_v25 }
 0x235   : > { %v2788_v6 = vand.u32 %v2761_v4, %v3698_v25 }
 0x236   : > { %v1826_v45 = vpop.f32.mrf.mxu2  ;;  %v1839_v36 = vpop.f32.mrf.mxu3 }
 0x238   : > { %v1852_v15 = vpop.f32.mrf.mxu0  ;;  %v1959_v52 = vpop.f32.mrf.mxu1 }
 0x23a   : > { %v2753_v46 = vpop.permute.xlu0 %2752 }
 0x23b   : > { %3557 = vmatmul.msk.bf16.vlgmr.msra.gmra.mxu2 %vm171_vm2, %v4648_v41  ;;  %3558 = vmatmul.msk.bf16.vlgmr.msra.gmra.mxu3 %vm171_vm2, %v4648_v41  ;;  %v2762_v39 = vsel %vm1697_vm4, %v2751_v40, %v2753_v46  ;;  %v2954_v61 = vpop.permute.xlu1 %2953 }
 0x23c   : > { %2865 = vmatpush.bf16.msra.mxu2 %v2782_v27  ;;  %2878 = vmatpush.bf16.msra.mxu3 %v2785_v43  ;;  %v2791_v9 = vand.u32 %v2762_v39, %v3698_v25 }
 0x23e   : > { %v1970_v60 = vpop.f32.mrf.mxu2  ;;  %v1983_v2 = vpop.f32.mrf.mxu3 }
 0x23f   : > { %v4701_v33 = vadd.f32 %v1970_v60, %v4620_v29  ;;  %v4704_v62 = vadd.f32 %v1983_v2, %v4640_v14 }
 0x240   : > { %v1996_v54 = vpop.f32.mrf.mxu0  ;;  %v2009_v34 = vpop.f32.mrf.mxu1 }
 0x241   : > { %v4714_v48 = vadd.f32 %v1996_v54, %v4643_v51  ;;  %v4717_v29 = vadd.f32 %v2009_v34, %v4653_v17  ;;  %v4784_v54 = vld [vmem:[%s4879_s1 + $0x38] sm:$0xf] }
 0x242   : > { %v2958_v47 = vpop.permute.xlu0 %2957 }
 0x243   : > { %3559 = vmatmul.msk.bf16.vlgmr.msrb.gmra.mxu0 %vm171_vm2, %v4648_v41  ;;  %3561 = vmatmul.msk.bf16.vlgmr.msrb.gmra.mxu1 %vm171_vm2, %v4709_v24  ;;  %v2952_v3 = vpop.permute.xlu1 %2951  ;;  %v2956_v41 = vpop.permute.xlu2 %2955 }
 0x244   : > { %2891 = vmatpush.bf16.msrb.mxu0 %v2788_v6  ;;  %2904 = vmatpush.bf16.msrb.mxu1 %v2791_v9  ;;  %v2967_v17 = vsel %vm2120_vm5, %v2950_v57, %v2952_v3  ;;  %v2968_v10 = vsel %vm2120_vm5, %v2952_v3, %v2954_v61  ;;  %v2969_v44 = vsel %vm2120_vm5, %v2954_v61, %v2956_v41 }
 0x245   : > { %v2984_v35 = vand.u32 %v2967_v17, %v3698_v25  ;;  %v2987_v7 = vand.u32 %v2968_v10, %v3698_v25  ;;  %v2970_v22 = vsel %vm2120_vm5, %v2956_v41, %v2958_v47  ;;  %v2990_v37 = vand.u32 %v2969_v44, %v3698_v25 }
 0x246   : > { %v1972_v14 = vpop.f32.mrf.mxu2  ;;  %v1985_v31 = vpop.f32.mrf.mxu3  ;;  %v2993_v12 = vand.u32 %v2970_v22, %v3698_v25 }
 0x248   : > { %v1998_v51 = vpop.f32.mrf.mxu0  ;;  %v2011_v8 = vpop.f32.mrf.mxu1 }
 0x24a   : > { %v2964_v11 = vpop.permute.xlu0 %2963 }
 0x24b   : > { %3562 = vmatmul.msk.bf16.vlgmr.msrb.gmra.mxu2 %vm171_vm2, %v4709_v24  ;;  %3563 = vmatmul.msk.bf16.vlgmr.msrb.gmra.mxu3 %vm171_vm2, %v4709_v24 }
 0x24c   : > { %3011 = vmatpush.bf16.msrb.mxu2 %v2978_v21  ;;  %3024 = vmatpush.bf16.msrb.mxu3 %v2981_v55 }
 0x24e   : > { %v2022_v26 = vpop.f32.mrf.mxu2  ;;  %v2035_v16 = vpop.f32.mrf.mxu3 }
 0x24f   : > { %v4734_v5 = vadd.f32 %v2022_v26, %v4656_v49  ;;  %v4737_v38 = vadd.f32 %v2035_v16, %v4673_v28  ;;  %v2962_v49 = vpop.permute.xlu2 %2961 }
 0x250   : > { %v2048_v30 = vpop.f32.mrf.mxu0  ;;  %v2061_v59 = vpop.f32.mrf.mxu1 }
 0x251   : > { %v4742_v13 = vadd.f32 %v2048_v30, %v4676_v58  ;;  %v4745_v56 = vadd.f32 %v2061_v59, %v4681_v50 }
 0x252   : > { %v3157_v58 = vpop.permute.xlu1 %3156  ;;  %v2960_v0 = vpop.permute.xlu0 %2959 }
 0x253   : > { %3564 = vmatmul.msk.bf16.vlgmr.msra.gmra.mxu0 %vm171_vm2, %v4709_v24  ;;  %3565 = vmatmul.msk.bf16.vlgmr.msra.gmra.mxu1 %vm171_vm2, %v4709_v24  ;;  %v2971_v53 = vsel %vm2120_vm5, %v2958_v47, %v2960_v0  ;;  %v2972_v42 = vsel %vm2120_vm5, %v2960_v0, %v2962_v49 }
 0x254   : > { %3037 = vmatpush.bf16.msra.mxu0 %v2984_v35  ;;  %3050 = vmatpush.bf16.msra.mxu1 %v2987_v7  ;;  %v2996_v43 = vand.u32 %v2971_v53, %v3698_v25  ;;  %v2999_v40 = vand.u32 %v2972_v42, %v3698_v25 }
 0x256   : > { %v2024_v1 = vpop.f32.mrf.mxu2  ;;  %v2037_v28 = vpop.f32.mrf.mxu3 }
 0x257   : > { %v3159_v50 = vpop.permute.xlu2 %3158 }
 0x258   : > { %v2050_v19 = vpop.f32.mrf.mxu0  ;;  %v2063_v23 = vpop.f32.mrf.mxu1  ;;  %v3176_v39 = vsel %vm2120_vm5, %v3157_v58, %v3159_v50 }
 0x25a   : > { %v3163_v15 = vpop.permute.xlu1 %3162 }
 0x25b   : > { %3566 = vmatmul.msk.bf16.vlgmr.msra.gmra.mxu2 %vm171_vm2, %v4709_v24  ;;  %3567 = vmatmul.msk.bf16.vlgmr.msra.gmra.mxu3 %vm171_vm2, %v4709_v24 }
 0x25c   : > { %3063 = vmatpush.bf16.msra.mxu2 %v2990_v37  ;;  %3076 = vmatpush.bf16.msra.mxu3 %v2993_v12 }
 0x25e   : > { %v2169_v63 = vpop.f32.mrf.mxu2  ;;  %v2182_v57 = vpop.f32.mrf.mxu3 }
 0x25f   : > { %v4762_v45 = vadd.f32 %v2169_v63, %v4684_v18  ;;  %v4765_v36 = vadd.f32 %v2182_v57, %v4701_v33  ;;  %v2973_v18 = vsel %vm2120_vm5, %v2962_v49, %v2964_v11  ;;  %v3165_v60 = vpop.permute.xlu2 %3164 }
 0x260   : > { %v2195_v52 = vpop.f32.mrf.mxu0  ;;  %v2208_v27 = vpop.f32.mrf.mxu1  ;;  %v3002_v34 = vand.u32 %v2973_v18, %v3698_v25  ;;  %v3179_v17 = vsel %vm2120_vm5, %v3163_v15, %v3165_v60 }
 0x261   : > { %v4770_v46 = vadd.f32 %v2195_v52, %v4704_v62  ;;  %v4773_v4 = vadd.f32 %v2208_v27, %v4714_v48  ;;  %v3198_v11 = vand.u32 %v3179_v17, %v3698_v25 }
 0x262   : > { %v3161_v6 = vpop.permute.xlu1 %3160 }
 0x263   : > { %3568 = vmatmul.msk.bf16.vlgmr.msrb.gmra.mxu0 %vm171_vm2, %v4709_v24  ;;  %3569 = vmatmul.msk.bf16.vlgmr.msrb.gmra.mxu1 %vm171_vm2, %v4709_v24  ;;  %v3189_v24 = vand.u32 %v3176_v39, %v3698_v25  ;;  %v3177_v9 = vsel %vm2120_vm5, %v3159_v50, %v3161_v6  ;;  %v3178_v48 = vsel %vm2120_vm5, %v3161_v6, %v3163_v15 }
 0x264   : > { %3089 = vmatpush.bf16.msrb.mxu0 %v2996_v43  ;;  %3102 = vmatpush.bf16.msrb.mxu1 %v2999_v40  ;;  %v3192_v21 = vand.u32 %v3177_v9, %v3698_v25  ;;  %v3195_v55 = vand.u32 %v3178_v48, %v3698_v25 }
 0x266   : > { %v2171_v2 = vpop.f32.mrf.mxu2  ;;  %v2184_v33 = vpop.f32.mrf.mxu3 }
 0x268   : > { %v2197_v62 = vpop.f32.mrf.mxu0  ;;  %v2210_v61 = vpop.f32.mrf.mxu1 }
 0x26a   : > { %v3171_v31 = vpop.permute.xlu2 %3170 }
 0x26b   : > { %3571 = vmatmul.msk.bf16.vlgmr.msrb.gmra.mxu2 %vm171_vm2, %v4784_v54  ;;  %3572 = vmatmul.msk.bf16.vlgmr.msrb.gmra.mxu3 %vm171_vm2, %v4784_v54 }
 0x26c   : > { %3115 = vmatpush.bf16.msrb.mxu2 %v3002_v34  ;;  %3222 = vmatpush.bf16.msrb.mxu3 %v3189_v24 }
 0x26e   : > { %v2221_v32 = vpop.f32.mrf.mxu2  ;;  %v2234_v20 = vpop.f32.mrf.mxu3 }
 0x26f   : > { %v2281_v47 = vadd.f32 %v2221_v32, %v4717_v29  ;;  %v4796_v14 = vadd.f32 %v2234_v20, %v4734_v5  ;;  %v3167_v29 = vpop.permute.xlu0 %3166 }
 0x270   : > { %v2247_v51 = vpop.f32.mrf.mxu0  ;;  %v2260_v8 = vpop.f32.mrf.mxu1  ;;  %v3180_v10 = vsel %vm2120_vm5, %v3165_v60, %v3167_v29 }
 0x271   : > { %v2283_v3 = vadd.f32 %v2247_v51, %v4737_v38  ;;  %v4802_v41 = vadd.f32 %v2260_v8, %v4742_v13  ;;  %v3201_v30 = vand.u32 %v3180_v10, %v3698_v25 }
 0x272   : > { %v3169_v59 = vpop.permute.xlu2 %3168 }
 0x273   : > { %3573 = vmatmul.msk.bf16.vlgmr.msra.gmra.mxu0 %vm171_vm2, %v4784_v54  ;;  %3574 = vmatmul.msk.bf16.vlgmr.msra.gmra.mxu1 %vm171_vm2, %v4784_v54  ;;  %v3181_v35 = vsel %vm2120_vm5, %v3167_v29, %v3169_v59  ;;  %v3182_v7 = vsel %vm2120_vm5, %v3169_v59, %v3171_v31 }
 0x274   : > { %3235 = vmatpush.bf16.msra.mxu0 %v3192_v21  ;;  %3248 = vmatpush.bf16.msra.mxu1 %v3195_v55  ;;  %v3204_v58 = vand.u32 %v3181_v35, %v3698_v25  ;;  %v3207_v19 = vand.u32 %v3182_v7, %v3698_v25 }
 0x276   : > { %v2223_v26 = vpop.f32.mrf.mxu2  ;;  %v2236_v16 = vpop.f32.mrf.mxu3 }
 0x277   : > { %v3173_v12 = vpop.permute.xlu0 %3172 }
 0x278   : > { %v2249_v5 = vpop.f32.mrf.mxu0  ;;  %v2262_v38 = vpop.f32.mrf.mxu1  ;;  %v3183_v0 = vsel %vm2120_vm5, %v3171_v31, %v3173_v12 }
 0x27b   : > { %3575 = vmatmul.msk.bf16.vlgmr.msra.gmra.mxu2 %vm171_vm2, %v4784_v54  ;;  %3576 = vmatmul.msk.bf16.vlgmr.msra.gmra.mxu3 %vm171_vm2, %v4784_v54 }
 0x27c   : > { %3261 = vmatpush.bf16.msra.mxu2 %v3198_v11  ;;  %3274 = vmatpush.bf16.msra.mxu3 %v3201_v30 }
 0x27e   : > { %v2273_v13 = vpop.f32.mrf.mxu2  ;;  %v2380_v49 = vpop.f32.mrf.mxu3 }
 0x27f   : > { %v2285_v44 = vadd.f32 %v2273_v13, %v4745_v56  ;;  %v2488_v22 = vadd.f32 %v2380_v49, %v4762_v45  ;;  %v3175_v56 = vpop.permute.xlu1 %3174  ;;  %v3580_v45 = vld [vmem:[%s4879_s1 + $0x3c] sm:$0xf] }
 0x280   : > { %v2393_v1 = vpop.f32.mrf.mxu0  ;;  %v2406_v28 = vpop.f32.mrf.mxu1  ;;  %v3184_v50 = vsel %vm2120_vm5, %v3173_v12, %v3175_v56 }
 0x281   : > { %v2489_v23 = vadd.f32 %v2393_v1, %v4765_v36  ;;  %v2490_v37 = vadd.f32 %v2406_v28, %v4770_v46  ;;  %v3210_v36 = vand.u32 %v3183_v0, %v3698_v25  ;;  %v3213_v15 = vand.u32 %v3184_v50, %v3698_v25 }
 0x283   : > { %3577 = vmatmul.msk.bf16.vlgmr.msrb.gmra.mxu0 %vm171_vm2, %v4784_v54  ;;  %3578 = vmatmul.msk.bf16.vlgmr.msrb.gmra.mxu1 %vm171_vm2, %v4784_v54 }
 0x284   : > { %3287 = vmatpush.bf16.msrb.mxu0 %v3204_v58  ;;  %3300 = vmatpush.bf16.msrb.mxu1 %v3207_v19 }
 0x286   : > { %v2275_v53 = vpop.f32.mrf.mxu2  ;;  %v2382_v42 = vpop.f32.mrf.mxu3 }
 0x288   : > { %v2395_v63 = vpop.f32.mrf.mxu0  ;;  %v2408_v57 = vpop.f32.mrf.mxu1 }
 0x28b   : > { %3579 = vmatmul.msk.bf16.vlgmr.msrb.gmra.mxu2 %vm171_vm2, %v4784_v54  ;;  %3581 = vmatmul.msk.bf16.vlgmr.msrb.gmra.mxu3 %vm171_vm2, %v3580_v45 }
 0x28c   : > { %3313 = vmatpush.bf16.msrb.mxu2 %v3210_v36  ;;  %3326 = vmatpush.bf16.msrb.mxu3 %v3213_v15 }
 0x28e   : > { %v2419_v52 = vpop.f32.mrf.mxu2  ;;  %v2432_v27 = vpop.f32.mrf.mxu3 }
 0x28f   : > { %v2491_v43 = vadd.f32 %v2419_v52, %v4773_v4  ;;  %v2492_v40 = vadd.f32 %v2432_v27, %v2281_v47 }
 0x290   : > { %v2445_v46 = vpop.f32.mrf.mxu0  ;;  %v2458_v18 = vpop.f32.mrf.mxu1 }
 0x291   : > { %v2493_v39 = vadd.f32 %v2445_v46, %v4796_v14  ;;  %v2494_v60 = vadd.f32 %v2458_v18, %v2283_v3 }
 0x293   : > { %3582 = vmatmul.msk.bf16.vlgmr.msra.gmra.mxu0 %vm171_vm2, %v3580_v45  ;;  %3583 = vmatmul.msk.bf16.vlgmr.msra.gmra.mxu1 %vm171_vm2, %v3580_v45 }
 0x296   : > { %v2421_v25 = vpop.f32.mrf.mxu2  ;;  %v2434_v2 = vpop.f32.mrf.mxu3 }
 0x298   : > { %v2447_v33 = vpop.f32.mrf.mxu0  ;;  %v2460_v62 = vpop.f32.mrf.mxu1 }
 0x29b   : > { %3584 = vmatmul.msk.bf16.vlgmr.msra.gmra.mxu2 %vm171_vm2, %v3580_v45  ;;  %3585 = vmatmul.msk.bf16.vlgmr.msra.gmra.mxu3 %vm171_vm2, %v3580_v45 }
 0x29e   : > { %v2471_v61 = vpop.f32.mrf.mxu2  ;;  %v2484_v4 = vpop.f32.mrf.mxu3 }
 0x29f   : > { %v2495_v54 = vadd.f32 %v2471_v61, %v4802_v41  ;;  %v2496_v34 = vadd.f32 %v2484_v4, %v2285_v44 }
 0x2a0   : > { %v2591_v24 = vpop.f32.mrf.mxu0  ;;  %v2604_v6 = vpop.f32.mrf.mxu1 }
 0x2a1   : > { %v2699_v9 = vadd.f32 %v2591_v24, %v2488_v22  ;;  %v4845_v48 = vadd.f32 %v2604_v6, %v2489_v23 }
 0x2a3   : > { %3586 = vmatmul.msk.bf16.vlgmr.msrb.gmra.mxu0 %vm171_vm2, %v3580_v45  ;;  %3587 = vmatmul.msk.bf16.vlgmr.msrb.gmra.mxu1 %vm171_vm2, %v3580_v45 }
 0x2a6   : > { %v2473_v32 = vpop.f32.mrf.mxu2  ;;  %v2486_v20 = vpop.f32.mrf.mxu3 }
 0x2a8   : > { %v2593_v47 = vpop.f32.mrf.mxu0  ;;  %v2606_v14 = vpop.f32.mrf.mxu1 }
 0x2ab   : > { %3588 = vmatmul.msk.bf16.vlgmr.msrb.gmra.mxu2 %vm171_vm2, %v3580_v45  ;;  %3589 = vmatmul.msk.bf16.vlgmr.msrb.gmra.mxu3 %vm171_vm2, %v3580_v45 }
 0x2ae   : > { %v2617_v31 = vpop.f32.mrf.mxu2  ;;  %v2630_v51 = vpop.f32.mrf.mxu3 }
 0x2af   : > { %v2701_v8 = vadd.f32 %v2617_v31, %v2490_v37  ;;  %v2702_v21 = vadd.f32 %v2630_v51, %v2491_v43 }
 0x2b0   : > { %v2643_v55 = vpop.f32.mrf.mxu0  ;;  %v2656_v3 = vpop.f32.mrf.mxu1 }
 0x2b1   : > { %v2703_v41 = vadd.f32 %v2643_v55, %v2492_v40  ;;  %v4851_v29 = vadd.f32 %v2656_v3, %v2493_v39 }
 0x2b6   : > { %v2619_v17 = vpop.f32.mrf.mxu2  ;;  %v2632_v10 = vpop.f32.mrf.mxu3 }
 0x2b8   : > { %v2645_v26 = vpop.f32.mrf.mxu0  ;;  %v2658_v16 = vpop.f32.mrf.mxu1 }
 0x2be   : > { %v2669_v5 = vpop.f32.mrf.mxu2  ;;  %v2682_v38 = vpop.f32.mrf.mxu3 }
 0x2bf   : > { %v2705_v11 = vadd.f32 %v2669_v5, %v2494_v60  ;;  %v2706_v30 = vadd.f32 %v2682_v38, %v2495_v54 }
 0x2c0   : > { %v2695_v59 = vpop.f32.mrf.mxu0  ;;  %v2802_v35 = vpop.f32.mrf.mxu1 }
 0x2c1   : > { %v2707_v7 = vadd.f32 %v2695_v59, %v2496_v34  ;;  %v2910_v13 = vadd.f32 %v2802_v35, %v2699_v9 }
 0x2c6   : > { %v2671_v49 = vpop.f32.mrf.mxu2  ;;  %v2684_v44 = vpop.f32.mrf.mxu3 }
 0x2c8   : > { %v2697_v22 = vpop.f32.mrf.mxu0  ;;  %v2804_v1 = vpop.f32.mrf.mxu1 }
 0x2ce   : > { %v2815_v28 = vpop.f32.mrf.mxu2  ;;  %v2828_v58 = vpop.f32.mrf.mxu3 }
 0x2cf   : > { %v2912_v19 = vadd.f32 %v2828_v58, %v2701_v8  ;;  %v2911_v14 = vadd.f32 %v2815_v28, %v4845_v48 }
 0x2d0   : > { %v2841_v23 = vpop.f32.mrf.mxu0  ;;  %v2854_v37 = vpop.f32.mrf.mxu1 }
 0x2d1   : > { %v2913_v12 = vadd.f32 %v2841_v23, %v2702_v21  ;;  %v2914_v56 = vadd.f32 %v2854_v37, %v2703_v41 }
 0x2d6   : > { %v2817_v0 = vpop.f32.mrf.mxu2  ;;  %v2830_v50 = vpop.f32.mrf.mxu3 }
 0x2d8   : > { %v2843_v53 = vpop.f32.mrf.mxu0  ;;  %v2856_v42 = vpop.f32.mrf.mxu1 }
 0x2de   : > { %v2867_v63 = vpop.f32.mrf.mxu2  ;;  %v2880_v57 = vpop.f32.mrf.mxu3 }
 0x2df   : > { %v4853_v45 = vadd.f32 %v2880_v57, %v2705_v11  ;;  %v2915_v59 = vadd.f32 %v2867_v63, %v4851_v29 }
 0x2e0   : > { %v2893_v36 = vpop.f32.mrf.mxu0  ;;  %v2906_v15 = vpop.f32.mrf.mxu1 }
 0x2e1   : > { %v4855_v52 = vadd.f32 %v2893_v36, %v2706_v30  ;;  %v4857_v27 = vadd.f32 %v2906_v15, %v2707_v7 }
 0x2e6   : > { %v2869_v43 = vpop.f32.mrf.mxu2  ;;  %v2882_v40 = vpop.f32.mrf.mxu3 }
 0x2e8   : > { %v2895_v46 = vpop.f32.mrf.mxu0  ;;  %v2908_v18 = vpop.f32.mrf.mxu1 }
 0x2ee   : > { %v3013_v39 = vpop.f32.mrf.mxu2  ;;  %v3026_v60 = vpop.f32.mrf.mxu3 }
 0x2ef   : > { %v3121_v31 = vadd.f32 %v3013_v39, %v2910_v13  ;;  %v3122_v21 = vadd.f32 %v3026_v60, %v2911_v14 }
 0x2f0   : > { %v3039_v25 = vpop.f32.mrf.mxu0  ;;  %v3052_v2 = vpop.f32.mrf.mxu1 }
 0x2f1   : > { %v3123_v30 = vadd.f32 %v3039_v25, %v2912_v19  ;;  %v3124_v35 = vadd.f32 %v3052_v2, %v2913_v12 }
 0x2f6   : > { %v3015_v33 = vpop.f32.mrf.mxu2  ;;  %v3028_v62 = vpop.f32.mrf.mxu3 }
 0x2f8   : > { %v3041_v61 = vpop.f32.mrf.mxu0  ;;  %v3054_v4 = vpop.f32.mrf.mxu1 }
 0x2fe   : > { %v3065_v54 = vpop.f32.mrf.mxu2  ;;  %v3078_v34 = vpop.f32.mrf.mxu3 }
 0x2ff   : > { %v3125_v7 = vadd.f32 %v3065_v54, %v2914_v56  ;;  %v3126_v22 = vadd.f32 %v3078_v34, %v2915_v59 }
 0x300   : > { %v3091_v24 = vpop.f32.mrf.mxu0  ;;  %v3104_v6 = vpop.f32.mrf.mxu1 }
 0x301   : > { %v3127_v36 = vadd.f32 %v3091_v24, %v4853_v45  ;;  %v3128_v15 = vadd.f32 %v3104_v6, %v4855_v52 }
 0x306   : > { %v3067_v9 = vpop.f32.mrf.mxu2  ;;  %v3080_v32 = vpop.f32.mrf.mxu3 }
 0x308   : > { %v3093_v20 = vpop.f32.mrf.mxu0  ;;  %v3106_v47 = vpop.f32.mrf.mxu1 }
 0x30e   : > { %v3117_v51 = vpop.f32.mrf.mxu2  ;;  %v3224_v8 = vpop.f32.mrf.mxu3 }
 0x30f   : > { %v3332_v55 = vadd.f32 %v3224_v8, %v3121_v31  ;;  %v3129_v43 = vadd.f32 %v3117_v51, %v4857_v27 }
 0x310   : > { %v3237_v3 = vpop.f32.mrf.mxu0  ;;  %v3250_v41 = vpop.f32.mrf.mxu1 }
 0x311   : > { %v3333_v17 = vadd.f32 %v3237_v3, %v3122_v21  ;;  %v3341_v10 = vmax.f32 %v3332_v55, 0.0  ;;  %v3334_v13 = vadd.f32 %v3250_v41, %v3123_v30 }
 0x313   : > { %v3342_v26 = vmax.f32 %v3333_v17, 0.0  ;;  %v3343_v37 = vmax.f32 %v3334_v13, 0.0 }
 0x315   : > { %v3350_v16 = vpack.c.bf16 %v3342_v26, %v3341_v10 }
 0x316   : > { %v3119_v5 = vpop.f32.mrf.mxu2  ;;  %v3226_v48 = vpop.f32.mrf.mxu3 }
 0x317   : > { %3355 = vst [vmem:[%s4864_s27] sm:$0xff] %v3350_v16 }
 0x318   : > { %v3239_v38 = vpop.f32.mrf.mxu0  ;;  %v3252_v11 = vpop.f32.mrf.mxu1 }
 0x31e   : > { %v3263_v49 = vpop.f32.mrf.mxu2  ;;  %v3276_v44 = vpop.f32.mrf.mxu3 }
 0x31f   : > { %v3335_v1 = vadd.f32 %v3263_v49, %v3124_v35  ;;  %v3336_v28 = vadd.f32 %v3276_v44, %v3125_v7 }
 0x320   : > { %v3289_v58 = vpop.f32.mrf.mxu0  ;;  %v3302_v23 = vpop.f32.mrf.mxu1 }
 0x321   : > { %v3344_v0 = vmax.f32 %v3335_v1, 0.0  ;;  %v3337_v50 = vadd.f32 %v3289_v58, %v3126_v22  ;;  %v3345_v42 = vmax.f32 %v3336_v28, 0.0  ;;  %v3338_v40 = vadd.f32 %v3302_v23, %v3127_v36 }
 0x323   : > { %v3351_v53 = vpack.c.bf16 %v3344_v0, %v3343_v37  ;;  %v3346_v19 = vmax.f32 %v3337_v50, 0.0  ;;  %v3347_v25 = vmax.f32 %v3338_v40, 0.0 }
 0x325   : > { %3356 = vst [vmem:[%s4864_s27 + $0x8] sm:$0xff] %v3351_v53  ;;  %v3352_v29 = vpack.c.bf16 %v3346_v19, %v3345_v42 }
 0x326   : > { %v3265_v12 = vpop.f32.mrf.mxu2  ;;  %v3278_v63 = vpop.f32.mrf.mxu3 }
 0x327   : > { %3357 = vst [vmem:[%s4864_s27 + $0x10] sm:$0xff] %v3352_v29 }
 0x328   : > { %v3291_v56 = vpop.f32.mrf.mxu0  ;;  %v3304_v57 = vpop.f32.mrf.mxu1 }
 0x32e   : > { %v3315_v46 = vpop.f32.mrf.mxu2  ;;  %v3328_v18 = vpop.f32.mrf.mxu3 }
 0x32f   : > { %v3339_v39 = vadd.f32 %v3315_v46, %v3128_v15  ;;  %v3340_v60 = vadd.f32 %v3328_v18, %v3129_v43 }
 0x331   : > { %v3348_v2 = vmax.f32 %v3339_v39, 0.0  ;;  %v3349_v33 = vmax.f32 %v3340_v60, 0.0 }
 0x333   : > { %v3353_v62 = vpack.c.bf16 %v3348_v2, %v3347_v25  ;;  %v3354_v61 = vpack.c.bf16 %v3349_v33, %v3349_v33 }
 0x335   : > { %3358 = vst [vmem:[%s4864_s27 + $0x18] sm:$0xff] %v3353_v62 }
 0x336   : > { %3359 = vst [vmem:[%s4864_s27 + $0x20] sm:$0xf] %v3354_v61  ;;  %v3317_v4 = vpop.f32.mrf.mxu2  ;;  %v3330_v54 = vpop.f32.mrf.mxu3 }
 0x337 PF: > { %s12_s9 = sadd.s32 1, %s3612_s9  }
 0x338   : > { %p9_p4 = scmp.ge.s32.totalorder %s12_s9, 4  }
 0x33a   :  { %11 = sbr.rel (!%p9_p4) target bundleno = 1 (0x1), region = 92 }

// kernel: dc_discriminator_forward.6
= control target key start
LH: loop header
LB: loop body
LE: loop exit
PB: predicated region body
PF: predicated region fallthrough
CT: control target
= control target key end

     0   :  { %s1690_s9 = smov 0   ;;  %s2059_s0 = inlined_call_operand.vmem [shape: bf16[2,2,2,8,512], index: 0, kind: input, shape index: {}]   ;;  %s2060_s1 = inlined_call_operand.vmem [shape: bf16[16,16,8], index: 1, kind: input, shape index: {}]   ;;  %s2061_s2 = inlined_call_operand.vmem [shape: bf16[2,16,384], index: 2, kind: output, shape index: {}]  }
   0x1 LB: > { %s1477_s10 = sadd.s32 4294967295, %s1670_s9   ;;  %p1481_p0 = scmp.ge.s32.totalorder %s1670_s9, 1  ;;  %s1670_s9 = sphi %s1690_s9, %s12_s9  }
   0x2   : > { %p112_p1 = scmp.lt.s32.totalorder %s1670_s9, 3 }
   0x4   : > { %p113_p2 = pnand %p1481_p0, %p112_p1 }
   0x5   : > { %p134_p3 = scmp.lt.s32.totalorder (!%p113_p2), %s1477_s10, 1  ;;  %s1672_s15 = smov (!%p113_p2), 127  }
   0x6   : > { %116 = sbr.rel (%p113_p2) target bundleno = 455 (0x1c7), region = 28  ;;  %s1673_s16 = smov (!%p113_p2), 111  }
   0x7   : > { %s1674_s21 = smov (!%p113_p2), 110  }
   0xb   : > { %s2063_s10 = smov (!%p134_p3, %s1477_s10), 1  ;;  %vm172_vm0 = vcmask 1043456   ;;  %v1637_v42 = vld [vmem:[%s2060_s1 + $0x8] sm:$0xff]  ;;  %vm168_vm1 = vcmask 64512   ;;  %v1636_v45 = vld [vmem:[%s2060_s1] sm:$0xff]  ;;  %vm309_vm2 = vcmask 1039360  }
   0xc   : > { %s1635_s11 = sshll.u32 %s2063_s10, 6  ;;  %v1638_v62 = vld [vmem:[%s2060_s1 + $0x10] sm:$0xff]  ;;  %vm790_vm3 = vcmask 908288   ;;  %vm949_vm4 = vcmask 900096   ;;  %s1652_s24 = smul.u32 24, %s2063_s10 }
   0xd   : > { %s1704_s14 = scalar_lea.vmem %s2059_s0, %s1635_s11 }
   0xe   : > { %v146_v0 = vld [vmem:[%s1704_s14 + $0x8] sm:$0xff]  ;;  %v145_v1 = vld [vmem:[%s1704_s14] sm:$0xff]  ;;  %v1486_v4 = vld [vmem:[%s1704_s14 + $0x18] sm:$0xff]  ;;  %s143_s27 = scalar_lea.vmem %s2061_s2, %s1652_s24 }
   0xf   : > { %v233_v2 = vunpack.c.l.b16 %v146_v0  ;;  %v231_v3 = vunpack.c.l.b16 %v145_v1  ;;  %v1485_v5 = vld [vmem:[%s1704_s14 + $0x10] sm:$0xff]  ;;  %v164_v6 = vunpack.c.l.b16 %v1486_v4  ;;  %v232_v11 = vunpack.c.h.b16 %v145_v1  ;;  %v1521_v18 = vld [vmem:[%s1704_s14 + $0x20] sm:$0xff]  ;;  %v1522_v22 = vld [vmem:[%s1704_s14 + $0x28] sm:$0xff] }
  0x10   : > { %v163_v10 = vunpack.c.h.b16 %v1485_v5  ;;  %v381_v12 = vunpack.c.h.b16 %v1486_v4  ;;  %v162_v16 = vunpack.c.l.b16 %v1485_v5  ;;  %v299_v17 = vunpack.c.h.b16 %v146_v0  ;;  %v1532_v26 = vld [vmem:[%s1704_s14 + $0x30] sm:$0xff]  ;;  %v1533_v30 = vld [vmem:[%s1704_s14 + $0x38] sm:$0xff] }
  0x11   : > { %v1710_v7 = vpack.c.b16 %v233_v2, %v233_v2  ;;  %v1712_v8 = vpack.c.b16 %v231_v3, %v231_v3  ;;  %v1714_v9 = vpack.c.b16 %v164_v6, %v164_v6  ;;  %v1724_v14 = vpack.c.b16 %v232_v11, %v232_v11 }
  0x12   : > { %v1722_v13 = vpack.c.b16 %v163_v10, %v163_v10  ;;  %v1726_v15 = vpack.c.b16 %v381_v12, %v381_v12  ;;  %v467_v19 = vunpack.c.l.b16 %v1521_v18  ;;  %v1735_v20 = vpack.c.b16 %v162_v16, %v162_v16  ;;  %v1639_v10 = vld [vmem:[%s2060_s1 + $0x18] sm:$0xff] }
  0x13   : > { %305 = vrot.lane.b32.xlu1 %v1710_v7, %s1672_s15  ;;  %301 = vrot.lane.b32.xlu0 %v1712_v8, %s1672_s15  ;;  %v1737_v21 = vpack.c.b16 %v299_v17, %v299_v17  ;;  %v469_v24 = vunpack.c.l.b16 %v1522_v22  ;;  %v468_v25 = vunpack.c.h.b16 %v1521_v18  ;;  %v547_v27 = vunpack.c.h.b16 %v1532_v26 }
  0x14   : > { %387 = vrot.lane.b32.xlu2 %v1714_v9, %s1672_s15  ;;  %v1740_v23 = vpack.c.b16 %v467_v19, %v467_v19  ;;  %v548_v32 = vunpack.c.l.b16 %v1533_v30  ;;  %v701_v33 = vunpack.c.h.b16 %v1533_v30  ;;  %v620_v34 = vunpack.c.h.b16 %v1522_v22 }
  0x15   : > { %v1749_v28 = vpack.c.b16 %v469_v24, %v469_v24  ;;  %v1751_v29 = vpack.c.b16 %v468_v25, %v468_v25  ;;  %v1754_v31 = vpack.c.b16 %v547_v27, %v547_v27  ;;  %v546_v38 = vunpack.c.l.b16 %v1532_v26  ;;  %v1640_v24 = vld [vmem:[%s2060_s1 + $0x20] sm:$0xff] }
  0x16   : > { %v1762_v35 = vpack.c.b16 %v548_v32, %v548_v32  ;;  %v1764_v36 = vpack.c.b16 %v701_v33, %v701_v33  ;;  %v1766_v37 = vpack.c.b16 %v620_v34, %v620_v34  ;;  %v174_v40 = vsel %vm172_vm0, %v1735_v20, 0  ;;  %v1641_v32 = vld [vmem:[%s2060_s1 + $0x28] sm:$0xff] }
  0x17   : > { %v1774_v39 = vpack.c.b16 %v546_v38, %v546_v38  ;;  %v177_v41 = vsel %vm172_vm0, %v1722_v13, 0  ;;  %189 = vmatpush.bf16.msra.mxu0 %v174_v40  ;;  %v180_v43 = vsel %vm172_vm0, %v1714_v9, 0  ;;  %v241_v44 = vsel %vm172_vm0, %v1712_v8, 0 }
  0x18   : > { %203 = vmatpush.bf16.msra.mxu1 %v177_v41  ;;  %217 = vmatpush.bf16.msra.mxu2 %v180_v43  ;;  %v244_v46 = vsel %vm172_vm0, %v1724_v14, 0  ;;  %v247_v47 = vsel %vm172_vm0, %v1710_v7, 0  ;;  %v483_v0 = vsel %vm172_vm0, %v1749_v28, 0  ;;  %v477_v6 = vsel %vm172_vm0, %v1740_v23, 0 }
  0x19   : > { %256 = vmatpush.bf16.msra.mxu3 %v241_v44  ;;  %v556_v1 = vsel %vm172_vm0, %v1774_v39, 0  ;;  %v559_v12 = vsel %vm172_vm0, %v1754_v31, 0 }
  0x1a   : > { %1493 = vmatmul.msk.bf16.vlgmr.msra.gmra.mxu0 %vm168_vm1, %v1637_v42 }
  0x1b   : > { %385 = vrot.lane.b32.xlu1 %v1722_v13, %s1672_s15  ;;  %303 = vrot.lane.b32.xlu0 %v1724_v14, %s1672_s15 }
  0x1c   : > { %389 = vrot.lane.b32.xlu2 %v1726_v15, %s1672_s15  ;;  %1494 = vmatmul.msk.bf16.vlgmr.msra.gmra.mxu1 %vm168_vm1, %v1637_v42 }
  0x1d   : > { %1495 = vmatmul.msk.bf16.vlgmr.msra.gmra.mxu2 %vm168_vm1, %v1637_v42  ;;  %1500 = vmatmul.msk.bf16.vlgmr.msra.gmra.mxu3 %vm168_vm1, %v1636_v45 }
  0x1e   : > { %270 = vmatpush.bf16.msrb.mxu0 %v244_v46  ;;  %284 = vmatpush.bf16.msrb.mxu1 %v247_v47  ;;  %v1642_v46 = vld [vmem:[%s2060_s1 + $0x30] sm:$0xff] }
  0x23   : > { %383 = vrot.lane.b32.xlu1 %v1735_v20, %s1672_s15  ;;  %307 = vrot.lane.b32.xlu0 %v1737_v21, %s1672_s15 }
  0x24   : > { %622 = vrot.lane.b32.xlu2 %v1740_v23, %s1672_s15 }
  0x2a   : > { %1501 = vmatmul.msk.bf16.vlgmr.msrb.gmra.mxu0 %vm168_vm1, %v1636_v45 }
  0x2b   : > { %626 = vrot.lane.b32.xlu1 %v1749_v28, %s1672_s15  ;;  %624 = vrot.lane.b32.xlu0 %v1751_v29, %s1672_s15 }
  0x2c   : > { %705 = vrot.lane.b32.xlu2 %v1754_v31, %s1672_s15  ;;  %1502 = vmatmul.msk.bf16.vlgmr.msrb.gmra.mxu1 %vm168_vm1, %v1636_v45 }
  0x33   : > { %709 = vrot.lane.b32.xlu1 %v1764_v36, %s1672_s15  ;;  %707 = vrot.lane.b32.xlu0 %v1762_v35, %s1672_s15 }
  0x34   : > { %628 = vrot.lane.b32.xlu2 %v1766_v37, %s1672_s15 }
  0x3b   : > { %786 = vrot.lane.b32.xlu1 %v1710_v7, %s1673_s16  ;;  %703 = vrot.lane.b32.xlu0 %v1774_v39, %s1672_s15 }
  0x3c   : > { %788 = vrot.lane.b32.xlu2 %v1737_v21, %s1673_s16 }
  0x43   : > { %864 = vrot.lane.b32.xlu1 %v1722_v13, %s1673_s16  ;;  %862 = vrot.lane.b32.xlu0 %v1735_v20, %s1673_s16 }
  0x44   : > { %782 = vrot.lane.b32.xlu2 %v1712_v8, %s1673_s16 }
  0x4b   : > { %941 = vrot.lane.b32.xlu1 %v1712_v8, %s1674_s21  ;;  %784 = vrot.lane.b32.xlu0 %v1724_v14, %s1673_s16 }
  0x4c   : > { %943 = vrot.lane.b32.xlu2 %v1724_v14, %s1674_s21 }
  0x53   : > { %866 = vrot.lane.b32.xlu1 %v1714_v9, %s1673_s16  ;;  %945 = vrot.lane.b32.xlu0 %v1710_v7, %s1674_s21  ;;  %v480_v7 = vsel %vm172_vm0, %v1751_v29, 0 }
  0x54   : > { %868 = vrot.lane.b32.xlu2 %v1726_v15, %s1673_s16 }
  0x5b   : > { %1023 = vrot.lane.b32.xlu0 %v1722_v13, %s1674_s21  ;;  %1025 = vrot.lane.b32.xlu1 %v1714_v9, %s1674_s21  ;;  %v562_v13 = vsel %vm172_vm0, %v1762_v35, 0 }
  0x5c   : > { %1027 = vrot.lane.b32.xlu2 %v1726_v15, %s1674_s21 }
  0x63   : > { %947 = vrot.lane.b32.xlu0 %v1737_v21, %s1674_s21  ;;  %1021 = vrot.lane.b32.xlu1 %v1735_v20, %s1674_s21 }
  0x64   : > { %1104 = vrot.lane.b32.xlu2 %v1749_v28, %s1673_s16 }
  0x6b   : > { %1179 = vrot.lane.b32.xlu1 %v1774_v39, %s1673_s16  ;;  %1106 = vrot.lane.b32.xlu0 %v1766_v37, %s1673_s16 }
  0x6c   : > { %1181 = vrot.lane.b32.xlu2 %v1754_v31, %s1673_s16 }
  0x6e   : > { %v388_v48 = vpop.permute.xlu2 %387 }
  0x73   : > { %1102 = vrot.lane.b32.xlu1 %v1751_v29, %s1673_s16  ;;  %1100 = vrot.lane.b32.xlu0 %v1740_v23, %s1673_s16 }
  0x74   : > { %1258 = vrot.lane.b32.xlu2 %v1740_v23, %s1674_s21 }
  0x76   : > { %v390_v51 = vpop.permute.xlu2 %389 }
  0x77   : > { %v393_v52 = vsel %vm309_vm2, %v388_v48, %v390_v51 }
  0x78   : > { %v404_v58 = vsel %vm172_vm0, %v393_v52, 0 }
  0x7b   : > { %1262 = vrot.lane.b32.xlu1 %v1749_v28, %s1674_s21  ;;  %1260 = vrot.lane.b32.xlu0 %v1751_v29, %s1674_s21 }
  0x7c   : > { %1183 = vrot.lane.b32.xlu2 %v1762_v35, %s1673_s16 }
  0x7e   : > { %v623_v63 = vpop.permute.xlu2 %622 }
  0x83   : > { %1339 = vrot.lane.b32.xlu1 %v1754_v31, %s1674_s21  ;;  %1185 = vrot.lane.b32.xlu0 %v1764_v36, %s1673_s16 }
  0x84   : > { %1341 = vrot.lane.b32.xlu2 %v1762_v35, %s1674_s21 }
  0x85   : > { %v306_v49 = vpop.permute.xlu1 %305  ;;  %v302_v50 = vpop.permute.xlu0 %301 }
  0x86   : > { %v706_v11 = vpop.permute.xlu2 %705 }
  0x8b   : > { %1264 = vrot.lane.b32.xlu1 %v1766_v37, %s1674_s21  ;;  %1343 = vrot.lane.b32.xlu0 %v1764_v36, %s1674_s21 }
  0x8c   : > { %1337 = vrot.lane.b32.xlu2 %v1774_v39, %s1674_s21 }
  0x8d   : > { %v386_v53 = vpop.permute.xlu1 %385  ;;  %v304_v54 = vpop.permute.xlu0 %303 }
  0x8e   : > { %v392_v55 = vsel %vm309_vm2, %v386_v53, %v388_v48  ;;  %v310_v56 = vsel %vm309_vm2, %v302_v50, %v304_v54  ;;  %v311_v57 = vsel %vm309_vm2, %v304_v54, %v306_v49  ;;  %v629_v20 = vpop.permute.xlu2 %628 }
  0x8f   : > { %v401_v59 = vsel %vm172_vm0, %v392_v55, 0  ;;  %v317_v60 = vsel %vm172_vm0, %v310_v56, 0  ;;  %v320_v61 = vsel %vm172_vm0, %v311_v57, 0  ;;  %v1643_v56 = vld [vmem:[%s2060_s1 + $0x38] sm:$0xff] }
  0x90   : > { %332 = vmatpush.bf16.msrb.mxu2 %v317_v60  ;;  %346 = vmatpush.bf16.msrb.mxu3 %v320_v61 }
  0x93   : > { %1509 = vmatmul.msk.bf16.vlgmr.msrb.gmra.mxu2 %vm168_vm1, %v1638_v62  ;;  %1510 = vmatmul.msk.bf16.vlgmr.msrb.gmra.mxu3 %vm168_vm1, %v1638_v62 }
  0x94   : > { %427 = vmatpush.bf16.msra.mxu2 %v401_v59  ;;  %441 = vmatpush.bf16.msra.mxu3 %v404_v58 }
  0x95   : > { %v384_v2 = vpop.permute.xlu1 %383  ;;  %v308_v3 = vpop.permute.xlu0 %307 }
  0x96   : > { %v391_v4 = vsel %vm309_vm2, %v384_v2, %v386_v53  ;;  %v312_v5 = vsel %vm309_vm2, %v306_v49, %v308_v3  ;;  %v789_v26 = vpop.permute.xlu2 %788 }
  0x97   : > { %v398_v8 = vsel %vm172_vm0, %v391_v4, 0  ;;  %v323_v9 = vsel %vm172_vm0, %v312_v5, 0 }
  0x98   : > { %520 = vmatpush.bf16.msrb.mxu2 %v483_v0  ;;  %571 = vmatpush.bf16.msrb.mxu3 %v556_v1  ;;  %v191_v0 = vpop.f32.mrf.mxu0 }
  0x99   : > { %360 = vmatpush.bf16.msra.mxu0 %v323_v9  ;;  %413 = vmatpush.bf16.msra.mxu1 %v398_v8  ;;  %v205_v1 = vpop.f32.mrf.mxu1 }
  0x9c   : > { %1518 = vmatmul.msk.bf16.vlgmr.msra.gmra.mxu1 %vm168_vm1, %v1639_v10  ;;  %1511 = vmatmul.msk.bf16.vlgmr.msra.gmra.mxu0 %vm168_vm1, %v1638_v62 }
  0x9d   : > { %492 = vmatpush.bf16.msrb.mxu0 %v477_v6  ;;  %506 = vmatpush.bf16.msrb.mxu1 %v480_v7  ;;  %v627_v14 = vpop.permute.xlu1 %626  ;;  %v625_v15 = vpop.permute.xlu0 %624 }
  0x9e   : > { %v630_v16 = vsel %vm309_vm2, %v623_v63, %v625_v15  ;;  %v631_v17 = vsel %vm309_vm2, %v625_v15, %v627_v14  ;;  %v632_v23 = vsel %vm309_vm2, %v627_v14, %v629_v20  ;;  %v783_v36 = vpop.permute.xlu2 %782 }
  0x9f   : > { %v637_v18 = vsel %vm172_vm0, %v630_v16, 0  ;;  %v640_v19 = vsel %vm172_vm0, %v631_v17, 0  ;;  %v643_v25 = vsel %vm172_vm0, %v632_v23, 0 }
  0xa0   : > { %v193_v9 = vpop.f32.mrf.mxu0  ;;  %v258_v14 = vpop.f32.mrf.mxu3 }
  0xa1   : > { %585 = vmatpush.bf16.msra.mxu0 %v559_v12  ;;  %599 = vmatpush.bf16.msra.mxu1 %v562_v13 }
  0xa3   : > { %1519 = vmatmul.msk.bf16.vlgmr.msra.gmra.mxu2 %vm168_vm1, %v1639_v10  ;;  %1520 = vmatmul.msk.bf16.vlgmr.msra.gmra.mxu3 %vm168_vm1, %v1639_v10  ;;  %v207_v10 = vpop.f32.mrf.mxu1 }
  0xa4   : > { %652 = vmatpush.bf16.msra.mxu2 %v637_v18  ;;  %666 = vmatpush.bf16.msra.mxu3 %v640_v19  ;;  %v219_v19 = vpop.f32.mrf.mxu2 }
  0xa5   : > { %v710_v21 = vpop.permute.xlu1 %709  ;;  %v708_v22 = vpop.permute.xlu0 %707 }
  0xa6   : > { %v712_v29 = vsel %vm309_vm2, %v706_v11, %v708_v22  ;;  %v713_v30 = vsel %vm309_vm2, %v708_v22, %v710_v21  ;;  %v944_v39 = vpop.permute.xlu2 %943  ;;  %v1645_v21 = vld [vmem:[%s2060_s1 + $0x48] sm:$0xff] }
  0xa7   : > { %v721_v34 = vsel %vm172_vm0, %v712_v29, 0  ;;  %v724_v35 = vsel %vm172_vm0, %v713_v30, 0 }
  0xa8   : > { %v272_v20 = vpop.f32.mrf.mxu0  ;;  %v260_v29 = vpop.f32.mrf.mxu3 }
  0xab   : > { %v286_v23 = vpop.f32.mrf.mxu1 }
  0xac   : > { %1530 = vmatmul.msk.bf16.vlgmr.msrb.gmra.mxu1 %vm168_vm1, %v1640_v24  ;;  %1529 = vmatmul.msk.bf16.vlgmr.msrb.gmra.mxu0 %vm168_vm1, %v1640_v24 }
  0xad   : > { %680 = vmatpush.bf16.msrb.mxu0 %v643_v25  ;;  %v787_v27 = vpop.permute.xlu1 %786  ;;  %v704_v28 = vpop.permute.xlu0 %703 }
  0xae   : > { %v711_v31 = vsel %vm309_vm2, %v704_v28, %v706_v11  ;;  %v793_v42 = vsel %vm790_vm3, %v787_v27, %v789_v26  ;;  %v869_v51 = vpop.permute.xlu2 %868  ;;  %v1644_v11 = vld [vmem:[%s2060_s1 + $0x40] sm:$0xff]  ;;  %v1972_v26 = vadd.f32 %v258_v14, %v191_v0  ;;  %v1976_v28 = vadd.f32 %v286_v23, %v219_v19 }
  0xaf   : > { %v718_v33 = vsel %vm172_vm0, %v711_v31, 0  ;;  %v804_v49 = vsel %vm172_vm0, %v793_v42, 0 }
  0xb0   : > { %733 = vmatpush.bf16.msrb.mxu1 %v718_v33 }
  0xb3   : > { %1531 = vmatmul.msk.bf16.vlgmr.msrb.gmra.mxu2 %vm168_vm1, %v1640_v24  ;;  %1540 = vmatmul.msk.bf16.vlgmr.msrb.gmra.mxu3 %vm168_vm1, %v1641_v32 }
  0xb4   : > { %747 = vmatpush.bf16.msrb.mxu2 %v721_v34  ;;  %761 = vmatpush.bf16.msrb.mxu3 %v724_v35  ;;  %v221_v35 = vpop.f32.mrf.mxu2 }
  0xb5   : > { %v865_v37 = vpop.permute.xlu1 %864  ;;  %v863_v38 = vpop.permute.xlu0 %862 }
  0xb6   : > { %v870_v43 = vsel %vm790_vm3, %v863_v38, %v865_v37  ;;  %v1028_v59 = vpop.permute.xlu2 %1027  ;;  %v288_v38 = vpop.f32.mrf.mxu1 }
  0xb7   : > { %v877_v50 = vsel %vm172_vm0, %v870_v43, 0 }
  0xbc   : > { %1541 = vmatmul.msk.bf16.vlgmr.msra.gmra.mxu0 %vm168_vm1, %v1641_v32  ;;  %1542 = vmatmul.msk.bf16.vlgmr.msra.gmra.mxu1 %vm168_vm1, %v1641_v32  ;;  %v1978_v32 = vadd.f32 %v260_v29, %v193_v9  ;;  %v1649_v9 = vld [vmem:[%s2060_s1 + $0x68] sm:$0xff] }
  0xbd   : > { %v942_v40 = vpop.permute.xlu1 %941  ;;  %v785_v41 = vpop.permute.xlu0 %784 }
  0xbe   : > { %v791_v44 = vsel %vm790_vm3, %v783_v36, %v785_v41  ;;  %v792_v45 = vsel %vm790_vm3, %v785_v41, %v787_v27  ;;  %v950_v62 = vsel %vm949_vm4, %v942_v40, %v944_v39  ;;  %v1105_v4 = vpop.permute.xlu2 %1104  ;;  %v1974_v27 = vadd.f32 %v272_v20, %v205_v1  ;;  %v274_v36 = vpop.f32.mrf.mxu0 }
  0xbf   : > { %v798_v47 = vsel %vm172_vm0, %v791_v44, 0  ;;  %v801_v48 = vsel %vm172_vm0, %v792_v45, 0  ;;  %v957_v2 = vsel %vm172_vm0, %v950_v62, 0 }
  0xc0   : > { %813 = vmatpush.bf16.msra.mxu0 %v798_v47  ;;  %827 = vmatpush.bf16.msra.mxu1 %v801_v48 }
  0xc3   : > { %1549 = vmatmul.msk.bf16.vlgmr.msra.gmra.mxu2 %vm168_vm1, %v1642_v46  ;;  %1550 = vmatmul.msk.bf16.vlgmr.msra.gmra.mxu3 %vm168_vm1, %v1642_v46 }
  0xc4   : > { %841 = vmatpush.bf16.msra.mxu2 %v804_v49  ;;  %892 = vmatpush.bf16.msra.mxu3 %v877_v50 }
  0xc5   : > { %v867_v52 = vpop.permute.xlu1 %866  ;;  %v946_v53 = vpop.permute.xlu0 %945 }
  0xc6   : > { %v871_v54 = vsel %vm790_vm3, %v865_v37, %v867_v52  ;;  %v872_v55 = vsel %vm790_vm3, %v867_v52, %v869_v51  ;;  %v951_v63 = vsel %vm949_vm4, %v944_v39, %v946_v53  ;;  %v1182_v22 = vpop.permute.xlu2 %1181  ;;  %v1982_v37 = vadd.f32 %v274_v36, %v207_v10 }
  0xc7   : > { %v880_v57 = vsel %vm172_vm0, %v871_v54, 0  ;;  %v883_v58 = vsel %vm172_vm0, %v872_v55, 0  ;;  %v960_v3 = vsel %vm172_vm0, %v951_v63, 0  ;;  %v1984_v39 = vadd.f32 %v288_v38, %v221_v35  ;;  %v1647_v54 = vld [vmem:[%s2060_s1 + $0x58] sm:$0xff] }
  0xcc   : > { %1551 = vmatmul.msk.bf16.vlgmr.msrb.gmra.mxu0 %vm168_vm1, %v1642_v46  ;;  %1558 = vmatmul.msk.bf16.vlgmr.msrb.gmra.mxu1 %vm168_vm1, %v1643_v56  ;;  %v1646_v46 = vld [vmem:[%s2060_s1 + $0x50] sm:$0xff] }
  0xcd   : > { %906 = vmatpush.bf16.msrb.mxu0 %v880_v57  ;;  %920 = vmatpush.bf16.msrb.mxu1 %v883_v58  ;;  %v1024_v60 = vpop.permute.xlu0 %1023  ;;  %v1026_v61 = vpop.permute.xlu1 %1025 }
  0xce   : > { %v1030_v17 = vsel %vm949_vm4, %v1024_v60, %v1026_v61  ;;  %v1031_v18 = vsel %vm949_vm4, %v1026_v61, %v1028_v59  ;;  %v1259_v41 = vpop.permute.xlu2 %1258 }
  0xcf   : > { %v1039_v24 = vsel %vm172_vm0, %v1030_v17, 0  ;;  %v1042_v25 = vsel %vm172_vm0, %v1031_v18, 0 }
  0xd3   : > { %1559 = vmatmul.msk.bf16.vlgmr.msrb.gmra.mxu2 %vm168_vm1, %v1643_v56  ;;  %1560 = vmatmul.msk.bf16.vlgmr.msrb.gmra.mxu3 %vm168_vm1, %v1643_v56 }
  0xd4   : > { %972 = vmatpush.bf16.msrb.mxu2 %v957_v2  ;;  %986 = vmatpush.bf16.msrb.mxu3 %v960_v3  ;;  %v1648_v3 = vld [vmem:[%s2060_s1 + $0x60] sm:$0xff] }
  0xd5   : > { %v948_v5 = vpop.permute.xlu0 %947  ;;  %v1022_v6 = vpop.permute.xlu1 %1021 }
  0xd6   : > { %v952_v7 = vsel %vm949_vm4, %v946_v53, %v948_v5  ;;  %v1029_v8 = vsel %vm949_vm4, %v1022_v6, %v1024_v60  ;;  %v1184_v50 = vpop.permute.xlu2 %1183 }
  0xd7   : > { %v963_v12 = vsel %vm172_vm0, %v952_v7, 0  ;;  %v1036_v13 = vsel %vm172_vm0, %v1029_v8, 0  ;;  %v1188_v52 = vsel %vm790_vm3, %v1182_v22, %v1184_v50 }
  0xd8   : > { %v1197_v55 = vsel %vm172_vm0, %v1188_v52, 0 }
  0xdc   : > { %1567 = vmatmul.msk.bf16.vlgmr.msra.gmra.mxu0 %vm168_vm1, %v1644_v11  ;;  %1568 = vmatmul.msk.bf16.vlgmr.msra.gmra.mxu1 %vm168_vm1, %v1644_v11 }
  0xdd   : > { %1000 = vmatpush.bf16.msra.mxu0 %v963_v12  ;;  %1051 = vmatpush.bf16.msra.mxu1 %v1036_v13  ;;  %v1180_v15 = vpop.permute.xlu1 %1179  ;;  %v1107_v16 = vpop.permute.xlu0 %1106 }
  0xde   : > { %v1187_v44 = vsel %vm790_vm3, %v1180_v15, %v1182_v22  ;;  %v1110_v45 = vsel %vm790_vm3, %v1105_v4, %v1107_v16  ;;  %v1342_v58 = vpop.permute.xlu2 %1341 }
  0xdf   : > { %v1194_v48 = vsel %vm172_vm0, %v1187_v44, 0  ;;  %v1121_v49 = vsel %vm172_vm0, %v1110_v45, 0 }
  0xe3   : > { %1569 = vmatmul.msk.bf16.vlgmr.msra.gmra.mxu2 %vm168_vm1, %v1644_v11  ;;  %1576 = vmatmul.msk.bf16.vlgmr.msra.gmra.mxu3 %vm168_vm1, %v1645_v21 }
  0xe4   : > { %1065 = vmatpush.bf16.msra.mxu2 %v1039_v24  ;;  %1079 = vmatpush.bf16.msra.mxu3 %v1042_v25  ;;  %v1650_v24 = vld [vmem:[%s2060_s1 + $0x70] sm:$0xff] }
  0xe5   : > { %v1103_v30 = vpop.permute.xlu1 %1102  ;;  %v1101_v31 = vpop.permute.xlu0 %1100 }
  0xe6   : > { %v1109_v33 = vsel %vm790_vm3, %v1103_v30, %v1105_v4  ;;  %v1108_v34 = vsel %vm790_vm3, %v1101_v31, %v1103_v30  ;;  %v1338_v0 = vpop.permute.xlu2 %1337 }
  0xe7   : > { %v1118_v40 = vsel %vm172_vm0, %v1109_v33, 0  ;;  %v1115_v42 = vsel %vm172_vm0, %v1108_v34, 0 }
  0xec   : > { %1577 = vmatmul.msk.bf16.vlgmr.msrb.gmra.mxu0 %vm168_vm1, %v1645_v21  ;;  %1578 = vmatmul.msk.bf16.vlgmr.msrb.gmra.mxu1 %vm168_vm1, %v1645_v21 }
  0xed   : > { %1130 = vmatpush.bf16.msrb.mxu0 %v1115_v42  ;;  %1144 = vmatpush.bf16.msrb.mxu1 %v1118_v40  ;;  %v1261_v43 = vpop.permute.xlu0 %1260  ;;  %v1263_v47 = vpop.permute.xlu1 %1262 }
  0xee   : > { %v1266_v59 = vsel %vm949_vm4, %v1259_v41, %v1261_v43  ;;  %v1267_v60 = vsel %vm949_vm4, %v1261_v43, %v1263_v47 }
  0xef   : > { %v1273_v61 = vsel %vm172_vm0, %v1266_v59, 0  ;;  %v1276_v62 = vsel %vm172_vm0, %v1267_v60, 0 }
  0xf3   : > { %1585 = vmatmul.msk.bf16.vlgmr.msrb.gmra.mxu2 %vm168_vm1, %v1646_v46  ;;  %1586 = vmatmul.msk.bf16.vlgmr.msrb.gmra.mxu3 %vm168_vm1, %v1646_v46 }
  0xf4   : > { %1158 = vmatpush.bf16.msrb.mxu2 %v1121_v49  ;;  %1209 = vmatpush.bf16.msrb.mxu3 %v1194_v48 }
  0xf5   : > { %v1186_v51 = vpop.permute.xlu0 %1185  ;;  %v1340_v56 = vpop.permute.xlu1 %1339 }
  0xf6   : > { %v1189_v53 = vsel %vm790_vm3, %v1184_v50, %v1186_v51  ;;  %v1345_v2 = vsel %vm949_vm4, %v1338_v0, %v1340_v56  ;;  %v1346_v7 = vsel %vm949_vm4, %v1340_v56, %v1342_v58 }
  0xf7   : > { %v1200_v57 = vsel %vm172_vm0, %v1189_v53, 0  ;;  %v1352_v5 = vsel %vm172_vm0, %v1345_v2, 0  ;;  %v1355_v10 = vsel %vm172_vm0, %v1346_v7, 0 }
  0xfc   : > { %1587 = vmatmul.msk.bf16.vlgmr.msra.gmra.mxu0 %vm168_vm1, %v1646_v46  ;;  %1594 = vmatmul.msk.bf16.vlgmr.msra.gmra.mxu1 %vm168_vm1, %v1647_v54 }
  0xfd   : > { %1223 = vmatpush.bf16.msra.mxu0 %v1197_v55  ;;  %1237 = vmatpush.bf16.msra.mxu1 %v1200_v57  ;;  %v1265_v63 = vpop.permute.xlu1 %1264  ;;  %v1344_v6 = vpop.permute.xlu0 %1343 }
  0xfe   : > { %v1268_v1 = vsel %vm949_vm4, %v1263_v47, %v1265_v63  ;;  %v1347_v8 = vsel %vm949_vm4, %v1342_v58, %v1344_v6 }
  0xff   : > { %v1279_v4 = vsel %vm172_vm0, %v1268_v1, 0  ;;  %v1358_v11 = vsel %vm172_vm0, %v1347_v8, 0 }
 0x103   : > { %1595 = vmatmul.msk.bf16.vlgmr.msra.gmra.mxu2 %vm168_vm1, %v1647_v54  ;;  %1596 = vmatmul.msk.bf16.vlgmr.msra.gmra.mxu3 %vm168_vm1, %v1647_v54 }
 0x104   : > { %1288 = vmatpush.bf16.msra.mxu2 %v1273_v61  ;;  %1302 = vmatpush.bf16.msra.mxu3 %v1276_v62 }
 0x10c   : > { %1603 = vmatmul.msk.bf16.vlgmr.msrb.gmra.mxu0 %vm168_vm1, %v1648_v3  ;;  %1604 = vmatmul.msk.bf16.vlgmr.msrb.gmra.mxu1 %vm168_vm1, %v1648_v3 }
 0x10d   : > { %1316 = vmatpush.bf16.msrb.mxu0 %v1279_v4  ;;  %1367 = vmatpush.bf16.msrb.mxu1 %v1352_v5 }
 0x113   : > { %1605 = vmatmul.msk.bf16.vlgmr.msrb.gmra.mxu2 %vm168_vm1, %v1648_v3  ;;  %1612 = vmatmul.msk.bf16.vlgmr.msrb.gmra.mxu3 %vm168_vm1, %v1649_v9 }
 0x114   : > { %1381 = vmatpush.bf16.msrb.mxu2 %v1355_v10  ;;  %1395 = vmatpush.bf16.msrb.mxu3 %v1358_v11 }
 0x116   : > { %v334_v12 = vpop.f32.mrf.mxu2  ;;  %v348_v13 = vpop.f32.mrf.mxu3 }
 0x117   : > { %v367_v14 = vadd.f32 %v334_v12, %v1972_v26  ;;  %v368_v15 = vadd.f32 %v348_v13, %v1974_v27 }
 0x119   : > { %v362_v16 = vpop.f32.mrf.mxu0  ;;  %v415_v17 = vpop.f32.mrf.mxu1 }
 0x11a   : > { %v369_v18 = vadd.f32 %v362_v16, %v1976_v28  ;;  %v448_v19 = vadd.f32 %v415_v17, %v367_v14 }
 0x11c   : > { %1613 = vmatmul.msk.bf16.vlgmr.msra.gmra.mxu0 %vm168_vm1, %v1649_v9  ;;  %1614 = vmatmul.msk.bf16.vlgmr.msra.gmra.mxu1 %vm168_vm1, %v1649_v9 }
 0x11e   : > { %v336_v20 = vpop.f32.mrf.mxu2  ;;  %v350_v21 = vpop.f32.mrf.mxu3 }
 0x11f   : > { %v370_v22 = vadd.f32 %v336_v20, %v1978_v32  ;;  %v371_v23 = vadd.f32 %v350_v21, %v1982_v37  ;;  %v1651_v32 = vld [vmem:[%s2060_s1 + $0x78] sm:$0xff] }
 0x121   : > { %v364_v25 = vpop.f32.mrf.mxu0  ;;  %v417_v26 = vpop.f32.mrf.mxu1 }
 0x122   : > { %v372_v27 = vadd.f32 %v364_v25, %v1984_v39  ;;  %v451_v28 = vadd.f32 %v417_v26, %v370_v22 }
 0x123   : > { %1621 = vmatmul.msk.bf16.vlgmr.msra.gmra.mxu2 %vm168_vm1, %v1650_v24  ;;  %1622 = vmatmul.msk.bf16.vlgmr.msra.gmra.mxu3 %vm168_vm1, %v1650_v24 }
 0x126   : > { %v429_v29 = vpop.f32.mrf.mxu2  ;;  %v443_v30 = vpop.f32.mrf.mxu3 }
 0x127   : > { %v449_v31 = vadd.f32 %v429_v29, %v368_v15  ;;  %v450_v33 = vadd.f32 %v443_v30, %v369_v18 }
 0x129   : > { %v494_v34 = vpop.f32.mrf.mxu0  ;;  %v508_v35 = vpop.f32.mrf.mxu1 }
 0x12a   : > { %v527_v36 = vadd.f32 %v494_v34, %v448_v19  ;;  %v528_v37 = vadd.f32 %v508_v35, %v449_v31 }
 0x12c   : > { %1623 = vmatmul.msk.bf16.vlgmr.msrb.gmra.mxu0 %vm168_vm1, %v1650_v24  ;;  %1630 = vmatmul.msk.bf16.vlgmr.msrb.gmra.mxu1 %vm168_vm1, %v1651_v32 }
 0x12e   : > { %v431_v38 = vpop.f32.mrf.mxu2  ;;  %v445_v39 = vpop.f32.mrf.mxu3 }
 0x12f   : > { %v452_v40 = vadd.f32 %v431_v38, %v371_v23  ;;  %v453_v41 = vadd.f32 %v445_v39, %v372_v27 }
 0x131   : > { %v496_v42 = vpop.f32.mrf.mxu0  ;;  %v510_v43 = vpop.f32.mrf.mxu1 }
 0x132   : > { %v530_v44 = vadd.f32 %v496_v42, %v451_v28  ;;  %v531_v45 = vadd.f32 %v510_v43, %v452_v40 }
 0x133   : > { %1631 = vmatmul.msk.bf16.vlgmr.msrb.gmra.mxu2 %vm168_vm1, %v1651_v32  ;;  %1632 = vmatmul.msk.bf16.vlgmr.msrb.gmra.mxu3 %vm168_vm1, %v1651_v32 }
 0x136   : > { %v522_v46 = vpop.f32.mrf.mxu2  ;;  %v573_v47 = vpop.f32.mrf.mxu3 }
 0x137   : > { %v529_v48 = vadd.f32 %v522_v46, %v450_v33  ;;  %v606_v49 = vadd.f32 %v573_v47, %v527_v36 }
 0x139   : > { %v587_v50 = vpop.f32.mrf.mxu0  ;;  %v601_v51 = vpop.f32.mrf.mxu1 }
 0x13a   : > { %v607_v52 = vadd.f32 %v587_v50, %v528_v37  ;;  %v608_v53 = vadd.f32 %v601_v51, %v529_v48 }
 0x13e   : > { %v524_v54 = vpop.f32.mrf.mxu2  ;;  %v575_v55 = vpop.f32.mrf.mxu3 }
 0x13f   : > { %v532_v56 = vadd.f32 %v524_v54, %v453_v41  ;;  %v609_v57 = vadd.f32 %v575_v55, %v530_v44 }
 0x141   : > { %v589_v58 = vpop.f32.mrf.mxu0  ;;  %v603_v59 = vpop.f32.mrf.mxu1 }
 0x142   : > { %v610_v60 = vadd.f32 %v589_v58, %v531_v45  ;;  %v611_v61 = vadd.f32 %v603_v59, %v532_v56 }
 0x146   : > { %v654_v62 = vpop.f32.mrf.mxu2  ;;  %v668_v63 = vpop.f32.mrf.mxu3 }
 0x147   : > { %v687_v0 = vadd.f32 %v654_v62, %v606_v49  ;;  %v688_v1 = vadd.f32 %v668_v63, %v607_v52 }
 0x149   : > { %v682_v2 = vpop.f32.mrf.mxu0  ;;  %v735_v3 = vpop.f32.mrf.mxu1 }
 0x14a   : > { %v689_v4 = vadd.f32 %v682_v2, %v608_v53  ;;  %v768_v5 = vadd.f32 %v735_v3, %v687_v0 }
 0x14e   : > { %v656_v6 = vpop.f32.mrf.mxu2  ;;  %v670_v7 = vpop.f32.mrf.mxu3 }
 0x14f   : > { %v690_v8 = vadd.f32 %v656_v6, %v609_v57  ;;  %v691_v9 = vadd.f32 %v670_v7, %v610_v60 }
 0x151   : > { %v684_v10 = vpop.f32.mrf.mxu0  ;;  %v737_v11 = vpop.f32.mrf.mxu1 }
 0x152   : > { %v692_v12 = vadd.f32 %v684_v10, %v611_v61  ;;  %v771_v13 = vadd.f32 %v737_v11, %v690_v8 }
 0x156   : > { %v749_v14 = vpop.f32.mrf.mxu2  ;;  %v763_v15 = vpop.f32.mrf.mxu3 }
 0x157   : > { %v769_v16 = vadd.f32 %v749_v14, %v688_v1  ;;  %v770_v17 = vadd.f32 %v763_v15, %v689_v4 }
 0x159   : > { %v815_v18 = vpop.f32.mrf.mxu0  ;;  %v829_v19 = vpop.f32.mrf.mxu1 }
 0x15a   : > { %v848_v20 = vadd.f32 %v815_v18, %v768_v5  ;;  %v849_v21 = vadd.f32 %v829_v19, %v769_v16 }
 0x15e   : > { %v751_v22 = vpop.f32.mrf.mxu2  ;;  %v765_v23 = vpop.f32.mrf.mxu3 }
 0x15f   : > { %v772_v24 = vadd.f32 %v751_v22, %v691_v9  ;;  %v773_v25 = vadd.f32 %v765_v23, %v692_v12 }
 0x161   : > { %v817_v26 = vpop.f32.mrf.mxu0  ;;  %v831_v27 = vpop.f32.mrf.mxu1 }
 0x162   : > { %v851_v28 = vadd.f32 %v817_v26, %v771_v13  ;;  %v852_v29 = vadd.f32 %v831_v27, %v772_v24 }
 0x166   : > { %v843_v30 = vpop.f32.mrf.mxu2  ;;  %v894_v31 = vpop.f32.mrf.mxu3 }
 0x167   : > { %v850_v33 = vadd.f32 %v843_v30, %v770_v17  ;;  %v927_v32 = vadd.f32 %v894_v31, %v848_v20 }
 0x169   : > { %v908_v34 = vpop.f32.mrf.mxu0  ;;  %v922_v35 = vpop.f32.mrf.mxu1 }
 0x16a   : > { %v928_v5 = vadd.f32 %v908_v34, %v849_v21  ;;  %v929_v6 = vadd.f32 %v922_v35, %v850_v33 }
 0x16e   : > { %v845_v36 = vpop.f32.mrf.mxu2  ;;  %v896_v37 = vpop.f32.mrf.mxu3 }
 0x16f   : > { %v853_v38 = vadd.f32 %v845_v36, %v773_v25  ;;  %v930_v39 = vadd.f32 %v896_v37, %v851_v28 }
 0x171   : > { %v910_v40 = vpop.f32.mrf.mxu0  ;;  %v924_v41 = vpop.f32.mrf.mxu1 }
 0x172   : > { %v931_v18 = vadd.f32 %v910_v40, %v852_v29  ;;  %v932_v19 = vadd.f32 %v924_v41, %v853_v38 }
 0x176   : > { %v974_v42 = vpop.f32.mrf.mxu2  ;;  %v988_v43 = vpop.f32.mrf.mxu3 }
 0x177   : > { %v1007_v4 = vadd.f32 %v974_v42, %v927_v32  ;;  %v1008_v7 = vadd.f32 %v988_v43, %v928_v5 }
 0x179   : > { %v1002_v44 = vpop.f32.mrf.mxu0  ;;  %v1053_v45 = vpop.f32.mrf.mxu1 }
 0x17a   : > { %v1009_v8 = vadd.f32 %v1002_v44, %v929_v6  ;;  %v1086_v9 = vadd.f32 %v1053_v45, %v1007_v4 }
 0x17e   : > { %v976_v46 = vpop.f32.mrf.mxu2  ;;  %v990_v47 = vpop.f32.mrf.mxu3 }
 0x17f   : > { %v1010_v15 = vadd.f32 %v976_v46, %v930_v39  ;;  %v1011_v21 = vadd.f32 %v990_v47, %v931_v18 }
 0x181   : > { %v1004_v48 = vpop.f32.mrf.mxu0  ;;  %v1055_v49 = vpop.f32.mrf.mxu1 }
 0x182   : > { %v1012_v25 = vadd.f32 %v1004_v48, %v932_v19  ;;  %v1089_v26 = vadd.f32 %v1055_v49, %v1010_v15 }
 0x186   : > { %v1067_v50 = vpop.f32.mrf.mxu2  ;;  %v1081_v51 = vpop.f32.mrf.mxu3 }
 0x187   : > { %v1087_v10 = vadd.f32 %v1067_v50, %v1008_v7  ;;  %v1088_v11 = vadd.f32 %v1081_v51, %v1009_v8 }
 0x189   : > { %v1132_v52 = vpop.f32.mrf.mxu0  ;;  %v1146_v53 = vpop.f32.mrf.mxu1 }
 0x18a   : > { %v1165_v12 = vadd.f32 %v1132_v52, %v1086_v9  ;;  %v1166_v23 = vadd.f32 %v1146_v53, %v1087_v10 }
 0x18e   : > { %v1069_v54 = vpop.f32.mrf.mxu2  ;;  %v1083_v55 = vpop.f32.mrf.mxu3 }
 0x18f   : > { %v1090_v30 = vadd.f32 %v1069_v54, %v1011_v21  ;;  %v1091_v31 = vadd.f32 %v1083_v55, %v1012_v25 }
 0x191   : > { %v1134_v56 = vpop.f32.mrf.mxu0  ;;  %v1148_v57 = vpop.f32.mrf.mxu1 }
 0x192   : > { %v1168_v33 = vadd.f32 %v1134_v56, %v1089_v26  ;;  %v1169_v41 = vadd.f32 %v1148_v57, %v1090_v30 }
 0x196   : > { %v1160_v58 = vpop.f32.mrf.mxu2  ;;  %v1211_v59 = vpop.f32.mrf.mxu3 }
 0x197   : > { %v1167_v16 = vadd.f32 %v1160_v58, %v1088_v11  ;;  %v1244_v17 = vadd.f32 %v1211_v59, %v1165_v12 }
 0x199   : > { %v1225_v60 = vpop.f32.mrf.mxu0  ;;  %v1239_v61 = vpop.f32.mrf.mxu1 }
 0x19a   : > { %v1245_v27 = vadd.f32 %v1225_v60, %v1166_v23  ;;  %v1246_v28 = vadd.f32 %v1239_v61, %v1167_v16 }
 0x19e   : > { %v1162_v62 = vpop.f32.mrf.mxu2  ;;  %v1213_v63 = vpop.f32.mrf.mxu3 }
 0x19f   : > { %v1170_v37 = vadd.f32 %v1162_v62, %v1091_v31  ;;  %v1247_v38 = vadd.f32 %v1213_v63, %v1168_v33 }
 0x1a1   : > { %v1227_v0 = vpop.f32.mrf.mxu0  ;;  %v1241_v1 = vpop.f32.mrf.mxu1 }
 0x1a2   : > { %v1248_v48 = vadd.f32 %v1227_v0, %v1169_v41  ;;  %v1249_v49 = vadd.f32 %v1241_v1, %v1170_v37 }
 0x1a6   : > { %v1290_v2 = vpop.f32.mrf.mxu2  ;;  %v1304_v3 = vpop.f32.mrf.mxu3 }
 0x1a7   : > { %v1323_v24 = vadd.f32 %v1290_v2, %v1244_v17  ;;  %v1324_v32 = vadd.f32 %v1304_v3, %v1245_v27 }
 0x1a9   : > { %v1318_v20 = vpop.f32.mrf.mxu0  ;;  %v1369_v22 = vpop.f32.mrf.mxu1 }
 0x1aa   : > { %v1325_v34 = vadd.f32 %v1318_v20, %v1246_v28  ;;  %v1402_v35 = vadd.f32 %v1369_v22, %v1323_v24 }
 0x1ac   : > { %v1408_v42 = vmax.f32 %v1402_v35, 0.0 }
 0x1ae   : > { %v1292_v13 = vpop.f32.mrf.mxu2  ;;  %v1306_v14 = vpop.f32.mrf.mxu3 }
 0x1af   : > { %v1326_v43 = vadd.f32 %v1292_v13, %v1247_v38  ;;  %v1327_v52 = vadd.f32 %v1306_v14, %v1248_v48 }
 0x1b1   : > { %v1320_v46 = vpop.f32.mrf.mxu0  ;;  %v1371_v47 = vpop.f32.mrf.mxu1 }
 0x1b2   : > { %v1328_v53 = vadd.f32 %v1320_v46, %v1249_v49  ;;  %v1405_v54 = vadd.f32 %v1371_v47, %v1326_v43 }
 0x1b4   : > { %v1411_v59 = vmax.f32 %v1405_v54, 0.0 }
 0x1b6   : > { %v1383_v36 = vpop.f32.mrf.mxu2  ;;  %v1397_v29 = vpop.f32.mrf.mxu3 }
 0x1b7   : > { %v1403_v39 = vadd.f32 %v1383_v36, %v1324_v32  ;;  %v1404_v40 = vadd.f32 %v1397_v29, %v1325_v34 }
 0x1b9   : > { %v1409_v44 = vmax.f32 %v1403_v39, 0.0  ;;  %v1410_v45 = vmax.f32 %v1404_v40, 0.0 }
 0x1bb   : > { %v1414_v50 = vpack.c.bf16 %v1409_v44, %v1408_v42  ;;  %v1415_v51 = vpack.c.bf16 %v1410_v45, %v1410_v45 }
 0x1bd   : > { %1418 = vst [vmem:[%s143_s27] sm:$0xff] %v1414_v50 }
 0x1be   : > { %1419 = vst [vmem:[%s143_s27 + $0x8] sm:$0xf] %v1415_v51  ;;  %v1385_v55 = vpop.f32.mrf.mxu2  ;;  %v1399_v56 = vpop.f32.mrf.mxu3 }
 0x1bf   : > { %v1406_v57 = vadd.f32 %v1385_v55, %v1327_v52  ;;  %v1407_v58 = vadd.f32 %v1399_v56, %v1328_v53 }
 0x1c1   : > { %v1412_v60 = vmax.f32 %v1406_v57, 0.0  ;;  %v1413_v61 = vmax.f32 %v1407_v58, 0.0 }
 0x1c3   : > { %v1416_v62 = vpack.c.bf16 %v1412_v60, %v1411_v59  ;;  %v1417_v63 = vpack.c.bf16 %v1413_v61, %v1413_v61 }
 0x1c5   : > { %1420 = vst [vmem:[%s143_s27 + $0xc] sm:$0xff] %v1416_v62 }
 0x1c6   : > { %1421 = vst [vmem:[%s143_s27 + $0x14] sm:$0xf] %v1417_v63 }
 0x1c7 PF: > { %s12_s9 = sadd.s32 1, %s1670_s9  }
 0x1c8   : > { %p9_p4 = scmp.ge.s32.totalorder %s12_s9, 4  }
 0x1ca   :  { %11 = sbr.rel (!%p9_p4) target bundleno = 1 (0x1), region = 76 }

// kernel: dc_discriminator_forward.7
= control target key start
LH: loop header
LB: loop body
LE: loop exit
PB: predicated region body
PF: predicated region fallthrough
CT: control target
= control target key end

     0   :  { %s1389_s9 = smov 0   ;;  %s1568_s0 = inlined_call_operand.vmem [shape: bf16[2,2,2,16,256], index: 0, kind: input, shape index: {}]   ;;  %s1569_s1 = inlined_call_operand.vmem [shape: bf16[16,32,16], index: 1, kind: input, shape index: {}]   ;;  %s1570_s2 = inlined_call_operand.vmem [shape: bf16[2,32,128], index: 2, kind: output, shape index: {}]  }
   0x1 LB: > { %s1030_s10 = sadd.s32 4294967295, %s1369_s9   ;;  %p1034_p0 = scmp.ge.s32.totalorder %s1369_s9, 1  ;;  %s1369_s9 = sphi %s1389_s9, %s12_s9  }
   0x2   : > { %p112_p1 = scmp.lt.s32.totalorder %s1369_s9, 3 }
   0x4   : > { %p113_p2 = pnand %p1034_p0, %p112_p1 }
   0x5   : > { %p134_p3 = scmp.lt.s32.totalorder (!%p113_p2), %s1030_s10, 1  ;;  %s1371_s15 = smov (!%p113_p2), 127  }
   0x6   : > { %116 = sbr.rel (%p113_p2) target bundleno = 406 (0x196), region = 28  ;;  %s1372_s16 = smov (!%p113_p2), 118  }
   0x7   : > { %s1373_s17 = smov (!%p113_p2), 119  }
   0xb   : > { %s1572_s10 = smov (!%p134_p3, %s1030_s10), 1  ;;  %v1307_v24 = vld [vmem:[%s1569_s1 + $0x10] sm:$0xff]  ;;  %vm175_vm0 = vcmask 130048   ;;  %v1303_v25 = vld [vmem:[%s1569_s1] sm:$0xff]  ;;  %v1308_v26 = vld [vmem:[%s1569_s1 + $0x18] sm:$0xff]  ;;  %vm264_vm1 = vcmask 1039360  }
   0xc   : > { %s1299_s11 = sshll.u32 %s1572_s10, 6  ;;  %v1304_v27 = vld [vmem:[%s1569_s1 + $0x8] sm:$0xff]  ;;  %v1315_v29 = vld [vmem:[%s1569_s1 + $0x40] sm:$0xff]  ;;  %v1319_v30 = vld [vmem:[%s1569_s1 + $0x50] sm:$0xff]  ;;  %vm580_vm2 = vcmask 973824   ;;  %vm681_vm3 = vcmask 965632  }
   0xd   : > { %s1403_s14 = scalar_lea.vmem %s1568_s0, %s1299_s11  ;;  %v1316_v34 = vld [vmem:[%s1569_s1 + $0x48] sm:$0xff]  ;;  %v1320_v36 = vld [vmem:[%s1569_s1 + $0x58] sm:$0xff]  ;;  %v1311_v41 = vld [vmem:[%s1569_s1 + $0x30] sm:$0xff]  ;;  %s1300_s30 = sshll.u32 %s1572_s10, 4 }
   0xe   : > { %v1055_v0 = vld [vmem:[%s1403_s14 + $0x10] sm:$0xf]  ;;  %v1306_v1 = vld [vmem:[%s1403_s14 + $0x14] sm:$0xf0]  ;;  %v1069_v2 = vld [vmem:[%s1403_s14] sm:$0xf]  ;;  %s143_s5 = scalar_lea.vmem %s1570_s2, %s1300_s30 }
   0xf   : > { %v1056_v3 = vor.u32 %v1306_v1, %v1055_v0  ;;  %v1302_v4 = vld [vmem:[%s1403_s14 + $0x4] sm:$0xf0]  ;;  %v1305_v6 = vld [vmem:[%s1403_s14 + $0x14] sm:$0xf]  ;;  %v1145_v7 = vld [vmem:[%s1403_s14 + $0x30] sm:$0xf] }
  0x10   : > { %v1070_v5 = vor.u32 %v1302_v4, %v1069_v2  ;;  %v1318_v8 = vld [vmem:[%s1403_s14 + $0x34] sm:$0xf0]  ;;  %v1103_v9 = vld [vmem:[%s1403_s14 + $0x18] sm:$0xf0]  ;;  %v1125_v11 = vld [vmem:[%s1403_s14 + $0x20] sm:$0xf] }
  0x11   : > { %314 = vrot.lane.b32.xlu1 %v1056_v3, %s1371_s15  ;;  %189 = vmatpush.bf16.msra.mxu0 %v1056_v3  ;;  %v1146_v10 = vor.u32 %v1318_v8, %v1145_v7  ;;  %v1314_v12 = vld [vmem:[%s1403_s14 + $0x24] sm:$0xf0]  ;;  %v1301_v13 = vld [vmem:[%s1403_s14 + $0x4] sm:$0xf]  ;;  %v1085_v14 = vld [vmem:[%s1403_s14 + $0x8] sm:$0xf0]  ;;  %v1106_v16 = vor.u32 %v1305_v6, %v1103_v9 }
  0x12   : > { %260 = vrot.lane.b32.xlu0 %v1070_v5, %s1371_s15  ;;  %230 = vmatpush.bf16.msra.mxu1 %v1070_v5  ;;  %v1126_v15 = vor.u32 %v1314_v12, %v1125_v11  ;;  %v1088_v17 = vor.u32 %v1301_v13, %v1085_v14  ;;  %v1313_v18 = vld [vmem:[%s1403_s14 + $0x24] sm:$0xf]  ;;  %v1161_v19 = vld [vmem:[%s1403_s14 + $0x28] sm:$0xf0]  ;;  %v1317_v21 = vld [vmem:[%s1403_s14 + $0x34] sm:$0xf] }
  0x13   : > { %v1164_v20 = vor.u32 %v1313_v18, %v1161_v19  ;;  %v1179_v22 = vld [vmem:[%s1403_s14 + $0x38] sm:$0xf0]  ;;  %v1309_v43 = vld [vmem:[%s1569_s1 + $0x20] sm:$0xff]  ;;  %v1310_v53 = vld [vmem:[%s1569_s1 + $0x28] sm:$0xff] }
  0x14   : > { %473 = vrot.lane.b32.xlu2 %v1126_v15, %s1371_s15  ;;  %v1182_v23 = vor.u32 %v1317_v21, %v1179_v22  ;;  %1057 = vmatmul.msk.bf16.vlgmr.msra.gmra.mxu0 %vm175_vm0, %v1307_v24  ;;  %v1312_v49 = vld [vmem:[%s1569_s1 + $0x38] sm:$0xff]  ;;  %v1325_v52 = vld [vmem:[%s1569_s1 + $0x80] sm:$0xff]  ;;  %v1323_v61 = vld [vmem:[%s1569_s1 + $0x70] sm:$0xff] }
  0x15   : > { %386 = vmatpush.bf16.msrb.mxu0 %v1126_v15  ;;  %1071 = vmatmul.msk.bf16.vlgmr.msra.gmra.mxu1 %vm175_vm0, %v1303_v25  ;;  %v1326_v63 = vld [vmem:[%s1569_s1 + $0x88] sm:$0xff]  ;;  %v1321_v0 = vld [vmem:[%s1569_s1 + $0x60] sm:$0xff]  ;;  %v1327_v2 = vld [vmem:[%s1569_s1 + $0x90] sm:$0xff] }
  0x16   : > { %439 = vmatpush.bf16.msrb.mxu1 %v1146_v10  ;;  %v1333_v13 = vld [vmem:[%s1569_s1 + $0xc0] sm:$0xff]  ;;  %v1322_v14 = vld [vmem:[%s1569_s1 + $0x68] sm:$0xff]  ;;  %v1332_v24 = vld [vmem:[%s1569_s1 + $0xb8] sm:$0xff] }
  0x17   : > { %v1334_v18 = vld [vmem:[%s1569_s1 + $0xc8] sm:$0xff]  ;;  %v1329_v19 = vld [vmem:[%s1569_s1 + $0xa0] sm:$0xff] }
  0x18   : > { %v1330_v25 = vld [vmem:[%s1569_s1 + $0xa8] sm:$0xff] }
  0x19   : > { %316 = vrot.lane.b32.xlu1 %v1106_v16, %s1371_s15 }
  0x1a   : > { %262 = vrot.lane.b32.xlu0 %v1088_v17, %s1371_s15 }
  0x1c   : > { %475 = vrot.lane.b32.xlu2 %v1164_v20, %s1371_s15 }
  0x21   : > { %528 = vrot.lane.b32.xlu1 %v1182_v23, %s1371_s15 }
  0x22   : > { %526 = vrot.lane.b32.xlu0 %v1146_v10, %s1371_s15 }
  0x24   : > { %677 = vrot.lane.b32.xlu2 %v1070_v5, %s1372_s16  ;;  %1058 = vmatmul.msk.bf16.gmra.mxu0 %vm175_vm0, %v1308_v26  ;;  %v1336_v26 = vld [vmem:[%s1569_s1 + $0xd8] sm:$0xff] }
  0x25   : > { %1072 = vmatmul.msk.bf16.gmra.mxu1 %vm175_vm0, %v1304_v27 }
  0x29   : > { %576 = vrot.lane.b32.xlu1 %v1070_v5, %s1373_s17 }
  0x2a   : > { %679 = vrot.lane.b32.xlu0 %v1088_v17, %s1372_s16 }
  0x2c   : > { %578 = vrot.lane.b32.xlu2 %v1088_v17, %s1373_s17  ;;  %v1331_v17 = vld [vmem:[%s1569_s1 + $0xb0] sm:$0xff] }
  0x31   : > { %730 = vrot.lane.b32.xlu1 %v1106_v16, %s1372_s16 }
  0x32   : > { %728 = vrot.lane.b32.xlu0 %v1056_v3, %s1372_s16 }
  0x34   : > { %627 = vrot.lane.b32.xlu2 %v1056_v3, %s1373_s17  ;;  %1127 = vmatmul.msk.bf16.vlgmr.msrb.gmra.mxu0 %vm175_vm0, %v1315_v29 }
  0x35   : > { %1147 = vmatmul.msk.bf16.vlgmr.msrb.gmra.mxu1 %vm175_vm0, %v1319_v30 }
  0x39   : > { %878 = vrot.lane.b32.xlu1 %v1126_v15, %s1372_s16 }
  0x3a   : > { %629 = vrot.lane.b32.xlu0 %v1106_v16, %s1373_s17 }
  0x3c   : > { %880 = vrot.lane.b32.xlu2 %v1164_v20, %s1372_s16 }
  0x41   : > { %780 = vrot.lane.b32.xlu1 %v1164_v20, %s1373_s17  ;;  %v1335_v20 = vld [vmem:[%s1569_s1 + $0xd0] sm:$0xff] }
  0x42   : > { %778 = vrot.lane.b32.xlu0 %v1126_v15, %s1373_s17  ;;  %v1328_v15 = vld [vmem:[%s1569_s1 + $0x98] sm:$0xff] }
  0x44   : > { %928 = vrot.lane.b32.xlu2 %v1146_v10, %s1372_s16  ;;  %1128 = vmatmul.msk.bf16.gmra.mxu0 %vm175_vm0, %v1316_v34  ;;  %v1337_v34 = vld [vmem:[%s1569_s1 + $0xe0] sm:$0xff] }
  0x45   : > { %1148 = vmatmul.msk.bf16.gmra.mxu1 %vm175_vm0, %v1320_v36 }
  0x49   : > { %828 = vrot.lane.b32.xlu1 %v1146_v10, %s1373_s17  ;;  %v1324_v10 = vld [vmem:[%s1569_s1 + $0x78] sm:$0xff] }
  0x4a   : > { %930 = vrot.lane.b32.xlu0 %v1182_v23, %s1372_s16 }
  0x4c   : > { %830 = vrot.lane.b32.xlu2 %v1182_v23, %s1373_s17 }
  0x6e   : > { %v474_v28 = vpop.permute.xlu2 %473 }
  0x76   : > { %v476_v31 = vpop.permute.xlu2 %475 }
  0x77   : > { %v477_v40 = vsel %vm264_vm1, %v474_v28, %v476_v31 }
  0x7e   : > { %v678_v35 = vpop.permute.xlu2 %677 }
  0x83   : > { %v315_v32 = vpop.permute.xlu1 %314 }
  0x84   : > { %v261_v33 = vpop.permute.xlu0 %260 }
  0x86   : > { %v579_v45 = vpop.permute.xlu2 %578 }
  0x8b   : > { %v317_v37 = vpop.permute.xlu1 %316 }
  0x8c   : > { %v263_v38 = vpop.permute.xlu0 %262  ;;  %v318_v39 = vsel %vm264_vm1, %v315_v32, %v317_v37 }
  0x8d   : > { %v265_v42 = vsel %vm264_vm1, %v261_v33, %v263_v38  ;;  %333 = vmatpush.bf16.msra.mxu3 %v318_v39  ;;  %v1339_v33 = vld [vmem:[%s1569_s1 + $0xf0] sm:$0xff]  ;;  %v1340_v38 = vld [vmem:[%s1569_s1 + $0xf8] sm:$0xff]  ;;  %v1338_v39 = vld [vmem:[%s1569_s1 + $0xe8] sm:$0xff] }
  0x8e   : > { %280 = vmatpush.bf16.msra.mxu2 %v265_v42  ;;  %v628_v55 = vpop.permute.xlu2 %627 }
  0x90   : > { %1107 = vmatmul.msk.bf16.vlgmr.msra.gmra.mxu3 %vm175_vm0, %v1311_v41 }
  0x91   : > { %1089 = vmatmul.msk.bf16.vlgmr.msra.gmra.mxu2 %vm175_vm0, %v1309_v43  ;;  %v191_v21 = vpop.f32.mrf.mxu0 }
  0x92   : > { %492 = vmatpush.bf16.msrb.mxu2 %v477_v40  ;;  %v232_v22 = vpop.f32.mrf.mxu1 }
  0x93   : > { %v529_v44 = vpop.permute.xlu1 %528  ;;  %v233_v23 = vadd.f32 %v232_v22, %v191_v21 }
  0x94   : > { %v527_v46 = vpop.permute.xlu0 %526 }
  0x95   : > { %v530_v47 = vsel %vm264_vm1, %v527_v46, %v529_v44 }
  0x96   : > { %545 = vmatpush.bf16.msrb.mxu3 %v530_v47  ;;  %v881_v59 = vpop.permute.xlu2 %880 }
  0x99   : > { %v193_v27 = vpop.f32.mrf.mxu0 }
  0x9a   : > { %v234_v28 = vpop.f32.mrf.mxu1 }
  0x9b   : > { %v577_v48 = vpop.permute.xlu1 %576  ;;  %v235_v29 = vadd.f32 %v234_v28, %v193_v27 }
  0x9c   : > { %v680_v50 = vpop.permute.xlu0 %679  ;;  %v581_v51 = vsel %vm580_vm2, %v577_v48, %v579_v45 }
  0x9d   : > { %v682_v54 = vsel %vm681_vm3, %v678_v35, %v680_v50  ;;  %596 = vmatpush.bf16.msra.mxu0 %v581_v51 }
  0x9e   : > { %697 = vmatpush.bf16.msra.mxu2 %v682_v54  ;;  %v929_v4 = vpop.permute.xlu2 %928 }
  0xa0   : > { %1108 = vmatmul.msk.bf16.gmra.mxu3 %vm175_vm0, %v1312_v49  ;;  %1197 = vmatmul.msk.bf16.vlgmr.msra.gmra.mxu0 %vm175_vm0, %v1325_v52 }
  0xa1   : > { %1090 = vmatmul.msk.bf16.gmra.mxu2 %vm175_vm0, %v1310_v53  ;;  %v196_v30 = vpop.f32.mrf.mxu0 }
  0xa2   : > { %v237_v31 = vpop.f32.mrf.mxu1 }
  0xa3   : > { %v731_v56 = vpop.permute.xlu1 %730  ;;  %v238_v32 = vadd.f32 %v237_v31, %v196_v30 }
  0xa4   : > { %v729_v57 = vpop.permute.xlu0 %728 }
  0xa5   : > { %v732_v58 = vsel %vm681_vm3, %v729_v57, %v731_v56 }
  0xa6   : > { %747 = vmatpush.bf16.msra.mxu3 %v732_v58  ;;  %v831_v8 = vpop.permute.xlu2 %830 }
  0xa9   : > { %v198_v35 = vpop.f32.mrf.mxu0 }
  0xaa   : > { %v239_v36 = vpop.f32.mrf.mxu1 }
  0xab   : > { %v879_v60 = vpop.permute.xlu1 %878  ;;  %v240_v37 = vadd.f32 %v239_v36, %v198_v35 }
  0xac   : > { %v630_v62 = vpop.permute.xlu0 %629  ;;  %v882_v3 = vsel %vm681_vm3, %v879_v60, %v881_v59 }
  0xad   : > { %v631_v1 = vsel %vm580_vm2, %v628_v55, %v630_v62 }
  0xae   : > { %646 = vmatpush.bf16.msra.mxu1 %v631_v1 }
  0xb0   : > { %1183 = vmatmul.msk.bf16.vlgmr.msrb.gmra.mxu3 %vm175_vm0, %v1323_v61  ;;  %1198 = vmatmul.msk.bf16.gmra.mxu0 %vm175_vm0, %v1326_v63 }
  0xb1   : > { %1165 = vmatmul.msk.bf16.vlgmr.msrb.gmra.mxu2 %vm175_vm0, %v1321_v0  ;;  %1211 = vmatmul.msk.bf16.vlgmr.msra.gmra.mxu1 %vm175_vm0, %v1327_v2  ;;  %v388_v43 = vpop.f32.mrf.mxu0 }
  0xb2   : > { %897 = vmatpush.bf16.msrb.mxu2 %v882_v3  ;;  %v441_v45 = vpop.f32.mrf.mxu1 }
  0xb3   : > { %v781_v5 = vpop.permute.xlu1 %780 }
  0xb4   : > { %v779_v6 = vpop.permute.xlu0 %778 }
  0xb5   : > { %v782_v7 = vsel %vm580_vm2, %v779_v6, %v781_v5 }
  0xb6   : > { %797 = vmatpush.bf16.msrb.mxu0 %v782_v7 }
  0xb9   : > { %v390_v50 = vpop.f32.mrf.mxu0 }
  0xba   : > { %v443_v52 = vpop.f32.mrf.mxu1 }
  0xbb   : > { %v829_v9 = vpop.permute.xlu1 %828 }
  0xbc   : > { %v931_v11 = vpop.permute.xlu0 %930  ;;  %v832_v12 = vsel %vm580_vm2, %v829_v9, %v831_v8 }
  0xbd   : > { %v932_v16 = vsel %vm681_vm3, %v929_v4, %v931_v11  ;;  %847 = vmatpush.bf16.msrb.mxu1 %v832_v12 }
  0xbe   : > { %947 = vmatpush.bf16.msrb.mxu3 %v932_v16 }
  0xc0   : > { %1184 = vmatmul.msk.bf16.gmra.mxu3 %vm175_vm0, %v1324_v10  ;;  %1253 = vmatmul.msk.bf16.vlgmr.msrb.gmra.mxu0 %vm175_vm0, %v1333_v13 }
  0xc1   : > { %1166 = vmatmul.msk.bf16.gmra.mxu2 %vm175_vm0, %v1322_v14  ;;  %1212 = vmatmul.msk.bf16.gmra.mxu1 %vm175_vm0, %v1328_v15  ;;  %v393_v56 = vpop.f32.mrf.mxu0 }
  0xc2   : > { %v446_v60 = vpop.f32.mrf.mxu1 }
  0xc9   : > { %v395_v62 = vpop.f32.mrf.mxu0 }
  0xca   : > { %v448_v1 = vpop.f32.mrf.mxu1 }
  0xd0   : > { %1239 = vmatmul.msk.bf16.vlgmr.msra.gmra.mxu3 %vm175_vm0, %v1331_v17  ;;  %1254 = vmatmul.msk.bf16.gmra.mxu0 %vm175_vm0, %v1334_v18 }
  0xd1   : > { %1225 = vmatmul.msk.bf16.vlgmr.msra.gmra.mxu2 %vm175_vm0, %v1329_v19  ;;  %1267 = vmatmul.msk.bf16.vlgmr.msrb.gmra.mxu1 %vm175_vm0, %v1335_v20 }
  0xe0   : > { %1240 = vmatmul.msk.bf16.gmra.mxu3 %vm175_vm0, %v1332_v24 }
  0xe1   : > { %1226 = vmatmul.msk.bf16.gmra.mxu2 %vm175_vm0, %v1330_v25  ;;  %1268 = vmatmul.msk.bf16.gmra.mxu1 %vm175_vm0, %v1336_v26 }
  0xf0   : > { %1295 = vmatmul.msk.bf16.vlgmr.msrb.gmra.mxu3 %vm175_vm0, %v1339_v33 }
  0xf1   : > { %1281 = vmatmul.msk.bf16.vlgmr.msrb.gmra.mxu2 %vm175_vm0, %v1337_v34 }
 0x100   : > { %1296 = vmatmul.msk.bf16.gmra.mxu3 %vm175_vm0, %v1340_v38 }
 0x101   : > { %1282 = vmatmul.msk.bf16.gmra.mxu2 %vm175_vm0, %v1338_v39 }
 0x113   : > { %v335_v40 = vpop.f32.mrf.mxu3 }
 0x114   : > { %v282_v41 = vpop.f32.mrf.mxu2 }
 0x115   : > { %v292_v42 = vadd.f32 %v282_v41, %v233_v23 }
 0x117   : > { %v345_v44 = vadd.f32 %v335_v40, %v292_v42 }
 0x119   : > { %v398_v16 = vadd.f32 %v388_v43, %v345_v44 }
 0x11b   : > { %v337_v46 = vpop.f32.mrf.mxu3  ;;  %v451_v17 = vadd.f32 %v441_v45, %v398_v16 }
 0x11c   : > { %v284_v47 = vpop.f32.mrf.mxu2 }
 0x11d   : > { %v293_v48 = vadd.f32 %v284_v47, %v235_v29  ;;  %v598_v4 = vpop.f32.mrf.mxu0 }
 0x11f   : > { %v346_v49 = vadd.f32 %v337_v46, %v293_v48 }
 0x121   : > { %v399_v18 = vadd.f32 %v390_v50, %v346_v49 }
 0x123   : > { %v340_v51 = vpop.f32.mrf.mxu3  ;;  %v452_v23 = vadd.f32 %v443_v52, %v399_v18 }
 0x124   : > { %v287_v53 = vpop.f32.mrf.mxu2 }
 0x125   : > { %v294_v54 = vadd.f32 %v287_v53, %v238_v32  ;;  %v600_v8 = vpop.f32.mrf.mxu0 }
 0x127   : > { %v347_v55 = vadd.f32 %v340_v51, %v294_v54 }
 0x129   : > { %v400_v32 = vadd.f32 %v393_v56, %v347_v55 }
 0x12b   : > { %v342_v57 = vpop.f32.mrf.mxu3  ;;  %v453_v36 = vadd.f32 %v446_v60, %v400_v32 }
 0x12c   : > { %v289_v58 = vpop.f32.mrf.mxu2 }
 0x12d   : > { %v295_v59 = vadd.f32 %v289_v58, %v240_v37  ;;  %v603_v12 = vpop.f32.mrf.mxu0 }
 0x12e   : > { %v648_v5 = vpop.f32.mrf.mxu1 }
 0x12f   : > { %v348_v61 = vadd.f32 %v342_v57, %v295_v59 }
 0x131   : > { %v401_v37 = vadd.f32 %v395_v62, %v348_v61 }
 0x133   : > { %v547_v63 = vpop.f32.mrf.mxu3  ;;  %v454_v43 = vadd.f32 %v448_v1, %v401_v37 }
 0x134   : > { %v494_v0 = vpop.f32.mrf.mxu2 }
 0x135   : > { %v605_v19 = vpop.f32.mrf.mxu0  ;;  %v504_v22 = vadd.f32 %v494_v0, %v451_v17 }
 0x136   : > { %v650_v10 = vpop.f32.mrf.mxu1 }
 0x137   : > { %v557_v25 = vadd.f32 %v547_v63, %v504_v22 }
 0x139   : > { %v608_v29 = vadd.f32 %v598_v4, %v557_v25 }
 0x13b   : > { %v549_v2 = vpop.f32.mrf.mxu3  ;;  %v658_v33 = vadd.f32 %v648_v5, %v608_v29 }
 0x13c   : > { %v496_v3 = vpop.f32.mrf.mxu2 }
 0x13d   : > { %v505_v26 = vadd.f32 %v496_v3, %v452_v23  ;;  %v799_v31 = vpop.f32.mrf.mxu0 }
 0x13e   : > { %v653_v15 = vpop.f32.mrf.mxu1 }
 0x13f   : > { %v558_v30 = vadd.f32 %v549_v2, %v505_v26 }
 0x141   : > { %v609_v34 = vadd.f32 %v600_v8, %v558_v30 }
 0x143   : > { %v552_v6 = vpop.f32.mrf.mxu3  ;;  %v659_v41 = vadd.f32 %v650_v10, %v609_v34 }
 0x144   : > { %v499_v7 = vpop.f32.mrf.mxu2 }
 0x145   : > { %v506_v42 = vadd.f32 %v499_v7, %v453_v36  ;;  %v801_v46 = vpop.f32.mrf.mxu0 }
 0x146   : > { %v655_v24 = vpop.f32.mrf.mxu1 }
 0x147   : > { %v559_v47 = vadd.f32 %v552_v6, %v506_v42 }
 0x149   : > { %v610_v54 = vadd.f32 %v603_v12, %v559_v47 }
 0x14b   : > { %v554_v9 = vpop.f32.mrf.mxu3  ;;  %v660_v58 = vadd.f32 %v653_v15, %v610_v54 }
 0x14c   : > { %v501_v11 = vpop.f32.mrf.mxu2 }
 0x14d   : > { %v507_v48 = vadd.f32 %v501_v11, %v454_v43  ;;  %v804_v60 = vpop.f32.mrf.mxu0 }
 0x14e   : > { %v849_v35 = vpop.f32.mrf.mxu1 }
 0x14f   : > { %v560_v55 = vadd.f32 %v554_v9, %v507_v48 }
 0x151   : > { %v611_v59 = vadd.f32 %v605_v19, %v560_v55 }
 0x153   : > { %v749_v13 = vpop.f32.mrf.mxu3  ;;  %v661_v2 = vadd.f32 %v655_v24, %v611_v59 }
 0x154   : > { %v699_v14 = vpop.f32.mrf.mxu2 }
 0x155   : > { %v709_v38 = vadd.f32 %v699_v14, %v658_v33 }
 0x156   : > { %v851_v52 = vpop.f32.mrf.mxu1 }
 0x157   : > { %v759_v44 = vadd.f32 %v749_v13, %v709_v38  ;;  %v806_v13 = vpop.f32.mrf.mxu0 }
 0x159   : > { %v809_v49 = vadd.f32 %v799_v31, %v759_v44 }
 0x15b   : > { %v751_v20 = vpop.f32.mrf.mxu3  ;;  %v859_v56 = vadd.f32 %v849_v35, %v809_v49 }
 0x15c   : > { %v701_v21 = vpop.f32.mrf.mxu2 }
 0x15d   : > { %v710_v45 = vadd.f32 %v701_v21, %v659_v41 }
 0x15e   : > { %v854_v5 = vpop.f32.mrf.mxu1 }
 0x15f   : > { %v760_v50 = vadd.f32 %v751_v20, %v710_v45 }
 0x161   : > { %v810_v57 = vadd.f32 %v801_v46, %v760_v50 }
 0x163   : > { %v754_v27 = vpop.f32.mrf.mxu3  ;;  %v860_v62 = vadd.f32 %v851_v52, %v810_v57 }
 0x164   : > { %v704_v28 = vpop.f32.mrf.mxu2 }
 0x165   : > { %v711_v63 = vadd.f32 %v704_v28, %v660_v58 }
 0x166   : > { %v856_v19 = vpop.f32.mrf.mxu1 }
 0x167   : > { %v761_v6 = vadd.f32 %v754_v27, %v711_v63 }
 0x169   : > { %v811_v11 = vadd.f32 %v804_v60, %v761_v6 }
 0x16b   : > { %v756_v39 = vpop.f32.mrf.mxu3  ;;  %v861_v17 = vadd.f32 %v854_v5, %v811_v11 }
 0x16c   : > { %v706_v40 = vpop.f32.mrf.mxu2 }
 0x16d   : > { %v712_v7 = vadd.f32 %v706_v40, %v661_v2 }
 0x16f   : > { %v762_v12 = vadd.f32 %v756_v39, %v712_v7 }
 0x171   : > { %v812_v18 = vadd.f32 %v806_v13, %v762_v12 }
 0x173   : > { %v949_v51 = vpop.f32.mrf.mxu3  ;;  %v862_v21 = vadd.f32 %v856_v19, %v812_v18 }
 0x174   : > { %v899_v53 = vpop.f32.mrf.mxu2 }
 0x175   : > { %v909_v61 = vadd.f32 %v899_v53, %v859_v56 }
 0x177   : > { %v959_v3 = vadd.f32 %v949_v51, %v909_v61 }
 0x179   : > { %v963_v9 = vmax.f32 %v959_v3, 0.0 }
 0x17b   : > { %v951_v0 = vpop.f32.mrf.mxu3 }
 0x17c   : > { %v901_v1 = vpop.f32.mrf.mxu2 }
 0x17d   : > { %v910_v4 = vadd.f32 %v901_v1, %v860_v62 }
 0x17f   : > { %v960_v8 = vadd.f32 %v951_v0, %v910_v4 }
 0x181   : > { %v964_v10 = vmax.f32 %v960_v8, 0.0 }
 0x183   : > { %v1344_v14 = vpack.c.bf16 %v964_v10, %v963_v9  ;;  %v954_v16 = vpop.f32.mrf.mxu3 }
 0x184   : > { %v904_v15 = vpop.f32.mrf.mxu2 }
 0x185   : > { %1345 = vst [vmem:[%s143_s5] sm:$0xff] %v1344_v14   ;;  %v911_v20 = vadd.f32 %v904_v15, %v861_v17 }
 0x187   : > { %v961_v23 = vadd.f32 %v954_v16, %v911_v20 }
 0x189   : > { %v965_v27 = vmax.f32 %v961_v23, 0.0 }
 0x18b   : > { %v956_v25 = vpop.f32.mrf.mxu3 }
 0x18c   : > { %v906_v22 = vpop.f32.mrf.mxu2 }
 0x18d   : > { %v912_v24 = vadd.f32 %v906_v22, %v862_v21 }
 0x18f   : > { %v962_v26 = vadd.f32 %v956_v25, %v912_v24 }
 0x191   : > { %v966_v28 = vmax.f32 %v962_v26, 0.0 }
 0x193   : > { %v1349_v29 = vpack.c.bf16 %v966_v28, %v965_v27 }
 0x195   : > { %1351 = vst [vmem:[%s143_s5 + $0x8] sm:$0xff] %v1349_v29  }
 0x196 PF: > { %s12_s9 = sadd.s32 1, %s1369_s9  }
 0x197   : > { %p9_p4 = scmp.ge.s32.totalorder %s12_s9, 4  }
 0x199   :  { %11 = sbr.rel (!%p9_p4) target bundleno = 1 (0x1), region = 76 }

// kernel: dc_discriminator_forward.9
= control target key start
LH: loop header
LB: loop body
LE: loop exit
PB: predicated region body
PF: predicated region fallthrough
CT: control target
= control target key end

     0   :  { %vm62_vm0 = vcmask 1041408   ;;  %vm64_vm1 = vcmask 1045508   ;;  %vm66_vm2 = vcmask 1043456   ;;  %vm118_vm3 = vcmask 1024   ;;  %s171_s0 = inlined_call_operand.vmem [shape: bf16[2,1024], index: 0, kind: input, shape index: {}]   ;;  %s172_s1 = inlined_call_operand.vmem [shape: bf16[1,1024], index: 1, kind: input, shape index: {}]   ;;  %s173_s2 = inlined_call_operand.<no memory space> [shape: f32[1,1], index: 2, kind: input, shape index: {}]   ;;  %s174_s3 = inlined_call_operand.vmem [shape: f32[2,1], index: 3, kind: output, shape index: {}]  }
   0x1   :  { %v16_v0 = vld [vmem:[%s171_s0] sm:$0xff]  ;;  %v8_v24 = vstv %s173_s2 }
   0x2   :  { %v19_v1 = vld [vmem:[%s172_s1] sm:$0xff]  ;;  %v17_v4 = vunpack.c.l.bf16 %v16_v0  ;;  %v18_v25 = vunpack.c.h.bf16 %v16_v0  ;;  %9 = vst [vmem:[#allocation2] sm:$0x1] %v8_v24 }
   0x3   :  { %v20_v2 = vunpack.c.l.bf16 %v19_v1  ;;  %v21_v3 = vunpack.c.h.bf16 %v19_v1 }
   0x5   :  { %v24_v5 = vperm.slane %v20_v2, 0  ;;  %v25_v6 = vperm.slane %v20_v2, 2  ;;  %v26_v7 = vperm.slane %v20_v2, 4  ;;  %v27_v8 = vperm.slane %v20_v2, 6 }
   0x6   :  { %v28_v9 = vperm.slane %v21_v3, 0  ;;  %v29_v10 = vperm.slane %v21_v3, 2  ;;  %v30_v11 = vperm.slane %v21_v3, 4  ;;  %v31_v12 = vperm.slane %v21_v3, 6 }
   0x7   :  { %v40_v13 = vperm.slane %v24_v5, 0  ;;  %v41_v14 = vperm.slane %v25_v6, 0  ;;  %v42_v15 = vperm.slane %v26_v7, 0  ;;  %v43_v16 = vperm.slane %v27_v8, 0 }
   0x8   :  { %v44_v17 = vperm.slane %v28_v9, 0  ;;  %v45_v18 = vperm.slane %v29_v10, 0  ;;  %v46_v19 = vperm.slane %v30_v11, 0  ;;  %v47_v20 = vperm.slane %v31_v12, 0 }
   0x9   :  { %v56_v21 = vrot.slane %v41_v14, 6  ;;  %v57_v22 = vrot.slane %v42_v15, 4  ;;  %v58_v23 = vrot.slane %v43_v16, 2  ;;  %v124_v60 = vld [vmem:[#allocation2] ss:$0 sm:$0xff] }
   0xa   :  { %v59_v26 = vrot.slane %v45_v18, 6  ;;  %v60_v27 = vrot.slane %v46_v19, 4  ;;  %v61_v28 = vrot.slane %v47_v20, 2 }
   0xb   :  { %v63_v29 = vsel %vm62_vm0, %v40_v13, %v56_v21  ;;  %v65_v30 = vsel %vm64_vm1, %v57_v22, %v58_v23 }
   0xc   :  { %v67_v31 = vsel %vm66_vm2, %v63_v29, %v65_v30  ;;  %v68_v32 = vsel %vm62_vm0, %v44_v17, %v59_v26  ;;  %v69_v33 = vsel %vm64_vm1, %v60_v27, %v61_v28 }
   0xd   :  { %v70_v34 = vsel %vm66_vm2, %v68_v32, %v69_v33  ;;  %v73_v35 = vmul.f32 %v67_v31, %v17_v4 }
   0xe   :  { %v74_v36 = vmul.f32 %v70_v34, %v18_v25 }
   0xf   :  { %77 = vst [vmem:[#allocation1] ss:$4 sm:$0xff] %v73_v35 }
  0x10   :  { %79 = vst [vmem:[#allocation1 + $0x20] ss:$4 sm:$0xff] %v74_v36 }
  0x16   :  { %v80_v37 = vld.sshfl [vmem:[#allocation1] sm:$0xff pattern:$0x73625140]  ;;  %v81_v38 = vld.sshfl [vmem:[#allocation1 + $0x8] sm:$0xff pattern:$0x73625140] }
  0x17   :  { %v82_v39 = vld.sshfl [vmem:[#allocation1 + $0x10] sm:$0xff pattern:$0x73625140]  ;;  %v83_v40 = vld.sshfl [vmem:[#allocation1 + $0x18] sm:$0xff pattern:$0x73625140] }
  0x18   :  { %v96_v41 = vsel %vm62_vm0, %v80_v37, 0.0  ;;  %v97_v42 = vsel %vm62_vm0, %v81_v38, 0.0  ;;  %v99_v43 = vsel %vm62_vm0, %v82_v39, 0.0  ;;  %v84_v44 = vld.sshfl [vmem:[#allocation1 + $0x20] sm:$0xff pattern:$0x73625140] }
  0x19   :  { %v98_v45 = vadd.f32 %v97_v42, %v96_v41  ;;  %v101_v46 = vsel %vm62_vm0, %v83_v40, 0.0  ;;  %v85_v47 = vld.sshfl [vmem:[#allocation1 + $0x28] sm:$0xff pattern:$0x73625140]  ;;  %v103_v49 = vsel %vm62_vm0, %v84_v44, 0.0 }
  0x1a   :  { %v86_v50 = vld.sshfl [vmem:[#allocation1 + $0x30] sm:$0xff pattern:$0x73625140]  ;;  %v105_v52 = vsel %vm62_vm0, %v85_v47, 0.0 }
  0x1b   :  { %v100_v48 = vadd.f32 %v99_v43, %v98_v45  ;;  %v87_v53 = vld.sshfl [vmem:[#allocation1 + $0x38] sm:$0xff pattern:$0x73625140]  ;;  %v107_v55 = vsel %vm62_vm0, %v86_v50, 0.0 }
  0x1c   :  { %v109_v57 = vsel %vm62_vm0, %v87_v53, 0.0 }
  0x1d   :  { %v102_v51 = vadd.f32 %v101_v46, %v100_v48 }
  0x1f   :  { %v104_v54 = vadd.f32 %v103_v49, %v102_v51 }
  0x21   :  { %v106_v56 = vadd.f32 %v105_v52, %v104_v54 }
  0x23   :  { %v108_v58 = vadd.f32 %v107_v55, %v106_v56 }
  0x25   :  { %v110_v59 = vadd.f32 %v109_v57, %v108_v58 }
  0x27   :  { %111 = vadd.xlane.f32.xlu0 %v110_v59 }
  0x9a   :  { %v112_v61 = vpop.xlane.xlu0 %111 }
  0x9b   :  { %v117_v62 = vadd.f32 %v124_v60, %v112_v61 }
  0x9d   :  { %119 = vst.msk [vmem:[%s174_s3] sm:$0x3] %vm118_vm3, %v117_v62 }

// kernel: dc_discriminator_forward.8
= control target key start
LH: loop header
LB: loop body
LE: loop exit
PB: predicated region body
PF: predicated region fallthrough
CT: control target
= control target key end

     0   :  { %s2363_s9 = smov 0   ;;  %s2914_s0 = inlined_call_operand.vmem [shape: bf16[2,2,2,32,256], index: 0, kind: input, shape index: {}]   ;;  %s2915_s1 = inlined_call_operand.vmem [shape: bf16[16,64,32], index: 1, kind: input, shape index: {}]   ;;  %s2916_s2 = inlined_call_operand.vmem [shape: bf16[2,64,128], index: 2, kind: output, shape index: {}]  }
   0x1 LB: > { %s1694_s10 = sadd.s32 4294967295, %s2343_s9   ;;  %p1698_p0 = scmp.ge.s32.totalorder %s2343_s9, 1  ;;  %s2343_s9 = sphi %s2363_s9, %s12_s9  }
   0x2   : > { %p112_p1 = scmp.lt.s32.totalorder %s2343_s9, 3 }
   0x4   : > { %p113_p2 = pnand %p1698_p0, %p112_p1 }
   0x5   : > { %p134_p3 = scmp.lt.s32.totalorder (!%p113_p2), %s1694_s10, 1  ;;  %s2345_s15 = smov (!%p113_p2), 127  }
   0x6   : > { %116 = sbr.rel (%p113_p2) target bundleno = 540 (0x21c), region = 28  ;;  %s2346_s20 = smov (!%p113_p2), 122  }
   0x7   : > { %s2347_s21 = smov (!%p113_p2), 123  }
   0xb   : > { %s2918_s10 = smov (!%p134_p3, %s1694_s10), 1  ;;  %v2235_v42 = vld [vmem:[%s2915_s1 + $0x20] sm:$0xff]  ;;  %vm203_vm0 = vcmask 261120   ;;  %v2236_v50 = vld [vmem:[%s2915_s1 + $0x28] sm:$0xff]  ;;  %v2237_v52 = vld [vmem:[%s2915_s1 + $0x30] sm:$0xff]  ;;  %vm361_vm1 = vcmask 1039360  }
   0xc   : > { %s2221_s11 = sshll.u32 %s2918_s10, 7  ;;  %v2227_v48 = vld [vmem:[%s2915_s1] sm:$0xff]  ;;  %v2228_v51 = vld [vmem:[%s2915_s1 + $0x8] sm:$0xff]  ;;  %v2229_v53 = vld [vmem:[%s2915_s1 + $0x10] sm:$0xff]  ;;  %vm1111_vm2 = vcmask 998400   ;;  %vm930_vm3 = vcmask 1006592  }
   0xd   : > { %s2377_s14 = scalar_lea.vmem %s2914_s0, %s2221_s11  ;;  %v2238_v54 = vld [vmem:[%s2915_s1 + $0x38] sm:$0xff]  ;;  %v2251_v57 = vld [vmem:[%s2915_s1 + $0x80] sm:$0xff]  ;;  %s2222_s16 = sshll.u32 %s2918_s10, 5 }
   0xe   : > { %v1737_v0 = vld [vmem:[%s2377_s14 + $0x30] sm:$0xf]  ;;  %v2234_v1 = vld [vmem:[%s2377_s14 + $0x34] sm:$0xf0]  ;;  %v2233_v6 = vld [vmem:[%s2377_s14 + $0x34] sm:$0xf]  ;;  %s2895_s19 = scalar_lea.vmem %s2916_s2, %s2222_s16 }
   0xf   : > { %v1765_v2 = vld [vmem:[%s2377_s14 + $0x10] sm:$0xf]  ;;  %v2382_v3 = vor.u32 %v2234_v1, %v1737_v0  ;;  %v2226_v4 = vld [vmem:[%s2377_s14 + $0x14] sm:$0xf0]  ;;  %v1835_v7 = vld [vmem:[%s2377_s14 + $0x38] sm:$0xf0] }
  0x10   : > { %v2385_v5 = vor.u32 %v2226_v4, %v1765_v2  ;;  %v1733_v8 = vld [vmem:[%s2377_s14 + $0x20] sm:$0xf]  ;;  %v2232_v9 = vld [vmem:[%s2377_s14 + $0x24] sm:$0xf0]  ;;  %v2225_v10 = vld [vmem:[%s2377_s14 + $0x14] sm:$0xf]  ;;  %v2407_v18 = vor.u32 %v2233_v6, %v1835_v7 }
  0x11   : > { %454 = vrot.lane.b32.xlu1 %v2382_v3, %s2345_s15  ;;  %222 = vmatpush.bf16.msra.mxu0 %v2382_v3  ;;  %v1761_v11 = vld [vmem:[%s2377_s14] sm:$0xf]  ;;  %v2224_v12 = vld [vmem:[%s2377_s14 + $0x4] sm:$0xf0]  ;;  %v1799_v13 = vld [vmem:[%s2377_s14 + $0x18] sm:$0xf0]  ;;  %v2401_v14 = vor.u32 %v2232_v9, %v1733_v8 }
  0x12   : > { %357 = vrot.lane.b32.xlu0 %v2385_v5, %s2345_s15  ;;  %295 = vmatpush.bf16.msra.mxu1 %v2385_v5  ;;  %v2403_v15 = vor.u32 %v2224_v12, %v1761_v11  ;;  %v1917_v16 = vld [vmem:[%s2377_s14 + $0x70] sm:$0xf]  ;;  %v2258_v17 = vld [vmem:[%s2377_s14 + $0x74] sm:$0xf0]  ;;  %v2223_v20 = vld [vmem:[%s2377_s14 + $0x4] sm:$0xf]  ;;  %v1802_v21 = vor.u32 %v2225_v10, %v1799_v13 }
  0x13   : > { %v2411_v19 = vor.u32 %v2258_v17, %v1917_v16  ;;  %v1795_v22 = vld [vmem:[%s2377_s14 + $0x8] sm:$0xf0]  ;;  %v1877_v23 = vld [vmem:[%s2377_s14 + $0x50] sm:$0xf]  ;;  %v2250_v24 = vld [vmem:[%s2377_s14 + $0x54] sm:$0xf0] }
  0x14   : > { %353 = vrot.lane.b32.xlu2 %v2403_v15, %s2345_s15  ;;  %v2419_v25 = vor.u32 %v2250_v24, %v1877_v23  ;;  %v1873_v26 = vld [vmem:[%s2377_s14 + $0x40] sm:$0xf]  ;;  %v2248_v27 = vld [vmem:[%s2377_s14 + $0x44] sm:$0xf0]  ;;  %v1798_v28 = vor.u32 %v2223_v20, %v1795_v22  ;;  %v2231_v29 = vld [vmem:[%s2377_s14 + $0x24] sm:$0xf] }
  0x15   : > { %223 = vmatpush.bf16.msra.mxu0 %v2401_v14  ;;  %v1831_v30 = vld [vmem:[%s2377_s14 + $0x28] sm:$0xf0]  ;;  %v2430_v31 = vor.u32 %v2248_v27, %v1873_v26  ;;  %v2249_v33 = vld [vmem:[%s2377_s14 + $0x54] sm:$0xf]  ;;  %v1951_v34 = vld [vmem:[%s2377_s14 + $0x58] sm:$0xf0] }
  0x16   : > { %296 = vmatpush.bf16.msra.mxu1 %v2403_v15  ;;  %v1834_v32 = vor.u32 %v2231_v29, %v1831_v30  ;;  %v1954_v35 = vor.u32 %v2249_v33, %v1951_v34  ;;  %v2257_v36 = vld [vmem:[%s2377_s14 + $0x74] sm:$0xf]  ;;  %v1987_v37 = vld [vmem:[%s2377_s14 + $0x78] sm:$0xf0]  ;;  %v2247_v39 = vld [vmem:[%s2377_s14 + $0x44] sm:$0xf] }
  0x17   : > { %v1990_v38 = vor.u32 %v2257_v36, %v1987_v37  ;;  %v1947_v40 = vld [vmem:[%s2377_s14 + $0x48] sm:$0xf0]  ;;  %v1913_v43 = vld [vmem:[%s2377_s14 + $0x60] sm:$0xf]  ;;  %v2256_v44 = vld [vmem:[%s2377_s14 + $0x64] sm:$0xf0] }
  0x18   : > { %v2448_v41 = vor.u32 %v2247_v39, %v1947_v40  ;;  %v2255_v45 = vld [vmem:[%s2377_s14 + $0x64] sm:$0xf]  ;;  %v1983_v46 = vld [vmem:[%s2377_s14 + $0x68] sm:$0xf0]  ;;  %v1914_v47 = vor.u32 %v2256_v44, %v1913_v43  ;;  %1739 = vmatmul.msk.bf16.vlgmr.msra.gmra.mxu0 %vm203_vm0, %v2235_v42  ;;  %v2230_v55 = vld [vmem:[%s2915_s1 + $0x18] sm:$0xff] }
  0x19   : > { %456 = vrot.lane.b32.xlu1 %v2407_v18, %s2345_s15  ;;  %575 = vmatpush.bf16.msrb.mxu0 %v2419_v25  ;;  %v2468_v49 = vor.u32 %v2255_v45, %v1983_v46  ;;  %v2259_v59 = vld [vmem:[%s2915_s1 + $0xa0] sm:$0xff]  ;;  %v2252_v2 = vld [vmem:[%s2915_s1 + $0x88] sm:$0xff]  ;;  %v2253_v16 = vld [vmem:[%s2915_s1 + $0x90] sm:$0xff] }
  0x1a   : > { %670 = vmatpush.bf16.msrb.mxu1 %v2411_v19  ;;  %359 = vrot.lane.b32.xlu0 %v1802_v21, %s2345_s15  ;;  %v2260_v4 = vld [vmem:[%s2915_s1 + $0xa8] sm:$0xff]  ;;  %v2239_v6 = vld [vmem:[%s2915_s1 + $0x40] sm:$0xff]  ;;  %v2242_v45 = vld [vmem:[%s2915_s1 + $0x58] sm:$0xff] }
  0x1b   : > { %1767 = vmatmul.msk.bf16.vlgmr.msra.gmra.mxu1 %vm203_vm0, %v2227_v48  ;;  %v2243_v11 = vld [vmem:[%s2915_s1 + $0x60] sm:$0xff]  ;;  %v2244_v22 = vld [vmem:[%s2915_s1 + $0x68] sm:$0xff] }
  0x1c   : > { %355 = vrot.lane.b32.xlu2 %v1798_v28, %s2345_s15 }
  0x1d   : > { %576 = vmatpush.bf16.msrb.mxu0 %v2430_v31 }
  0x1e   : > { %671 = vmatpush.bf16.msrb.mxu1 %v1914_v47 }
  0x21   : > { %452 = vrot.lane.b32.xlu1 %v1834_v32, %s2345_s15 }
  0x22   : > { %450 = vrot.lane.b32.xlu0 %v2401_v14, %s2345_s15 }
  0x24   : > { %740 = vrot.lane.b32.xlu2 %v2419_v25, %s2345_s15 }
  0x28   : > { %1740 = vmatmul.msk.bf16.gmra.mxu0 %vm203_vm0, %v2236_v50 }
  0x29   : > { %836 = vrot.lane.b32.xlu1 %v2411_v19, %s2345_s15 }
  0x2a   : > { %742 = vrot.lane.b32.xlu0 %v1954_v35, %s2345_s15 }
  0x2b   : > { %1768 = vmatmul.msk.bf16.gmra.mxu1 %vm203_vm0, %v2228_v51 }
  0x2c   : > { %838 = vrot.lane.b32.xlu2 %v1990_v38, %s2345_s15 }
  0x31   : > { %738 = vrot.lane.b32.xlu1 %v2448_v41, %s2345_s15 }
  0x32   : > { %736 = vrot.lane.b32.xlu0 %v2430_v31, %s2345_s15 }
  0x34   : > { %832 = vrot.lane.b32.xlu2 %v1914_v47, %s2345_s15 }
  0x38   : > { %1741 = vmatmul.msk.bf16.gmra.mxu0 %vm203_vm0, %v2237_v52 }
  0x39   : > { %1107 = vrot.lane.b32.xlu1 %v2385_v5, %s2346_s20 }
  0x3a   : > { %834 = vrot.lane.b32.xlu0 %v2468_v49, %s2345_s15 }
  0x3b   : > { %1769 = vmatmul.msk.bf16.gmra.mxu1 %vm203_vm0, %v2229_v53 }
  0x3c   : > { %1109 = vrot.lane.b32.xlu2 %v1802_v21, %s2346_s20 }
  0x41   : > { %928 = vrot.lane.b32.xlu1 %v1802_v21, %s2347_s21 }
  0x42   : > { %926 = vrot.lane.b32.xlu0 %v2385_v5, %s2347_s21 }
  0x44   : > { %1198 = vrot.lane.b32.xlu2 %v2382_v3, %s2346_s20 }
  0x48   : > { %1742 = vmatmul.msk.bf16.gmra.mxu0 %vm203_vm0, %v2238_v54 }
  0x49   : > { %1017 = vrot.lane.b32.xlu1 %v2382_v3, %s2347_s21 }
  0x4a   : > { %1200 = vrot.lane.b32.xlu0 %v2407_v18, %s2346_s20 }
  0x4b   : > { %1770 = vmatmul.msk.bf16.gmra.mxu1 %vm203_vm0, %v2230_v55 }
  0x4c   : > { %1019 = vrot.lane.b32.xlu2 %v2407_v18, %s2347_s21  ;;  %v2261_v18 = vld [vmem:[%s2915_s1 + $0xb0] sm:$0xff] }
  0x51   : > { %1105 = vrot.lane.b32.xlu1 %v1798_v28, %s2346_s20 }
  0x52   : > { %1103 = vrot.lane.b32.xlu0 %v2403_v15, %s2346_s20 }
  0x54   : > { %922 = vrot.lane.b32.xlu2 %v2403_v15, %s2347_s21 }
  0x58   : > { %1879 = vmatmul.msk.bf16.vlgmr.msrb.gmra.mxu0 %vm203_vm0, %v2251_v57  ;;  %v2271_v57 = vld [vmem:[%s2915_s1 + $0x100] sm:$0xff] }
  0x59   : > { %1194 = vrot.lane.b32.xlu1 %v2401_v14, %s2346_s20 }
  0x5a   : > { %924 = vrot.lane.b32.xlu0 %v1798_v28, %s2347_s21  ;;  %v2254_v28 = vld [vmem:[%s2915_s1 + $0x98] sm:$0xff] }
  0x5b   : > { %1919 = vmatmul.msk.bf16.vlgmr.msrb.gmra.mxu1 %vm203_vm0, %v2259_v59 }
  0x5c   : > { %1196 = vrot.lane.b32.xlu2 %v1834_v32, %s2346_s20 }
  0x61   : > { %1015 = vrot.lane.b32.xlu1 %v1834_v32, %s2347_s21  ;;  %v2241_v32 = vld [vmem:[%s2915_s1 + $0x50] sm:$0xff] }
  0x62   : > { %1013 = vrot.lane.b32.xlu0 %v2401_v14, %s2347_s21 }
  0x64   : > { %1468 = vrot.lane.b32.xlu2 %v2419_v25, %s2346_s20 }
  0x68   : > { %1880 = vmatmul.msk.bf16.gmra.mxu0 %vm203_vm0, %v2252_v2  ;;  %v2275_v2 = vld [vmem:[%s2915_s1 + $0x120] sm:$0xff] }
  0x69   : > { %1288 = vrot.lane.b32.xlu1 %v2419_v25, %s2347_s21 }
  0x6a   : > { %1470 = vrot.lane.b32.xlu0 %v1954_v35, %s2346_s20 }
  0x6b   : > { %1920 = vmatmul.msk.bf16.gmra.mxu1 %vm203_vm0, %v2260_v4 }
  0x6c   : > { %1290 = vrot.lane.b32.xlu2 %v1954_v35, %s2347_s21  ;;  %v2245_v35 = vld [vmem:[%s2915_s1 + $0x70] sm:$0xff] }
  0x6e   : > { %v354_v56 = vpop.permute.xlu2 %353 }
  0x71   : > { %1560 = vrot.lane.b32.xlu1 %v1990_v38, %s2346_s20 }
  0x72   : > { %1558 = vrot.lane.b32.xlu0 %v2411_v19, %s2346_s20 }
  0x74   : > { %1378 = vrot.lane.b32.xlu2 %v2411_v19, %s2347_s21  ;;  %v2240_v19 = vld [vmem:[%s2915_s1 + $0x48] sm:$0xff] }
  0x76   : > { %v356_v58 = vpop.permute.xlu2 %355 }
  0x77   : > { %v362_v5 = vsel %vm361_vm1, %v354_v56, %v356_v58 }
  0x78   : > { %1881 = vmatmul.msk.bf16.gmra.mxu0 %vm203_vm0, %v2253_v16  ;;  %v2264_v16 = vld [vmem:[%s2915_s1 + $0xc8] sm:$0xff] }
  0x79   : > { %1464 = vrot.lane.b32.xlu1 %v2430_v31, %s2346_s20 }
  0x7a   : > { %1380 = vrot.lane.b32.xlu0 %v1990_v38, %s2347_s21 }
  0x7b   : > { %1921 = vmatmul.msk.bf16.gmra.mxu1 %vm203_vm0, %v2261_v18  ;;  %v2276_v18 = vld [vmem:[%s2915_s1 + $0x128] sm:$0xff] }
  0x7c   : > { %1466 = vrot.lane.b32.xlu2 %v2448_v41, %s2346_s20 }
  0x7e   : > { %v741_v62 = vpop.permute.xlu2 %740 }
  0x81   : > { %1286 = vrot.lane.b32.xlu1 %v2448_v41, %s2347_s21 }
  0x82   : > { %1284 = vrot.lane.b32.xlu0 %v2430_v31, %s2347_s21  ;;  %v2262_v31 = vld [vmem:[%s2915_s1 + $0xb8] sm:$0xff] }
  0x83   : > { %v455_v60 = vpop.permute.xlu1 %454 }
  0x84   : > { %v358_v61 = vpop.permute.xlu0 %357  ;;  %1554 = vrot.lane.b32.xlu2 %v1914_v47, %s2346_s20 }
  0x86   : > { %v839_v7 = vpop.permute.xlu2 %838 }
  0x88   : > { %1882 = vmatmul.msk.bf16.gmra.mxu0 %vm203_vm0, %v2254_v28 }
  0x89   : > { %1374 = vrot.lane.b32.xlu1 %v1914_v47, %s2347_s21 }
  0x8a   : > { %1556 = vrot.lane.b32.xlu0 %v2468_v49, %s2346_s20 }
  0x8b   : > { %v457_v63 = vpop.permute.xlu1 %456  ;;  %1922 = vmatmul.msk.bf16.gmra.mxu1 %vm203_vm0, %v2262_v31 }
  0x8c   : > { %v360_v0 = vpop.permute.xlu0 %359  ;;  %v459_v1 = vsel %vm361_vm1, %v455_v60, %v457_v63  ;;  %1376 = vrot.lane.b32.xlu2 %v2468_v49, %s2347_s21  ;;  %v2246_v49 = vld [vmem:[%s2915_s1 + $0x78] sm:$0xff] }
  0x8d   : > { %v363_v3 = vsel %vm361_vm1, %v358_v61, %v360_v0  ;;  %480 = vmatpush.bf16.msra.mxu3 %v459_v1  ;;  %v2263_v61 = vld [vmem:[%s2915_s1 + $0xc0] sm:$0xff] }
  0x8e   : > { %384 = vmatpush.bf16.msra.mxu2 %v363_v3  ;;  %v833_v13 = vpop.permute.xlu2 %832  ;;  %v2267_v0 = vld [vmem:[%s2915_s1 + $0xe0] sm:$0xff] }
  0x92   : > { %385 = vmatpush.bf16.msra.mxu2 %v362_v5 }
  0x93   : > { %v453_v8 = vpop.permute.xlu1 %452 }
  0x94   : > { %v451_v9 = vpop.permute.xlu0 %450 }
  0x95   : > { %1803 = vmatmul.msk.bf16.vlgmr.msra.gmra.mxu2 %vm203_vm0, %v2239_v6  ;;  %v458_v10 = vsel %vm361_vm1, %v451_v9, %v453_v8  ;;  %v225_v38 = vpop.f32.mrf.mxu0  ;;  %v2272_v9 = vld [vmem:[%s2915_s1 + $0x108] sm:$0xff] }
  0x96   : > { %481 = vmatpush.bf16.msra.mxu3 %v458_v10  ;;  %v1110_v24 = vpop.permute.xlu2 %1109 }
  0x98   : > { %v298_v39 = vpop.f32.mrf.mxu1 }
  0x99   : > { %1839 = vmatmul.msk.bf16.vlgmr.msra.gmra.mxu3 %vm203_vm0, %v2243_v11  ;;  %v2614_v41 = vadd.f32 %v298_v39, %v225_v38 }
  0x9b   : > { %v837_v12 = vpop.permute.xlu1 %836 }
  0x9c   : > { %v743_v14 = vpop.permute.xlu0 %742  ;;  %v841_v15 = vsel %vm361_vm1, %v837_v12, %v839_v7 }
  0x9d   : > { %v745_v17 = vsel %vm361_vm1, %v741_v62, %v743_v14  ;;  %862 = vmatpush.bf16.msrb.mxu3 %v841_v15  ;;  %v2625_v50 = vpop.f32.mrf.mxu0 }
  0x9e   : > { %766 = vmatpush.bf16.msrb.mxu2 %v745_v17  ;;  %v1199_v30 = vpop.permute.xlu2 %1198  ;;  %v2268_v17 = vld [vmem:[%s2915_s1 + $0xe8] sm:$0xff] }
  0xa0   : > { %v2627_v51 = vpop.f32.mrf.mxu1 }
  0xa3   : > { %v739_v20 = vpop.permute.xlu1 %738 }
  0xa4   : > { %v737_v21 = vpop.permute.xlu0 %736 }
  0xa5   : > { %1804 = vmatmul.msk.bf16.gmra.mxu2 %vm203_vm0, %v2240_v19  ;;  %v744_v23 = vsel %vm361_vm1, %v737_v21, %v739_v20  ;;  %v230_v58 = vpop.f32.mrf.mxu0 }
  0xa6   : > { %767 = vmatpush.bf16.msrb.mxu2 %v744_v23  ;;  %v1020_v37 = vpop.permute.xlu2 %1019 }
  0xa8   : > { %v303_v59 = vpop.f32.mrf.mxu1 }
  0xa9   : > { %1840 = vmatmul.msk.bf16.gmra.mxu3 %vm203_vm0, %v2244_v22  ;;  %v2635_v60 = vadd.f32 %v303_v59, %v230_v58 }
  0xab   : > { %v1108_v25 = vpop.permute.xlu1 %1107 }
  0xac   : > { %v835_v26 = vpop.permute.xlu0 %834  ;;  %v1113_v27 = vsel %vm1111_vm2, %v1108_v25, %v1110_v24  ;;  %v2273_v25 = vld [vmem:[%s2915_s1 + $0x110] sm:$0xff] }
  0xad   : > { %v840_v29 = vsel %vm361_vm1, %v833_v13, %v835_v26  ;;  %1134 = vmatpush.bf16.msra.mxu2 %v1113_v27  ;;  %v2649_v3 = vpop.f32.mrf.mxu0 }
  0xae   : > { %863 = vmatpush.bf16.msrb.mxu3 %v840_v29  ;;  %v923_v47 = vpop.permute.xlu2 %922 }
  0xb0   : > { %v2651_v5 = vpop.f32.mrf.mxu1 }
  0xb3   : > { %v929_v33 = vpop.permute.xlu1 %928 }
  0xb4   : > { %v927_v34 = vpop.permute.xlu0 %926 }
  0xb5   : > { %1805 = vmatmul.msk.bf16.gmra.mxu2 %vm203_vm0, %v2241_v32  ;;  %v932_v36 = vsel %vm930_vm3, %v927_v34, %v929_v33  ;;  %v235_v10 = vpop.f32.mrf.mxu0  ;;  %v2269_v34 = vld [vmem:[%s2915_s1 + $0xf0] sm:$0xff] }
  0xb6   : > { %953 = vmatpush.bf16.msra.mxu0 %v932_v36  ;;  %v1197_v54 = vpop.permute.xlu2 %1196 }
  0xb8   : > { %v308_v14 = vpop.f32.mrf.mxu1 }
  0xb9   : > { %1841 = vmatmul.msk.bf16.gmra.mxu3 %vm203_vm0, %v2245_v35  ;;  %v2661_v15 = vadd.f32 %v308_v14, %v235_v10  ;;  %v2277_v35 = vld [vmem:[%s2915_s1 + $0x130] sm:$0xff] }
  0xbb   : > { %v1018_v40 = vpop.permute.xlu1 %1017 }
  0xbc   : > { %v1201_v42 = vpop.permute.xlu0 %1200  ;;  %v1022_v43 = vsel %vm930_vm3, %v1018_v40, %v1020_v37 }
  0xbd   : > { %v1203_v44 = vsel %vm1111_vm2, %v1199_v30, %v1201_v42  ;;  %1043 = vmatpush.bf16.msra.mxu1 %v1022_v43  ;;  %v2674_v19 = vpop.f32.mrf.mxu0  ;;  %v2265_v30 = vld [vmem:[%s2915_s1 + $0xd0] sm:$0xff]  ;;  %v2274_v42 = vld [vmem:[%s2915_s1 + $0x118] sm:$0xff] }
  0xbe   : > { %1224 = vmatpush.bf16.msra.mxu3 %v1203_v44  ;;  %v1469_v4 = vpop.permute.xlu2 %1468 }
  0xc0   : > { %v2676_v22 = vpop.f32.mrf.mxu1 }
  0xc3   : > { %v1106_v46 = vpop.permute.xlu1 %1105 }
  0xc4   : > { %v1104_v48 = vpop.permute.xlu0 %1103 }
  0xc5   : > { %1806 = vmatmul.msk.bf16.gmra.mxu2 %vm203_vm0, %v2242_v45  ;;  %v1112_v52 = vsel %vm1111_vm2, %v1104_v48, %v1106_v46  ;;  %v240_v26 = vpop.f32.mrf.mxu0  ;;  %v2266_v48 = vld [vmem:[%s2915_s1 + $0xd8] sm:$0xff] }
  0xc6   : > { %1135 = vmatpush.bf16.msra.mxu2 %v1112_v52  ;;  %v1291_v11 = vpop.permute.xlu2 %1290  ;;  %v2278_v52 = vld [vmem:[%s2915_s1 + $0x138] sm:$0xff] }
  0xc8   : > { %v313_v29 = vpop.f32.mrf.mxu1 }
  0xc9   : > { %1842 = vmatmul.msk.bf16.gmra.mxu3 %vm203_vm0, %v2246_v49  ;;  %v2688_v31 = vadd.f32 %v313_v29, %v240_v26  ;;  %v2270_v49 = vld [vmem:[%s2915_s1 + $0xf8] sm:$0xff] }
  0xcb   : > { %v1195_v53 = vpop.permute.xlu1 %1194 }
  0xcc   : > { %v925_v55 = vpop.permute.xlu0 %924  ;;  %v1202_v6 = vsel %vm1111_vm2, %v1195_v53, %v1197_v54 }
  0xcd   : > { %v931_v56 = vsel %vm930_vm3, %v923_v47, %v925_v55  ;;  %1225 = vmatpush.bf16.msra.mxu3 %v1202_v6  ;;  %v2698_v37 = vpop.f32.mrf.mxu0  ;;  %v2287_v55 = vld [vmem:[%s2915_s1 + $0x180] sm:$0xff] }
  0xce   : > { %954 = vmatpush.bf16.msra.mxu0 %v931_v56  ;;  %v1379_v21 = vpop.permute.xlu2 %1378 }
  0xd0   : > { %v2702_v39 = vpop.f32.mrf.mxu1 }
  0xd1   : > { %2019 = vmatmul.msk.bf16.vlgmr.msra.gmra.mxu0 %vm203_vm0, %v2271_v57  ;;  %v2279_v57 = vld [vmem:[%s2915_s1 + $0x140] sm:$0xff] }
  0xd3   : > { %v1016_v62 = vpop.permute.xlu1 %1015 }
  0xd4   : > { %v1014_v63 = vpop.permute.xlu0 %1013 }
  0xd5   : > { %1955 = vmatmul.msk.bf16.vlgmr.msrb.gmra.mxu2 %vm203_vm0, %v2263_v61  ;;  %v1021_v1 = vsel %vm930_vm3, %v1014_v63, %v1016_v62  ;;  %v578_v47 = vpop.f32.mrf.mxu0  ;;  %v2283_v61 = vld [vmem:[%s2915_s1 + $0x160] sm:$0xff] }
  0xd6   : > { %1044 = vmatpush.bf16.msra.mxu1 %v1021_v1  ;;  %v1467_v28 = vpop.permute.xlu2 %1466  ;;  %v2291_v62 = vld [vmem:[%s2915_s1 + $0x1a0] sm:$0xff] }
  0xd8   : > { %v673_v53 = vpop.f32.mrf.mxu1 }
  0xd9   : > { %1991 = vmatmul.msk.bf16.vlgmr.msrb.gmra.mxu3 %vm203_vm0, %v2267_v0  ;;  %2047 = vmatmul.msk.bf16.vlgmr.msra.gmra.mxu1 %vm203_vm0, %v2275_v2 }
  0xdb   : > { %v1289_v7 = vpop.permute.xlu1 %1288 }
  0xdc   : > { %v1471_v8 = vpop.permute.xlu0 %1470  ;;  %v1293_v13 = vsel %vm930_vm3, %v1289_v7, %v1291_v11 }
  0xdd   : > { %v1473_v12 = vsel %vm1111_vm2, %v1469_v4, %v1471_v8  ;;  %1314 = vmatpush.bf16.msrb.mxu0 %v1293_v13  ;;  %v580_v54 = vpop.f32.mrf.mxu0  ;;  %v2288_v8 = vld [vmem:[%s2915_s1 + $0x188] sm:$0xff] }
  0xde   : > { %1494 = vmatpush.bf16.msrb.mxu2 %v1473_v12  ;;  %v1555_v38 = vpop.permute.xlu2 %1554  ;;  %v2280_v13 = vld [vmem:[%s2915_s1 + $0x148] sm:$0xff] }
  0xe0   : > { %v675_v56 = vpop.f32.mrf.mxu1 }
  0xe1   : > { %2020 = vmatmul.msk.bf16.gmra.mxu0 %vm203_vm0, %v2272_v9 }
  0xe3   : > { %v1561_v20 = vpop.permute.xlu1 %1560 }
  0xe4   : > { %v1559_v23 = vpop.permute.xlu0 %1558 }
  0xe5   : > { %1956 = vmatmul.msk.bf16.gmra.mxu2 %vm203_vm0, %v2264_v16  ;;  %v1563_v24 = vsel %vm1111_vm2, %v1559_v23, %v1561_v20  ;;  %v583_v59 = vpop.f32.mrf.mxu0  ;;  %v2284_v20 = vld [vmem:[%s2915_s1 + $0x168] sm:$0xff] }
  0xe6   : > { %1584 = vmatpush.bf16.msrb.mxu3 %v1563_v24  ;;  %v1377_v45 = vpop.permute.xlu2 %1376 }
  0xe8   : > { %v678_v2 = vpop.f32.mrf.mxu1 }
  0xe9   : > { %1992 = vmatmul.msk.bf16.gmra.mxu3 %vm203_vm0, %v2268_v17  ;;  %2048 = vmatmul.msk.bf16.gmra.mxu1 %vm203_vm0, %v2276_v18 }
  0xeb   : > { %v1465_v27 = vpop.permute.xlu1 %1464 }
  0xec   : > { %v1381_v32 = vpop.permute.xlu0 %1380  ;;  %v1472_v58 = vsel %vm1111_vm2, %v1465_v27, %v1467_v28  ;;  %v2289_v28 = vld [vmem:[%s2915_s1 + $0x190] sm:$0xff] }
  0xed   : > { %v1383_v33 = vsel %vm930_vm3, %v1379_v21, %v1381_v32  ;;  %1495 = vmatpush.bf16.msrb.mxu2 %v1472_v58  ;;  %v585_v9 = vpop.f32.mrf.mxu0 }
  0xee   : > { %1404 = vmatpush.bf16.msrb.mxu1 %v1383_v33  ;;  %v306_v33 = vadd.f32 %v2651_v5, %v2649_v3  ;;  %v2293_v3 = vld [vmem:[%s2915_s1 + $0x1b0] sm:$0xff] }
  0xf0   : > { %v680_v17 = vpop.f32.mrf.mxu1 }
  0xf1   : > { %2021 = vmatmul.msk.bf16.gmra.mxu0 %vm203_vm0, %v2273_v25 }
  0xf3   : > { %v1287_v36 = vpop.permute.xlu1 %1286 }
  0xf4   : > { %v1285_v40 = vpop.permute.xlu0 %1284 }
  0xf5   : > { %1957 = vmatmul.msk.bf16.gmra.mxu2 %vm203_vm0, %v2265_v30  ;;  %v1292_v43 = vsel %vm930_vm3, %v1285_v40, %v1287_v36  ;;  %v588_v23 = vpop.f32.mrf.mxu0 }
  0xf6   : > { %1315 = vmatpush.bf16.msrb.mxu0 %v1292_v43 }
  0xf8   : > { %v683_v29 = vpop.f32.mrf.mxu1 }
  0xf9   : > { %1993 = vmatmul.msk.bf16.gmra.mxu3 %vm203_vm0, %v2269_v34  ;;  %2049 = vmatmul.msk.bf16.gmra.mxu1 %vm203_vm0, %v2277_v35 }
  0xfb   : > { %v1375_v44 = vpop.permute.xlu1 %1374 }
  0xfc   : > { %v1382_v46 = vsel %vm930_vm3, %v1375_v44, %v1377_v45  ;;  %v1557_v1 = vpop.permute.xlu0 %1556 }
  0xfd   : > { %1405 = vmatpush.bf16.msrb.mxu1 %v1382_v46  ;;  %v1562_v4 = vsel %vm1111_vm2, %v1555_v38, %v1557_v1  ;;  %v590_v35 = vpop.f32.mrf.mxu0 }
  0xfe   : > { %1585 = vmatpush.bf16.msrb.mxu3 %v1562_v4 }
 0x100   : > { %v685_v44 = vpop.f32.mrf.mxu1 }
 0x101   : > { %2022 = vmatmul.msk.bf16.gmra.mxu0 %vm203_vm0, %v2274_v42  ;;  %v2285_v42 = vld [vmem:[%s2915_s1 + $0x170] sm:$0xff] }
 0x105   : > { %1958 = vmatmul.msk.bf16.gmra.mxu2 %vm203_vm0, %v2266_v48  ;;  %v593_v48 = vpop.f32.mrf.mxu0 }
 0x109   : > { %1994 = vmatmul.msk.bf16.gmra.mxu3 %vm203_vm0, %v2270_v49  ;;  %2050 = vmatmul.msk.bf16.gmra.mxu1 %vm203_vm0, %v2278_v52  ;;  %v2290_v52 = vld [vmem:[%s2915_s1 + $0x198] sm:$0xff] }
 0x111   : > { %2131 = vmatmul.msk.bf16.vlgmr.msrb.gmra.mxu0 %vm203_vm0, %v2287_v55  ;;  %v311_v55 = vadd.f32 %v2676_v22, %v2674_v19  ;;  %v2294_v19 = vld [vmem:[%s2915_s1 + $0x1b8] sm:$0xff]  ;;  %v595_v22 = vpop.f32.mrf.mxu0 }
 0x115   : > { %2075 = vmatmul.msk.bf16.vlgmr.msra.gmra.mxu2 %vm203_vm0, %v2279_v57  ;;  %v688_v57 = vpop.f32.mrf.mxu1 }
 0x118   : > { %v387_v63 = vpop.f32.mrf.mxu2 }
 0x119   : > { %v407_v0 = vadd.f32 %v387_v63, %v2614_v41  ;;  %2103 = vmatmul.msk.bf16.vlgmr.msra.gmra.mxu3 %vm203_vm0, %v2283_v61  ;;  %2159 = vmatmul.msk.bf16.vlgmr.msrb.gmra.mxu1 %vm203_vm0, %v2291_v62  ;;  %v301_v41 = vadd.f32 %v2627_v51, %v2625_v50  ;;  %v2292_v50 = vld [vmem:[%s2915_s1 + $0x1a8] sm:$0xff]  ;;  %v2286_v62 = vld [vmem:[%s2915_s1 + $0x178] sm:$0xff] }
 0x11c   : > { %v483_v6 = vpop.f32.mrf.mxu3 }
 0x11d   : > { %v503_v7 = vadd.f32 %v483_v6, %v407_v0  ;;  %v690_v6 = vpop.f32.mrf.mxu1 }
 0x11f   : > { %v598_v10 = vadd.f32 %v578_v47, %v503_v7 }
 0x120   : > { %v389_v11 = vpop.f32.mrf.mxu2 }
 0x121   : > { %v2746_v12 = vadd.f32 %v673_v53, %v598_v10  ;;  %2132 = vmatmul.msk.bf16.gmra.mxu0 %vm203_vm0, %v2288_v8  ;;  %v408_v14 = vadd.f32 %v389_v11, %v301_v41  ;;  %v316_v11 = vadd.f32 %v2702_v39, %v2698_v37 }
 0x124   : > { %v485_v16 = vpop.f32.mrf.mxu3 }
 0x125   : > { %v504_v18 = vadd.f32 %v485_v16, %v408_v14  ;;  %2076 = vmatmul.msk.bf16.gmra.mxu2 %vm203_vm0, %v2280_v13 }
 0x127   : > { %v599_v51 = vadd.f32 %v580_v54, %v504_v18 }
 0x128   : > { %v392_v21 = vpop.f32.mrf.mxu2 }
 0x129   : > { %v409_v24 = vadd.f32 %v392_v21, %v2635_v60  ;;  %v2760_v25 = vadd.f32 %v675_v56, %v599_v51  ;;  %2104 = vmatmul.msk.bf16.gmra.mxu3 %vm203_vm0, %v2284_v20  ;;  %2160 = vmatmul.msk.bf16.gmra.mxu1 %vm203_vm0, %v2292_v50  ;;  %v2281_v60 = vld [vmem:[%s2915_s1 + $0x150] sm:$0xff] }
 0x12c   : > { %v488_v26 = vpop.f32.mrf.mxu3 }
 0x12d   : > { %v505_v27 = vadd.f32 %v488_v26, %v409_v24 }
 0x12f   : > { %v600_v30 = vadd.f32 %v583_v59, %v505_v27 }
 0x130   : > { %v394_v32 = vpop.f32.mrf.mxu2 }
 0x131   : > { %v2769_v34 = vadd.f32 %v678_v2, %v600_v30  ;;  %2133 = vmatmul.msk.bf16.gmra.mxu0 %vm203_vm0, %v2289_v28  ;;  %v410_v36 = vadd.f32 %v394_v32, %v306_v33  ;;  %v2296_v30 = vld [vmem:[%s2915_s1 + $0x1c8] sm:$0xff] }
 0x134   : > { %v490_v38 = vpop.f32.mrf.mxu3 }
 0x135   : > { %v506_v40 = vadd.f32 %v490_v38, %v410_v36  ;;  %2077 = vmatmul.msk.bf16.gmra.mxu2 %vm203_vm0, %v2281_v60  ;;  %v2300_v60 = vld [vmem:[%s2915_s1 + $0x1e8] sm:$0xff] }
 0x137   : > { %v601_v5 = vadd.f32 %v585_v9, %v506_v40 }
 0x138   : > { %v397_v43 = vpop.f32.mrf.mxu2 }
 0x139   : > { %v2782_v45 = vadd.f32 %v680_v17, %v601_v5  ;;  %v411_v46 = vadd.f32 %v397_v43, %v2661_v15  ;;  %2105 = vmatmul.msk.bf16.gmra.mxu3 %vm203_vm0, %v2285_v42  ;;  %2161 = vmatmul.msk.bf16.gmra.mxu1 %vm203_vm0, %v2293_v3  ;;  %v2282_v15 = vld [vmem:[%s2915_s1 + $0x158] sm:$0xff]  ;;  %v2299_v17 = vld [vmem:[%s2915_s1 + $0x1e0] sm:$0xff] }
 0x13c   : > { %v493_v47 = vpop.f32.mrf.mxu3 }
 0x13d   : > { %v507_v49 = vadd.f32 %v493_v47, %v411_v46  ;;  %v2297_v47 = vld [vmem:[%s2915_s1 + $0x1d0] sm:$0xff] }
 0x13f   : > { %v602_v53 = vadd.f32 %v588_v23, %v507_v49 }
 0x140   : > { %v399_v54 = vpop.f32.mrf.mxu2 }
 0x141   : > { %v2792_v56 = vadd.f32 %v683_v29, %v602_v53  ;;  %2134 = vmatmul.msk.bf16.gmra.mxu0 %vm203_vm0, %v2290_v52  ;;  %v412_v58 = vadd.f32 %v399_v54, %v311_v55 }
 0x144   : > { %v495_v59 = vpop.f32.mrf.mxu3 }
 0x145   : > { %v508_v61 = vadd.f32 %v495_v59, %v412_v58  ;;  %2078 = vmatmul.msk.bf16.gmra.mxu2 %vm203_vm0, %v2282_v15 }
 0x147   : > { %v603_v63 = vadd.f32 %v590_v35, %v508_v61 }
 0x148   : > { %v402_v0 = vpop.f32.mrf.mxu2 }
 0x149   : > { %v413_v1 = vadd.f32 %v402_v0, %v2688_v31  ;;  %v2806_v2 = vadd.f32 %v685_v44, %v603_v63  ;;  %2106 = vmatmul.msk.bf16.gmra.mxu3 %vm203_vm0, %v2286_v62  ;;  %2162 = vmatmul.msk.bf16.gmra.mxu1 %vm203_vm0, %v2294_v19  ;;  %v2295_v31 = vld [vmem:[%s2915_s1 + $0x1c0] sm:$0xff]  ;;  %v2298_v62 = vld [vmem:[%s2915_s1 + $0x1d8] sm:$0xff] }
 0x14a   : > { %v2302_v0 = vld [vmem:[%s2915_s1 + $0x1f8] sm:$0xff] }
 0x14c   : > { %v498_v4 = vpop.f32.mrf.mxu3 }
 0x14d   : > { %v509_v7 = vadd.f32 %v498_v4, %v413_v1 }
 0x14e   : > { %v956_v10 = vpop.f32.mrf.mxu0 }
 0x14f   : > { %v604_v8 = vadd.f32 %v593_v48, %v509_v7 }
 0x150   : > { %v404_v9 = vpop.f32.mrf.mxu2 }
 0x151   : > { %v2812_v41 = vadd.f32 %v688_v57, %v604_v8  ;;  %v414_v13 = vadd.f32 %v404_v9, %v316_v11 }
 0x154   : > { %v500_v14 = vpop.f32.mrf.mxu3 }
 0x155   : > { %v510_v16 = vadd.f32 %v500_v14, %v414_v13  ;;  %2187 = vmatmul.msk.bf16.vlgmr.msrb.gmra.mxu2 %vm203_vm0, %v2295_v31 }
 0x156   : > { %v1046_v18 = vpop.f32.mrf.mxu1  ;;  %v2823_v39 = vpop.f32.mrf.mxu0 }
 0x157   : > { %v605_v20 = vadd.f32 %v595_v22, %v510_v16 }
 0x158   : > { %v769_v50 = vpop.f32.mrf.mxu2 }
 0x159   : > { %v700_v51 = vadd.f32 %v690_v6, %v605_v20  ;;  %v789_v37 = vadd.f32 %v769_v50, %v2746_v12  ;;  %2215 = vmatmul.msk.bf16.vlgmr.msrb.gmra.mxu3 %vm203_vm0, %v2299_v17 }
 0x15c   : > { %v865_v21 = vpop.f32.mrf.mxu3 }
 0x15d   : > { %v885_v23 = vadd.f32 %v865_v21, %v789_v37 }
 0x15e   : > { %v2825_v24 = vpop.f32.mrf.mxu1  ;;  %v961_v33 = vpop.f32.mrf.mxu0 }
 0x15f   : > { %v976_v26 = vadd.f32 %v956_v10, %v885_v23 }
 0x160   : > { %v771_v27 = vpop.f32.mrf.mxu2 }
 0x161   : > { %v790_v28 = vadd.f32 %v771_v27, %v2760_v25  ;;  %v1066_v29 = vadd.f32 %v1046_v18, %v976_v26 }
 0x164   : > { %v867_v32 = vpop.f32.mrf.mxu3 }
 0x165   : > { %v2831_v12 = vadd.f32 %v867_v32, %v790_v28  ;;  %2188 = vmatmul.msk.bf16.gmra.mxu2 %vm203_vm0, %v2296_v30 }
 0x166   : > { %v1051_v35 = vpop.f32.mrf.mxu1  ;;  %v2839_v42 = vpop.f32.mrf.mxu0 }
 0x168   : > { %v774_v36 = vpop.f32.mrf.mxu2 }
 0x169   : > { %v791_v38 = vadd.f32 %v774_v36, %v2769_v34  ;;  %2216 = vmatmul.msk.bf16.gmra.mxu3 %vm203_vm0, %v2300_v60  ;;  %v2301_v34 = vld [vmem:[%s2915_s1 + $0x1f0] sm:$0xff] }
 0x16c   : > { %v870_v25 = vpop.f32.mrf.mxu3 }
 0x16d   : > { %v887_v40 = vadd.f32 %v870_v25, %v791_v38 }
 0x16e   : > { %v2841_v43 = vpop.f32.mrf.mxu1  ;;  %v966_v53 = vpop.f32.mrf.mxu0 }
 0x16f   : > { %v978_v3 = vadd.f32 %v961_v33, %v887_v40 }
 0x170   : > { %v776_v5 = vpop.f32.mrf.mxu2 }
 0x171   : > { %v792_v44 = vadd.f32 %v776_v5, %v2782_v45  ;;  %v1068_v46 = vadd.f32 %v1051_v35, %v978_v3 }
 0x174   : > { %v872_v48 = vpop.f32.mrf.mxu3 }
 0x175   : > { %v2847_v49 = vadd.f32 %v872_v48, %v792_v44  ;;  %2189 = vmatmul.msk.bf16.gmra.mxu2 %vm203_vm0, %v2297_v47  ;;  %v977_v48 = vadd.f32 %v2823_v39, %v2831_v12 }
 0x176   : > { %v1056_v45 = vpop.f32.mrf.mxu1  ;;  %v2859_v19 = vpop.f32.mrf.mxu0 }
 0x178   : > { %v779_v52 = vpop.f32.mrf.mxu2 }
 0x179   : > { %v793_v54 = vadd.f32 %v779_v52, %v2792_v56  ;;  %2217 = vmatmul.msk.bf16.gmra.mxu3 %vm203_vm0, %v2301_v34 }
 0x17c   : > { %v875_v55 = vpop.f32.mrf.mxu3 }
 0x17d   : > { %v889_v15 = vadd.f32 %v875_v55, %v793_v54 }
 0x17e   : > { %v2861_v63 = vpop.f32.mrf.mxu1  ;;  %v971_v6 = vpop.f32.mrf.mxu0 }
 0x17f   : > { %v980_v57 = vadd.f32 %v966_v53, %v889_v15  ;;  %v1067_v53 = vadd.f32 %v2825_v24, %v977_v48 }
 0x180   : > { %v781_v58 = vpop.f32.mrf.mxu2 }
 0x181   : > { %v794_v59 = vadd.f32 %v781_v58, %v2806_v2  ;;  %v1070_v61 = vadd.f32 %v1056_v45, %v980_v57 }
 0x184   : > { %v877_v22 = vpop.f32.mrf.mxu3 }
 0x185   : > { %v2863_v56 = vadd.f32 %v877_v22, %v794_v59  ;;  %2190 = vmatmul.msk.bf16.gmra.mxu2 %vm203_vm0, %v2298_v62 }
 0x186   : > { %v1061_v8 = vpop.f32.mrf.mxu1  ;;  %v2873_v33 = vpop.f32.mrf.mxu0 }
 0x188   : > { %v784_v1 = vpop.f32.mrf.mxu2 }
 0x189   : > { %v795_v2 = vadd.f32 %v784_v1, %v2812_v41  ;;  %2218 = vmatmul.msk.bf16.gmra.mxu3 %vm203_vm0, %v2302_v0  ;;  %v979_v0 = vadd.f32 %v2839_v42, %v2847_v49 }
 0x18c   : > { %v880_v4 = vpop.f32.mrf.mxu3 }
 0x18d   : > { %v891_v7 = vadd.f32 %v880_v4, %v795_v2 }
 0x18e   : > { %v2877_v35 = vpop.f32.mrf.mxu1  ;;  %v1317_v36 = vpop.f32.mrf.mxu0 }
 0x18f   : > { %v982_v9 = vadd.f32 %v971_v6, %v891_v7  ;;  %v1069_v6 = vadd.f32 %v2841_v43, %v979_v0 }
 0x190   : > { %v786_v10 = vpop.f32.mrf.mxu2 }
 0x191   : > { %v796_v11 = vadd.f32 %v786_v10, %v700_v51  ;;  %v1072_v31 = vadd.f32 %v1061_v8, %v982_v9 }
 0x194   : > { %v882_v13 = vpop.f32.mrf.mxu3 }
 0x195   : > { %v2871_v14 = vadd.f32 %v882_v13, %v796_v11 }
 0x196   : > { %v1407_v25 = vpop.f32.mrf.mxu1 }
 0x198   : > { %v1137_v16 = vpop.f32.mrf.mxu2 }
 0x199   : > { %v1157_v17 = vadd.f32 %v1137_v16, %v1066_v29 }
 0x19c   : > { %v1227_v18 = vpop.f32.mrf.mxu3 }
 0x19d   : > { %v1247_v20 = vadd.f32 %v1227_v18, %v1157_v17 }
 0x19e   : > { %v1409_v34 = vpop.f32.mrf.mxu1 }
 0x19f   : > { %v1337_v57 = vadd.f32 %v1317_v36, %v1247_v20 }
 0x1a0   : > { %v1139_v50 = vpop.f32.mrf.mxu2 }
 0x1a1   : > { %v1158_v54 = vadd.f32 %v1139_v50, %v1067_v53  ;;  %v1427_v62 = vadd.f32 %v1407_v25, %v1337_v57 }
 0x1a4   : > { %v1229_v37 = vpop.f32.mrf.mxu3 }
 0x1a5   : > { %v1248_v15 = vadd.f32 %v1229_v37, %v1158_v54  ;;  %v981_v37 = vadd.f32 %v2859_v19, %v2863_v56 }
 0x1a6   : > { %v1412_v58 = vpop.f32.mrf.mxu1 }
 0x1a8   : > { %v1142_v41 = vpop.f32.mrf.mxu2 }
 0x1a9   : > { %v1159_v21 = vadd.f32 %v1142_v41, %v1068_v46  ;;  %v1319_v46 = vpop.f32.mrf.mxu0 }
 0x1ac   : > { %v1232_v23 = vpop.f32.mrf.mxu3 }
 0x1ad   : > { %v1249_v26 = vadd.f32 %v1232_v23, %v1159_v21 }
 0x1ae   : > { %v1414_v8 = vpop.f32.mrf.mxu1 }
 0x1b0   : > { %v1144_v27 = vpop.f32.mrf.mxu2 }
 0x1b1   : > { %v1322_v45 = vpop.f32.mrf.mxu0  ;;  %v1160_v9 = vadd.f32 %v1144_v27, %v1069_v6 }
 0x1b2   : > { %v1339_v13 = vadd.f32 %v1322_v45, %v1249_v26 }
 0x1b4   : > { %v1234_v28 = vpop.f32.mrf.mxu3  ;;  %v1429_v18 = vadd.f32 %v1412_v58, %v1339_v13 }
 0x1b5   : > { %v1250_v49 = vadd.f32 %v1234_v28, %v1160_v9  ;;  %v1071_v28 = vadd.f32 %v2861_v63, %v981_v37  ;;  %v983_v63 = vadd.f32 %v2873_v33, %v2871_v14 }
 0x1b6   : > { %v1417_v20 = vpop.f32.mrf.mxu1 }
 0x1b7   : > { %v1073_v58 = vadd.f32 %v2877_v35, %v983_v63 }
 0x1b8   : > { %v1147_v30 = vpop.f32.mrf.mxu2 }
 0x1b9   : > { %v1161_v32 = vadd.f32 %v1147_v30, %v1070_v61  ;;  %v1338_v61 = vadd.f32 %v1319_v46, %v1248_v15  ;;  %v1324_v1 = vpop.f32.mrf.mxu0 }
 0x1ba   : > { %v1340_v43 = vadd.f32 %v1324_v1, %v1250_v49 }
 0x1bb   : > { %v1428_v39 = vadd.f32 %v1409_v34, %v1338_v61 }
 0x1bc   : > { %v1237_v51 = vpop.f32.mrf.mxu3  ;;  %v1430_v41 = vadd.f32 %v1414_v8, %v1340_v43 }
 0x1bd   : > { %v2875_v60 = vadd.f32 %v1237_v51, %v1161_v32 }
 0x1be   : > { %v1419_v46 = vpop.f32.mrf.mxu1 }
 0x1c0   : > { %v1149_v29 = vpop.f32.mrf.mxu2 }
 0x1c1   : > { %v1327_v16 = vpop.f32.mrf.mxu0  ;;  %v1162_v51 = vadd.f32 %v1149_v29, %v1071_v28 }
 0x1c2   : > { %v1341_v48 = vadd.f32 %v1327_v16, %v2875_v60 }
 0x1c4   : > { %v1239_v38 = vpop.f32.mrf.mxu3  ;;  %v1431_v34 = vadd.f32 %v1417_v20, %v1341_v48 }
 0x1c6   : > { %v1422_v57 = vpop.f32.mrf.mxu1 }
 0x1c8   : > { %v1152_v40 = vpop.f32.mrf.mxu2 }
 0x1c9   : > { %v1163_v3 = vadd.f32 %v1152_v40, %v1072_v31  ;;  %v1329_v26 = vpop.f32.mrf.mxu0 }
 0x1cc   : > { %v1242_v5 = vpop.f32.mrf.mxu3 }
 0x1cd   : > { %v2879_v44 = vadd.f32 %v1242_v5, %v1163_v3  ;;  %v1252_v3 = vadd.f32 %v1239_v38, %v1162_v51 }
 0x1cf   : > { %v1342_v56 = vadd.f32 %v1329_v26, %v1252_v3 }
 0x1d0   : > { %v2881_v47 = vpop.f32.mrf.mxu2 }
 0x1d1   : > { %v1332_v53 = vpop.f32.mrf.mxu0  ;;  %v1432_v45 = vadd.f32 %v1419_v46, %v1342_v56  ;;  %v1164_v60 = vadd.f32 %v2881_v47, %v1073_v58 }
 0x1d2   : > { %v1343_v14 = vadd.f32 %v1332_v53, %v2879_v44 }
 0x1d4   : > { %v2885_v52 = vpop.f32.mrf.mxu3 }
 0x1d5   : > { %v1254_v0 = vadd.f32 %v2885_v52, %v1164_v60 }
 0x1d8   : > { %v1497_v55 = vpop.f32.mrf.mxu2 }
 0x1d9   : > { %v1517_v12 = vadd.f32 %v1497_v55, %v1427_v62 }
 0x1dc   : > { %v1587_v59 = vpop.f32.mrf.mxu3 }
 0x1dd   : > { %v1607_v2 = vadd.f32 %v1587_v59, %v1517_v12  ;;  %v1334_v12 = vpop.f32.mrf.mxu0 }
 0x1de   : > { %v1344_v1 = vadd.f32 %v1334_v12, %v1254_v0 }
 0x1df   : > { %v1615_v10 = vmax.f32 %v1607_v2, 0.0  ;;  %v1424_v2 = vpop.f32.mrf.mxu1 }
 0x1e0   : > { %v1499_v22 = vpop.f32.mrf.mxu2  ;;  %v1434_v35 = vadd.f32 %v1424_v2, %v1344_v1 }
 0x1e1   : > { %v1518_v4 = vadd.f32 %v1499_v22, %v1428_v39 }
 0x1e4   : > { %v1589_v24 = vpop.f32.mrf.mxu3 }
 0x1e5   : > { %v1608_v7 = vadd.f32 %v1589_v24, %v1518_v4  ;;  %v1433_v4 = vadd.f32 %v1422_v57, %v1343_v14 }
 0x1e7   : > { %v1616_v11 = vmax.f32 %v1608_v7, 0.0 }
 0x1e8   : > { %v1502_v42 = vpop.f32.mrf.mxu2 }
 0x1e9   : > { %v2306_v31 = vpack.c.bf16 %v1616_v11, %v1615_v10  ;;  %v1519_v21 = vadd.f32 %v1502_v42, %v1429_v18 }
 0x1eb   : > { %2307 = vst [vmem:[%s2895_s19] sm:$0xff] %v2306_v31  }
 0x1ec   : > { %v1592_v17 = vpop.f32.mrf.mxu3 }
 0x1ed   : > { %v1609_v23 = vadd.f32 %v1592_v17, %v1519_v21 }
 0x1ef   : > { %v1617_v36 = vmax.f32 %v1609_v23, 0.0 }
 0x1f0   : > { %v1504_v50 = vpop.f32.mrf.mxu2 }
 0x1f1   : > { %v1520_v27 = vadd.f32 %v1504_v50, %v1430_v41 }
 0x1f4   : > { %v1594_v30 = vpop.f32.mrf.mxu3 }
 0x1f5   : > { %v1610_v32 = vadd.f32 %v1594_v30, %v1520_v27 }
 0x1f7   : > { %v1618_v25 = vmax.f32 %v1610_v32, 0.0 }
 0x1f8   : > { %v1507_v40 = vpop.f32.mrf.mxu2 }
 0x1f9   : > { %v2311_v5 = vpack.c.bf16 %v1618_v25, %v1617_v36  ;;  %v1521_v29 = vadd.f32 %v1507_v40, %v1431_v34 }
 0x1fb   : > { %2323 = vst [vmem:[%s2895_s19 + $0x8] sm:$0xff] %v2311_v5  }
 0x1fc   : > { %v1597_v19 = vpop.f32.mrf.mxu3 }
 0x1fd   : > { %v1611_v55 = vadd.f32 %v1597_v19, %v1521_v29 }
 0x1ff   : > { %v1619_v61 = vmax.f32 %v1611_v55, 0.0 }
 0x200   : > { %v1509_v54 = vpop.f32.mrf.mxu2 }
 0x201   : > { %v1522_v15 = vadd.f32 %v1509_v54, %v1432_v45 }
 0x204   : > { %v1599_v38 = vpop.f32.mrf.mxu3 }
 0x205   : > { %v1612_v59 = vadd.f32 %v1599_v38, %v1522_v15 }
 0x207   : > { %v1620_v62 = vmax.f32 %v1612_v59, 0.0 }
 0x208   : > { %v1512_v22 = vpop.f32.mrf.mxu2 }
 0x209   : > { %v2316_v39 = vpack.c.bf16 %v1620_v62, %v1619_v61  ;;  %v1523_v6 = vadd.f32 %v1512_v22, %v1433_v4 }
 0x20b   : > { %2324 = vst [vmem:[%s2895_s19 + $0x10] sm:$0xff] %v2316_v39  }
 0x20c   : > { %v1602_v33 = vpop.f32.mrf.mxu3 }
 0x20d   : > { %v1613_v7 = vadd.f32 %v1602_v33, %v1523_v6 }
 0x20f   : > { %v1621_v10 = vmax.f32 %v1613_v7, 0.0 }
 0x210   : > { %v1514_v24 = vpop.f32.mrf.mxu2 }
 0x211   : > { %v1524_v47 = vadd.f32 %v1514_v24, %v1434_v35 }
 0x214   : > { %v1604_v8 = vpop.f32.mrf.mxu3 }
 0x215   : > { %v1614_v9 = vadd.f32 %v1604_v8, %v1524_v47 }
 0x217   : > { %v1622_v11 = vmax.f32 %v1614_v9, 0.0 }
 0x219   : > { %v2321_v52 = vpack.c.bf16 %v1622_v11, %v1621_v10 }
 0x21b   : > { %2325 = vst [vmem:[%s2895_s19 + $0x18] sm:$0xff] %v2321_v52  }
 0x21c PF: > { %s12_s9 = sadd.s32 1, %s2343_s9  }
 0x21d   : > { %p9_p4 = scmp.ge.s32.totalorder %s12_s9, 4  }
 0x21f   :  { %11 = sbr.rel (!%p9_p4) target bundleno = 1 (0x1), region = 76 }

</bundles_post_ra>
